<compile_context>
chip_gen: v7x
topology: tpu7x:2x2x1
jax: 0.10.0
libtpu: 0.0.40
codegen_flags: <defaults>
</compile_context>

<pallas_src>
import functools

import jax
import jax.numpy as jnp
from jax.experimental import pallas as pl
from jax.experimental.pallas import tpu as pltpu


# ----------------------------- Pallas kernels -----------------------------

def _wx_bias_act_kernel(w_ref, x_ref, b_ref, o_ref, *, act):
    # out = act(W @ X + b);  W: [O, K] bf16, X: [K, N] bf16, b: [O, 1] f32
    acc = jnp.dot(w_ref[...], x_ref[...], preferred_element_type=jnp.float32)
    acc = acc + b_ref[...]
    if act == "relu":
        acc = jnp.maximum(acc, 0.0)
    elif act == "sigmoid":
        acc = jax.nn.sigmoid(acc)
    o_ref[...] = acc.astype(o_ref.dtype)


def wx_bias_act(w, x, b, act="none"):
    """out = act(w @ x + b).  Spatial axis (N) is the last / lane axis so the
    output store is lane-dense even when O is tiny (e.g. final deconv O=1)."""
    O, K = w.shape
    K2, N = x.shape
    assert K == K2
    kernel = functools.partial(_wx_bias_act_kernel, act=act)
    return pl.pallas_call(
        kernel,
        out_shape=jax.ShapeDtypeStruct((O, N), jnp.float32),
        grid=(1,),
        in_specs=[
            pl.BlockSpec((O, K), lambda i: (0, 0)),
            pl.BlockSpec((K, N), lambda i: (0, 0)),
            pl.BlockSpec((O, 1), lambda i: (0, 0)),
        ],
        out_specs=pl.BlockSpec((O, N), lambda i: (0, 0)),
        compiler_params=pltpu.CompilerParams(
            dimension_semantics=("arbitrary",)),
    )(w, x, b)


def _fc_stack_kernel(enc_ref, xf_ref,
                     ew1, eb1, ew2, eb2,
                     dw1, db1, dw2, db2,
                     aw1, ab1, aw2, ab2,
                     lat_ref, dec_ref, aff_ref):
    """All six fully-connected layers fused; activations stay in VMEM."""
    bf16 = jnp.bfloat16

    def dense(a, w_r, b_r, relu):
        y = jnp.dot(a, w_r[...], preferred_element_type=jnp.float32) + b_r[...]
        if relu:
            y = jnp.maximum(y, 0.0)
        return y

    # encoder head
    h = dense(enc_ref[...], ew1, eb1, relu=True)
    lat = dense(h.astype(bf16), ew2, eb2, relu=False)
    lat_ref[...] = lat
    # decoder head
    d = dense(lat.astype(bf16), dw1, db1, relu=True)
    d = dense(d.astype(bf16), dw2, db2, relu=True)
    dec_ref[...] = d
    # affine branch (independent of encoder)
    a = dense(xf_ref[...], aw1, ab1, relu=True)
    aff_ref[...] = dense(a.astype(bf16), aw2, ab2, relu=False)


def fc_stack(enc_flat, x_flat, p):
    B = enc_flat.shape[0]
    latent_dim = p["e_fc2_w"].shape[1]
    dec_dim = p["d_fc2_w"].shape[1]
    aff_dim = p["a_fc2_w"].shape[1]
    args = (enc_flat, x_flat,
            p["e_fc1_w"], p["e_fc1_b"], p["e_fc2_w"], p["e_fc2_b"],
            p["d_fc1_w"], p["d_fc1_b"], p["d_fc2_w"], p["d_fc2_b"],
            p["a_fc1_w"], p["a_fc1_b"], p["a_fc2_w"], p["a_fc2_b"])
    in_specs = [pl.BlockSpec(a.shape, lambda i: (0, 0)) for a in args]
    out_shape = (jax.ShapeDtypeStruct((B, latent_dim), jnp.float32),
                 jax.ShapeDtypeStruct((B, dec_dim), jnp.float32),
                 jax.ShapeDtypeStruct((B, aff_dim), jnp.float32))
    out_specs = (pl.BlockSpec((B, latent_dim), lambda i: (0, 0)),
                 pl.BlockSpec((B, dec_dim), lambda i: (0, 0)),
                 pl.BlockSpec((B, aff_dim), lambda i: (0, 0)))
    return pl.pallas_call(
        _fc_stack_kernel,
        out_shape=out_shape,
        grid=(1,),
        in_specs=in_specs,
        out_specs=out_specs,
        compiler_params=pltpu.CompilerParams(
            dimension_semantics=("arbitrary",),
            vmem_limit_bytes=32 * 1024 * 1024),
    )(*args)


# --------------------------- conv lowering (glue) ---------------------------

def _im2col_T(x, k, stride, pad):
    """x: [B, C, H, W] -> patches [C*k*k, B*OH*OW].
    Row order (c, kh, kw) matches PyTorch weight.reshape(O, C*k*k); the large
    B*OH*OW axis is last so it maps to lanes in the Pallas matmul."""
    B, C, H, W = x.shape
    xp = jnp.pad(x, ((0, 0), (0, 0), (pad, pad), (pad, pad)))
    OH = (H + 2 * pad - k) // stride + 1
    OW = (W + 2 * pad - k) // stride + 1
    pieces = []
    for ki in range(k):
        for kj in range(k):
            pieces.append(
                xp[:, :, ki:ki + stride * OH:stride, kj:kj + stride * OW:stride])
    p = jnp.stack(pieces, axis=0).reshape(k, k, B, C, OH, OW)
    p = jnp.transpose(p, (3, 0, 1, 2, 4, 5))          # [C, k, k, B, OH, OW]
    return p.reshape(C * k * k, B * OH * OW), OH, OW


def conv2d(x, w_mat, b_col, *, k, stride, pad, act):
    """w_mat: [O, C*k*k] bf16 (pre-reshaped at init), b_col: [O, 1] f32."""
    B = x.shape[0]
    O = w_mat.shape[0]
    patches, OH, OW = _im2col_T(x, k, stride, pad)
    y = wx_bias_act(w_mat, patches.astype(jnp.bfloat16), b_col, act=act)
    y = y.reshape(O, B, OH, OW)
    return jnp.transpose(y, (1, 0, 2, 3))             # NCHW


def conv_transpose2d(x, w_mat, b_col, *, k, stride, pad, act):
    """Transposed conv as a direct conv on an interior-zero-padded input.
    lax.pad (interior padding) replaces the zeros+scatter upsample.
    # TODO(synk): a full sub-pixel split would also skip MACs on the interior
    # zeros (~4x fewer FLOPs); not worth the complexity at 28x28 / B=2."""
    ep = k - 1 - pad
    up = jax.lax.pad(x, jnp.asarray(0.0, x.dtype),
                     ((0, 0, 0), (0, 0, 0),
                      (ep, ep, stride - 1), (ep, ep, stride - 1)))
    return conv2d(up, w_mat, b_col, k=k, stride=1, pad=0, act=act)


# ------------------- affine_grid + grid_sample (4-tap gather) -------------------

def apply_affine_transformation(images, affine_params):
    """F.affine_grid + F.grid_sample (align_corners=False, bilinear, zeros
    padding) as a 4-tap bilinear gather: O(B*P) instead of a dense [P, P]
    sampling matrix.  The data-dependent gather itself runs as XLA glue
    (jnp.take_along_axis) on the VPU."""
    B, C, H, W = images.shape
    P = H * W
    theta = affine_params.reshape(-1, 2, 3).astype(jnp.float32)
    xs = (2.0 * jnp.arange(W, dtype=jnp.float32) + 1.0) / W - 1.0
    ys = (2.0 * jnp.arange(H, dtype=jnp.float32) + 1.0) / H - 1.0
    gy, gx = jnp.meshgrid(ys, xs, indexing="ij")
    base = jnp.stack([gx.ravel(), gy.ravel(),
                      jnp.ones((P,), jnp.float32)], axis=0)        # [3, P]
    coords = jnp.einsum("brc,cp->brp", theta, base)                # [B, 2, P]
    ix = ((coords[:, 0] + 1.0) * W - 1.0) / 2.0
    iy = ((coords[:, 1] + 1.0) * H - 1.0) / 2.0
    x0 = jnp.floor(ix)
    y0 = jnp.floor(iy)
    img_flat = images.reshape(B, C, P)
    out = jnp.zeros((B, C, P), jnp.float32)
    for dy in (0, 1):
        for dx in (0, 1):
            xc = x0 + dx
            yc = y0 + dy
            wx = (x0 + 1.0 - ix) if dx == 0 else (ix - x0)
            wy = (y0 + 1.0 - iy) if dy == 0 else (iy - y0)
            w = wx * wy
            valid = ((xc >= 0) & (xc < W) & (yc >= 0) & (yc < H))
            idx = jnp.clip((yc * W + xc).astype(jnp.int32), 0, P - 1)
            tap = jnp.take_along_axis(img_flat, idx[:, None, :], axis=2)
            out = out + (w * valid.astype(jnp.float32))[:, None, :] * tap
    return out.reshape(B, C, H, W)


# ------------------------------- model -------------------------------------

def affine_invariant_autoencoder_forward(params, x):
    B = x.shape[0]
    # encoder convs
    h = conv2d(x, params["e_conv1_w"], params["e_conv1_b"],
               k=4, stride=2, pad=1, act="relu")                    # [B,32,14,14]
    h = conv2d(h, params["e_conv2_w"], params["e_conv2_b"],
               k=4, stride=2, pad=1, act="relu")                    # [B,64,7,7]
    h = conv2d(h, params["e_conv3_w"], params["e_conv3_b"],
               k=3, stride=2, pad=1, act="relu")                    # [B,128,4,4]
    enc_flat = h.reshape(B, -1).astype(jnp.bfloat16)                # [B,2048]
    x_flat = x.reshape(B, -1).astype(jnp.bfloat16)                  # [B,784]

    # fused FC stack: encoder fc1/fc2 + decoder fc1/fc2 + affine net
    latent, dec, affine_params = fc_stack(enc_flat, x_flat, params)

    # decoder transposed convs
    d = dec.reshape(B, 128, 4, 4)
    d = conv_transpose2d(d, params["d_dc1_w"], params["d_dc1_b"],
                         k=3, stride=2, pad=1, act="relu")          # [B,64,7,7]
    d = conv_transpose2d(d, params["d_dc2_w"], params["d_dc2_b"],
                         k=4, stride=2, pad=1, act="relu")          # [B,32,14,14]
    recon = conv_transpose2d(d, params["d_dc3_w"], params["d_dc3_b"],
                             k=4, stride=2, pad=1, act="sigmoid")   # [B,1,28,28]

    transformed = apply_affine_transformation(recon, affine_params)
    return recon, transformed, latent, affine_params


# ------------------------------ parameters ----------------------------------

def init_params(key, latent_dim=64):
    ks = jax.random.split(key, 12)

    def w(k, shape, scale=0.05):
        return scale * jax.random.normal(k, shape, jnp.float32)

    def conv_mat(wt):            # [O, C, k, k] -> [O, C*k*k] bf16
        return wt.reshape(wt.shape[0], -1).astype(jnp.bfloat16)

    def convT_mat(wt):           # [C_in, C_out, k, k] -> equivalent direct conv [C_out, C_in*k*k]
        w_eq = jnp.transpose(wt[:, :, ::-1, ::-1], (1, 0, 2, 3))
        return w_eq.reshape(w_eq.shape[0], -1).astype(jnp.bfloat16)

    def bcol(n):
        return jnp.zeros((n, 1), jnp.float32)

    def brow(n):
        return jnp.zeros((1, n), jnp.float32)

    p = {}
    # encoder convs (matmul layout fixed at init -> no transposes in forward)
    p["e_conv1_w"] = conv_mat(w(ks[0], (32, 1, 4, 4)));    p["e_conv1_b"] = bcol(32)
    p["e_conv2_w"] = conv_mat(w(ks[1], (64, 32, 4, 4)));   p["e_conv2_b"] = bcol(64)
    p["e_conv3_w"] = conv_mat(w(ks[2], (128, 64, 3, 3)));  p["e_conv3_b"] = bcol(128)
    # fc stack (bf16 weights, f32 biases)
    p["e_fc1_w"] = w(ks[3], (128 * 4 * 4, 512)).astype(jnp.bfloat16); p["e_fc1_b"] = brow(512)
    p["e_fc2_w"] = w(ks[4], (512, latent_dim)).astype(jnp.bfloat16);  p["e_fc2_b"] = brow(latent_dim)
    p["d_fc1_w"] = w(ks[5], (latent_dim, 512)).astype(jnp.bfloat16);  p["d_fc1_b"] = brow(512)
    p["d_fc2_w"] = w(ks[6], (512, 128 * 4 * 4)).astype(jnp.bfloat16); p["d_fc2_b"] = brow(128 * 4 * 4)
    # decoder transposed convs (stored as flipped/transposed equivalent-conv matrices)
    p["d_dc1_w"] = convT_mat(w(ks[7], (128, 64, 3, 3)));   p["d_dc1_b"] = bcol(64)
    p["d_dc2_w"] = convT_mat(w(ks[8], (64, 32, 4, 4)));    p["d_dc2_b"] = bcol(32)
    p["d_dc3_w"] = convT_mat(w(ks[9], (32, 1, 4, 4)));     p["d_dc3_b"] = bcol(1)
    # affine net
    # TODO(synk): shared.AffineTransformationNetwork source not provided; using a
    # small MLP (784 -> 128 -> 6) with identity-affine bias init as stand-in.
    p["a_fc1_w"] = w(ks[10], (28 * 28, 128)).astype(jnp.bfloat16);   p["a_fc1_b"] = brow(128)
    p["a_fc2_w"] = w(ks[11], (128, 6), scale=0.01).astype(jnp.bfloat16)
    p["a_fc2_b"] = jnp.array([[1.0, 0.0, 0.0, 0.0, 1.0, 0.0]], jnp.float32)
    return p


# --------------------------------- main --------------------------------------

if __name__ == "__main__":
    root = jax.random.PRNGKey(0)
    k_params, k_x = jax.random.split(root)
    params = init_params(k_params, latent_dim=64)
    x = jax.random.normal(k_x, (2, 1, 28, 28), jnp.float32)

    fwd = jax.jit(affine_invariant_autoencoder_forward)
    recon, transformed, latent, affine_params = fwd(params, x)
    jax.block_until_ready((recon, transformed, latent, affine_params))

    assert recon.shape == (2, 1, 28, 28)
    assert transformed.shape == (2, 1, 28, 28)
    assert latent.shape == (2, 64)
    assert affine_params.shape == (2, 6)
    assert bool(jnp.all(jnp.isfinite(recon)))
    assert bool(jnp.all(jnp.isfinite(transformed)))
    print("KERNEL_OK")
</pallas_src>

<mosaic_0001>
module attributes {stable_mosaic.version = 11 : i64} {
  func.func private @main(%arg0: i32) attributes {dimension_semantics = [#tpu.dimension_semantics<core_parallel>], iteration_bounds = array<i64: 2>, tpu.core_type = #tpu.core_type<sc_scalar_subcore>, window_params = []} {
    return
  }
}

module attributes {stable_mosaic.version = 11 : i64} {
  func.func private @main(%arg0: i32) attributes {dimension_semantics = [#tpu.dimension_semantics<core_parallel>], iteration_bounds = array<i64: 2>, tpu.core_type = #tpu.core_type<sc_scalar_subcore>, window_params = []} {
    return
  }
}

module attributes {stable_mosaic.version = 11 : i64} {
  func.func @_wx_bias_act_kernel(%arg0: i32, %arg1: memref<32x16xbf16, #tpu.memory_space<vmem>>, %arg2: memref<16x392xbf16, #tpu.memory_space<vmem>>, %arg3: memref<32x1xf32, #tpu.memory_space<vmem>>, %arg4: memref<32x392xf32, #tpu.memory_space<vmem>>) attributes {dimension_semantics = [#tpu.dimension_semantics<arbitrary>], iteration_bounds = array<i64: 1>, scalar_prefetch = 0 : i64, scratch_operands = 0 : i64, tpu.core_type = #tpu.core_type<tc>, window_params = [{pipeline_mode = #tpu.pipeline_mode<synchronous>, transform_indices = @transform_0, window_bounds = array<i64: 32, 16>}, {pipeline_mode = #tpu.pipeline_mode<synchronous>, transform_indices = @transform_1, window_bounds = array<i64: 16, 392>}, {pipeline_mode = #tpu.pipeline_mode<synchronous>, transform_indices = @transform_2, window_bounds = array<i64: 32, 1>}, {pipeline_mode = #tpu.pipeline_mode<synchronous>, transform_indices = @transform_3, window_bounds = array<i64: 32, 392>}]} {
    %c0 = arith.constant 0 : index
    %c0_0 = arith.constant 0 : index
    %0 = vector.load %arg1[%c0, %c0_0] : memref<32x16xbf16, #tpu.memory_space<vmem>>, vector<32x16xbf16>
    %c0_1 = arith.constant 0 : index
    %c0_2 = arith.constant 0 : index
    %1 = vector.load %arg2[%c0_1, %c0_2] : memref<16x392xbf16, #tpu.memory_space<vmem>>, vector<16x392xbf16>
    %cst = arith.constant dense<0.000000e+00> : vector<32x392xf32>
    %2 = tpu.matmul %0, %1, %cst {dimension_numbers = #tpu.dot_dimension_numbers<[1], [0], [0], [1], [0, 0, 1, 1], [], []>} : vector<32x16xbf16>, vector<16x392xbf16>, vector<32x392xf32> -> vector<32x392xf32>
    %c0_3 = arith.constant 0 : index
    %c0_4 = arith.constant 0 : index
    %3 = vector.load %arg3[%c0_3, %c0_4] : memref<32x1xf32, #tpu.memory_space<vmem>>, vector<32x1xf32>
    %4 = vector.broadcast %3 : vector<32x1xf32> to vector<32x392xf32>
    %5 = arith.addf %2, %4 : vector<32x392xf32>
    %cst_5 = arith.constant 0.000000e+00 : f32
    %6 = vector.broadcast %cst_5 : f32 to vector<32x392xf32>
    %7 = arith.maximumf %5, %6 : vector<32x392xf32>
    %c0_6 = arith.constant 0 : index
    %c0_7 = arith.constant 0 : index
    %8 = vector.load %arg4[%c0_6, %c0_7] : memref<32x392xf32, #tpu.memory_space<vmem>>, vector<32x392xf32>
    tpu.vector_store %arg4[%c0_6, %c0_7], %7 {strides = array<i32>} : memref<32x392xf32, #tpu.memory_space<vmem>>, vector<32x392xf32>,
    return
  }
  func.func @transform_0(%arg0: i32) -> (i32, i32) {
    %c0_i32 = arith.constant 0 : i32
    %c0_i32_0 = arith.constant 0 : i32
    %c0_i32_1 = arith.constant 0 : i32
    return %c0_i32, %c0_i32_0 : i32, i32
  }
  func.func @transform_1(%arg0: i32) -> (i32, i32) {
    %c0_i32 = arith.constant 0 : i32
    %c0_i32_0 = arith.constant 0 : i32
    %c0_i32_1 = arith.constant 0 : i32
    return %c0_i32, %c0_i32_0 : i32, i32
  }
  func.func @transform_2(%arg0: i32) -> (i32, i32) {
    %c0_i32 = arith.constant 0 : i32
    %c0_i32_0 = arith.constant 0 : i32
    %c0_i32_1 = arith.constant 0 : i32
    return %c0_i32, %c0_i32_0 : i32, i32
  }
  func.func @transform_3(%arg0: i32) -> (i32, i32) {
    %c0_i32 = arith.constant 0 : i32
    %c0_i32_0 = arith.constant 0 : i32
    %c0_i32_1 = arith.constant 0 : i32
    return %c0_i32, %c0_i32_0 : i32, i32
  }
}

module attributes {stable_mosaic.version = 11 : i64} {
  func.func @_wx_bias_act_kernel(%arg0: i32, %arg1: memref<64x512xbf16, #tpu.memory_space<vmem>>, %arg2: memref<512x98xbf16, #tpu.memory_space<vmem>>, %arg3: memref<64x1xf32, #tpu.memory_space<vmem>>, %arg4: memref<64x98xf32, #tpu.memory_space<vmem>>) attributes {dimension_semantics = [#tpu.dimension_semantics<arbitrary>], iteration_bounds = array<i64: 1>, scalar_prefetch = 0 : i64, scratch_operands = 0 : i64, tpu.core_type = #tpu.core_type<tc>, window_params = [{pipeline_mode = #tpu.pipeline_mode<synchronous>, transform_indices = @transform_0, window_bounds = array<i64: 64, 512>}, {pipeline_mode = #tpu.pipeline_mode<synchronous>, transform_indices = @transform_1, window_bounds = array<i64: 512, 98>}, {pipeline_mode = #tpu.pipeline_mode<synchronous>, transform_indices = @transform_2, window_bounds = array<i64: 64, 1>}, {pipeline_mode = #tpu.pipeline_mode<synchronous>, transform_indices = @transform_3, window_bounds = array<i64: 64, 98>}]} {
    %c0 = arith.constant 0 : index
    %c0_0 = arith.constant 0 : index
    %0 = vector.load %arg1[%c0, %c0_0] : memref<64x512xbf16, #tpu.memory_space<vmem>>, vector<64x512xbf16>
    %c0_1 = arith.constant 0 : index
    %c0_2 = arith.constant 0 : index
    %1 = vector.load %arg2[%c0_1, %c0_2] : memref<512x98xbf16, #tpu.memory_space<vmem>>, vector<512x98xbf16>
    %cst = arith.constant dense<0.000000e+00> : vector<64x98xf32>
    %2 = tpu.matmul %0, %1, %cst {dimension_numbers = #tpu.dot_dimension_numbers<[1], [0], [0], [1], [0, 0, 1, 1], [], []>} : vector<64x512xbf16>, vector<512x98xbf16>, vector<64x98xf32> -> vector<64x98xf32>
    %c0_3 = arith.constant 0 : index
    %c0_4 = arith.constant 0 : index
    %3 = vector.load %arg3[%c0_3, %c0_4] : memref<64x1xf32, #tpu.memory_space<vmem>>, vector<64x1xf32>
    %4 = vector.broadcast %3 : vector<64x1xf32> to vector<64x98xf32>
    %5 = arith.addf %2, %4 : vector<64x98xf32>
    %cst_5 = arith.constant 0.000000e+00 : f32
    %6 = vector.broadcast %cst_5 : f32 to vector<64x98xf32>
    %7 = arith.maximumf %5, %6 : vector<64x98xf32>
    %c0_6 = arith.constant 0 : index
    %c0_7 = arith.constant 0 : index
    %8 = vector.load %arg4[%c0_6, %c0_7] : memref<64x98xf32, #tpu.memory_space<vmem>>, vector<64x98xf32>
    tpu.vector_store %arg4[%c0_6, %c0_7], %7 {strides = array<i32>} : memref<64x98xf32, #tpu.memory_space<vmem>>, vector<64x98xf32>,
    return
  }
  func.func @transform_0(%arg0: i32) -> (i32, i32) {
    %c0_i32 = arith.constant 0 : i32
    %c0_i32_0 = arith.constant 0 : i32
    %c0_i32_1 = arith.constant 0 : i32
    return %c0_i32, %c0_i32_0 : i32, i32
  }
  func.func @transform_1(%arg0: i32) -> (i32, i32) {
    %c0_i32 = arith.constant 0 : i32
    %c0_i32_0 = arith.constant 0 : i32
    %c0_i32_1 = arith.constant 0 : i32
    return %c0_i32, %c0_i32_0 : i32, i32
  }
  func.func @transform_2(%arg0: i32) -> (i32, i32) {
    %c0_i32 = arith.constant 0 : i32
    %c0_i32_0 = arith.constant 0 : i32
    %c0_i32_1 = arith.constant 0 : i32
    return %c0_i32, %c0_i32_0 : i32, i32
  }
  func.func @transform_3(%arg0: i32) -> (i32, i32) {
    %c0_i32 = arith.constant 0 : i32
    %c0_i32_0 = arith.constant 0 : i32
    %c0_i32_1 = arith.constant 0 : i32
    return %c0_i32, %c0_i32_0 : i32, i32
  }
}

module attributes {stable_mosaic.version = 11 : i64} {
  func.func @_wx_bias_act_kernel(%arg0: i32, %arg1: memref<128x576xbf16, #tpu.memory_space<vmem>>, %arg2: memref<576x32xbf16, #tpu.memory_space<vmem>>, %arg3: memref<128x1xf32, #tpu.memory_space<vmem>>, %arg4: memref<128x32xf32, #tpu.memory_space<vmem>>) attributes {dimension_semantics = [#tpu.dimension_semantics<arbitrary>], iteration_bounds = array<i64: 1>, scalar_prefetch = 0 : i64, scratch_operands = 0 : i64, tpu.core_type = #tpu.core_type<tc>, window_params = [{pipeline_mode = #tpu.pipeline_mode<synchronous>, transform_indices = @transform_0, window_bounds = array<i64: 128, 576>}, {pipeline_mode = #tpu.pipeline_mode<synchronous>, transform_indices = @transform_1, window_bounds = array<i64: 576, 32>}, {pipeline_mode = #tpu.pipeline_mode<synchronous>, transform_indices = @transform_2, window_bounds = array<i64: 128, 1>}, {pipeline_mode = #tpu.pipeline_mode<synchronous>, transform_indices = @transform_3, window_bounds = array<i64: 128, 32>}]} {
    %c0 = arith.constant 0 : index
    %c0_0 = arith.constant 0 : index
    %0 = vector.load %arg1[%c0, %c0_0] : memref<128x576xbf16, #tpu.memory_space<vmem>>, vector<128x576xbf16>
    %c0_1 = arith.constant 0 : index
    %c0_2 = arith.constant 0 : index
    %1 = vector.load %arg2[%c0_1, %c0_2] : memref<576x32xbf16, #tpu.memory_space<vmem>>, vector<576x32xbf16>
    %cst = arith.constant dense<0.000000e+00> : vector<128x32xf32>
    %2 = tpu.matmul %0, %1, %cst {dimension_numbers = #tpu.dot_dimension_numbers<[1], [0], [0], [1], [0, 0, 1, 1], [], []>} : vector<128x576xbf16>, vector<576x32xbf16>, vector<128x32xf32> -> vector<128x32xf32>
    %c0_3 = arith.constant 0 : index
    %c0_4 = arith.constant 0 : index
    %3 = vector.load %arg3[%c0_3, %c0_4] : memref<128x1xf32, #tpu.memory_space<vmem>>, vector<128x1xf32>
    %4 = vector.broadcast %3 : vector<128x1xf32> to vector<128x32xf32>
    %5 = arith.addf %2, %4 : vector<128x32xf32>
    %cst_5 = arith.constant 0.000000e+00 : f32
    %6 = vector.broadcast %cst_5 : f32 to vector<128x32xf32>
    %7 = arith.maximumf %5, %6 : vector<128x32xf32>
    %c0_6 = arith.constant 0 : index
    %c0_7 = arith.constant 0 : index
    %8 = vector.load %arg4[%c0_6, %c0_7] : memref<128x32xf32, #tpu.memory_space<vmem>>, vector<128x32xf32>
    tpu.vector_store %arg4[%c0_6, %c0_7], %7 {strides = array<i32>} : memref<128x32xf32, #tpu.memory_space<vmem>>, vector<128x32xf32>,
    return
  }
  func.func @transform_0(%arg0: i32) -> (i32, i32) {
    %c0_i32 = arith.constant 0 : i32
    %c0_i32_0 = arith.constant 0 : i32
    %c0_i32_1 = arith.constant 0 : i32
    return %c0_i32, %c0_i32_0 : i32, i32
  }
  func.func @transform_1(%arg0: i32) -> (i32, i32) {
    %c0_i32 = arith.constant 0 : i32
    %c0_i32_0 = arith.constant 0 : i32
    %c0_i32_1 = arith.constant 0 : i32
    return %c0_i32, %c0_i32_0 : i32, i32
  }
  func.func @transform_2(%arg0: i32) -> (i32, i32) {
    %c0_i32 = arith.constant 0 : i32
    %c0_i32_0 = arith.constant 0 : i32
    %c0_i32_1 = arith.constant 0 : i32
    return %c0_i32, %c0_i32_0 : i32, i32
  }
  func.func @transform_3(%arg0: i32) -> (i32, i32) {
    %c0_i32 = arith.constant 0 : i32
    %c0_i32_0 = arith.constant 0 : i32
    %c0_i32_1 = arith.constant 0 : i32
    return %c0_i32, %c0_i32_0 : i32, i32
  }
}

module attributes {stable_mosaic.version = 11 : i64} {
  func.func @_fc_stack_kernel(%arg0: i32, %arg1: memref<2x2048xbf16, #tpu.memory_space<vmem>>, %arg2: memref<2x784xbf16, #tpu.memory_space<vmem>>, %arg3: memref<2048x512xbf16, #tpu.memory_space<vmem>>, %arg4: memref<1x512xf32, #tpu.memory_space<vmem>>, %arg5: memref<512x64xbf16, #tpu.memory_space<vmem>>, %arg6: memref<1x64xf32, #tpu.memory_space<vmem>>, %arg7: memref<64x512xbf16, #tpu.memory_space<vmem>>, %arg8: memref<1x512xf32, #tpu.memory_space<vmem>>, %arg9: memref<512x2048xbf16, #tpu.memory_space<vmem>>, %arg10: memref<1x2048xf32, #tpu.memory_space<vmem>>, %arg11: memref<784x128xbf16, #tpu.memory_space<vmem>>, %arg12: memref<1x128xf32, #tpu.memory_space<vmem>>, %arg13: memref<128x6xbf16, #tpu.memory_space<vmem>>, %arg14: memref<1x6xf32, #tpu.memory_space<vmem>>, %arg15: memref<2x64xf32, #tpu.memory_space<vmem>>, %arg16: memref<2x2048xf32, #tpu.memory_space<vmem>>, %arg17: memref<2x6xf32, #tpu.memory_space<vmem>>) attributes {dimension_semantics = [#tpu.dimension_semantics<arbitrary>], iteration_bounds = array<i64: 1>, scalar_prefetch = 0 : i64, scratch_operands = 0 : i64, tpu.core_type = #tpu.core_type<tc>, window_params = [{pipeline_mode = #tpu.pipeline_mode<synchronous>, transform_indices = @transform_0, window_bounds = array<i64: 2, 2048>}, {pipeline_mode = #tpu.pipeline_mode<synchronous>, transform_indices = @transform_1, window_bounds = array<i64: 2, 784>}, {pipeline_mode = #tpu.pipeline_mode<synchronous>, transform_indices = @transform_2, window_bounds = array<i64: 2048, 512>}, {pipeline_mode = #tpu.pipeline_mode<synchronous>, transform_indices = @transform_3, window_bounds = array<i64: 1, 512>}, {pipeline_mode = #tpu.pipeline_mode<synchronous>, transform_indices = @transform_4, window_bounds = array<i64: 512, 64>}, {pipeline_mode = #tpu.pipeline_mode<synchronous>, transform_indices = @transform_5, window_bounds = array<i64: 1, 64>}, {pipeline_mode = #tpu.pipeline_mode<synchronous>, transform_indices = @transform_6, window_bounds = array<i64: 64, 512>}, {pipeline_mode = #tpu.pipeline_mode<synchronous>, transform_indices = @transform_7, window_bounds = array<i64: 1, 512>}, {pipeline_mode = #tpu.pipeline_mode<synchronous>, transform_indices = @transform_8, window_bounds = array<i64: 512, 2048>}, {pipeline_mode = #tpu.pipeline_mode<synchronous>, transform_indices = @transform_9, window_bounds = array<i64: 1, 2048>}, {pipeline_mode = #tpu.pipeline_mode<synchronous>, transform_indices = @transform_10, window_bounds = array<i64: 784, 128>}, {pipeline_mode = #tpu.pipeline_mode<synchronous>, transform_indices = @transform_11, window_bounds = array<i64: 1, 128>}, {pipeline_mode = #tpu.pipeline_mode<synchronous>, transform_indices = @transform_12, window_bounds = array<i64: 128, 6>}, {pipeline_mode = #tpu.pipeline_mode<synchronous>, transform_indices = @transform_13, window_bounds = array<i64: 1, 6>}, {pipeline_mode = #tpu.pipeline_mode<synchronous>, transform_indices = @transform_14, window_bounds = array<i64: 2, 64>}, {pipeline_mode = #tpu.pipeline_mode<synchronous>, transform_indices = @transform_15, window_bounds = array<i64: 2, 2048>}, {pipeline_mode = #tpu.pipeline_mode<synchronous>, transform_indices = @transform_16, window_bounds = array<i64: 2, 6>}]} {
    %c0 = arith.constant 0 : index
    %c0_0 = arith.constant 0 : index
    %0 = vector.load %arg1[%c0, %c0_0] : memref<2x2048xbf16, #tpu.memory_space<vmem>>, vector<2x2048xbf16>
    %c0_1 = arith.constant 0 : index
    %c0_2 = arith.constant 0 : index
    %1 = vector.load %arg3[%c0_1, %c0_2] : memref<2048x512xbf16, #tpu.memory_space<vmem>>, vector<2048x512xbf16>
    %cst = arith.constant dense<0.000000e+00> : vector<2x512xf32>
    %2 = tpu.matmul %0, %1, %cst {dimension_numbers = #tpu.dot_dimension_numbers<[1], [0], [0], [1], [0, 0, 1, 1], [], []>} : vector<2x2048xbf16>, vector<2048x512xbf16>, vector<2x512xf32> -> vector<2x512xf32>
    %c0_3 = arith.constant 0 : index
    %c0_4 = arith.constant 0 : index
    %3 = vector.load %arg4[%c0_3, %c0_4] : memref<1x512xf32, #tpu.memory_space<vmem>>, vector<1x512xf32>
    %4 = vector.broadcast %3 : vector<1x512xf32> to vector<2x512xf32>
    %5 = arith.addf %2, %4 : vector<2x512xf32>
    %cst_5 = arith.constant 0.000000e+00 : f32
    %6 = vector.broadcast %cst_5 : f32 to vector<2x512xf32>
    %7 = arith.maximumf %5, %6 : vector<2x512xf32>
    %8 = arith.truncf %7 : vector<2x512xf32> to vector<2x512xbf16>
    %c0_6 = arith.constant 0 : index
    %c0_7 = arith.constant 0 : index
    %9 = vector.load %arg5[%c0_6, %c0_7] : memref<512x64xbf16, #tpu.memory_space<vmem>>, vector<512x64xbf16>
    %cst_8 = arith.constant dense<0.000000e+00> : vector<2x64xf32>
    %10 = tpu.matmul %8, %9, %cst_8 {dimension_numbers = #tpu.dot_dimension_numbers<[1], [0], [0], [1], [0, 0, 1, 1], [], []>} : vector<2x512xbf16>, vector<512x64xbf16>, vector<2x64xf32> -> vector<2x64xf32>
    %c0_9 = arith.constant 0 : index
    %c0_10 = arith.constant 0 : index
    %11 = vector.load %arg6[%c0_9, %c0_10] : memref<1x64xf32, #tpu.memory_space<vmem>>, vector<1x64xf32>
    %12 = vector.broadcast %11 : vector<1x64xf32> to vector<2x64xf32>
    %13 = arith.addf %10, %12 : vector<2x64xf32>
    %c0_11 = arith.constant 0 : index
    %c0_12 = arith.constant 0 : index
    %14 = vector.load %arg15[%c0_11, %c0_12] : memref<2x64xf32, #tpu.memory_space<vmem>>, vector<2x64xf32>
    tpu.vector_store %arg15[%c0_11, %c0_12], %13 {strides = array<i32>} : memref<2x64xf32, #tpu.memory_space<vmem>>, vector<2x64xf32>,
    %15 = arith.truncf %13 : vector<2x64xf32> to vector<2x64xbf16>
    %c0_13 = arith.constant 0 : index
    %c0_14 = arith.constant 0 : index
    %16 = vector.load %arg7[%c0_13, %c0_14] : memref<64x512xbf16, #tpu.memory_space<vmem>>, vector<64x512xbf16>
    %cst_15 = arith.constant dense<0.000000e+00> : vector<2x512xf32>
    %17 = tpu.matmul %15, %16, %cst_15 {dimension_numbers = #tpu.dot_dimension_numbers<[1], [0], [0], [1], [0, 0, 1, 1], [], []>} : vector<2x64xbf16>, vector<64x512xbf16>, vector<2x512xf32> -> vector<2x512xf32>
    %c0_16 = arith.constant 0 : index
    %c0_17 = arith.constant 0 : index
    %18 = vector.load %arg8[%c0_16, %c0_17] : memref<1x512xf32, #tpu.memory_space<vmem>>, vector<1x512xf32>
    %19 = vector.broadcast %18 : vector<1x512xf32> to vector<2x512xf32>
    %20 = arith.addf %17, %19 : vector<2x512xf32>
    %cst_18 = arith.constant 0.000000e+00 : f32
    %21 = vector.broadcast %cst_18 : f32 to vector<2x512xf32>
    %22 = arith.maximumf %20, %21 : vector<2x512xf32>
    %23 = arith.truncf %22 : vector<2x512xf32> to vector<2x512xbf16>
    %c0_19 = arith.constant 0 : index
    %c0_20 = arith.constant 0 : index
    %24 = vector.load %arg9[%c0_19, %c0_20] : memref<512x2048xbf16, #tpu.memory_space<vmem>>, vector<512x2048xbf16>
    %cst_21 = arith.constant dense<0.000000e+00> : vector<2x2048xf32>
    %25 = tpu.matmul %23, %24, %cst_21 {dimension_numbers = #tpu.dot_dimension_numbers<[1], [0], [0], [1], [0, 0, 1, 1], [], []>} : vector<2x512xbf16>, vector<512x2048xbf16>, vector<2x2048xf32> -> vector<2x2048xf32>
    %c0_22 = arith.constant 0 : index
    %c0_23 = arith.constant 0 : index
    %26 = vector.load %arg10[%c0_22, %c0_23] : memref<1x2048xf32, #tpu.memory_space<vmem>>, vector<1x2048xf32>
    %27 = vector.broadcast %26 : vector<1x2048xf32> to vector<2x2048xf32>
    %28 = arith.addf %25, %27 : vector<2x2048xf32>
    %cst_24 = arith.constant 0.000000e+00 : f32
    %29 = vector.broadcast %cst_24 : f32 to vector<2x2048xf32>
    %30 = arith.maximumf %28, %29 : vector<2x2048xf32>
    %c0_25 = arith.constant 0 : index
    %c0_26 = arith.constant 0 : index
    %31 = vector.load %arg16[%c0_25, %c0_26] : memref<2x2048xf32, #tpu.memory_space<vmem>>, vector<2x2048xf32>
    tpu.vector_store %arg16[%c0_25, %c0_26], %30 {strides = array<i32>} : memref<2x2048xf32, #tpu.memory_space<vmem>>, vector<2x2048xf32>,
    %c0_27 = arith.constant 0 : index
    %c0_28 = arith.constant 0 : index
    %32 = vector.load %arg2[%c0_27, %c0_28] : memref<2x784xbf16, #tpu.memory_space<vmem>>, vector<2x784xbf16>
    %c0_29 = arith.constant 0 : index
    %c0_30 = arith.constant 0 : index
    %33 = vector.load %arg11[%c0_29, %c0_30] : memref<784x128xbf16, #tpu.memory_space<vmem>>, vector<784x128xbf16>
    %cst_31 = arith.constant dense<0.000000e+00> : vector<2x128xf32>
    %34 = tpu.matmul %32, %33, %cst_31 {dimension_numbers = #tpu.dot_dimension_numbers<[1], [0], [0], [1], [0, 0, 1, 1], [], []>} : vector<2x784xbf16>, vector<784x128xbf16>, vector<2x128xf32> -> vector<2x128xf32>
    %c0_32 = arith.constant 0 : index
    %c0_33 = arith.constant 0 : index
    %35 = vector.load %arg12[%c0_32, %c0_33] : memref<1x128xf32, #tpu.memory_space<vmem>>, vector<1x128xf32>
    %36 = vector.broadcast %35 : vector<1x128xf32> to vector<2x128xf32>
    %37 = arith.addf %34, %36 : vector<2x128xf32>
    %cst_34 = arith.constant 0.000000e+00 : f32
    %38 = vector.broadcast %cst_34 : f32 to vector<2x128xf32>
    %39 = arith.maximumf %37, %38 : vector<2x128xf32>
    %40 = arith.truncf %39 : vector<2x128xf32> to vector<2x128xbf16>
    %c0_35 = arith.constant 0 : index
    %c0_36 = arith.constant 0 : index
    %41 = vector.load %arg13[%c0_35, %c0_36] : memref<128x6xbf16, #tpu.memory_space<vmem>>, vector<128x6xbf16>
    %cst_37 = arith.constant dense<0.000000e+00> : vector<2x6xf32>
    %42 = tpu.matmul %40, %41, %cst_37 {dimension_numbers = #tpu.dot_dimension_numbers<[1], [0], [0], [1], [0, 0, 1, 1], [], []>} : vector<2x128xbf16>, vector<128x6xbf16>, vector<2x6xf32> -> vector<2x6xf32>
    %c0_38 = arith.constant 0 : index
    %c0_39 = arith.constant 0 : index
    %43 = vector.load %arg14[%c0_38, %c0_39] : memref<1x6xf32, #tpu.memory_space<vmem>>, vector<1x6xf32>
    %44 = vector.broadcast %43 : vector<1x6xf32> to vector<2x6xf32>
    %45 = arith.addf %42, %44 : vector<2x6xf32>
    %c0_40 = arith.constant 0 : index
    %c0_41 = arith.constant 0 : index
    %46 = vector.load %arg17[%c0_40, %c0_41] : memref<2x6xf32, #tpu.memory_space<vmem>>, vector<2x6xf32>
    tpu.vector_store %arg17[%c0_40, %c0_41], %45 {strides = array<i32>} : memref<2x6xf32, #tpu.memory_space<vmem>>, vector<2x6xf32>,
    return
  }
  func.func @transform_0(%arg0: i32) -> (i32, i32) {
    %c0_i32 = arith.constant 0 : i32
    %c0_i32_0 = arith.constant 0 : i32
    %c0_i32_1 = arith.constant 0 : i32
    return %c0_i32, %c0_i32_0 : i32, i32
  }
  func.func @transform_1(%arg0: i32) -> (i32, i32) {
    %c0_i32 = arith.constant 0 : i32
    %c0_i32_0 = arith.constant 0 : i32
    %c0_i32_1 = arith.constant 0 : i32
    return %c0_i32, %c0_i32_0 : i32, i32
  }
  func.func @transform_2(%arg0: i32) -> (i32, i32) {
    %c0_i32 = arith.constant 0 : i32
    %c0_i32_0 = arith.constant 0 : i32
    %c0_i32_1 = arith.constant 0 : i32
    return %c0_i32, %c0_i32_0 : i32, i32
  }
  func.func @transform_3(%arg0: i32) -> (i32, i32) {
    %c0_i32 = arith.constant 0 : i32
    %c0_i32_0 = arith.constant 0 : i32
    %c0_i32_1 = arith.constant 0 : i32
    return %c0_i32, %c0_i32_0 : i32, i32
  }
  func.func @transform_4(%arg0: i32) -> (i32, i32) {
    %c0_i32 = arith.constant 0 : i32
    %c0_i32_0 = arith.constant 0 : i32
    %c0_i32_1 = arith.constant 0 : i32
    return %c0_i32, %c0_i32_0 : i32, i32
  }
  func.func @transform_5(%arg0: i32) -> (i32, i32) {
    %c0_i32 = arith.constant 0 : i32
    %c0_i32_0 = arith.constant 0 : i32
    %c0_i32_1 = arith.constant 0 : i32
    return %c0_i32, %c0_i32_0 : i32, i32
  }
  func.func @transform_6(%arg0: i32) -> (i32, i32) {
    %c0_i32 = arith.constant 0 : i32
    %c0_i32_0 = arith.constant 0 : i32
    %c0_i32_1 = arith.constant 0 : i32
    return %c0_i32, %c0_i32_0 : i32, i32
  }
  func.func @transform_7(%arg0: i32) -> (i32, i32) {
    %c0_i32 = arith.constant 0 : i32
    %c0_i32_0 = arith.constant 0 : i32
    %c0_i32_1 = arith.constant 0 : i32
    return %c0_i32, %c0_i32_0 : i32, i32
  }
  func.func @transform_8(%arg0: i32) -> (i32, i32) {
    %c0_i32 = arith.constant 0 : i32
    %c0_i32_0 = arith.constant 0 : i32
    %c0_i32_1 = arith.constant 0 : i32
    return %c0_i32, %c0_i32_0 : i32, i32
  }
  func.func @transform_9(%arg0: i32) -> (i32, i32) {
    %c0_i32 = arith.constant 0 : i32
    %c0_i32_0 = arith.constant 0 : i32
    %c0_i32_1 = arith.constant 0 : i32
    return %c0_i32, %c0_i32_0 : i32, i32
  }
  func.func @transform_10(%arg0: i32) -> (i32, i32) {
    %c0_i32 = arith.constant 0 : i32
    %c0_i32_0 = arith.constant 0 : i32
    %c0_i32_1 = arith.constant 0 : i32
    return %c0_i32, %c0_i32_0 : i32, i32
  }
  func.func @transform_11(%arg0: i32) -> (i32, i32) {
    %c0_i32 = arith.constant 0 : i32
    %c0_i32_0 = arith.constant 0 : i32
    %c0_i32_1 = arith.constant 0 : i32
    return %c0_i32, %c0_i32_0 : i32, i32
  }
  func.func @transform_12(%arg0: i32) -> (i32, i32) {
    %c0_i32 = arith.constant 0 : i32
    %c0_i32_0 = arith.constant 0 : i32
    %c0_i32_1 = arith.constant 0 : i32
    return %c0_i32, %c0_i32_0 : i32, i32
  }
  func.func @transform_13(%arg0: i32) -> (i32, i32) {
    %c0_i32 = arith.constant 0 : i32
    %c0_i32_0 = arith.constant 0 : i32
    %c0_i32_1 = arith.constant 0 : i32
    return %c0_i32, %c0_i32_0 : i32, i32
  }
  func.func @transform_14(%arg0: i32) -> (i32, i32) {
    %c0_i32 = arith.constant 0 : i32
    %c0_i32_0 = arith.constant 0 : i32
    %c0_i32_1 = arith.constant 0 : i32
    return %c0_i32, %c0_i32_0 : i32, i32
  }
  func.func @transform_15(%arg0: i32) -> (i32, i32) {
    %c0_i32 = arith.constant 0 : i32
    %c0_i32_0 = arith.constant 0 : i32
    %c0_i32_1 = arith.constant 0 : i32
    return %c0_i32, %c0_i32_0 : i32, i32
  }
  func.func @transform_16(%arg0: i32) -> (i32, i32) {
    %c0_i32 = arith.constant 0 : i32
    %c0_i32_0 = arith.constant 0 : i32
    %c0_i32_1 = arith.constant 0 : i32
    return %c0_i32, %c0_i32_0 : i32, i32
  }
}

module attributes {stable_mosaic.version = 11 : i64} {
  func.func @_wx_bias_act_kernel(%arg0: i32, %arg1: memref<64x1152xbf16, #tpu.memory_space<vmem>>, %arg2: memref<1152x98xbf16, #tpu.memory_space<vmem>>, %arg3: memref<64x1xf32, #tpu.memory_space<vmem>>, %arg4: memref<64x98xf32, #tpu.memory_space<vmem>>) attributes {dimension_semantics = [#tpu.dimension_semantics<arbitrary>], iteration_bounds = array<i64: 1>, scalar_prefetch = 0 : i64, scratch_operands = 0 : i64, tpu.core_type = #tpu.core_type<tc>, window_params = [{pipeline_mode = #tpu.pipeline_mode<synchronous>, transform_indices = @transform_0, window_bounds = array<i64: 64, 1152>}, {pipeline_mode = #tpu.pipeline_mode<synchronous>, transform_indices = @transform_1, window_bounds = array<i64: 1152, 98>}, {pipeline_mode = #tpu.pipeline_mode<synchronous>, transform_indices = @transform_2, window_bounds = array<i64: 64, 1>}, {pipeline_mode = #tpu.pipeline_mode<synchronous>, transform_indices = @transform_3, window_bounds = array<i64: 64, 98>}]} {
    %c0 = arith.constant 0 : index
    %c0_0 = arith.constant 0 : index
    %0 = vector.load %arg1[%c0, %c0_0] : memref<64x1152xbf16, #tpu.memory_space<vmem>>, vector<64x1152xbf16>
    %c0_1 = arith.constant 0 : index
    %c0_2 = arith.constant 0 : index
    %1 = vector.load %arg2[%c0_1, %c0_2] : memref<1152x98xbf16, #tpu.memory_space<vmem>>, vector<1152x98xbf16>
    %cst = arith.constant dense<0.000000e+00> : vector<64x98xf32>
    %2 = tpu.matmul %0, %1, %cst {dimension_numbers = #tpu.dot_dimension_numbers<[1], [0], [0], [1], [0, 0, 1, 1], [], []>} : vector<64x1152xbf16>, vector<1152x98xbf16>, vector<64x98xf32> -> vector<64x98xf32>
    %c0_3 = arith.constant 0 : index
    %c0_4 = arith.constant 0 : index
    %3 = vector.load %arg3[%c0_3, %c0_4] : memref<64x1xf32, #tpu.memory_space<vmem>>, vector<64x1xf32>
    %4 = vector.broadcast %3 : vector<64x1xf32> to vector<64x98xf32>
    %5 = arith.addf %2, %4 : vector<64x98xf32>
    %cst_5 = arith.constant 0.000000e+00 : f32
    %6 = vector.broadcast %cst_5 : f32 to vector<64x98xf32>
    %7 = arith.maximumf %5, %6 : vector<64x98xf32>
    %c0_6 = arith.constant 0 : index
    %c0_7 = arith.constant 0 : index
    %8 = vector.load %arg4[%c0_6, %c0_7] : memref<64x98xf32, #tpu.memory_space<vmem>>, vector<64x98xf32>
    tpu.vector_store %arg4[%c0_6, %c0_7], %7 {strides = array<i32>} : memref<64x98xf32, #tpu.memory_space<vmem>>, vector<64x98xf32>,
    return
  }
  func.func @transform_0(%arg0: i32) -> (i32, i32) {
    %c0_i32 = arith.constant 0 : i32
    %c0_i32_0 = arith.constant 0 : i32
    %c0_i32_1 = arith.constant 0 : i32
    return %c0_i32, %c0_i32_0 : i32, i32
  }
  func.func @transform_1(%arg0: i32) -> (i32, i32) {
    %c0_i32 = arith.constant 0 : i32
    %c0_i32_0 = arith.constant 0 : i32
    %c0_i32_1 = arith.constant 0 : i32
    return %c0_i32, %c0_i32_0 : i32, i32
  }
  func.func @transform_2(%arg0: i32) -> (i32, i32) {
    %c0_i32 = arith.constant 0 : i32
    %c0_i32_0 = arith.constant 0 : i32
    %c0_i32_1 = arith.constant 0 : i32
    return %c0_i32, %c0_i32_0 : i32, i32
  }
  func.func @transform_3(%arg0: i32) -> (i32, i32) {
    %c0_i32 = arith.constant 0 : i32
    %c0_i32_0 = arith.constant 0 : i32
    %c0_i32_1 = arith.constant 0 : i32
    return %c0_i32, %c0_i32_0 : i32, i32
  }
}

module attributes {stable_mosaic.version = 11 : i64} {
  func.func @_wx_bias_act_kernel(%arg0: i32, %arg1: memref<32x1024xbf16, #tpu.memory_space<vmem>>, %arg2: memref<1024x392xbf16, #tpu.memory_space<vmem>>, %arg3: memref<32x1xf32, #tpu.memory_space<vmem>>, %arg4: memref<32x392xf32, #tpu.memory_space<vmem>>) attributes {dimension_semantics = [#tpu.dimension_semantics<arbitrary>], iteration_bounds = array<i64: 1>, scalar_prefetch = 0 : i64, scratch_operands = 0 : i64, tpu.core_type = #tpu.core_type<tc>, window_params = [{pipeline_mode = #tpu.pipeline_mode<synchronous>, transform_indices = @transform_0, window_bounds = array<i64: 32, 1024>}, {pipeline_mode = #tpu.pipeline_mode<synchronous>, transform_indices = @transform_1, window_bounds = array<i64: 1024, 392>}, {pipeline_mode = #tpu.pipeline_mode<synchronous>, transform_indices = @transform_2, window_bounds = array<i64: 32, 1>}, {pipeline_mode = #tpu.pipeline_mode<synchronous>, transform_indices = @transform_3, window_bounds = array<i64: 32, 392>}]} {
    %c0 = arith.constant 0 : index
    %c0_0 = arith.constant 0 : index
    %0 = vector.load %arg1[%c0, %c0_0] : memref<32x1024xbf16, #tpu.memory_space<vmem>>, vector<32x1024xbf16>
    %c0_1 = arith.constant 0 : index
    %c0_2 = arith.constant 0 : index
    %1 = vector.load %arg2[%c0_1, %c0_2] : memref<1024x392xbf16, #tpu.memory_space<vmem>>, vector<1024x392xbf16>
    %cst = arith.constant dense<0.000000e+00> : vector<32x392xf32>
    %2 = tpu.matmul %0, %1, %cst {dimension_numbers = #tpu.dot_dimension_numbers<[1], [0], [0], [1], [0, 0, 1, 1], [], []>} : vector<32x1024xbf16>, vector<1024x392xbf16>, vector<32x392xf32> -> vector<32x392xf32>
    %c0_3 = arith.constant 0 : index
    %c0_4 = arith.constant 0 : index
    %3 = vector.load %arg3[%c0_3, %c0_4] : memref<32x1xf32, #tpu.memory_space<vmem>>, vector<32x1xf32>
    %4 = vector.broadcast %3 : vector<32x1xf32> to vector<32x392xf32>
    %5 = arith.addf %2, %4 : vector<32x392xf32>
    %cst_5 = arith.constant 0.000000e+00 : f32
    %6 = vector.broadcast %cst_5 : f32 to vector<32x392xf32>
    %7 = arith.maximumf %5, %6 : vector<32x392xf32>
    %c0_6 = arith.constant 0 : index
    %c0_7 = arith.constant 0 : index
    %8 = vector.load %arg4[%c0_6, %c0_7] : memref<32x392xf32, #tpu.memory_space<vmem>>, vector<32x392xf32>
    tpu.vector_store %arg4[%c0_6, %c0_7], %7 {strides = array<i32>} : memref<32x392xf32, #tpu.memory_space<vmem>>, vector<32x392xf32>,
    return
  }
  func.func @transform_0(%arg0: i32) -> (i32, i32) {
    %c0_i32 = arith.constant 0 : i32
    %c0_i32_0 = arith.constant 0 : i32
    %c0_i32_1 = arith.constant 0 : i32
    return %c0_i32, %c0_i32_0 : i32, i32
  }
  func.func @transform_1(%arg0: i32) -> (i32, i32) {
    %c0_i32 = arith.constant 0 : i32
    %c0_i32_0 = arith.constant 0 : i32
    %c0_i32_1 = arith.constant 0 : i32
    return %c0_i32, %c0_i32_0 : i32, i32
  }
  func.func @transform_2(%arg0: i32) -> (i32, i32) {
    %c0_i32 = arith.constant 0 : i32
    %c0_i32_0 = arith.constant 0 : i32
    %c0_i32_1 = arith.constant 0 : i32
    return %c0_i32, %c0_i32_0 : i32, i32
  }
  func.func @transform_3(%arg0: i32) -> (i32, i32) {
    %c0_i32 = arith.constant 0 : i32
    %c0_i32_0 = arith.constant 0 : i32
    %c0_i32_1 = arith.constant 0 : i32
    return %c0_i32, %c0_i32_0 : i32, i32
  }
}

module attributes {stable_mosaic.version = 11 : i64} {
  func.func @_wx_bias_act_kernel(%arg0: i32, %arg1: memref<1x512xbf16, #tpu.memory_space<vmem>>, %arg2: memref<512x1568xbf16, #tpu.memory_space<vmem>>, %arg3: memref<1x1xf32, #tpu.memory_space<vmem>>, %arg4: memref<1x1568xf32, #tpu.memory_space<vmem>>) attributes {dimension_semantics = [#tpu.dimension_semantics<arbitrary>], iteration_bounds = array<i64: 1>, scalar_prefetch = 0 : i64, scratch_operands = 0 : i64, tpu.core_type = #tpu.core_type<tc>, window_params = [{pipeline_mode = #tpu.pipeline_mode<synchronous>, transform_indices = @transform_0, window_bounds = array<i64: 1, 512>}, {pipeline_mode = #tpu.pipeline_mode<synchronous>, transform_indices = @transform_1, window_bounds = array<i64: 512, 1568>}, {pipeline_mode = #tpu.pipeline_mode<synchronous>, transform_indices = @transform_2, window_bounds = array<i64: 1, 1>}, {pipeline_mode = #tpu.pipeline_mode<synchronous>, transform_indices = @transform_3, window_bounds = array<i64: 1, 1568>}]} {
    %c0 = arith.constant 0 : index
    %c0_0 = arith.constant 0 : index
    %0 = vector.load %arg1[%c0, %c0_0] : memref<1x512xbf16, #tpu.memory_space<vmem>>, vector<1x512xbf16>
    %c0_1 = arith.constant 0 : index
    %c0_2 = arith.constant 0 : index
    %1 = vector.load %arg2[%c0_1, %c0_2] : memref<512x1568xbf16, #tpu.memory_space<vmem>>, vector<512x1568xbf16>
    %cst = arith.constant dense<0.000000e+00> : vector<1x1568xf32>
    %2 = tpu.matmul %0, %1, %cst {dimension_numbers = #tpu.dot_dimension_numbers<[1], [0], [0], [1], [0, 0, 1, 1], [], []>} : vector<1x512xbf16>, vector<512x1568xbf16>, vector<1x1568xf32> -> vector<1x1568xf32>
    %c0_3 = arith.constant 0 : index
    %c0_4 = arith.constant 0 : index
    %3 = vector.load %arg3[%c0_3, %c0_4] : memref<1x1xf32, #tpu.memory_space<vmem>>, vector<1x1xf32>
    %4 = vector.broadcast %3 : vector<1x1xf32> to vector<1x1568xf32>
    %5 = arith.addf %2, %4 : vector<1x1568xf32>
    %6 = arith.negf %5 : vector<1x1568xf32>
    %7 = math.exp %6 : vector<1x1568xf32>
    %cst_5 = arith.constant 1.000000e+00 : f32
    %8 = vector.broadcast %cst_5 : f32 to vector<1x1568xf32>
    %9 = arith.addf %8, %7 : vector<1x1568xf32>
    %10 = arith.divf %8, %9 : vector<1x1568xf32>
    %c0_6 = arith.constant 0 : index
    %c0_7 = arith.constant 0 : index
    %11 = vector.load %arg4[%c0_6, %c0_7] : memref<1x1568xf32, #tpu.memory_space<vmem>>, vector<1x1568xf32>
    tpu.vector_store %arg4[%c0_6, %c0_7], %10 {strides = array<i32>} : memref<1x1568xf32, #tpu.memory_space<vmem>>, vector<1x1568xf32>,
    return
  }
  func.func @transform_0(%arg0: i32) -> (i32, i32) {
    %c0_i32 = arith.constant 0 : i32
    %c0_i32_0 = arith.constant 0 : i32
    %c0_i32_1 = arith.constant 0 : i32
    return %c0_i32, %c0_i32_0 : i32, i32
  }
  func.func @transform_1(%arg0: i32) -> (i32, i32) {
    %c0_i32 = arith.constant 0 : i32
    %c0_i32_0 = arith.constant 0 : i32
    %c0_i32_1 = arith.constant 0 : i32
    return %c0_i32, %c0_i32_0 : i32, i32
  }
  func.func @transform_2(%arg0: i32) -> (i32, i32) {
    %c0_i32 = arith.constant 0 : i32
    %c0_i32_0 = arith.constant 0 : i32
    %c0_i32_1 = arith.constant 0 : i32
    return %c0_i32, %c0_i32_0 : i32, i32
  }
  func.func @transform_3(%arg0: i32) -> (i32, i32) {
    %c0_i32 = arith.constant 0 : i32
    %c0_i32_0 = arith.constant 0 : i32
    %c0_i32_1 = arith.constant 0 : i32
    return %c0_i32, %c0_i32_0 : i32, i32
  }
}

</mosaic_0001>

<bundles_post_ra>
// kernel: affine_invariant_autoencoder_forward.7
= control target key start
LH: loop header
LB: loop body
LE: loop exit
PB: predicated region body
PF: predicated region fallthrough
CT: control target
= control target key end

     0   :  { %v248_v1 = vmov 0   ;;  %vm77_vm0 = vcmask 130048   ;;  %vm209_vm1 = vcmask 64512   ;;  %s351_s1 = inlined_call_operand.vmem [shape: bf16[16,392], index: 1, kind: input, shape index: {}]   ;;  %s352_s0 = inlined_call_operand.vmem [shape: bf16[32,16], index: 0, kind: input, shape index: {}]   ;;  %s353_s2 = inlined_call_operand.vmem [shape: f32[32,1], index: 2, kind: input, shape index: {}]   ;;  %s354_s3 = inlined_call_operand.vmem [shape: f32[32,392], index: 3, kind: output, shape index: {}]  }
   0x1   :  { %v240_v0 = vld [vmem:[%s351_s1 + $0x4] ss:$16 sps:$4 sm:$0xff]   ;;  %116 = vmatprep.mubr.bf16.mxu0 %v248_v1  ;;  %169 = vmatprep.mubr.bf16.mxu1 %v248_v1  ;;  %v242_v2 = vld [vmem:[%s351_s1 + $0xc] ss:$16 sps:$4 sm:$0xff]   ;;  %v244_v3 = vld [vmem:[%s351_s1] ss:$16 sps:$4 sm:$0xff]  }
   0x2   :  { %238 = vset.pattern.permute.xlu0 %v248_v1  ;;  %239 = vset.pattern.permute.xlu1 %v248_v1  ;;  %v245_v4 = vld [vmem:[%s351_s1 + $0x8] ss:$16 sps:$4 sm:$0xff]   ;;  %v246_v5 = vld [vmem:[%s352_s0] sm:$0xff]   ;;  %v25_v7 = vld [vmem:[%s353_s2 + $0x10] sm:$0xff] }
   0x3   :  { %84 = vmatprep.subr.bf16.mxu0 %v240_v0  ;;  %137 = vmatprep.subr.bf16.mxu1 %v242_v2  ;;  %v23_v6 = vld [vmem:[%s353_s2] sm:$0xff]  ;;  %v24_v8 = vld [vmem:[%s353_s2 + $0x8] sm:$0xff]  ;;  %v26_v9 = vld [vmem:[%s353_s2 + $0x18] sm:$0xff] }
   0x4   :  { %85 = vmatpush1.bf16.msra.mxu0 %v244_v3  ;;  %138 = vmatpush1.bf16.msra.mxu1 %v245_v4  ;;  %v247_v10 = vld [vmem:[%s352_s0 + $0x8] sm:$0xff]  }
   0x5   :  { %29 = vperm.xlu0 %238, %v23_v6   ;;  %39 = vperm.xlu1 %239, %v25_v7  }
   0x7   :  { %233 = vmatmul.mubr.msk.bf16.vlgmr.msra.gmra.mrb[0].mxu0 %vm77_vm0, %v246_v5  ;;  %235 = vmatmul.mubr.msk.bf16.vlgmr.msra.gmra.mrb[0].mxu1 %vm77_vm0, %v246_v5 }
   0x8   :  { %126 = vmatprep.mubr.bf16.mxu0 %v248_v1  ;;  %179 = vmatprep.mubr.bf16.mxu1 %v248_v1 }
   0x9   :  { %34 = vperm.xlu0 %238, %v24_v8   ;;  %44 = vperm.xlu1 %239, %v26_v9  }
   0xf   :  { %234 = vmatmul.mubr.msk.bf16.gmra.mrb[4].mxu0 %vm77_vm0, %v247_v10  ;;  %236 = vmatmul.mubr.msk.bf16.gmra.mrb[4].mxu1 %vm77_vm0, %v247_v10 }
  0x84   :  { %v30_v11 = vpop.permute.xlu0 %29  ;;  %v40_v13 = vpop.permute.xlu1 %39 }
  0x88   :  { %v35_v12 = vpop.permute.xlu0 %34  ;;  %v45_v38 = vpop.permute.xlu1 %44 }
  0xda   :  { %v118_v14 = vpop.f32.mrb[0].mxu0  ;;  %v171_v15 = vpop.f32.mrb[0].mxu1 }
  0xdb   :  { %v119_v16 = vadd.f32 %v118_v14, %v30_v11  ;;  %v172_v17 = vadd.f32 %v171_v15, %v30_v11  ;;  %v120_v18 = vpop.f32.mrb[1].mxu0  ;;  %v173_v19 = vpop.f32.mrb[1].mxu1 }
  0xdc   :  { %v121_v20 = vadd.f32 %v120_v18, %v30_v11  ;;  %v174_v21 = vadd.f32 %v173_v19, %v30_v11  ;;  %v122_v22 = vpop.f32.mrb[2].mxu0  ;;  %v175_v23 = vpop.f32.mrb[2].mxu1 }
  0xdd   :  { %v190_v24 = vmax.f32 %v119_v16, 0.0  ;;  %v192_v25 = vmax.f32 %v172_v17, 0.0  ;;  %v123_v26 = vadd.f32 %v122_v22, %v35_v12  ;;  %v176_v27 = vadd.f32 %v175_v23, %v35_v12  ;;  %v124_v28 = vpop.f32.mrb[3].mxu0  ;;  %v177_v29 = vpop.f32.mrb[3].mxu1 }
  0xde   :  { %v191_v30 = vmax.f32 %v121_v20, 0.0  ;;  %v193_v31 = vmax.f32 %v174_v21, 0.0  ;;  %v125_v32 = vadd.f32 %v124_v28, %v35_v12  ;;  %v178_v33 = vadd.f32 %v177_v29, %v35_v12 }
  0xdf   :  { %206 = vst [vmem:[%s354_s3] sm:$0xff] %v190_v24  ;;  %208 = vst [vmem:[%s354_s3 + $0x10] sm:$0xff] %v192_v25  ;;  %v194_v34 = vmax.f32 %v123_v26, 0.0  ;;  %v196_v35 = vmax.f32 %v176_v27, 0.0 }
  0xe0   :  { %207 = vst [vmem:[%s354_s3 + $0x8] sm:$0xff] %v191_v30  ;;  %210 = vst.msk [vmem:[%s354_s3 + $0x18] sm:$0xff] %vm209_vm1, %v193_v31  ;;  %v195_v36 = vmax.f32 %v125_v32, 0.0  ;;  %v197_v37 = vmax.f32 %v178_v33, 0.0 }
  0xe1   :  { %211 = vst [vmem:[%s354_s3 + $0x20] sm:$0xff] %v194_v34  ;;  %213 = vst [vmem:[%s354_s3 + $0x30] sm:$0xff] %v196_v35 }
  0xe2   :  { %212 = vst [vmem:[%s354_s3 + $0x28] sm:$0xff] %v195_v36  ;;  %214 = vst.msk [vmem:[%s354_s3 + $0x38] sm:$0xff] %vm209_vm1, %v197_v37  ;;  %v128_v39 = vpop.f32.mrb[4].mxu0  ;;  %v181_v40 = vpop.f32.mrb[4].mxu1 }
  0xe3   :  { %v129_v41 = vadd.f32 %v128_v39, %v40_v13  ;;  %v182_v42 = vadd.f32 %v181_v40, %v40_v13  ;;  %v130_v43 = vpop.f32.mrb[5].mxu0  ;;  %v183_v44 = vpop.f32.mrb[5].mxu1 }
  0xe4   :  { %v131_v45 = vadd.f32 %v130_v43, %v40_v13  ;;  %v184_v46 = vadd.f32 %v183_v44, %v40_v13  ;;  %v132_v47 = vpop.f32.mrb[6].mxu0  ;;  %v185_v48 = vpop.f32.mrb[6].mxu1 }
  0xe5   :  { %v198_v49 = vmax.f32 %v129_v41, 0.0  ;;  %v200_v50 = vmax.f32 %v182_v42, 0.0  ;;  %v133_v51 = vadd.f32 %v132_v47, %v45_v38  ;;  %v186_v52 = vadd.f32 %v185_v48, %v45_v38  ;;  %v134_v53 = vpop.f32.mrb[7].mxu0  ;;  %v187_v54 = vpop.f32.mrb[7].mxu1 }
  0xe6   :  { %v199_v55 = vmax.f32 %v131_v45, 0.0  ;;  %v201_v56 = vmax.f32 %v184_v46, 0.0  ;;  %v135_v57 = vadd.f32 %v134_v53, %v45_v38  ;;  %v188_v58 = vadd.f32 %v187_v54, %v45_v38 }
  0xe7   :  { %215 = vst [vmem:[%s354_s3 + $0x40] sm:$0xff] %v198_v49  ;;  %217 = vst [vmem:[%s354_s3 + $0x50] sm:$0xff] %v200_v50  ;;  %v202_v59 = vmax.f32 %v133_v51, 0.0  ;;  %v204_v60 = vmax.f32 %v186_v52, 0.0 }
  0xe8   :  { %216 = vst [vmem:[%s354_s3 + $0x48] sm:$0xff] %v199_v55  ;;  %218 = vst.msk [vmem:[%s354_s3 + $0x58] sm:$0xff] %vm209_vm1, %v201_v56  ;;  %v203_v61 = vmax.f32 %v135_v57, 0.0  ;;  %v205_v62 = vmax.f32 %v188_v58, 0.0 }
  0xe9   :  { %219 = vst [vmem:[%s354_s3 + $0x60] sm:$0xff] %v202_v59  ;;  %221 = vst [vmem:[%s354_s3 + $0x70] sm:$0xff] %v204_v60 }
  0xea   :  { %220 = vst [vmem:[%s354_s3 + $0x68] sm:$0xff] %v203_v61  ;;  %222 = vst.msk [vmem:[%s354_s3 + $0x78] sm:$0xff] %vm209_vm1, %v205_v62 }

// kernel: affine_invariant_autoencoder_forward.8
= control target key start
LH: loop header
LB: loop body
LE: loop exit
PB: predicated region body
PF: predicated region fallthrough
CT: control target
= control target key end

     0   :  { %v753_v1 = vmov 0   ;;  %vm553_vm0 = vcmask 801792   ;;  %s974_s1 = inlined_call_operand.vmem [shape: bf16[512,98], index: 1, kind: input, shape index: {}]   ;;  %s975_s0 = inlined_call_operand.vmem [shape: bf16[64,512], index: 0, kind: input, shape index: {}]   ;;  %s976_s2 = inlined_call_operand.vmem [shape: f32[64,1], index: 2, kind: input, shape index: {}]   ;;  %s977_s3 = inlined_call_operand.vmem [shape: f32[64,98], index: 3, kind: output, shape index: {}]  }
   0x1   :  { %v697_v0 = vld [vmem:[%s974_s1 + $0x40] sm:$0xff]   ;;  %695 = vset.pattern.permute.xlu0 %v753_v1  ;;  %696 = vset.pattern.permute.xlu1 %v753_v1  ;;  %v701_v5 = vld [vmem:[%s974_s1 + $0x48] sm:$0xff]   ;;  %v705_v9 = vld [vmem:[%s974_s1 + $0x50] sm:$0xff]  }
   0x2   :  { %v698_v2 = vld [vmem:[%s974_s1 + $0xc0] sm:$0xff]   ;;  %614 = vmatprep.subr.bf16.mxu0 %v697_v0  ;;  %v702_v6 = vld [vmem:[%s974_s1 + $0xc8] sm:$0xff]   ;;  %v706_v10 = vld [vmem:[%s974_s1 + $0xd0] sm:$0xff]  }
   0x3   :  { %v699_v3 = vld [vmem:[%s974_s1] sm:$0xff]   ;;  %654 = vmatprep.subr.bf16.mxu1 %v698_v2  ;;  %v703_v7 = vld [vmem:[%s974_s1 + $0x8] sm:$0xff]   ;;  %v707_v11 = vld [vmem:[%s974_s1 + $0x10] sm:$0xff]  }
   0x4   :  { %v700_v4 = vld [vmem:[%s974_s1 + $0x80] sm:$0xff]   ;;  %615 = vmatpush3.bf16.msra.mxu0 %v699_v3  ;;  %v704_v8 = vld [vmem:[%s974_s1 + $0x88] sm:$0xff]   ;;  %v708_v12 = vld [vmem:[%s974_s1 + $0x90] sm:$0xff]  }
   0x5   :  { %655 = vmatpush3.bf16.msra.mxu1 %v700_v4  ;;  %616 = vmatprep.subr.bf16.mxu0 %v701_v5  ;;  %v709_v13 = vld [vmem:[%s974_s1 + $0x58] sm:$0xff]   ;;  %v713_v17 = vld [vmem:[%s974_s1 + $0x60] sm:$0xff]   ;;  %v717_v21 = vld [vmem:[%s974_s1 + $0x68] sm:$0xff]  }
   0x6   :  { %656 = vmatprep.subr.bf16.mxu1 %v702_v6  ;;  %v710_v14 = vld [vmem:[%s974_s1 + $0xd8] sm:$0xff]   ;;  %v714_v18 = vld [vmem:[%s974_s1 + $0xe0] sm:$0xff]   ;;  %v718_v22 = vld [vmem:[%s974_s1 + $0xe8] sm:$0xff]  }
   0x7   :  { %v711_v15 = vld [vmem:[%s974_s1 + $0x18] sm:$0xff]   ;;  %v715_v19 = vld [vmem:[%s974_s1 + $0x20] sm:$0xff]   ;;  %v719_v23 = vld [vmem:[%s974_s1 + $0x28] sm:$0xff]  }
   0x8   :  { %617 = vmatpush3.bf16.msra.mxu0 %v703_v7  ;;  %v712_v16 = vld [vmem:[%s974_s1 + $0x98] sm:$0xff]   ;;  %v716_v20 = vld [vmem:[%s974_s1 + $0xa0] sm:$0xff]   ;;  %v720_v24 = vld [vmem:[%s974_s1 + $0xa8] sm:$0xff]  }
   0x9   :  { %657 = vmatpush3.bf16.msra.mxu1 %v704_v8  ;;  %618 = vmatprep.subr.bf16.mxu0 %v705_v9  ;;  %v721_v25 = vld [vmem:[%s974_s1 + $0x70] sm:$0xff]   ;;  %v725_v29 = vld [vmem:[%s974_s1 + $0x78] sm:$0xff]   ;;  %v95_v43 = vld [vmem:[%s976_s2] sm:$0xff] }
   0xa   :  { %658 = vmatprep.subr.bf16.mxu1 %v706_v10  ;;  %v722_v26 = vld [vmem:[%s974_s1 + $0xf0] sm:$0xff]   ;;  %v726_v30 = vld [vmem:[%s974_s1 + $0xf8] sm:$0xff]   ;;  %105 = vperm.xlu0 %695, %v95_v43   ;;  %v96_v45 = vld [vmem:[%s976_s2 + $0x8] sm:$0xff] }
   0xb   :  { %v723_v27 = vld [vmem:[%s974_s1 + $0x30] sm:$0xff]   ;;  %v727_v31 = vld [vmem:[%s974_s1 + $0x38] sm:$0xff]   ;;  %v99_v48 = vld [vmem:[%s976_s2 + $0x20] sm:$0xff] }
   0xc   :  { %619 = vmatpush3.bf16.msra.mxu0 %v707_v11  ;;  %v724_v28 = vld [vmem:[%s974_s1 + $0xb0] sm:$0xff]   ;;  %v728_v32 = vld [vmem:[%s974_s1 + $0xb8] sm:$0xff]   ;;  %v100_v51 = vld [vmem:[%s976_s2 + $0x28] sm:$0xff] }
   0xd   :  { %659 = vmatpush3.bf16.msra.mxu1 %v708_v12  ;;  %620 = vmatprep.subr.bf16.mxu0 %v709_v13  ;;  %v729_v33 = vld [vmem:[%s975_s0] ss:$16 sps:$4 sm:$0xff]   ;;  %v731_v34 = vld [vmem:[%s975_s0 + $0x4] ss:$16 sps:$4 sm:$0xff]   ;;  %v732_v35 = vld [vmem:[%s975_s0 + $0x8] ss:$16 sps:$4 sm:$0xff]  }
   0xe   :  { %660 = vmatprep.subr.bf16.mxu1 %v710_v14  ;;  %v734_v36 = vld [vmem:[%s975_s0 + $0xc] ss:$16 sps:$4 sm:$0xff]   ;;  %447 = vmatprep.mubr.bf16.mxu0 %v731_v34  ;;  %v735_v37 = vld [vmem:[%s975_s0 + $0x24] ss:$16 sps:$4 sm:$0xff]   ;;  %v739_v39 = vld [vmem:[%s975_s0 + $0x20] ss:$16 sps:$4 sm:$0xff]  }
   0xf   :  { %512 = vmatprep.mubr.bf16.mxu1 %v734_v36  ;;  %v737_v38 = vld [vmem:[%s975_s0 + $0x2c] ss:$16 sps:$4 sm:$0xff]   ;;  %v740_v40 = vld [vmem:[%s975_s0 + $0x28] ss:$16 sps:$4 sm:$0xff]   ;;  %v741_v41 = vld [vmem:[%s975_s0 + $0x44] ss:$16 sps:$4 sm:$0xff]   ;;  %110 = vperm.xlu0 %695, %v96_v45  }
  0x10   :  { %621 = vmatpush3.bf16.msra.mxu0 %v711_v15  ;;  %v743_v42 = vld [vmem:[%s975_s0 + $0x4c] ss:$16 sps:$4 sm:$0xff]   ;;  %v97_v44 = vld [vmem:[%s976_s2 + $0x10] sm:$0xff]  ;;  %v746_v49 = vld [vmem:[%s975_s0 + $0x48] ss:$16 sps:$4 sm:$0xff]  }
  0x11   :  { %661 = vmatpush3.bf16.msra.mxu1 %v712_v16  ;;  %622 = vmatprep.subr.bf16.mxu0 %v713_v17  ;;  %v98_v46 = vld [vmem:[%s976_s2 + $0x18] sm:$0xff]  ;;  %v745_v47 = vld [vmem:[%s975_s0 + $0x40] ss:$16 sps:$4 sm:$0xff]   ;;  %v747_v50 = vld [vmem:[%s975_s0 + $0x64] ss:$16 sps:$4 sm:$0xff]  }
  0x12   :  { %662 = vmatprep.subr.bf16.mxu1 %v714_v18  ;;  %115 = vperm.xlu1 %696, %v97_v44   ;;  %v749_v52 = vld [vmem:[%s975_s0 + $0x6c] ss:$16 sps:$4 sm:$0xff]   ;;  %v101_v53 = vld [vmem:[%s976_s2 + $0x30] sm:$0xff]  ;;  %v752_v56 = vld [vmem:[%s975_s0 + $0x68] ss:$16 sps:$4 sm:$0xff]  }
  0x13   :  { %125 = vperm.xlu0 %695, %v99_v48   ;;  %v102_v54 = vld [vmem:[%s976_s2 + $0x38] sm:$0xff]  ;;  %v751_v55 = vld [vmem:[%s975_s0 + $0x60] ss:$16 sps:$4 sm:$0xff]  }
  0x14   :  { %623 = vmatpush3.bf16.msra.mxu0 %v715_v19 }
  0x15   :  { %663 = vmatpush3.bf16.msra.mxu1 %v716_v20  ;;  %624 = vmatprep.subr.bf16.mxu0 %v717_v21 }
  0x16   :  { %664 = vmatprep.subr.bf16.mxu1 %v718_v22  ;;  %120 = vperm.xlu1 %696, %v98_v46  }
  0x17   :  { %135 = vperm.xlu0 %695, %v101_v53  }
  0x18   :  { %625 = vmatpush3.bf16.msra.mxu0 %v719_v23 }
  0x19   :  { %665 = vmatpush3.bf16.msra.mxu1 %v720_v24  ;;  %626 = vmatprep.subr.bf16.mxu0 %v721_v25 }
  0x1a   :  { %666 = vmatprep.subr.bf16.mxu1 %v722_v26  ;;  %130 = vperm.xlu1 %696, %v100_v51  }
  0x1c   :  { %627 = vmatpush3.bf16.msra.mxu0 %v723_v27 }
  0x1d   :  { %667 = vmatpush3.bf16.msra.mxu1 %v724_v28  ;;  %628 = vmatprep.subr.bf16.mxu0 %v725_v29 }
  0x1e   :  { %668 = vmatprep.subr.bf16.mxu1 %v726_v30  ;;  %140 = vperm.xlu1 %696, %v102_v54  }
  0x20   :  { %629 = vmatpush3.bf16.msra.mxu0 %v727_v31 }
  0x21   :  { %669 = vmatpush3.bf16.msra.mxu1 %v728_v32 }
  0x23   :  { %448 = vmatmul.mubr.bf16.vlgmr.msra.gmra.mrb[0].mxu0 %v729_v33 }
  0x24   :  { %513 = vmatmul.mubr.bf16.vlgmr.msra.gmra.mrb[0].mxu1 %v732_v35  ;;  %455 = vmatprep.mubr.bf16.mxu0 %v735_v37 }
  0x25   :  { %520 = vmatprep.mubr.bf16.mxu1 %v737_v38 }
  0x2b   :  { %456 = vmatmul.mubr.bf16.gmra.mrb[4].mxu0 %v739_v39 }
  0x2c   :  { %521 = vmatmul.mubr.bf16.gmra.mrb[4].mxu1 %v740_v40  ;;  %463 = vmatprep.mubr.bf16.mxu0 %v741_v41 }
  0x2d   :  { %528 = vmatprep.mubr.bf16.mxu1 %v743_v42 }
  0x33   :  { %464 = vmatmul.mubr.bf16.gmra.mrb[8].mxu0 %v745_v47 }
  0x34   :  { %529 = vmatmul.mubr.bf16.gmra.mrb[8].mxu1 %v746_v49  ;;  %471 = vmatprep.mubr.bf16.mxu0 %v747_v50 }
  0x35   :  { %536 = vmatprep.mubr.bf16.mxu1 %v749_v52 }
  0x3b   :  { %472 = vmatmul.mubr.bf16.gmra.mrb[12].mxu0 %v751_v55 }
  0x3c   :  { %537 = vmatmul.mubr.bf16.gmra.mrb[12].mxu1 %v752_v56 }
  0x89   :  { %v106_v57 = vpop.permute.xlu0 %105 }
  0x8e   :  { %v111_v59 = vpop.permute.xlu0 %110 }
  0x91   :  { %v116_v10 = vpop.permute.xlu1 %115 }
  0x92   :  { %v126_v32 = vpop.permute.xlu0 %125 }
  0x95   :  { %v121_v26 = vpop.permute.xlu1 %120 }
  0x96   :  { %v136_v50 = vpop.permute.xlu0 %135 }
  0x99   :  { %v131_v46 = vpop.permute.xlu1 %130 }
  0xf6   :  { %v630_v58 = vpop.f32.mrb[0].mxu0 }
  0xf7   :  { %v670_v60 = vpop.f32.mrb[0].mxu1  ;;  %v631_v61 = vpop.f32.mrb[1].mxu0 }
  0xf8   :  { %v632_v62 = vadd.f32 %v631_v61, %v630_v58  ;;  %v671_v63 = vpop.f32.mrb[1].mxu1  ;;  %v633_v0 = vpop.f32.mrb[2].mxu0 }
  0xf9   :  { %v672_v1 = vadd.f32 %v671_v63, %v670_v60  ;;  %v673_v2 = vpop.f32.mrb[2].mxu1  ;;  %v634_v3 = vpop.f32.mrb[3].mxu0 }
  0xfa   :  { %v450_v4 = vadd.f32 %v632_v62, %v106_v57  ;;  %v635_v5 = vadd.f32 %v634_v3, %v633_v0  ;;  %v674_v6 = vpop.f32.mrb[3].mxu1 }
  0xfb   :  { %v675_v7 = vadd.f32 %v674_v6, %v673_v2  ;;  %v141_v2 = vpop.permute.xlu1 %140 }
  0xfc   :  { %v515_v8 = vadd.f32 %v672_v1, %v450_v4  ;;  %v453_v9 = vadd.f32 %v635_v5, %v111_v59 }
  0xfe   :  { %v545_v11 = vmax.f32 %v515_v8, 0.0  ;;  %v518_v12 = vadd.f32 %v675_v7, %v453_v9  ;;  %v636_v13 = vpop.f32.mrb[4].mxu0 }
  0xff   :  { %v676_v14 = vpop.f32.mrb[4].mxu1  ;;  %v637_v15 = vpop.f32.mrb[5].mxu0 }
 0x100   :  { %554 = vst.msk [vmem:[%s977_s3] sm:$0xff] %vm553_vm0, %v545_v11  ;;  %v546_v16 = vmax.f32 %v518_v12, 0.0  ;;  %v638_v17 = vadd.f32 %v637_v15, %v636_v13  ;;  %v677_v18 = vpop.f32.mrb[5].mxu1  ;;  %v639_v19 = vpop.f32.mrb[6].mxu0 }
 0x101   :  { %v678_v20 = vadd.f32 %v677_v18, %v676_v14  ;;  %v679_v21 = vpop.f32.mrb[6].mxu1  ;;  %v640_v22 = vpop.f32.mrb[7].mxu0 }
 0x102   :  { %555 = vst.msk [vmem:[%s977_s3 + $0x8] sm:$0xff] %vm553_vm0, %v546_v16  ;;  %v458_v23 = vadd.f32 %v638_v17, %v116_v10  ;;  %v641_v24 = vadd.f32 %v640_v22, %v639_v19  ;;  %v680_v25 = vpop.f32.mrb[7].mxu1 }
 0x103   :  { %v681_v27 = vadd.f32 %v680_v25, %v679_v21 }
 0x104   :  { %v523_v28 = vadd.f32 %v678_v20, %v458_v23  ;;  %v461_v29 = vadd.f32 %v641_v24, %v121_v26 }
 0x106   :  { %v547_v30 = vmax.f32 %v523_v28, 0.0  ;;  %v526_v31 = vadd.f32 %v681_v27, %v461_v29  ;;  %v642_v33 = vpop.f32.mrb[8].mxu0 }
 0x107   :  { %v682_v34 = vpop.f32.mrb[8].mxu1  ;;  %v643_v35 = vpop.f32.mrb[9].mxu0 }
 0x108   :  { %556 = vst.msk [vmem:[%s977_s3 + $0x10] sm:$0xff] %vm553_vm0, %v547_v30  ;;  %v548_v36 = vmax.f32 %v526_v31, 0.0  ;;  %v644_v37 = vadd.f32 %v643_v35, %v642_v33  ;;  %v683_v38 = vpop.f32.mrb[9].mxu1  ;;  %v645_v39 = vpop.f32.mrb[10].mxu0 }
 0x109   :  { %v684_v40 = vadd.f32 %v683_v38, %v682_v34  ;;  %v685_v41 = vpop.f32.mrb[10].mxu1  ;;  %v646_v42 = vpop.f32.mrb[11].mxu0 }
 0x10a   :  { %557 = vst.msk [vmem:[%s977_s3 + $0x18] sm:$0xff] %vm553_vm0, %v548_v36  ;;  %v466_v43 = vadd.f32 %v644_v37, %v126_v32  ;;  %v647_v44 = vadd.f32 %v646_v42, %v645_v39  ;;  %v686_v45 = vpop.f32.mrb[11].mxu1 }
 0x10b   :  { %v687_v47 = vadd.f32 %v686_v45, %v685_v41 }
 0x10c   :  { %v531_v48 = vadd.f32 %v684_v40, %v466_v43  ;;  %v469_v49 = vadd.f32 %v647_v44, %v131_v46 }
 0x10e   :  { %v549_v51 = vmax.f32 %v531_v48, 0.0  ;;  %v534_v52 = vadd.f32 %v687_v47, %v469_v49  ;;  %v648_v53 = vpop.f32.mrb[12].mxu0 }
 0x10f   :  { %v688_v54 = vpop.f32.mrb[12].mxu1  ;;  %v649_v55 = vpop.f32.mrb[13].mxu0 }
 0x110   :  { %558 = vst.msk [vmem:[%s977_s3 + $0x20] sm:$0xff] %vm553_vm0, %v549_v51  ;;  %v550_v56 = vmax.f32 %v534_v52, 0.0  ;;  %v650_v57 = vadd.f32 %v649_v55, %v648_v53  ;;  %v689_v58 = vpop.f32.mrb[13].mxu1  ;;  %v651_v59 = vpop.f32.mrb[14].mxu0 }
 0x111   :  { %v690_v60 = vadd.f32 %v689_v58, %v688_v54  ;;  %v691_v61 = vpop.f32.mrb[14].mxu1  ;;  %v652_v62 = vpop.f32.mrb[15].mxu0 }
 0x112   :  { %559 = vst.msk [vmem:[%s977_s3 + $0x28] sm:$0xff] %vm553_vm0, %v550_v56  ;;  %v474_v63 = vadd.f32 %v650_v57, %v136_v50  ;;  %v653_v0 = vadd.f32 %v652_v62, %v651_v59  ;;  %v692_v1 = vpop.f32.mrb[15].mxu1 }
 0x113   :  { %v693_v3 = vadd.f32 %v692_v1, %v691_v61 }
 0x114   :  { %v539_v4 = vadd.f32 %v690_v60, %v474_v63  ;;  %v477_v5 = vadd.f32 %v653_v0, %v141_v2 }
 0x116   :  { %v551_v6 = vmax.f32 %v539_v4, 0.0  ;;  %v542_v7 = vadd.f32 %v693_v3, %v477_v5 }
 0x118   :  { %560 = vst.msk [vmem:[%s977_s3 + $0x30] sm:$0xff] %vm553_vm0, %v551_v6  ;;  %v552_v8 = vmax.f32 %v542_v7, 0.0 }
 0x11a   :  { %561 = vst.msk [vmem:[%s977_s3 + $0x38] sm:$0xff] %vm553_vm0, %v552_v8 }

// kernel: affine_invariant_autoencoder_forward.9
= control target key start
LH: loop header
LB: loop body
LE: loop exit
PB: predicated region body
PF: predicated region fallthrough
CT: control target
= control target key end

     0   :  { %v1351_v1 = vmov 0   ;;  %vm647_vm0 = vcmask 523264   ;;  %vm979_vm1 = vcmask 261120   ;;  %s1756_s1 = inlined_call_operand.vmem [shape: bf16[576,32], index: 1, kind: input, shape index: {}]   ;;  %s1757_s0 = inlined_call_operand.vmem [shape: bf16[128,576], index: 0, kind: input, shape index: {}]   ;;  %s1758_s2 = inlined_call_operand.vmem [shape: f32[128,1], index: 2, kind: input, shape index: {}]   ;;  %s1759_s3 = inlined_call_operand.vmem [shape: f32[128,32], index: 3, kind: output, shape index: {}]  }
   0x1   :  { %v1259_v0 = vld [vmem:[%s1756_s1 + $0x40] sm:$0xff]   ;;  %1257 = vset.pattern.permute.xlu0 %v1351_v1  ;;  %1258 = vset.pattern.permute.xlu1 %v1351_v1  ;;  %v1263_v5 = vld [vmem:[%s1756_s1 + $0x48] sm:$0xff]   ;;  %v1267_v9 = vld [vmem:[%s1756_s1 + $0x50] sm:$0xff]  }
   0x2   :  { %v1260_v2 = vld [vmem:[%s1756_s1 + $0xc0] sm:$0xff]   ;;  %1084 = vmatprep.subr.bf16.mxu0 %v1259_v0  ;;  %v1264_v6 = vld [vmem:[%s1756_s1 + $0xc8] sm:$0xff]   ;;  %v1268_v10 = vld [vmem:[%s1756_s1 + $0xd0] sm:$0xff]  }
   0x3   :  { %v1261_v3 = vld [vmem:[%s1756_s1] sm:$0xff]   ;;  %1148 = vmatprep.subr.bf16.mxu1 %v1260_v2  ;;  %v1265_v7 = vld [vmem:[%s1756_s1 + $0x8] sm:$0xff]   ;;  %v1269_v11 = vld [vmem:[%s1756_s1 + $0x10] sm:$0xff]  }
   0x4   :  { %v1262_v4 = vld [vmem:[%s1756_s1 + $0x80] sm:$0xff]   ;;  %1085 = vmatpush3.bf16.msra.mxu0 %v1261_v3  ;;  %v1266_v8 = vld [vmem:[%s1756_s1 + $0x88] sm:$0xff]   ;;  %v1270_v12 = vld [vmem:[%s1756_s1 + $0x90] sm:$0xff]  }
   0x5   :  { %1149 = vmatpush3.bf16.msra.mxu1 %v1262_v4  ;;  %1086 = vmatprep.subr.bf16.mxu0 %v1263_v5  ;;  %v1271_v13 = vld [vmem:[%s1756_s1 + $0x58] sm:$0xff]   ;;  %v1275_v17 = vld [vmem:[%s1756_s1 + $0x60] sm:$0xff]   ;;  %v1279_v21 = vld [vmem:[%s1756_s1 + $0x68] sm:$0xff]  }
   0x6   :  { %1150 = vmatprep.subr.bf16.mxu1 %v1264_v6  ;;  %v1272_v14 = vld [vmem:[%s1756_s1 + $0xd8] sm:$0xff]   ;;  %v1276_v18 = vld [vmem:[%s1756_s1 + $0xe0] sm:$0xff]   ;;  %v1280_v22 = vld [vmem:[%s1756_s1 + $0xe8] sm:$0xff]  }
   0x7   :  { %v1273_v15 = vld [vmem:[%s1756_s1 + $0x18] sm:$0xff]   ;;  %v1277_v19 = vld [vmem:[%s1756_s1 + $0x20] sm:$0xff]   ;;  %v1281_v23 = vld [vmem:[%s1756_s1 + $0x28] sm:$0xff]  }
   0x8   :  { %1087 = vmatpush3.bf16.msra.mxu0 %v1265_v7  ;;  %v1274_v16 = vld [vmem:[%s1756_s1 + $0x98] sm:$0xff]   ;;  %v1278_v20 = vld [vmem:[%s1756_s1 + $0xa0] sm:$0xff]   ;;  %v1282_v24 = vld [vmem:[%s1756_s1 + $0xa8] sm:$0xff]  }
   0x9   :  { %1151 = vmatpush3.bf16.msra.mxu1 %v1266_v8  ;;  %1088 = vmatprep.subr.bf16.mxu0 %v1267_v9  ;;  %v1283_v25 = vld [vmem:[%s1756_s1 + $0x70] sm:$0xff]   ;;  %v1287_v29 = vld [vmem:[%s1756_s1 + $0x78] sm:$0xff]   ;;  %v1296_v36 = vld [vmem:[%s1757_s0 + $0xc] ss:$20 sps:$4 sm:$0xff]  }
   0xa   :  { %1152 = vmatprep.subr.bf16.mxu1 %v1268_v10  ;;  %v1284_v26 = vld [vmem:[%s1756_s1 + $0xf0] sm:$0xff]   ;;  %v1288_v30 = vld [vmem:[%s1756_s1 + $0xf8] sm:$0xff]   ;;  %v1297_v37 = vld [vmem:[%s1756_s1 + $0x100] sm:$0xff]   ;;  %801 = vmatprep.mubr.bf16.mxu1 %v1296_v36 }
   0xb   :  { %v1285_v27 = vld [vmem:[%s1756_s1 + $0x30] sm:$0xff]   ;;  %v1289_v31 = vld [vmem:[%s1756_s1 + $0x38] sm:$0xff]   ;;  %v1298_v38 = vld [vmem:[%s1757_s0 + $0x2c] ss:$20 sps:$4 sm:$0xff]  }
   0xc   :  { %1089 = vmatpush3.bf16.msra.mxu0 %v1269_v11  ;;  %v1286_v28 = vld [vmem:[%s1756_s1 + $0xb0] sm:$0xff]   ;;  %v1290_v32 = vld [vmem:[%s1756_s1 + $0xb8] sm:$0xff]   ;;  %v1310_v43 = vld [vmem:[%s1756_s1 + $0x108] sm:$0xff]  }
   0xd   :  { %1153 = vmatpush3.bf16.msra.mxu1 %v1270_v12  ;;  %1090 = vmatprep.subr.bf16.mxu0 %v1271_v13  ;;  %v1291_v33 = vld [vmem:[%s1757_s0] ss:$20 sps:$4 sm:$0xff]   ;;  %v1293_v34 = vld [vmem:[%s1757_s0 + $0x4] ss:$20 sps:$4 sm:$0xff]   ;;  %v1294_v35 = vld [vmem:[%s1757_s0 + $0x8] ss:$20 sps:$4 sm:$0xff]  }
   0xe   :  { %1154 = vmatprep.subr.bf16.mxu1 %v1272_v14  ;;  %704 = vmatprep.mubr.bf16.mxu0 %v1293_v34  ;;  %v1300_v39 = vld [vmem:[%s1757_s0 + $0x34] ss:$20 sps:$4 sm:$0xff]   ;;  %v1303_v41 = vld [vmem:[%s1757_s0 + $0x30] ss:$20 sps:$4 sm:$0xff]   ;;  %v1309_v46 = vld [vmem:[%s1757_s0 + $0x58] ss:$20 sps:$4 sm:$0xff]  }
   0xf   :  { %v1302_v40 = vld [vmem:[%s1757_s0 + $0x28] ss:$20 sps:$4 sm:$0xff]   ;;  %v1308_v45 = vld [vmem:[%s1757_s0 + $0x50] ss:$20 sps:$4 sm:$0xff]   ;;  %v1315_v51 = vld [vmem:[%s1757_s0 + $0x78] ss:$20 sps:$4 sm:$0xff]  }
  0x10   :  { %1091 = vmatpush3.bf16.msra.mxu0 %v1273_v15  ;;  %v1304_v42 = vld [vmem:[%s1757_s0 + $0x54] ss:$20 sps:$4 sm:$0xff]   ;;  %v1306_v44 = vld [vmem:[%s1757_s0 + $0x5c] ss:$20 sps:$4 sm:$0xff]   ;;  %v1313_v49 = vld [vmem:[%s1757_s0 + $0x84] ss:$20 sps:$4 sm:$0xff]  }
  0x11   :  { %1155 = vmatpush3.bf16.msra.mxu1 %v1274_v16  ;;  %1092 = vmatprep.subr.bf16.mxu0 %v1275_v17  ;;  %v1323_v47 = vld [vmem:[%s1756_s1 + $0x110] sm:$0xff]   ;;  %v1336_v50 = vld [vmem:[%s1756_s1 + $0x118] sm:$0xff]   ;;  %v1319_v54 = vld [vmem:[%s1757_s0 + $0xac] ss:$20 sps:$4 sm:$0xff]  }
  0x12   :  { %1156 = vmatprep.subr.bf16.mxu1 %v1276_v18  ;;  %v1311_v48 = vld [vmem:[%s1757_s0 + $0x7c] ss:$20 sps:$4 sm:$0xff]   ;;  %v1316_v52 = vld [vmem:[%s1757_s0 + $0x80] ss:$20 sps:$4 sm:$0xff]   ;;  %v1317_v53 = vld [vmem:[%s1757_s0 + $0xa4] ss:$20 sps:$4 sm:$0xff]  }
  0x13   :  { %v1321_v55 = vld [vmem:[%s1757_s0 + $0xa0] ss:$20 sps:$4 sm:$0xff]   ;;  %v1322_v56 = vld [vmem:[%s1757_s0 + $0xa8] ss:$20 sps:$4 sm:$0xff]   ;;  %v1329_v2 = vld [vmem:[%s1757_s0 + $0xd0] ss:$20 sps:$4 sm:$0xff]  }
  0x14   :  { %1093 = vmatpush3.bf16.msra.mxu0 %v1277_v19  ;;  %v1324_v57 = vld [vmem:[%s1757_s0 + $0xcc] ss:$20 sps:$4 sm:$0xff]   ;;  %v1326_v59 = vld [vmem:[%s1757_s0 + $0xd4] ss:$20 sps:$4 sm:$0xff]   ;;  %v138_v62 = vld [vmem:[%s1758_s2 + $0x18] sm:$0xff] }
  0x15   :  { %1157 = vmatpush3.bf16.msra.mxu1 %v1278_v20  ;;  %1094 = vmatprep.subr.bf16.mxu0 %v1279_v21  ;;  %v135_v58 = vld [vmem:[%s1758_s2] sm:$0xff]  ;;  %v137_v60 = vld [vmem:[%s1758_s2 + $0x10] sm:$0xff]  ;;  %v136_v61 = vld [vmem:[%s1758_s2 + $0x8] sm:$0xff] }
  0x16   :  { %1158 = vmatprep.subr.bf16.mxu1 %v1280_v22  ;;  %153 = vperm.xlu0 %1257, %v135_v58   ;;  %v139_v63 = vld [vmem:[%s1758_s2 + $0x20] sm:$0xff]  ;;  %v1328_v0 = vld [vmem:[%s1757_s0 + $0xc8] ss:$20 sps:$4 sm:$0xff]   ;;  %v141_v5 = vld [vmem:[%s1758_s2 + $0x30] sm:$0xff] }
  0x17   :  { %163 = vperm.xlu1 %1258, %v137_v60   ;;  %v140_v1 = vld [vmem:[%s1758_s2 + $0x28] sm:$0xff]  ;;  %v1332_v4 = vld [vmem:[%s1757_s0 + $0xfc] ss:$20 sps:$4 sm:$0xff]   ;;  %v143_v7 = vld [vmem:[%s1758_s2 + $0x40] sm:$0xff] }
  0x18   :  { %1095 = vmatpush3.bf16.msra.mxu0 %v1281_v23  ;;  %v1330_v3 = vld [vmem:[%s1757_s0 + $0xf4] ss:$20 sps:$4 sm:$0xff]   ;;  %v142_v6 = vld [vmem:[%s1758_s2 + $0x38] sm:$0xff]  ;;  %v1334_v8 = vld [vmem:[%s1757_s0 + $0xf0] ss:$20 sps:$4 sm:$0xff]  }
  0x19   :  { %1159 = vmatpush3.bf16.msra.mxu1 %v1282_v24  ;;  %1096 = vmatprep.subr.bf16.mxu0 %v1283_v25  ;;  %v144_v9 = vld [vmem:[%s1758_s2 + $0x48] sm:$0xff]  ;;  %v1337_v11 = vld [vmem:[%s1757_s0 + $0x11c] ss:$20 sps:$4 sm:$0xff]   ;;  %v1339_v12 = vld [vmem:[%s1757_s0 + $0x124] ss:$20 sps:$4 sm:$0xff]  }
  0x1a   :  { %1160 = vmatprep.subr.bf16.mxu1 %v1284_v26  ;;  %158 = vperm.xlu0 %1257, %v136_v61   ;;  %v1335_v10 = vld [vmem:[%s1757_s0 + $0xf8] ss:$20 sps:$4 sm:$0xff]   ;;  %v145_v13 = vld [vmem:[%s1758_s2 + $0x50] sm:$0xff]  ;;  %v147_v15 = vld [vmem:[%s1758_s2 + $0x60] sm:$0xff] }
  0x1b   :  { %168 = vperm.xlu1 %1258, %v138_v62   ;;  %v146_v14 = vld [vmem:[%s1758_s2 + $0x58] sm:$0xff]  ;;  %v148_v17 = vld [vmem:[%s1758_s2 + $0x68] sm:$0xff]  ;;  %v1342_v18 = vld [vmem:[%s1757_s0 + $0x120] ss:$20 sps:$4 sm:$0xff]  }
  0x1c   :  { %1097 = vmatpush3.bf16.msra.mxu0 %v1285_v27  ;;  %v1341_v16 = vld [vmem:[%s1757_s0 + $0x118] ss:$20 sps:$4 sm:$0xff]   ;;  %v1343_v19 = vld [vmem:[%s1757_s0 + $0x10] ss:$20 sps:$4 sm:$0xff]   ;;  %v1347_v25 = vld [vmem:[%s1757_s0 + $0x60] ss:$20 sps:$4 sm:$0xff]  }
  0x1d   :  { %1161 = vmatpush3.bf16.msra.mxu1 %v1286_v28  ;;  %1098 = vmatprep.subr.bf16.mxu0 %v1287_v29  ;;  %v1344_v20 = vld [vmem:[%s1757_s0 + $0xb0] ss:$20 sps:$4 sm:$0xff]   ;;  %v150_v22 = vld [vmem:[%s1758_s2 + $0x78] sm:$0xff]  ;;  %v1348_v26 = vld [vmem:[%s1757_s0 + $0x100] ss:$20 sps:$4 sm:$0xff]  }
  0x1e   :  { %1162 = vmatprep.subr.bf16.mxu1 %v1288_v30  ;;  %173 = vperm.xlu0 %1257, %v139_v63   ;;  %v149_v21 = vld [vmem:[%s1758_s2 + $0x70] sm:$0xff]  ;;  %v1345_v23 = vld [vmem:[%s1757_s0 + $0x38] ss:$20 sps:$4 sm:$0xff]   ;;  %v1349_v27 = vld [vmem:[%s1757_s0 + $0x88] ss:$20 sps:$4 sm:$0xff]  }
  0x1f   :  { %178 = vperm.xlu1 %1258, %v140_v1   ;;  %v1346_v24 = vld [vmem:[%s1757_s0 + $0xd8] ss:$20 sps:$4 sm:$0xff]   ;;  %v1350_v28 = vld [vmem:[%s1757_s0 + $0x128] ss:$20 sps:$4 sm:$0xff]  }
  0x20   :  { %1099 = vmatpush3.bf16.msra.mxu0 %v1289_v31 }
  0x21   :  { %1163 = vmatpush3.bf16.msra.mxu1 %v1290_v32  ;;  %1224 = vmatprep.subr.bf16.mxu0 %v1297_v37 }
  0x22   :  { %1248 = vmatprep.subr.bf16.mxu1 %v1297_v37  ;;  %183 = vperm.xlu0 %1257, %v141_v5  }
  0x23   :  { %705 = vmatmul.mubr.bf16.vlgmr.msra.gmra.mrb[0].mxu0 %v1291_v33  ;;  %188 = vperm.xlu1 %1258, %v142_v6  }
  0x24   :  { %802 = vmatmul.mubr.bf16.vlgmr.msra.gmra.mrb[0].mxu1 %v1294_v35  ;;  %1225 = vmatpush3.bf16.msra.mxu0 %v1297_v37 }
  0x25   :  { %1252 = vmatpush3.bf16.msra.mxu1 %v1297_v37  ;;  %712 = vmatprep.mubr.bf16.mxu0 %v1298_v38 }
  0x26   :  { %809 = vmatprep.mubr.bf16.mxu1 %v1300_v39  ;;  %1226 = vmatprep.subr.bf16.mxu0 %v1310_v43 }
  0x27   :  { %1249 = vmatprep.subr.bf16.mxu1 %v1310_v43  ;;  %193 = vperm.xlu0 %1257, %v143_v7  }
  0x28   :  { %1227 = vmatpush3.bf16.msra.mxu0 %v1310_v43  ;;  %198 = vperm.xlu1 %1258, %v144_v9  }
  0x29   :  { %1253 = vmatpush3.bf16.msra.mxu1 %v1310_v43  ;;  %1228 = vmatprep.subr.bf16.mxu0 %v1323_v47 }
  0x2a   :  { %1250 = vmatprep.subr.bf16.mxu1 %v1323_v47 }
  0x2b   :  { %713 = vmatmul.mubr.bf16.gmra.mrb[4].mxu0 %v1302_v40  ;;  %203 = vperm.xlu0 %1257, %v145_v13  }
  0x2c   :  { %810 = vmatmul.mubr.bf16.gmra.mrb[4].mxu1 %v1303_v41  ;;  %720 = vmatprep.mubr.bf16.mxu0 %v1304_v42 }
  0x2d   :  { %817 = vmatprep.mubr.bf16.mxu1 %v1306_v44  ;;  %1229 = vmatpush3.bf16.msra.mxu0 %v1323_v47 }
  0x2e   :  { %1254 = vmatpush3.bf16.msra.mxu1 %v1323_v47  ;;  %1230 = vmatprep.subr.bf16.mxu0 %v1336_v50 }
  0x2f   :  { %1251 = vmatprep.subr.bf16.mxu1 %v1336_v50  ;;  %208 = vperm.xlu1 %1258, %v146_v14  }
  0x30   :  { %213 = vperm.xlu0 %1257, %v147_v15  }
  0x31   :  { %1231 = vmatpush3.bf16.msra.mxu0 %v1336_v50 }
  0x32   :  { %1255 = vmatpush3.bf16.msra.mxu1 %v1336_v50 }
  0x33   :  { %721 = vmatmul.mubr.bf16.gmra.mrb[8].mxu0 %v1308_v45  ;;  %218 = vperm.xlu1 %1258, %v148_v17  }
  0x34   :  { %818 = vmatmul.mubr.bf16.gmra.mrb[8].mxu1 %v1309_v46  ;;  %728 = vmatprep.mubr.bf16.mxu0 %v1311_v48 }
  0x35   :  { %825 = vmatprep.mubr.bf16.mxu1 %v1313_v49  ;;  %223 = vperm.xlu0 %1257, %v149_v21  }
  0x37   :  { %228 = vperm.xlu1 %1258, %v150_v22  }
  0x3b   :  { %729 = vmatmul.mubr.bf16.gmra.mrb[12].mxu0 %v1315_v51 }
  0x3c   :  { %826 = vmatmul.mubr.bf16.gmra.mrb[12].mxu1 %v1316_v52  ;;  %736 = vmatprep.mubr.bf16.mxu0 %v1317_v53 }
  0x3d   :  { %833 = vmatprep.mubr.bf16.mxu1 %v1319_v54 }
  0x43   :  { %737 = vmatmul.mubr.bf16.gmra.mrb[16].mxu0 %v1321_v55 }
  0x44   :  { %834 = vmatmul.mubr.bf16.gmra.mrb[16].mxu1 %v1322_v56  ;;  %744 = vmatprep.mubr.bf16.mxu0 %v1324_v57 }
  0x45   :  { %841 = vmatprep.mubr.bf16.mxu1 %v1326_v59 }
  0x4b   :  { %745 = vmatmul.mubr.bf16.gmra.mrb[20].mxu0 %v1328_v0 }
  0x4c   :  { %842 = vmatmul.mubr.bf16.gmra.mrb[20].mxu1 %v1329_v2  ;;  %752 = vmatprep.mubr.bf16.mxu0 %v1330_v3 }
  0x4d   :  { %849 = vmatprep.mubr.bf16.mxu1 %v1332_v4 }
  0x53   :  { %753 = vmatmul.mubr.bf16.gmra.mrb[24].mxu0 %v1334_v8 }
  0x54   :  { %850 = vmatmul.mubr.bf16.gmra.mrb[24].mxu1 %v1335_v10  ;;  %760 = vmatprep.mubr.bf16.mxu0 %v1337_v11 }
  0x55   :  { %857 = vmatprep.mubr.bf16.mxu1 %v1339_v12 }
  0x5b   :  { %761 = vmatmul.mubr.bf16.gmra.mrb[28].mxu0 %v1341_v16 }
  0x5c   :  { %858 = vmatmul.mubr.bf16.gmra.mrb[28].mxu1 %v1342_v18  ;;  %1232 = vmatprep.mubr.msk.bf16.mxu0 %vm647_vm0, %v1343_v19 }
  0x5d   :  { %1240 = vmatprep.mubr.msk.bf16.mxu1 %vm647_vm0, %v1344_v20 }
  0x63   :  { %1233 = vmatmul.mubr.msk.bf16.vlgmr.msra.gmra.mrb[32].mxu0 %vm647_vm0, %v1345_v23 }
  0x64   :  { %1241 = vmatmul.mubr.msk.bf16.vlgmr.msra.gmra.mrb[32].mxu1 %vm647_vm0, %v1346_v24  ;;  %1236 = vmatprep.mubr.msk.bf16.mxu0 %vm647_vm0, %v1347_v25 }
  0x65   :  { %1244 = vmatprep.mubr.msk.bf16.mxu1 %vm647_vm0, %v1348_v26 }
  0x6b   :  { %1237 = vmatmul.mubr.msk.bf16.gmra.mrb[36].mxu0 %vm647_vm0, %v1349_v27 }
  0x6c   :  { %1245 = vmatmul.mubr.msk.bf16.gmra.mrb[36].mxu1 %vm647_vm0, %v1350_v28 }
  0x95   :  { %v154_v29 = vpop.permute.xlu0 %153 }
  0x96   :  { %v164_v30 = vpop.permute.xlu1 %163 }
  0x99   :  { %v159_v32 = vpop.permute.xlu0 %158 }
  0x9a   :  { %v169_v48 = vpop.permute.xlu1 %168 }
  0x9d   :  { %v174_v0 = vpop.permute.xlu0 %173 }
  0x9e   :  { %v179_v2 = vpop.permute.xlu1 %178 }
  0xa1   :  { %v184_v19 = vpop.permute.xlu0 %183 }
  0xf6   :  { %v1100_v31 = vpop.f32.mrb[0].mxu0 }
  0xf7   :  { %v1164_v33 = vpop.f32.mrb[0].mxu1  ;;  %v1101_v34 = vpop.f32.mrb[1].mxu0 }
  0xf8   :  { %v1102_v35 = vadd.f32 %v1101_v34, %v1100_v31  ;;  %v1165_v36 = vpop.f32.mrb[1].mxu1  ;;  %v1103_v37 = vpop.f32.mrb[2].mxu0 }
  0xf9   :  { %v1166_v38 = vadd.f32 %v1165_v36, %v1164_v33  ;;  %v1167_v39 = vpop.f32.mrb[2].mxu1  ;;  %v1104_v40 = vpop.f32.mrb[3].mxu0 }
  0xfa   :  { %v707_v41 = vadd.f32 %v1102_v35, %v154_v29  ;;  %v1105_v42 = vadd.f32 %v1104_v40, %v1103_v37  ;;  %v1168_v43 = vpop.f32.mrb[3].mxu1  ;;  %v189_v33 = vpop.permute.xlu1 %188 }
  0xfb   :  { %v1169_v44 = vadd.f32 %v1168_v43, %v1167_v39  ;;  %v194_v36 = vpop.permute.xlu0 %193 }
  0xfc   :  { %v710_v45 = vadd.f32 %v1105_v42, %v159_v32  ;;  %v1656_v46 = vadd.f32 %v1166_v38, %v707_v41 }
  0xfe   :  { %v1106_v47 = vpop.f32.mrb[4].mxu0  ;;  %v1658_v49 = vadd.f32 %v1169_v44, %v710_v45 }
  0xff   :  { %v1170_v50 = vpop.f32.mrb[4].mxu1  ;;  %v1107_v51 = vpop.f32.mrb[5].mxu0 }
 0x100   :  { %v1108_v52 = vadd.f32 %v1107_v51, %v1106_v47  ;;  %v1171_v53 = vpop.f32.mrb[5].mxu1  ;;  %v1109_v54 = vpop.f32.mrb[6].mxu0 }
 0x101   :  { %v1172_v55 = vadd.f32 %v1171_v53, %v1170_v50  ;;  %v1173_v56 = vpop.f32.mrb[6].mxu1  ;;  %v1110_v57 = vpop.f32.mrb[7].mxu0 }
 0x102   :  { %v715_v58 = vadd.f32 %v1108_v52, %v164_v30  ;;  %v1111_v59 = vadd.f32 %v1110_v57, %v1109_v54  ;;  %v1174_v60 = vpop.f32.mrb[7].mxu1  ;;  %v199_v52 = vpop.permute.xlu1 %198 }
 0x103   :  { %v1175_v61 = vadd.f32 %v1174_v60, %v1173_v56  ;;  %v204_v56 = vpop.permute.xlu0 %203 }
 0x104   :  { %v718_v62 = vadd.f32 %v1111_v59, %v169_v48  ;;  %v1660_v63 = vadd.f32 %v1172_v55, %v715_v58 }
 0x106   :  { %v1112_v1 = vpop.f32.mrb[8].mxu0  ;;  %v1662_v3 = vadd.f32 %v1175_v61, %v718_v62 }
 0x107   :  { %v1176_v4 = vpop.f32.mrb[8].mxu1  ;;  %v1113_v5 = vpop.f32.mrb[9].mxu0 }
 0x108   :  { %v1114_v6 = vadd.f32 %v1113_v5, %v1112_v1  ;;  %v1177_v7 = vpop.f32.mrb[9].mxu1  ;;  %v1115_v8 = vpop.f32.mrb[10].mxu0 }
 0x109   :  { %v1178_v9 = vadd.f32 %v1177_v7, %v1176_v4  ;;  %v1179_v10 = vpop.f32.mrb[10].mxu1  ;;  %v1116_v11 = vpop.f32.mrb[11].mxu0 }
 0x10a   :  { %v723_v12 = vadd.f32 %v1114_v6, %v174_v0  ;;  %v1117_v13 = vadd.f32 %v1116_v11, %v1115_v8  ;;  %v1180_v14 = vpop.f32.mrb[11].mxu1  ;;  %v209_v8 = vpop.permute.xlu1 %208 }
 0x10b   :  { %v1181_v15 = vadd.f32 %v1180_v14, %v1179_v10 }
 0x10c   :  { %v726_v16 = vadd.f32 %v1117_v13, %v179_v2  ;;  %v1664_v17 = vadd.f32 %v1178_v9, %v723_v12  ;;  %v214_v12 = vpop.permute.xlu0 %213 }
 0x10e   :  { %v1118_v18 = vpop.f32.mrb[12].mxu0  ;;  %v1666_v20 = vadd.f32 %v1181_v15, %v726_v16 }
 0x10f   :  { %v1182_v21 = vpop.f32.mrb[12].mxu1  ;;  %v1119_v22 = vpop.f32.mrb[13].mxu0 }
 0x110   :  { %v1120_v23 = vadd.f32 %v1119_v22, %v1118_v18  ;;  %v1183_v24 = vpop.f32.mrb[13].mxu1  ;;  %v1121_v25 = vpop.f32.mrb[14].mxu0 }
 0x111   :  { %v1184_v26 = vadd.f32 %v1183_v24, %v1182_v21  ;;  %v1185_v27 = vpop.f32.mrb[14].mxu1  ;;  %v1122_v28 = vpop.f32.mrb[15].mxu0 }
 0x112   :  { %v731_v29 = vadd.f32 %v1120_v23, %v184_v19  ;;  %v1123_v30 = vadd.f32 %v1122_v28, %v1121_v25  ;;  %v1186_v31 = vpop.f32.mrb[15].mxu1  ;;  %v219_v28 = vpop.permute.xlu1 %218 }
 0x113   :  { %v1187_v32 = vadd.f32 %v1186_v31, %v1185_v27 }
 0x114   :  { %v734_v34 = vadd.f32 %v1123_v30, %v189_v33  ;;  %v1668_v35 = vadd.f32 %v1184_v26, %v731_v29 }
 0x116   :  { %v1124_v37 = vpop.f32.mrb[16].mxu0  ;;  %v1670_v38 = vadd.f32 %v1187_v32, %v734_v34  ;;  %v224_v32 = vpop.permute.xlu0 %223 }
 0x117   :  { %v1188_v39 = vpop.f32.mrb[16].mxu1  ;;  %v1125_v40 = vpop.f32.mrb[17].mxu0 }
 0x118   :  { %v1126_v41 = vadd.f32 %v1125_v40, %v1124_v37  ;;  %v1189_v42 = vpop.f32.mrb[17].mxu1  ;;  %v1127_v43 = vpop.f32.mrb[18].mxu0 }
 0x119   :  { %v1190_v44 = vadd.f32 %v1189_v42, %v1188_v39  ;;  %v1191_v45 = vpop.f32.mrb[18].mxu1  ;;  %v1128_v47 = vpop.f32.mrb[19].mxu0 }
 0x11a   :  { %v739_v48 = vadd.f32 %v1126_v41, %v194_v36  ;;  %v1129_v50 = vadd.f32 %v1128_v47, %v1127_v43  ;;  %v1192_v51 = vpop.f32.mrb[19].mxu1 }
 0x11b   :  { %v1193_v53 = vadd.f32 %v1192_v51, %v1191_v45 }
 0x11c   :  { %v742_v54 = vadd.f32 %v1129_v50, %v199_v52  ;;  %v1672_v55 = vadd.f32 %v1190_v44, %v739_v48  ;;  %v229_v50 = vpop.permute.xlu1 %228 }
 0x11e   :  { %v1130_v57 = vpop.f32.mrb[20].mxu0  ;;  %v1674_v58 = vadd.f32 %v1193_v53, %v742_v54 }
 0x11f   :  { %v1194_v59 = vpop.f32.mrb[20].mxu1  ;;  %v1131_v60 = vpop.f32.mrb[21].mxu0 }
 0x120   :  { %v1132_v61 = vadd.f32 %v1131_v60, %v1130_v57  ;;  %v1195_v62 = vpop.f32.mrb[21].mxu1  ;;  %v1133_v0 = vpop.f32.mrb[22].mxu0 }
 0x121   :  { %v1196_v1 = vadd.f32 %v1195_v62, %v1194_v59  ;;  %v1197_v2 = vpop.f32.mrb[22].mxu1  ;;  %v1134_v4 = vpop.f32.mrb[23].mxu0 }
 0x122   :  { %v747_v5 = vadd.f32 %v1132_v61, %v204_v56  ;;  %v1135_v6 = vadd.f32 %v1134_v4, %v1133_v0  ;;  %v1198_v7 = vpop.f32.mrb[23].mxu1 }
 0x123   :  { %v1199_v9 = vadd.f32 %v1198_v7, %v1197_v2 }
 0x124   :  { %v750_v10 = vadd.f32 %v1135_v6, %v209_v8  ;;  %v844_v11 = vadd.f32 %v1196_v1, %v747_v5 }
 0x126   :  { %v1136_v13 = vpop.f32.mrb[24].mxu0  ;;  %v847_v14 = vadd.f32 %v1199_v9, %v750_v10 }
 0x127   :  { %v1200_v15 = vpop.f32.mrb[24].mxu1  ;;  %v1137_v16 = vpop.f32.mrb[25].mxu0 }
 0x128   :  { %v1138_v18 = vadd.f32 %v1137_v16, %v1136_v13  ;;  %v1201_v19 = vpop.f32.mrb[25].mxu1  ;;  %v1139_v21 = vpop.f32.mrb[26].mxu0 }
 0x129   :  { %v1202_v22 = vadd.f32 %v1201_v19, %v1200_v15  ;;  %v1203_v23 = vpop.f32.mrb[26].mxu1  ;;  %v1140_v24 = vpop.f32.mrb[27].mxu0 }
 0x12a   :  { %v755_v25 = vadd.f32 %v1138_v18, %v214_v12  ;;  %v1141_v26 = vadd.f32 %v1140_v24, %v1139_v21  ;;  %v1204_v27 = vpop.f32.mrb[27].mxu1 }
 0x12b   :  { %v1205_v29 = vadd.f32 %v1204_v27, %v1203_v23 }
 0x12c   :  { %v758_v30 = vadd.f32 %v1141_v26, %v219_v28  ;;  %v1676_v31 = vadd.f32 %v1202_v22, %v755_v25 }
 0x12e   :  { %v1142_v33 = vpop.f32.mrb[28].mxu0  ;;  %v1678_v34 = vadd.f32 %v1205_v29, %v758_v30 }
 0x12f   :  { %v1206_v36 = vpop.f32.mrb[28].mxu1  ;;  %v1143_v37 = vpop.f32.mrb[29].mxu0 }
 0x130   :  { %v1144_v39 = vadd.f32 %v1143_v37, %v1142_v33  ;;  %v1207_v40 = vpop.f32.mrb[29].mxu1  ;;  %v1145_v41 = vpop.f32.mrb[30].mxu0 }
 0x131   :  { %v1208_v42 = vadd.f32 %v1207_v40, %v1206_v36  ;;  %v1209_v43 = vpop.f32.mrb[30].mxu1  ;;  %v1146_v44 = vpop.f32.mrb[31].mxu0 }
 0x132   :  { %v763_v45 = vadd.f32 %v1144_v39, %v224_v32  ;;  %v1147_v47 = vadd.f32 %v1146_v44, %v1145_v41  ;;  %v1210_v48 = vpop.f32.mrb[31].mxu1 }
 0x133   :  { %v1211_v51 = vadd.f32 %v1210_v48, %v1209_v43 }
 0x134   :  { %v766_v52 = vadd.f32 %v1147_v47, %v229_v50  ;;  %v860_v53 = vadd.f32 %v1208_v42, %v763_v45 }
 0x136   :  { %v1234_v54 = vpop.f32.mrb[32].mxu0  ;;  %v863_v56 = vadd.f32 %v1211_v51, %v766_v52 }
 0x137   :  { %v909_v57 = vadd.f32 %v1234_v54, %v1660_v63  ;;  %v1242_v59 = vpop.f32.mrb[32].mxu1  ;;  %v900_v60 = vpop.f32.mrb[33].mxu0 }
 0x138   :  { %v941_v61 = vadd.f32 %v1242_v59, %v844_v11  ;;  %v901_v62 = vadd.f32 %v900_v60, %v1656_v46  ;;  %v932_v0 = vpop.f32.mrb[33].mxu1  ;;  %v1235_v1 = vpop.f32.mrb[34].mxu0 }
 0x139   :  { %v965_v2 = vmax.f32 %v909_v57, 0.0  ;;  %v933_v4 = vadd.f32 %v932_v0, %v1672_v55  ;;  %v912_v5 = vadd.f32 %v1235_v1, %v1662_v3  ;;  %v1243_v6 = vpop.f32.mrb[34].mxu1  ;;  %v903_v7 = vpop.f32.mrb[35].mxu0 }
 0x13a   :  { %v973_v8 = vmax.f32 %v941_v61, 0.0  ;;  %v963_v9 = vmax.f32 %v901_v62, 0.0  ;;  %v944_v10 = vadd.f32 %v1243_v6, %v847_v14  ;;  %v904_v63 = vadd.f32 %v903_v7, %v1658_v49  ;;  %v935_v12 = vpop.f32.mrb[35].mxu1 }
 0x13b   :  { %982 = vst.msk [vmem:[%s1759_s3 + $0x10] sm:$0xff] %vm979_vm1, %v965_v2  ;;  %v971_v46 = vmax.f32 %v933_v4, 0.0  ;;  %v966_v11 = vmax.f32 %v912_v5, 0.0  ;;  %v936_v13 = vadd.f32 %v935_v12, %v1674_v58 }
 0x13c   :  { %990 = vst.msk [vmem:[%s1759_s3 + $0x50] sm:$0xff] %vm979_vm1, %v973_v8  ;;  %980 = vst.msk [vmem:[%s1759_s3] sm:$0xff] %vm979_vm1, %v963_v9  ;;  %v974_v49 = vmax.f32 %v944_v10, 0.0  ;;  %v964_v3 = vmax.f32 %v904_v63, 0.0 }
 0x13d   :  { %988 = vst.msk [vmem:[%s1759_s3 + $0x40] sm:$0xff] %vm979_vm1, %v971_v46  ;;  %983 = vst.msk [vmem:[%s1759_s3 + $0x18] sm:$0xff] %vm979_vm1, %v966_v11  ;;  %v972_v55 = vmax.f32 %v936_v13, 0.0 }
 0x13e   :  { %991 = vst.msk [vmem:[%s1759_s3 + $0x58] sm:$0xff] %vm979_vm1, %v974_v49  ;;  %981 = vst.msk [vmem:[%s1759_s3 + $0x8] sm:$0xff] %vm979_vm1, %v964_v3  ;;  %v1238_v58 = vpop.f32.mrb[36].mxu0 }
 0x13f   :  { %989 = vst.msk [vmem:[%s1759_s3 + $0x48] sm:$0xff] %vm979_vm1, %v972_v55  ;;  %v925_v14 = vadd.f32 %v1238_v58, %v1668_v35  ;;  %v1246_v15 = vpop.f32.mrb[36].mxu1  ;;  %v916_v16 = vpop.f32.mrb[37].mxu0 }
 0x140   :  { %v957_v18 = vadd.f32 %v1246_v15, %v860_v53  ;;  %v917_v19 = vadd.f32 %v916_v16, %v1664_v17  ;;  %v948_v21 = vpop.f32.mrb[37].mxu1  ;;  %v1239_v22 = vpop.f32.mrb[38].mxu0 }
 0x141   :  { %v969_v23 = vmax.f32 %v925_v14, 0.0  ;;  %v949_v24 = vadd.f32 %v948_v21, %v1676_v31  ;;  %v928_v25 = vadd.f32 %v1239_v22, %v1670_v38  ;;  %v1247_v26 = vpop.f32.mrb[38].mxu1  ;;  %v919_v27 = vpop.f32.mrb[39].mxu0 }
 0x142   :  { %v977_v28 = vmax.f32 %v957_v18, 0.0  ;;  %v967_v29 = vmax.f32 %v917_v19, 0.0  ;;  %v960_v30 = vadd.f32 %v1247_v26, %v863_v56  ;;  %v920_v32 = vadd.f32 %v919_v27, %v1666_v20  ;;  %v951_v35 = vpop.f32.mrb[39].mxu1 }
 0x143   :  { %986 = vst.msk [vmem:[%s1759_s3 + $0x30] sm:$0xff] %vm979_vm1, %v969_v23  ;;  %v975_v17 = vmax.f32 %v949_v24, 0.0  ;;  %v970_v33 = vmax.f32 %v928_v25, 0.0  ;;  %v952_v36 = vadd.f32 %v951_v35, %v1678_v34 }
 0x144   :  { %994 = vst.msk [vmem:[%s1759_s3 + $0x70] sm:$0xff] %vm979_vm1, %v977_v28  ;;  %984 = vst.msk [vmem:[%s1759_s3 + $0x20] sm:$0xff] %vm979_vm1, %v967_v29  ;;  %v978_v20 = vmax.f32 %v960_v30, 0.0  ;;  %v968_v38 = vmax.f32 %v920_v32, 0.0 }
 0x145   :  { %992 = vst.msk [vmem:[%s1759_s3 + $0x60] sm:$0xff] %vm979_vm1, %v975_v17  ;;  %987 = vst.msk [vmem:[%s1759_s3 + $0x38] sm:$0xff] %vm979_vm1, %v970_v33  ;;  %v976_v31 = vmax.f32 %v952_v36, 0.0 }
 0x146   :  { %995 = vst.msk [vmem:[%s1759_s3 + $0x78] sm:$0xff] %vm979_vm1, %v978_v20  ;;  %985 = vst.msk [vmem:[%s1759_s3 + $0x28] sm:$0xff] %vm979_vm1, %v968_v38 }
 0x147   :  { %993 = vst.msk [vmem:[%s1759_s3 + $0x68] sm:$0xff] %vm979_vm1, %v976_v31 }

// kernel: affine_invariant_autoencoder_forward.10
= control target key start
LH: loop header
LB: loop body
LE: loop exit
PB: predicated region body
PF: predicated region fallthrough
CT: control target
= control target key end

     0   :  { %s15229_s0 = inlined_call_operand.vmem [shape: bf16[2,2048], index: 0, kind: input, shape index: {}]   ;;  %s15230_s1 = inlined_call_operand.vmem [shape: bf16[2,784], index: 1, kind: input, shape index: {}]   ;;  %s15231_s2 = inlined_call_operand.vmem [shape: bf16[2048,512], index: 2, kind: input, shape index: {}]   ;;  %s15232_s3 = inlined_call_operand.vmem [shape: f32[1,512], index: 3, kind: input, shape index: {}]   ;;  %s15233_s4 = inlined_call_operand.vmem [shape: bf16[512,64], index: 4, kind: input, shape index: {}]   ;;  %s15234_s5 = inlined_call_operand.vmem [shape: f32[1,64], index: 5, kind: input, shape index: {}]   ;;  %s15235_s6 = inlined_call_operand.vmem [shape: bf16[64,512], index: 6, kind: input, shape index: {}]   ;;  %s15236_s7 = inlined_call_operand.vmem [shape: f32[1,512], index: 7, kind: input, shape index: {}]   ;;  %s15237_s8 = inlined_call_operand.vmem [shape: bf16[512,2048], index: 8, kind: input, shape index: {}]   ;;  %s15238_s9 = inlined_call_operand.vmem [shape: f32[1,2048], index: 9, kind: input, shape index: {}]   ;;  %s15239_s10 = inlined_call_operand.vmem [shape: bf16[784,128], index: 10, kind: input, shape index: {}]   ;;  %s15240_s11 = inlined_call_operand.vmem [shape: f32[1,128], index: 11, kind: input, shape index: {}]   ;;  %s15241_s12 = inlined_call_operand.vmem [shape: bf16[128,6], index: 12, kind: input, shape index: {}]   ;;  %s15242_s13 = inlined_call_operand.vmem [shape: f32[1,6], index: 13, kind: input, shape index: {}]   ;;  %s15243_s14 = inlined_call_operand.hbm [shape: f32[2,64], index: 14, kind: output, shape index: {0}]   ;;  %s15244_s15 = inlined_call_operand.vmem [shape: f32[2,2048], index: 15, kind: output, shape index: {1}]   ;;  %s15245_s16 = inlined_call_operand.vmem [shape: f32[2,6], index: 16, kind: output, shape index: {2}]  }
   0x1   :  { %15247 = sst [smem:[#allocation5_spill]] %s15229_s0 }
   0x2   :  { %v10558_v0 = vld [vmem:[%s15231_s2 + $0x4] ss:$16 sps:$4 sm:$0xff]   ;;  %v10560_v1 = vld [vmem:[%s15231_s2 + $0xc] ss:$16 sps:$4 sm:$0xff]   ;;  %v10562_v2 = vld [vmem:[%s15231_s2] ss:$16 sps:$4 sm:$0xff]   ;;  %v568_v36 = vlaneseq }
   0x3   :  { %3264 = vmatprep.subr.bf16.mxu0 %v10558_v0  ;;  %v10563_v3 = vld [vmem:[%s15231_s2 + $0x8] ss:$16 sps:$4 sm:$0xff]   ;;  %3592 = vmatprep.subr.bf16.mxu1 %v10560_v1  ;;  %v10564_v4 = vld [vmem:[%s15231_s2 + $0x24] ss:$16 sps:$4 sm:$0xff]   ;;  %v10566_v5 = vld [vmem:[%s15231_s2 + $0x2c] ss:$16 sps:$4 sm:$0xff]  }
   0x4   :  { %3265 = vmatpush1.bf16.msra.mxu0 %v10562_v2  ;;  %3593 = vmatpush1.bf16.msra.mxu1 %v10563_v3  ;;  %v10568_v6 = vld [vmem:[%s15231_s2 + $0x20] ss:$16 sps:$4 sm:$0xff]   ;;  %v10569_v7 = vld [vmem:[%s15231_s2 + $0x28] ss:$16 sps:$4 sm:$0xff]   ;;  %v10570_v8 = vld [vmem:[%s15231_s2 + $0x44] ss:$16 sps:$4 sm:$0xff]  }
   0x5   :  { %3266 = vmatprep.subr.bf16.mxu0 %v10564_v4  ;;  %3594 = vmatprep.subr.bf16.mxu1 %v10566_v5  ;;  %v10572_v9 = vld [vmem:[%s15231_s2 + $0x4c] ss:$16 sps:$4 sm:$0xff]   ;;  %v10574_v10 = vld [vmem:[%s15231_s2 + $0x40] ss:$16 sps:$4 sm:$0xff]   ;;  %v10575_v11 = vld [vmem:[%s15231_s2 + $0x48] ss:$16 sps:$4 sm:$0xff]  }
   0x6   :  { %v10576_v12 = vld [vmem:[%s15231_s2 + $0x64] ss:$16 sps:$4 sm:$0xff]   ;;  %v10578_v13 = vld [vmem:[%s15231_s2 + $0x6c] ss:$16 sps:$4 sm:$0xff]   ;;  %v10580_v14 = vld [vmem:[%s15231_s2 + $0x60] ss:$16 sps:$4 sm:$0xff]  }
   0x7   :  { %v10581_v15 = vld [vmem:[%s15231_s2 + $0x68] ss:$16 sps:$4 sm:$0xff]   ;;  %v10582_v16 = vld [vmem:[%s15231_s2 + $0x84] ss:$16 sps:$4 sm:$0xff]   ;;  %v10584_v17 = vld [vmem:[%s15231_s2 + $0x8c] ss:$16 sps:$4 sm:$0xff]  }
   0x8   :  { %3267 = vmatpush1.bf16.msra.mxu0 %v10568_v6  ;;  %3595 = vmatpush1.bf16.msra.mxu1 %v10569_v7  ;;  %v10586_v18 = vld [vmem:[%s15231_s2 + $0x80] ss:$16 sps:$4 sm:$0xff]   ;;  %v10587_v19 = vld [vmem:[%s15231_s2 + $0x88] ss:$16 sps:$4 sm:$0xff]   ;;  %v10588_v20 = vld [vmem:[%s15231_s2 + $0xa4] ss:$16 sps:$4 sm:$0xff]  }
   0x9   :  { %3268 = vmatprep.subr.bf16.mxu0 %v10570_v8  ;;  %3596 = vmatprep.subr.bf16.mxu1 %v10572_v9  ;;  %v10590_v21 = vld [vmem:[%s15231_s2 + $0xac] ss:$16 sps:$4 sm:$0xff]   ;;  %v10592_v22 = vld [vmem:[%s15231_s2 + $0xa0] ss:$16 sps:$4 sm:$0xff]   ;;  %v10593_v23 = vld [vmem:[%s15231_s2 + $0xa8] ss:$16 sps:$4 sm:$0xff]  }
   0xa   :  { %v10594_v24 = vld [vmem:[%s15231_s2 + $0xc4] ss:$16 sps:$4 sm:$0xff]   ;;  %v10596_v25 = vld [vmem:[%s15231_s2 + $0xcc] ss:$16 sps:$4 sm:$0xff]   ;;  %v10598_v26 = vld [vmem:[%s15231_s2 + $0xc0] ss:$16 sps:$4 sm:$0xff]  }
   0xb   :  { %v10599_v27 = vld [vmem:[%s15231_s2 + $0xc8] ss:$16 sps:$4 sm:$0xff]   ;;  %v10600_v28 = vld [vmem:[%s15231_s2 + $0xe4] ss:$16 sps:$4 sm:$0xff]   ;;  %v10602_v29 = vld [vmem:[%s15231_s2 + $0xec] ss:$16 sps:$4 sm:$0xff]  }
   0xc   :  { %3269 = vmatpush1.bf16.msra.mxu0 %v10574_v10  ;;  %3597 = vmatpush1.bf16.msra.mxu1 %v10575_v11  ;;  %v10604_v30 = vld [vmem:[%s15231_s2 + $0xe0] ss:$16 sps:$4 sm:$0xff]   ;;  %v10605_v31 = vld [vmem:[%s15231_s2 + $0xe8] ss:$16 sps:$4 sm:$0xff]   ;;  %v10606_v32 = vld [vmem:[%s15231_s2 + $0x104] ss:$16 sps:$4 sm:$0xff]  }
   0xd   :  { %3270 = vmatprep.subr.bf16.mxu0 %v10576_v12  ;;  %3598 = vmatprep.subr.bf16.mxu1 %v10578_v13  ;;  %v10608_v33 = vld [vmem:[%s15231_s2 + $0x10c] ss:$16 sps:$4 sm:$0xff]   ;;  %v10610_v34 = vld [vmem:[%s15231_s2 + $0x100] ss:$16 sps:$4 sm:$0xff]   ;;  %v10611_v35 = vld [vmem:[%s15231_s2 + $0x108] ss:$16 sps:$4 sm:$0xff]  }
   0xe   :  { %v11468_v37 = vmov 1966171168   ;;  %v10612_v39 = vld [vmem:[%s15231_s2 + $0x124] ss:$16 sps:$4 sm:$0xff]   ;;  %v10614_v40 = vld [vmem:[%s15231_s2 + $0x12c] ss:$16 sps:$4 sm:$0xff]  }
   0xf   :  { %v592_v38 = vunpack.c.l.s4 %v11468_v37  ;;  %v10616_v41 = vld [vmem:[%s15231_s2 + $0x120] ss:$16 sps:$4 sm:$0xff]   ;;  %v11676_v42 = vshrl.u32 %v568_v36, 7  ;;  %v10617_v44 = vld [vmem:[%s15231_s2 + $0x128] ss:$16 sps:$4 sm:$0xff]   ;;  %s15248_s25 = sld [smem:[#allocation5_spill]] }
  0x10   :  { %3271 = vmatpush1.bf16.msra.mxu0 %v10580_v14  ;;  %3599 = vmatpush1.bf16.msra.mxu1 %v10581_v15  ;;  %v10618_v45 = vld [vmem:[%s15231_s2 + $0x144] ss:$16 sps:$4 sm:$0xff]   ;;  %v10620_v46 = vld [vmem:[%s15231_s2 + $0x14c] ss:$16 sps:$4 sm:$0xff]   ;;  %v10622_v47 = vld [vmem:[%s15231_s2 + $0x140] ss:$16 sps:$4 sm:$0xff]  }
  0x11   :  { %3272 = vmatprep.subr.bf16.mxu0 %v10582_v16  ;;  %3600 = vmatprep.subr.bf16.mxu1 %v10584_v17  ;;  %v593_v43 = vunpack.c.0.s8 %v592_v38  ;;  %v10623_v48 = vld [vmem:[%s15231_s2 + $0x148] ss:$16 sps:$4 sm:$0xff]   ;;  %v10624_v50 = vld [vmem:[%s15231_s2 + $0x164] ss:$16 sps:$4 sm:$0xff]   ;;  %v10626_v51 = vld [vmem:[%s15231_s2 + $0x16c] ss:$16 sps:$4 sm:$0xff]  }
  0x12   :  { %v10628_v53 = vld [vmem:[%s15231_s2 + $0x160] ss:$16 sps:$4 sm:$0xff]   ;;  %v10629_v55 = vld [vmem:[%s15231_s2 + $0x168] ss:$16 sps:$4 sm:$0xff]   ;;  %v10630_v56 = vld [vmem:[%s15231_s2 + $0x184] ss:$16 sps:$4 sm:$0xff]  }
  0x13   :  { %v11694_v49 = vsub.s32 %v593_v43, %v11676_v42  ;;  %v10632_v57 = vld [vmem:[%s15231_s2 + $0x18c] ss:$16 sps:$4 sm:$0xff]   ;;  %v10634_v59 = vld [vmem:[%s15231_s2 + $0x180] ss:$16 sps:$4 sm:$0xff]   ;;  %v10635_v61 = vld [vmem:[%s15231_s2 + $0x188] ss:$16 sps:$4 sm:$0xff]  }
  0x14   :  { %3273 = vmatpush1.bf16.msra.mxu0 %v10586_v18  ;;  %3601 = vmatpush1.bf16.msra.mxu1 %v10587_v19  ;;  %v10636_v62 = vld [vmem:[%s15231_s2 + $0x1a4] ss:$16 sps:$4 sm:$0xff]   ;;  %v10638_v63 = vld [vmem:[%s15231_s2 + $0x1ac] ss:$16 sps:$4 sm:$0xff]   ;;  %v10640_v0 = vld [vmem:[%s15231_s2 + $0x1a0] ss:$16 sps:$4 sm:$0xff]  }
  0x15   :  { %3274 = vmatprep.subr.bf16.mxu0 %v10588_v20  ;;  %3602 = vmatprep.subr.bf16.mxu1 %v10590_v21  ;;  %v11705_v52 = vld [vmem:[%s15248_s25] sm:$0xff]  ;;  %v10641_v1 = vld [vmem:[%s15231_s2 + $0x1a8] ss:$16 sps:$4 sm:$0xff]   ;;  %v10644_v3 = vld [vmem:[%s15231_s2 + $0x1cc] ss:$16 sps:$4 sm:$0xff]  }
  0x16   :  { %v597_v54 = vrot.slane %v11705_v52, %v11694_v49  ;;  %v10642_v2 = vld [vmem:[%s15231_s2 + $0x1c4] ss:$16 sps:$4 sm:$0xff]   ;;  %v10646_v4 = vld [vmem:[%s15231_s2 + $0x1c0] ss:$16 sps:$4 sm:$0xff]   ;;  %v10647_v5 = vld [vmem:[%s15231_s2 + $0x1c8] ss:$16 sps:$4 sm:$0xff]  }
  0x17   :  { %v10648_v6 = vld [vmem:[%s15231_s2 + $0x1e4] ss:$16 sps:$4 sm:$0xff]   ;;  %v10650_v7 = vld [vmem:[%s15231_s2 + $0x1ec] ss:$16 sps:$4 sm:$0xff]   ;;  %v10652_v8 = vld [vmem:[%s15231_s2 + $0x1e0] ss:$16 sps:$4 sm:$0xff]  }
  0x18   :  { %3275 = vmatpush1.bf16.msra.mxu0 %v10592_v22  ;;  %3603 = vmatpush1.bf16.msra.mxu1 %v10593_v23  ;;  %v605_v58 = vcombine.high %v597_v54, %v597_v54  ;;  %v10653_v9 = vld [vmem:[%s15231_s2 + $0x1e8] ss:$16 sps:$4 sm:$0xff]   ;;  %v10656_v10 = vld [vmem:[%s15231_s2 + $0x204] ss:$16 sps:$4 sm:$0xff]   ;;  %v10659_v11 = vld [vmem:[%s15231_s2 + $0x20c] ss:$16 sps:$4 sm:$0xff]   ;;  %v11774_v13 = vrot.slane %v597_v54, %v11694_v49 }
  0x19   :  { %3276 = vmatprep.subr.bf16.mxu0 %v10594_v24  ;;  %3604 = vmatprep.subr.bf16.mxu1 %v10596_v25  ;;  %v10654_v12 = vld [vmem:[%s15231_s2 + $0x200] ss:$16 sps:$4 sm:$0xff]   ;;  %v10657_v14 = vld [vmem:[%s15231_s2 + $0x208] ss:$16 sps:$4 sm:$0xff]   ;;  %v10662_v15 = vld [vmem:[%s15231_s2 + $0x224] ss:$16 sps:$4 sm:$0xff]  }
  0x1a   :  { %v627_v60 = vrot.slane %v605_v58, %v11694_v49  ;;  %v10665_v16 = vld [vmem:[%s15231_s2 + $0x22c] ss:$16 sps:$4 sm:$0xff]   ;;  %v10660_v18 = vld [vmem:[%s15231_s2 + $0x220] ss:$16 sps:$4 sm:$0xff]   ;;  %v10663_v19 = vld [vmem:[%s15231_s2 + $0x228] ss:$16 sps:$4 sm:$0xff]  }
  0x1b   :  { %v10668_v20 = vld [vmem:[%s15231_s2 + $0x244] ss:$16 sps:$4 sm:$0xff]   ;;  %v10671_v21 = vld [vmem:[%s15231_s2 + $0x24c] ss:$16 sps:$4 sm:$0xff]   ;;  %v10666_v22 = vld [vmem:[%s15231_s2 + $0x240] ss:$16 sps:$4 sm:$0xff]  }
  0x1c   :  { %3277 = vmatpush1.bf16.msra.mxu0 %v10598_v26  ;;  %3605 = vmatpush1.bf16.msra.mxu1 %v10599_v27  ;;  %v637_v17 = vcombine.high %v627_v60, %v627_v60  ;;  %v10669_v23 = vld [vmem:[%s15231_s2 + $0x248] ss:$16 sps:$4 sm:$0xff]   ;;  %v10674_v24 = vld [vmem:[%s15231_s2 + $0x264] ss:$16 sps:$4 sm:$0xff]   ;;  %v10677_v25 = vld [vmem:[%s15231_s2 + $0x26c] ss:$16 sps:$4 sm:$0xff]  }
  0x1d   :  { %3278 = vmatprep.subr.bf16.mxu0 %v10600_v28  ;;  %3606 = vmatprep.subr.bf16.mxu1 %v10602_v29  ;;  %v10672_v26 = vld [vmem:[%s15231_s2 + $0x260] ss:$16 sps:$4 sm:$0xff]   ;;  %v10675_v27 = vld [vmem:[%s15231_s2 + $0x268] ss:$16 sps:$4 sm:$0xff]   ;;  %v10680_v28 = vld [vmem:[%s15231_s2 + $0x284] ss:$16 sps:$4 sm:$0xff]  }
  0x1e   :  { %3296 = vmatprep.mubr.bf16.mxu0 %v627_v60  ;;  %3624 = vmatprep.mubr.bf16.mxu1 %v627_v60  ;;  %v10683_v29 = vld [vmem:[%s15231_s2 + $0x28c] ss:$16 sps:$4 sm:$0xff]   ;;  %v10692_v36 = vld [vmem:[%s15231_s2 + $0x2c4] ss:$16 sps:$4 sm:$0xff]   ;;  %v10690_v38 = vld [vmem:[%s15231_s2 + $0x2c0] ss:$16 sps:$4 sm:$0xff]  }
  0x1f   :  { %v10695_v37 = vld [vmem:[%s15231_s2 + $0x2cc] ss:$16 sps:$4 sm:$0xff]   ;;  %v10696_v43 = vld [vmem:[%s15231_s2 + $0x2e0] ss:$16 sps:$4 sm:$0xff]   ;;  %v10711_v54 = vld [vmem:[%s15231_s2 + $0x328] ss:$16 sps:$4 sm:$0xff]  }
  0x20   :  { %3279 = vmatpush1.bf16.msra.mxu0 %v10604_v30  ;;  %3607 = vmatpush1.bf16.msra.mxu1 %v10605_v31  ;;  %v10678_v30 = vld [vmem:[%s15231_s2 + $0x280] ss:$16 sps:$4 sm:$0xff]   ;;  %v10681_v31 = vld [vmem:[%s15231_s2 + $0x288] ss:$16 sps:$4 sm:$0xff]   ;;  %v10725_v60 = vld [vmem:[%s15231_s2 + $0x36c] ss:$16 sps:$4 sm:$0xff]  }
  0x21   :  { %3280 = vmatprep.subr.bf16.mxu0 %v10606_v32  ;;  %3608 = vmatprep.subr.bf16.mxu1 %v10608_v33  ;;  %v10686_v32 = vld [vmem:[%s15231_s2 + $0x2a4] ss:$16 sps:$4 sm:$0xff]   ;;  %v10689_v33 = vld [vmem:[%s15231_s2 + $0x2ac] ss:$16 sps:$4 sm:$0xff]   ;;  %v10717_v58 = vld [vmem:[%s15231_s2 + $0x348] ss:$16 sps:$4 sm:$0xff]  }
  0x24   :  { %3281 = vmatpush1.bf16.msra.mxu0 %v10610_v34  ;;  %3609 = vmatpush1.bf16.msra.mxu1 %v10611_v35  ;;  %v10684_v34 = vld [vmem:[%s15231_s2 + $0x2a0] ss:$16 sps:$4 sm:$0xff]   ;;  %v10687_v35 = vld [vmem:[%s15231_s2 + $0x2a8] ss:$16 sps:$4 sm:$0xff]  }
  0x25   :  { %3282 = vmatprep.subr.bf16.mxu0 %v10612_v39  ;;  %3610 = vmatprep.subr.bf16.mxu1 %v10614_v40  ;;  %v10693_v39 = vld [vmem:[%s15231_s2 + $0x2c8] ss:$16 sps:$4 sm:$0xff]   ;;  %v10698_v40 = vld [vmem:[%s15231_s2 + $0x2e4] ss:$16 sps:$4 sm:$0xff]  }
  0x28   :  { %3283 = vmatpush1.bf16.msra.mxu0 %v10616_v41  ;;  %3611 = vmatpush1.bf16.msra.mxu1 %v10617_v44  ;;  %v10701_v41 = vld [vmem:[%s15231_s2 + $0x2ec] ss:$16 sps:$4 sm:$0xff]   ;;  %v10699_v44 = vld [vmem:[%s15231_s2 + $0x2e8] ss:$16 sps:$4 sm:$0xff]  }
  0x29   :  { %3284 = vmatprep.subr.bf16.mxu0 %v10618_v45  ;;  %3612 = vmatprep.subr.bf16.mxu1 %v10620_v46  ;;  %v10704_v45 = vld [vmem:[%s15231_s2 + $0x304] ss:$16 sps:$4 sm:$0xff]   ;;  %v10707_v46 = vld [vmem:[%s15231_s2 + $0x30c] ss:$16 sps:$4 sm:$0xff]  }
  0x2c   :  { %3285 = vmatpush1.bf16.msra.mxu0 %v10622_v47  ;;  %3613 = vmatpush1.bf16.msra.mxu1 %v10623_v48  ;;  %v10702_v47 = vld [vmem:[%s15231_s2 + $0x300] ss:$16 sps:$4 sm:$0xff]   ;;  %v10705_v48 = vld [vmem:[%s15231_s2 + $0x308] ss:$16 sps:$4 sm:$0xff]  }
  0x2d   :  { %3286 = vmatprep.subr.bf16.mxu0 %v10624_v50  ;;  %3614 = vmatprep.subr.bf16.mxu1 %v10626_v51  ;;  %v10710_v50 = vld [vmem:[%s15231_s2 + $0x324] ss:$16 sps:$4 sm:$0xff]   ;;  %v10713_v51 = vld [vmem:[%s15231_s2 + $0x32c] ss:$16 sps:$4 sm:$0xff]  }
  0x30   :  { %3287 = vmatpush1.bf16.msra.mxu0 %v10628_v53  ;;  %3615 = vmatpush1.bf16.msra.mxu1 %v10629_v55  ;;  %v10708_v53 = vld [vmem:[%s15231_s2 + $0x320] ss:$16 sps:$4 sm:$0xff]   ;;  %v10716_v55 = vld [vmem:[%s15231_s2 + $0x344] ss:$16 sps:$4 sm:$0xff]  }
  0x31   :  { %3288 = vmatprep.subr.bf16.mxu0 %v10630_v56  ;;  %3616 = vmatprep.subr.bf16.mxu1 %v10632_v57  ;;  %v10719_v56 = vld [vmem:[%s15231_s2 + $0x34c] ss:$16 sps:$4 sm:$0xff]   ;;  %v10714_v57 = vld [vmem:[%s15231_s2 + $0x340] ss:$16 sps:$4 sm:$0xff]  }
  0x34   :  { %3289 = vmatpush1.bf16.msra.mxu0 %v10634_v59  ;;  %3617 = vmatpush1.bf16.msra.mxu1 %v10635_v61  ;;  %v10722_v59 = vld [vmem:[%s15231_s2 + $0x364] ss:$16 sps:$4 sm:$0xff]   ;;  %v10720_v61 = vld [vmem:[%s15231_s2 + $0x360] ss:$16 sps:$4 sm:$0xff]  }
  0x35   :  { %3290 = vmatprep.subr.bf16.mxu0 %v10636_v62  ;;  %3618 = vmatprep.subr.bf16.mxu1 %v10638_v63  ;;  %v10723_v62 = vld [vmem:[%s15231_s2 + $0x368] ss:$16 sps:$4 sm:$0xff]   ;;  %v10728_v63 = vld [vmem:[%s15231_s2 + $0x384] ss:$16 sps:$4 sm:$0xff]  }
  0x38   :  { %3291 = vmatpush1.bf16.msra.mxu0 %v10640_v0  ;;  %3619 = vmatpush1.bf16.msra.mxu1 %v10641_v1  ;;  %v10731_v0 = vld [vmem:[%s15231_s2 + $0x38c] ss:$16 sps:$4 sm:$0xff]   ;;  %v10726_v1 = vld [vmem:[%s15231_s2 + $0x380] ss:$16 sps:$4 sm:$0xff]  }
  0x39   :  { %3292 = vmatprep.subr.bf16.mxu0 %v10642_v2  ;;  %3620 = vmatprep.subr.bf16.mxu1 %v10644_v3  ;;  %v10729_v2 = vld [vmem:[%s15231_s2 + $0x388] ss:$16 sps:$4 sm:$0xff]   ;;  %v10734_v3 = vld [vmem:[%s15231_s2 + $0x3a4] ss:$16 sps:$4 sm:$0xff]  }
  0x3c   :  { %3293 = vmatpush1.bf16.msra.mxu0 %v10646_v4  ;;  %3621 = vmatpush1.bf16.msra.mxu1 %v10647_v5  ;;  %v10737_v4 = vld [vmem:[%s15231_s2 + $0x3ac] ss:$16 sps:$4 sm:$0xff]   ;;  %v10732_v5 = vld [vmem:[%s15231_s2 + $0x3a0] ss:$16 sps:$4 sm:$0xff]  }
  0x3d   :  { %3294 = vmatprep.subr.bf16.mxu0 %v10648_v6  ;;  %3622 = vmatprep.subr.bf16.mxu1 %v10650_v7  ;;  %v10735_v6 = vld [vmem:[%s15231_s2 + $0x3a8] ss:$16 sps:$4 sm:$0xff]   ;;  %v10740_v7 = vld [vmem:[%s15231_s2 + $0x3c4] ss:$16 sps:$4 sm:$0xff]  }
  0x40   :  { %3295 = vmatpush1.bf16.msra.mxu0 %v10652_v8  ;;  %3623 = vmatpush1.bf16.msra.mxu1 %v10653_v9  ;;  %v10743_v8 = vld [vmem:[%s15231_s2 + $0x3cc] ss:$16 sps:$4 sm:$0xff]   ;;  %v590_v9 = vcombine.high %v11705_v52, %v11705_v52 }
  0x41   :  { %3305 = vmatprep.subr.bf16.mxu0 %v10656_v10  ;;  %3633 = vmatprep.subr.bf16.mxu1 %v10659_v11  ;;  %v10738_v10 = vld [vmem:[%s15231_s2 + $0x3c0] ss:$16 sps:$4 sm:$0xff]   ;;  %v10741_v11 = vld [vmem:[%s15231_s2 + $0x3c8] ss:$16 sps:$4 sm:$0xff]   ;;  %v10749_v52 = vld [vmem:[%s15231_s2 + $0x3ec] ss:$16 sps:$4 sm:$0xff]  }
  0x43   :  { %3297 = vmatmul.mubr.bf16.vlgmr.msra.gmra.mrb[0].mxu0 %v11774_v13  ;;  %3625 = vmatmul.mubr.bf16.vlgmr.msra.gmra.mrb[0].mxu1 %v11774_v13 }
  0x44   :  { %3306 = vmatpush1.bf16.msra.mxu0 %v10654_v12  ;;  %3634 = vmatpush1.bf16.msra.mxu1 %v10657_v14  ;;  %v10746_v12 = vld [vmem:[%s15231_s2 + $0x3e4] ss:$16 sps:$4 sm:$0xff]   ;;  %v11958_v14 = vrot.slane %v590_v9, %v11694_v49  ;;  %v10825_v9 = vld [vmem:[%s15231_s2 + $0x588] ss:$16 sps:$4 sm:$0xff]  }
  0x45   :  { %3307 = vmatprep.subr.bf16.mxu0 %v10662_v15  ;;  %3635 = vmatprep.subr.bf16.mxu1 %v10665_v16  ;;  %v10744_v15 = vld [vmem:[%s15231_s2 + $0x3e0] ss:$16 sps:$4 sm:$0xff]   ;;  %v10747_v16 = vld [vmem:[%s15231_s2 + $0x3e8] ss:$16 sps:$4 sm:$0xff]  }
  0x46   :  { %3337 = vmatprep.mubr.bf16.mxu0 %v637_v17  ;;  %3665 = vmatprep.mubr.bf16.mxu1 %v637_v17  ;;  %v10752_v17 = vld [vmem:[%s15231_s2 + $0x404] ss:$16 sps:$4 sm:$0xff]  }
  0x48   :  { %3308 = vmatpush1.bf16.msra.mxu0 %v10660_v18  ;;  %3636 = vmatpush1.bf16.msra.mxu1 %v10663_v19  ;;  %v10755_v18 = vld [vmem:[%s15231_s2 + $0x40c] ss:$16 sps:$4 sm:$0xff]   ;;  %v606_v19 = vcombine.high %v11958_v14, %v11958_v14 }
  0x49   :  { %3309 = vmatprep.subr.bf16.mxu0 %v10668_v20  ;;  %3637 = vmatprep.subr.bf16.mxu1 %v10671_v21  ;;  %v10750_v20 = vld [vmem:[%s15231_s2 + $0x400] ss:$16 sps:$4 sm:$0xff]   ;;  %v635_v21 = vcombine.high %v11774_v13, %v11774_v13 }
  0x4a   :  { %v10756_v13 = vld [vmem:[%s15231_s2 + $0x420] ss:$16 sps:$4 sm:$0xff]  }
  0x4c   :  { %3310 = vmatpush1.bf16.msra.mxu0 %v10666_v22  ;;  %3638 = vmatpush1.bf16.msra.mxu1 %v10669_v23  ;;  %v10753_v22 = vld [vmem:[%s15231_s2 + $0x408] ss:$16 sps:$4 sm:$0xff]   ;;  %v10758_v23 = vld [vmem:[%s15231_s2 + $0x424] ss:$16 sps:$4 sm:$0xff]  }
  0x4d   :  { %3311 = vmatprep.subr.bf16.mxu0 %v10674_v24  ;;  %3639 = vmatprep.subr.bf16.mxu1 %v10677_v25  ;;  %v10761_v24 = vld [vmem:[%s15231_s2 + $0x42c] ss:$16 sps:$4 sm:$0xff]   ;;  %v11989_v25 = vrot.slane %v606_v19, %v11694_v49  ;;  %v10842_v19 = vld [vmem:[%s15231_s2 + $0x5e4] ss:$16 sps:$4 sm:$0xff]  }
  0x50   :  { %3312 = vmatpush1.bf16.msra.mxu0 %v10672_v26  ;;  %3640 = vmatpush1.bf16.msra.mxu1 %v10675_v27  ;;  %v10759_v26 = vld [vmem:[%s15231_s2 + $0x428] ss:$16 sps:$4 sm:$0xff]   ;;  %v10764_v27 = vld [vmem:[%s15231_s2 + $0x444] ss:$16 sps:$4 sm:$0xff]  }
  0x51   :  { %3313 = vmatprep.subr.bf16.mxu0 %v10680_v28  ;;  %3641 = vmatprep.subr.bf16.mxu1 %v10683_v29  ;;  %v10767_v28 = vld [vmem:[%s15231_s2 + $0x44c] ss:$16 sps:$4 sm:$0xff]   ;;  %v10762_v29 = vld [vmem:[%s15231_s2 + $0x440] ss:$16 sps:$4 sm:$0xff]  }
  0x54   :  { %3314 = vmatpush1.bf16.msra.mxu0 %v10678_v30  ;;  %3642 = vmatpush1.bf16.msra.mxu1 %v10681_v31  ;;  %v10765_v30 = vld [vmem:[%s15231_s2 + $0x448] ss:$16 sps:$4 sm:$0xff]   ;;  %v10770_v31 = vld [vmem:[%s15231_s2 + $0x464] ss:$16 sps:$4 sm:$0xff]  }
  0x55   :  { %3315 = vmatprep.subr.bf16.mxu0 %v10686_v32  ;;  %3643 = vmatprep.subr.bf16.mxu1 %v10689_v33  ;;  %v10773_v32 = vld [vmem:[%s15231_s2 + $0x46c] ss:$16 sps:$4 sm:$0xff]   ;;  %v10768_v33 = vld [vmem:[%s15231_s2 + $0x460] ss:$16 sps:$4 sm:$0xff]  }
  0x58   :  { %3316 = vmatpush1.bf16.msra.mxu0 %v10684_v34  ;;  %3644 = vmatpush1.bf16.msra.mxu1 %v10687_v35  ;;  %v10771_v34 = vld [vmem:[%s15231_s2 + $0x468] ss:$16 sps:$4 sm:$0xff]   ;;  %v10776_v35 = vld [vmem:[%s15231_s2 + $0x484] ss:$16 sps:$4 sm:$0xff]  }
  0x59   :  { %3317 = vmatprep.subr.bf16.mxu0 %v10692_v36  ;;  %3645 = vmatprep.subr.bf16.mxu1 %v10695_v37  ;;  %v10779_v36 = vld [vmem:[%s15231_s2 + $0x48c] ss:$16 sps:$4 sm:$0xff]   ;;  %v10774_v37 = vld [vmem:[%s15231_s2 + $0x480] ss:$16 sps:$4 sm:$0xff]  }
  0x5c   :  { %3318 = vmatpush1.bf16.msra.mxu0 %v10690_v38  ;;  %3646 = vmatpush1.bf16.msra.mxu1 %v10693_v39  ;;  %v10777_v38 = vld [vmem:[%s15231_s2 + $0x488] ss:$16 sps:$4 sm:$0xff]   ;;  %v10782_v39 = vld [vmem:[%s15231_s2 + $0x4a4] ss:$16 sps:$4 sm:$0xff]  }
  0x5d   :  { %3319 = vmatprep.subr.bf16.mxu0 %v10698_v40  ;;  %3647 = vmatprep.subr.bf16.mxu1 %v10701_v41  ;;  %v10785_v40 = vld [vmem:[%s15231_s2 + $0x4ac] ss:$16 sps:$4 sm:$0xff]   ;;  %v10780_v41 = vld [vmem:[%s15231_s2 + $0x4a0] ss:$16 sps:$4 sm:$0xff]  }
  0x60   :  { %3320 = vmatpush1.bf16.msra.mxu0 %v10696_v43  ;;  %3648 = vmatpush1.bf16.msra.mxu1 %v10699_v44  ;;  %v10783_v43 = vld [vmem:[%s15231_s2 + $0x4a8] ss:$16 sps:$4 sm:$0xff]   ;;  %v10788_v44 = vld [vmem:[%s15231_s2 + $0x4c4] ss:$16 sps:$4 sm:$0xff]  }
  0x61   :  { %3321 = vmatprep.subr.bf16.mxu0 %v10704_v45  ;;  %3649 = vmatprep.subr.bf16.mxu1 %v10707_v46  ;;  %v10791_v45 = vld [vmem:[%s15231_s2 + $0x4cc] ss:$16 sps:$4 sm:$0xff]   ;;  %v10786_v46 = vld [vmem:[%s15231_s2 + $0x4c0] ss:$16 sps:$4 sm:$0xff]  }
  0x64   :  { %3322 = vmatpush1.bf16.msra.mxu0 %v10702_v47  ;;  %3650 = vmatpush1.bf16.msra.mxu1 %v10705_v48  ;;  %v10789_v47 = vld [vmem:[%s15231_s2 + $0x4c8] ss:$16 sps:$4 sm:$0xff]   ;;  %v10794_v48 = vld [vmem:[%s15231_s2 + $0x4e4] ss:$16 sps:$4 sm:$0xff]  }
  0x65   :  { %3323 = vmatprep.subr.bf16.mxu0 %v10710_v50  ;;  %3651 = vmatprep.subr.bf16.mxu1 %v10713_v51  ;;  %v10797_v50 = vld [vmem:[%s15231_s2 + $0x4ec] ss:$16 sps:$4 sm:$0xff]   ;;  %v10792_v51 = vld [vmem:[%s15231_s2 + $0x4e0] ss:$16 sps:$4 sm:$0xff]  }
  0x68   :  { %3324 = vmatpush1.bf16.msra.mxu0 %v10708_v53  ;;  %3652 = vmatpush1.bf16.msra.mxu1 %v10711_v54  ;;  %v10795_v53 = vld [vmem:[%s15231_s2 + $0x4e8] ss:$16 sps:$4 sm:$0xff]   ;;  %v10800_v54 = vld [vmem:[%s15231_s2 + $0x504] ss:$16 sps:$4 sm:$0xff]  }
  0x69   :  { %3325 = vmatprep.subr.bf16.mxu0 %v10716_v55  ;;  %3653 = vmatprep.subr.bf16.mxu1 %v10719_v56  ;;  %v10803_v55 = vld [vmem:[%s15231_s2 + $0x50c] ss:$16 sps:$4 sm:$0xff]   ;;  %v10798_v56 = vld [vmem:[%s15231_s2 + $0x500] ss:$16 sps:$4 sm:$0xff]  }
  0x6c   :  { %3326 = vmatpush1.bf16.msra.mxu0 %v10714_v57  ;;  %3654 = vmatpush1.bf16.msra.mxu1 %v10717_v58  ;;  %v10801_v57 = vld [vmem:[%s15231_s2 + $0x508] ss:$16 sps:$4 sm:$0xff]   ;;  %v10806_v58 = vld [vmem:[%s15231_s2 + $0x524] ss:$16 sps:$4 sm:$0xff]  }
  0x6d   :  { %3327 = vmatprep.subr.bf16.mxu0 %v10722_v59  ;;  %3655 = vmatprep.subr.bf16.mxu1 %v10725_v60  ;;  %v10809_v59 = vld [vmem:[%s15231_s2 + $0x52c] ss:$16 sps:$4 sm:$0xff]   ;;  %v10804_v60 = vld [vmem:[%s15231_s2 + $0x520] ss:$16 sps:$4 sm:$0xff]  }
  0x70   :  { %3328 = vmatpush1.bf16.msra.mxu0 %v10720_v61  ;;  %3656 = vmatpush1.bf16.msra.mxu1 %v10723_v62  ;;  %v10807_v61 = vld [vmem:[%s15231_s2 + $0x528] ss:$16 sps:$4 sm:$0xff]   ;;  %v10812_v62 = vld [vmem:[%s15231_s2 + $0x544] ss:$16 sps:$4 sm:$0xff]  }
  0x71   :  { %3329 = vmatprep.subr.bf16.mxu0 %v10728_v63  ;;  %3657 = vmatprep.subr.bf16.mxu1 %v10731_v0  ;;  %v10815_v63 = vld [vmem:[%s15231_s2 + $0x54c] ss:$16 sps:$4 sm:$0xff]   ;;  %v10810_v0 = vld [vmem:[%s15231_s2 + $0x540] ss:$16 sps:$4 sm:$0xff]  }
  0x74   :  { %3330 = vmatpush1.bf16.msra.mxu0 %v10726_v1  ;;  %3658 = vmatpush1.bf16.msra.mxu1 %v10729_v2  ;;  %v10813_v1 = vld [vmem:[%s15231_s2 + $0x548] ss:$16 sps:$4 sm:$0xff]   ;;  %v10818_v2 = vld [vmem:[%s15231_s2 + $0x564] ss:$16 sps:$4 sm:$0xff]  }
  0x75   :  { %3331 = vmatprep.subr.bf16.mxu0 %v10734_v3  ;;  %3659 = vmatprep.subr.bf16.mxu1 %v10737_v4  ;;  %v10821_v3 = vld [vmem:[%s15231_s2 + $0x56c] ss:$16 sps:$4 sm:$0xff]   ;;  %v10816_v4 = vld [vmem:[%s15231_s2 + $0x560] ss:$16 sps:$4 sm:$0xff]  }
  0x78   :  { %3332 = vmatpush1.bf16.msra.mxu0 %v10732_v5  ;;  %3660 = vmatpush1.bf16.msra.mxu1 %v10735_v6  ;;  %v10819_v5 = vld [vmem:[%s15231_s2 + $0x568] ss:$16 sps:$4 sm:$0xff]   ;;  %v10824_v6 = vld [vmem:[%s15231_s2 + $0x584] ss:$16 sps:$4 sm:$0xff]  }
  0x79   :  { %3333 = vmatprep.subr.bf16.mxu0 %v10740_v7  ;;  %3661 = vmatprep.subr.bf16.mxu1 %v10743_v8  ;;  %v10827_v7 = vld [vmem:[%s15231_s2 + $0x58c] ss:$16 sps:$4 sm:$0xff]   ;;  %v10822_v8 = vld [vmem:[%s15231_s2 + $0x580] ss:$16 sps:$4 sm:$0xff]  }
  0x7c   :  { %3334 = vmatpush1.bf16.msra.mxu0 %v10738_v10  ;;  %3662 = vmatpush1.bf16.msra.mxu1 %v10741_v11  ;;  %v10830_v10 = vld [vmem:[%s15231_s2 + $0x5a4] ss:$16 sps:$4 sm:$0xff]   ;;  %v10833_v11 = vld [vmem:[%s15231_s2 + $0x5ac] ss:$16 sps:$4 sm:$0xff]  }
  0x7d   :  { %3335 = vmatprep.subr.bf16.mxu0 %v10746_v12  ;;  %3663 = vmatprep.subr.bf16.mxu1 %v10749_v52  ;;  %v10828_v12 = vld [vmem:[%s15231_s2 + $0x5a0] ss:$16 sps:$4 sm:$0xff]   ;;  %v10831_v52 = vld [vmem:[%s15231_s2 + $0x5a8] ss:$16 sps:$4 sm:$0xff]  }
  0x80   :  { %3336 = vmatpush1.bf16.msra.mxu0 %v10744_v15  ;;  %3664 = vmatpush1.bf16.msra.mxu1 %v10747_v16  ;;  %v10836_v15 = vld [vmem:[%s15231_s2 + $0x5c4] ss:$16 sps:$4 sm:$0xff]   ;;  %v10839_v16 = vld [vmem:[%s15231_s2 + $0x5cc] ss:$16 sps:$4 sm:$0xff]  }
  0x81   :  { %3346 = vmatprep.subr.bf16.mxu0 %v10752_v17  ;;  %3674 = vmatprep.subr.bf16.mxu1 %v10755_v18  ;;  %v10834_v17 = vld [vmem:[%s15231_s2 + $0x5c0] ss:$16 sps:$4 sm:$0xff]   ;;  %v10837_v18 = vld [vmem:[%s15231_s2 + $0x5c8] ss:$16 sps:$4 sm:$0xff]  }
  0x83   :  { %3338 = vmatmul.mubr.bf16.vlgmr.msra.gmra.mrb[0].mxu0 %v635_v21  ;;  %3666 = vmatmul.mubr.bf16.vlgmr.msra.gmra.mrb[0].mxu1 %v635_v21  ;;  %v10840_v21 = vld [vmem:[%s15231_s2 + $0x5e0] ss:$16 sps:$4 sm:$0xff]  }
  0x84   :  { %3347 = vmatpush1.bf16.msra.mxu0 %v10750_v20  ;;  %3675 = vmatpush1.bf16.msra.mxu1 %v10753_v22  ;;  %v10845_v20 = vld [vmem:[%s15231_s2 + $0x5ec] ss:$16 sps:$4 sm:$0xff]   ;;  %v10843_v22 = vld [vmem:[%s15231_s2 + $0x5e8] ss:$16 sps:$4 sm:$0xff]  }
  0x85   :  { %3348 = vmatprep.subr.bf16.mxu0 %v10758_v23  ;;  %3676 = vmatprep.subr.bf16.mxu1 %v10761_v24  ;;  %v10849_v23 = vld [vmem:[%s15231_s2 + $0x604] ss:$16 sps:$4 sm:$0xff]   ;;  %v10852_v24 = vld [vmem:[%s15231_s2 + $0x60c] ss:$16 sps:$4 sm:$0xff]  }
  0x86   :  { %3378 = vmatprep.mubr.bf16.mxu0 %v11989_v25  ;;  %3706 = vmatprep.mubr.bf16.mxu1 %v11989_v25 }
  0x88   :  { %3349 = vmatpush1.bf16.msra.mxu0 %v10756_v13  ;;  %3677 = vmatpush1.bf16.msra.mxu1 %v10759_v26  ;;  %v10847_v13 = vld [vmem:[%s15231_s2 + $0x600] ss:$16 sps:$4 sm:$0xff]   ;;  %v12178_v26 = vrot.slane %v11958_v14, %v11694_v49  ;;  %v638_v14 = vcombine.high %v11989_v25, %v11989_v25  ;;  %v10861_v25 = vld [vmem:[%s15231_s2 + $0x644] ss:$16 sps:$4 sm:$0xff]  }
  0x89   :  { %3350 = vmatprep.subr.bf16.mxu0 %v10764_v27  ;;  %3678 = vmatprep.subr.bf16.mxu1 %v10767_v28  ;;  %v10850_v27 = vld [vmem:[%s15231_s2 + $0x608] ss:$16 sps:$4 sm:$0xff]   ;;  %v10855_v28 = vld [vmem:[%s15231_s2 + $0x624] ss:$16 sps:$4 sm:$0xff]  }
  0x8c   :  { %3351 = vmatpush1.bf16.msra.mxu0 %v10762_v29  ;;  %3679 = vmatpush1.bf16.msra.mxu1 %v10765_v30  ;;  %v10858_v29 = vld [vmem:[%s15231_s2 + $0x62c] ss:$16 sps:$4 sm:$0xff]   ;;  %v10853_v30 = vld [vmem:[%s15231_s2 + $0x620] ss:$16 sps:$4 sm:$0xff]  }
  0x8d   :  { %3352 = vmatprep.subr.bf16.mxu0 %v10770_v31  ;;  %3680 = vmatprep.subr.bf16.mxu1 %v10773_v32  ;;  %v10856_v31 = vld [vmem:[%s15231_s2 + $0x628] ss:$16 sps:$4 sm:$0xff]   ;;  %v10864_v32 = vld [vmem:[%s15231_s2 + $0x64c] ss:$16 sps:$4 sm:$0xff]  }
  0x90   :  { %3353 = vmatpush1.bf16.msra.mxu0 %v10768_v33  ;;  %3681 = vmatpush1.bf16.msra.mxu1 %v10771_v34  ;;  %v10859_v33 = vld [vmem:[%s15231_s2 + $0x640] ss:$16 sps:$4 sm:$0xff]   ;;  %v10862_v34 = vld [vmem:[%s15231_s2 + $0x648] ss:$16 sps:$4 sm:$0xff]  }
  0x91   :  { %3354 = vmatprep.subr.bf16.mxu0 %v10776_v35  ;;  %3682 = vmatprep.subr.bf16.mxu1 %v10779_v36  ;;  %v10867_v35 = vld [vmem:[%s15231_s2 + $0x664] ss:$16 sps:$4 sm:$0xff]   ;;  %v10870_v36 = vld [vmem:[%s15231_s2 + $0x66c] ss:$16 sps:$4 sm:$0xff]  }
  0x94   :  { %3355 = vmatpush1.bf16.msra.mxu0 %v10774_v37  ;;  %3683 = vmatpush1.bf16.msra.mxu1 %v10777_v38  ;;  %v10865_v37 = vld [vmem:[%s15231_s2 + $0x660] ss:$16 sps:$4 sm:$0xff]   ;;  %v10868_v38 = vld [vmem:[%s15231_s2 + $0x668] ss:$16 sps:$4 sm:$0xff]  }
  0x95   :  { %3356 = vmatprep.subr.bf16.mxu0 %v10782_v39  ;;  %3684 = vmatprep.subr.bf16.mxu1 %v10785_v40  ;;  %v10873_v39 = vld [vmem:[%s15231_s2 + $0x684] ss:$16 sps:$4 sm:$0xff]   ;;  %v10876_v40 = vld [vmem:[%s15231_s2 + $0x68c] ss:$16 sps:$4 sm:$0xff]  }
  0x98   :  { %3357 = vmatpush1.bf16.msra.mxu0 %v10780_v41  ;;  %3685 = vmatpush1.bf16.msra.mxu1 %v10783_v43  ;;  %v10871_v41 = vld [vmem:[%s15231_s2 + $0x680] ss:$16 sps:$4 sm:$0xff]   ;;  %v10874_v43 = vld [vmem:[%s15231_s2 + $0x688] ss:$16 sps:$4 sm:$0xff]  }
  0x99   :  { %3358 = vmatprep.subr.bf16.mxu0 %v10788_v44  ;;  %3686 = vmatprep.subr.bf16.mxu1 %v10791_v45  ;;  %v10879_v44 = vld [vmem:[%s15231_s2 + $0x6a4] ss:$16 sps:$4 sm:$0xff]   ;;  %v10882_v45 = vld [vmem:[%s15231_s2 + $0x6ac] ss:$16 sps:$4 sm:$0xff]  }
  0x9c   :  { %3359 = vmatpush1.bf16.msra.mxu0 %v10786_v46  ;;  %3687 = vmatpush1.bf16.msra.mxu1 %v10789_v47  ;;  %v10877_v46 = vld [vmem:[%s15231_s2 + $0x6a0] ss:$16 sps:$4 sm:$0xff]   ;;  %v10880_v47 = vld [vmem:[%s15231_s2 + $0x6a8] ss:$16 sps:$4 sm:$0xff]  }
  0x9d   :  { %3360 = vmatprep.subr.bf16.mxu0 %v10794_v48  ;;  %3688 = vmatprep.subr.bf16.mxu1 %v10797_v50  ;;  %v10885_v48 = vld [vmem:[%s15231_s2 + $0x6c4] ss:$16 sps:$4 sm:$0xff]   ;;  %v10888_v50 = vld [vmem:[%s15231_s2 + $0x6cc] ss:$16 sps:$4 sm:$0xff]  }
  0xa0   :  { %3361 = vmatpush1.bf16.msra.mxu0 %v10792_v51  ;;  %3689 = vmatpush1.bf16.msra.mxu1 %v10795_v53  ;;  %v10883_v51 = vld [vmem:[%s15231_s2 + $0x6c0] ss:$16 sps:$4 sm:$0xff]   ;;  %v10886_v53 = vld [vmem:[%s15231_s2 + $0x6c8] ss:$16 sps:$4 sm:$0xff]  }
  0xa1   :  { %3362 = vmatprep.subr.bf16.mxu0 %v10800_v54  ;;  %3690 = vmatprep.subr.bf16.mxu1 %v10803_v55  ;;  %v10891_v54 = vld [vmem:[%s15231_s2 + $0x6e4] ss:$16 sps:$4 sm:$0xff]   ;;  %v10894_v55 = vld [vmem:[%s15231_s2 + $0x6ec] ss:$16 sps:$4 sm:$0xff]  }
  0xa4   :  { %3363 = vmatpush1.bf16.msra.mxu0 %v10798_v56  ;;  %3691 = vmatpush1.bf16.msra.mxu1 %v10801_v57  ;;  %v10889_v56 = vld [vmem:[%s15231_s2 + $0x6e0] ss:$16 sps:$4 sm:$0xff]   ;;  %v10892_v57 = vld [vmem:[%s15231_s2 + $0x6e8] ss:$16 sps:$4 sm:$0xff]  }
  0xa5   :  { %3364 = vmatprep.subr.bf16.mxu0 %v10806_v58  ;;  %3692 = vmatprep.subr.bf16.mxu1 %v10809_v59  ;;  %v10897_v58 = vld [vmem:[%s15231_s2 + $0x704] ss:$16 sps:$4 sm:$0xff]   ;;  %v10900_v59 = vld [vmem:[%s15231_s2 + $0x70c] ss:$16 sps:$4 sm:$0xff]  }
  0xa8   :  { %3365 = vmatpush1.bf16.msra.mxu0 %v10804_v60  ;;  %3693 = vmatpush1.bf16.msra.mxu1 %v10807_v61  ;;  %v10895_v60 = vld [vmem:[%s15231_s2 + $0x700] ss:$16 sps:$4 sm:$0xff]   ;;  %v10898_v61 = vld [vmem:[%s15231_s2 + $0x708] ss:$16 sps:$4 sm:$0xff]  }
  0xa9   :  { %3366 = vmatprep.subr.bf16.mxu0 %v10812_v62  ;;  %3694 = vmatprep.subr.bf16.mxu1 %v10815_v63  ;;  %v10903_v62 = vld [vmem:[%s15231_s2 + $0x724] ss:$16 sps:$4 sm:$0xff]   ;;  %v10906_v63 = vld [vmem:[%s15231_s2 + $0x72c] ss:$16 sps:$4 sm:$0xff]  }
  0xac   :  { %3367 = vmatpush1.bf16.msra.mxu0 %v10810_v0  ;;  %3695 = vmatpush1.bf16.msra.mxu1 %v10813_v1  ;;  %v10901_v0 = vld [vmem:[%s15231_s2 + $0x720] ss:$16 sps:$4 sm:$0xff]   ;;  %v10904_v1 = vld [vmem:[%s15231_s2 + $0x728] ss:$16 sps:$4 sm:$0xff]  }
  0xad   :  { %3368 = vmatprep.subr.bf16.mxu0 %v10818_v2  ;;  %3696 = vmatprep.subr.bf16.mxu1 %v10821_v3  ;;  %v10909_v2 = vld [vmem:[%s15231_s2 + $0x744] ss:$16 sps:$4 sm:$0xff]   ;;  %v10912_v3 = vld [vmem:[%s15231_s2 + $0x74c] ss:$16 sps:$4 sm:$0xff]  }
  0xb0   :  { %3369 = vmatpush1.bf16.msra.mxu0 %v10816_v4  ;;  %3697 = vmatpush1.bf16.msra.mxu1 %v10819_v5  ;;  %v10907_v4 = vld [vmem:[%s15231_s2 + $0x740] ss:$16 sps:$4 sm:$0xff]   ;;  %v10910_v5 = vld [vmem:[%s15231_s2 + $0x748] ss:$16 sps:$4 sm:$0xff]  }
  0xb1   :  { %3370 = vmatprep.subr.bf16.mxu0 %v10824_v6  ;;  %3698 = vmatprep.subr.bf16.mxu1 %v10827_v7  ;;  %v10915_v6 = vld [vmem:[%s15231_s2 + $0x764] ss:$16 sps:$4 sm:$0xff]   ;;  %v10918_v7 = vld [vmem:[%s15231_s2 + $0x76c] ss:$16 sps:$4 sm:$0xff]  }
  0xb4   :  { %3371 = vmatpush1.bf16.msra.mxu0 %v10822_v8  ;;  %3699 = vmatpush1.bf16.msra.mxu1 %v10825_v9  ;;  %v10913_v8 = vld [vmem:[%s15231_s2 + $0x760] ss:$16 sps:$4 sm:$0xff]   ;;  %v10916_v9 = vld [vmem:[%s15231_s2 + $0x768] ss:$16 sps:$4 sm:$0xff]  }
  0xb5   :  { %3372 = vmatprep.subr.bf16.mxu0 %v10830_v10  ;;  %3700 = vmatprep.subr.bf16.mxu1 %v10833_v11  ;;  %v10921_v10 = vld [vmem:[%s15231_s2 + $0x784] ss:$16 sps:$4 sm:$0xff]   ;;  %v10924_v11 = vld [vmem:[%s15231_s2 + $0x78c] ss:$16 sps:$4 sm:$0xff]  }
  0xb8   :  { %3373 = vmatpush1.bf16.msra.mxu0 %v10828_v12  ;;  %3701 = vmatpush1.bf16.msra.mxu1 %v10831_v52  ;;  %v10919_v12 = vld [vmem:[%s15231_s2 + $0x780] ss:$16 sps:$4 sm:$0xff]   ;;  %v10922_v52 = vld [vmem:[%s15231_s2 + $0x788] ss:$16 sps:$4 sm:$0xff]  }
  0xb9   :  { %3374 = vmatprep.subr.bf16.mxu0 %v10836_v15  ;;  %3702 = vmatprep.subr.bf16.mxu1 %v10839_v16  ;;  %v10927_v15 = vld [vmem:[%s15231_s2 + $0x7a4] ss:$16 sps:$4 sm:$0xff]   ;;  %v10930_v16 = vld [vmem:[%s15231_s2 + $0x7ac] ss:$16 sps:$4 sm:$0xff]  }
  0xbc   :  { %3375 = vmatpush1.bf16.msra.mxu0 %v10834_v17  ;;  %3703 = vmatpush1.bf16.msra.mxu1 %v10837_v18  ;;  %v10925_v17 = vld [vmem:[%s15231_s2 + $0x7a0] ss:$16 sps:$4 sm:$0xff]   ;;  %v10928_v18 = vld [vmem:[%s15231_s2 + $0x7a8] ss:$16 sps:$4 sm:$0xff]  }
  0xbd   :  { %3376 = vmatprep.subr.bf16.mxu0 %v10842_v19  ;;  %3704 = vmatprep.subr.bf16.mxu1 %v10845_v20  ;;  %v10933_v19 = vld [vmem:[%s15231_s2 + $0x7c4] ss:$16 sps:$4 sm:$0xff]   ;;  %v10936_v20 = vld [vmem:[%s15231_s2 + $0x7cc] ss:$16 sps:$4 sm:$0xff]  }
  0xc0   :  { %3377 = vmatpush1.bf16.msra.mxu0 %v10840_v21  ;;  %3705 = vmatpush1.bf16.msra.mxu1 %v10843_v22  ;;  %v12352_v21 = vld.sshfl [vmem:[%s15248_s25 + $0x8] sm:$0xff pattern:$0x75316420]  ;;  %v10931_v22 = vld [vmem:[%s15231_s2 + $0x7c0] ss:$16 sps:$4 sm:$0xff]  }
  0xc1   :  { %3387 = vmatprep.subr.bf16.mxu0 %v10849_v23  ;;  %3715 = vmatprep.subr.bf16.mxu1 %v10852_v24  ;;  %v10934_v23 = vld [vmem:[%s15231_s2 + $0x7c8] ss:$16 sps:$4 sm:$0xff]   ;;  %v10939_v24 = vld [vmem:[%s15231_s2 + $0x7e4] ss:$16 sps:$4 sm:$0xff]  }
  0xc3   :  { %3379 = vmatmul.mubr.bf16.vlgmr.msra.gmra.mrb[0].mxu0 %v12178_v26  ;;  %3707 = vmatmul.mubr.bf16.vlgmr.msra.gmra.mrb[0].mxu1 %v12178_v26 }
  0xc4   :  { %3388 = vmatpush1.bf16.msra.mxu0 %v10847_v13  ;;  %3716 = vmatpush1.bf16.msra.mxu1 %v10850_v27  ;;  %v10942_v13 = vld [vmem:[%s15231_s2 + $0x7ec] ss:$16 sps:$4 sm:$0xff]   ;;  %v10937_v27 = vld [vmem:[%s15231_s2 + $0x7e0] ss:$16 sps:$4 sm:$0xff]  }
  0xc5   :  { %3389 = vmatprep.subr.bf16.mxu0 %v10855_v28  ;;  %3717 = vmatprep.subr.bf16.mxu1 %v10858_v29  ;;  %v10940_v28 = vld [vmem:[%s15231_s2 + $0x7e8] ss:$16 sps:$4 sm:$0xff]   ;;  %v10945_v29 = vld [vmem:[%s15231_s2 + $0x804] ss:$16 sps:$4 sm:$0xff]  }
  0xc6   :  { %3419 = vmatprep.mubr.bf16.mxu0 %v638_v14  ;;  %3747 = vmatprep.mubr.bf16.mxu1 %v638_v14  ;;  %v10948_v14 = vld [vmem:[%s15231_s2 + $0x80c] ss:$16 sps:$4 sm:$0xff]  }
  0xc8   :  { %3390 = vmatpush1.bf16.msra.mxu0 %v10853_v30  ;;  %3718 = vmatpush1.bf16.msra.mxu1 %v10856_v31  ;;  %v654_v30 = vcombine.high %v12352_v21, %v12352_v21  ;;  %v636_v31 = vcombine.high %v12178_v26, %v12178_v26  ;;  %v10954_v26 = vld [vmem:[%s15231_s2 + $0x82c] ss:$16 sps:$4 sm:$0xff]  }
  0xc9   :  { %3391 = vmatprep.subr.bf16.mxu0 %v10861_v25  ;;  %3719 = vmatprep.subr.bf16.mxu1 %v10864_v32  ;;  %v10943_v25 = vld [vmem:[%s15231_s2 + $0x800] ss:$16 sps:$4 sm:$0xff]   ;;  %v10946_v32 = vld [vmem:[%s15231_s2 + $0x808] ss:$16 sps:$4 sm:$0xff]  }
  0xcc   :  { %3392 = vmatpush1.bf16.msra.mxu0 %v10859_v33  ;;  %3720 = vmatpush1.bf16.msra.mxu1 %v10862_v34  ;;  %v10951_v33 = vld [vmem:[%s15231_s2 + $0x824] ss:$16 sps:$4 sm:$0xff]   ;;  %v12395_v34 = vrot.slane %v654_v30, %v11694_v49 }
  0xcd   :  { %3393 = vmatprep.subr.bf16.mxu0 %v10867_v35  ;;  %3721 = vmatprep.subr.bf16.mxu1 %v10870_v36  ;;  %v10949_v35 = vld [vmem:[%s15231_s2 + $0x820] ss:$16 sps:$4 sm:$0xff]   ;;  %v10952_v36 = vld [vmem:[%s15231_s2 + $0x828] ss:$16 sps:$4 sm:$0xff]   ;;  %v11035_v30 = vld [vmem:[%s15231_s2 + $0x9e4] ss:$16 sps:$4 sm:$0xff]  }
  0xd0   :  { %3394 = vmatpush1.bf16.msra.mxu0 %v10865_v37  ;;  %3722 = vmatpush1.bf16.msra.mxu1 %v10868_v38  ;;  %v10957_v37 = vld [vmem:[%s15231_s2 + $0x844] ss:$16 sps:$4 sm:$0xff]   ;;  %v10960_v38 = vld [vmem:[%s15231_s2 + $0x84c] ss:$16 sps:$4 sm:$0xff]  }
  0xd1   :  { %3395 = vmatprep.subr.bf16.mxu0 %v10873_v39  ;;  %3723 = vmatprep.subr.bf16.mxu1 %v10876_v40  ;;  %v10955_v39 = vld [vmem:[%s15231_s2 + $0x840] ss:$16 sps:$4 sm:$0xff]   ;;  %v10958_v40 = vld [vmem:[%s15231_s2 + $0x848] ss:$16 sps:$4 sm:$0xff]  }
  0xd4   :  { %3396 = vmatpush1.bf16.msra.mxu0 %v10871_v41  ;;  %3724 = vmatpush1.bf16.msra.mxu1 %v10874_v43  ;;  %v10963_v41 = vld [vmem:[%s15231_s2 + $0x864] ss:$16 sps:$4 sm:$0xff]   ;;  %v10966_v43 = vld [vmem:[%s15231_s2 + $0x86c] ss:$16 sps:$4 sm:$0xff]  }
  0xd5   :  { %3397 = vmatprep.subr.bf16.mxu0 %v10879_v44  ;;  %3725 = vmatprep.subr.bf16.mxu1 %v10882_v45  ;;  %v10961_v44 = vld [vmem:[%s15231_s2 + $0x860] ss:$16 sps:$4 sm:$0xff]   ;;  %v10964_v45 = vld [vmem:[%s15231_s2 + $0x868] ss:$16 sps:$4 sm:$0xff]  }
  0xd8   :  { %3398 = vmatpush1.bf16.msra.mxu0 %v10877_v46  ;;  %3726 = vmatpush1.bf16.msra.mxu1 %v10880_v47  ;;  %v10969_v46 = vld [vmem:[%s15231_s2 + $0x884] ss:$16 sps:$4 sm:$0xff]   ;;  %v10972_v47 = vld [vmem:[%s15231_s2 + $0x88c] ss:$16 sps:$4 sm:$0xff]  }
  0xd9   :  { %3399 = vmatprep.subr.bf16.mxu0 %v10885_v48  ;;  %3727 = vmatprep.subr.bf16.mxu1 %v10888_v50  ;;  %v10967_v48 = vld [vmem:[%s15231_s2 + $0x880] ss:$16 sps:$4 sm:$0xff]   ;;  %v10970_v50 = vld [vmem:[%s15231_s2 + $0x888] ss:$16 sps:$4 sm:$0xff]  }
  0xdc   :  { %3400 = vmatpush1.bf16.msra.mxu0 %v10883_v51  ;;  %3728 = vmatpush1.bf16.msra.mxu1 %v10886_v53  ;;  %v10975_v51 = vld [vmem:[%s15231_s2 + $0x8a4] ss:$16 sps:$4 sm:$0xff]   ;;  %v10978_v53 = vld [vmem:[%s15231_s2 + $0x8ac] ss:$16 sps:$4 sm:$0xff]  }
  0xdd   :  { %3401 = vmatprep.subr.bf16.mxu0 %v10891_v54  ;;  %3729 = vmatprep.subr.bf16.mxu1 %v10894_v55  ;;  %v10973_v54 = vld [vmem:[%s15231_s2 + $0x8a0] ss:$16 sps:$4 sm:$0xff]   ;;  %v10976_v55 = vld [vmem:[%s15231_s2 + $0x8a8] ss:$16 sps:$4 sm:$0xff]  }
  0xe0   :  { %3402 = vmatpush1.bf16.msra.mxu0 %v10889_v56  ;;  %3730 = vmatpush1.bf16.msra.mxu1 %v10892_v57  ;;  %v10981_v56 = vld [vmem:[%s15231_s2 + $0x8c4] ss:$16 sps:$4 sm:$0xff]   ;;  %v10984_v57 = vld [vmem:[%s15231_s2 + $0x8cc] ss:$16 sps:$4 sm:$0xff]  }
  0xe1   :  { %3403 = vmatprep.subr.bf16.mxu0 %v10897_v58  ;;  %3731 = vmatprep.subr.bf16.mxu1 %v10900_v59  ;;  %v10979_v58 = vld [vmem:[%s15231_s2 + $0x8c0] ss:$16 sps:$4 sm:$0xff]   ;;  %v10982_v59 = vld [vmem:[%s15231_s2 + $0x8c8] ss:$16 sps:$4 sm:$0xff]  }
  0xe4   :  { %3404 = vmatpush1.bf16.msra.mxu0 %v10895_v60  ;;  %3732 = vmatpush1.bf16.msra.mxu1 %v10898_v61  ;;  %v10987_v60 = vld [vmem:[%s15231_s2 + $0x8e4] ss:$16 sps:$4 sm:$0xff]   ;;  %v10990_v61 = vld [vmem:[%s15231_s2 + $0x8ec] ss:$16 sps:$4 sm:$0xff]  }
  0xe5   :  { %3405 = vmatprep.subr.bf16.mxu0 %v10903_v62  ;;  %3733 = vmatprep.subr.bf16.mxu1 %v10906_v63  ;;  %v10985_v62 = vld [vmem:[%s15231_s2 + $0x8e0] ss:$16 sps:$4 sm:$0xff]   ;;  %v10988_v63 = vld [vmem:[%s15231_s2 + $0x8e8] ss:$16 sps:$4 sm:$0xff]  }
  0xe8   :  { %3406 = vmatpush1.bf16.msra.mxu0 %v10901_v0  ;;  %3734 = vmatpush1.bf16.msra.mxu1 %v10904_v1  ;;  %v10993_v0 = vld [vmem:[%s15231_s2 + $0x904] ss:$16 sps:$4 sm:$0xff]   ;;  %v10996_v1 = vld [vmem:[%s15231_s2 + $0x90c] ss:$16 sps:$4 sm:$0xff]  }
  0xe9   :  { %3407 = vmatprep.subr.bf16.mxu0 %v10909_v2  ;;  %3735 = vmatprep.subr.bf16.mxu1 %v10912_v3  ;;  %v10991_v2 = vld [vmem:[%s15231_s2 + $0x900] ss:$16 sps:$4 sm:$0xff]   ;;  %v10994_v3 = vld [vmem:[%s15231_s2 + $0x908] ss:$16 sps:$4 sm:$0xff]  }
  0xec   :  { %3408 = vmatpush1.bf16.msra.mxu0 %v10907_v4  ;;  %3736 = vmatpush1.bf16.msra.mxu1 %v10910_v5  ;;  %v10999_v4 = vld [vmem:[%s15231_s2 + $0x924] ss:$16 sps:$4 sm:$0xff]   ;;  %v11002_v5 = vld [vmem:[%s15231_s2 + $0x92c] ss:$16 sps:$4 sm:$0xff]  }
  0xed   :  { %3409 = vmatprep.subr.bf16.mxu0 %v10915_v6  ;;  %3737 = vmatprep.subr.bf16.mxu1 %v10918_v7  ;;  %v10997_v6 = vld [vmem:[%s15231_s2 + $0x920] ss:$16 sps:$4 sm:$0xff]   ;;  %v11000_v7 = vld [vmem:[%s15231_s2 + $0x928] ss:$16 sps:$4 sm:$0xff]  }
  0xf0   :  { %3410 = vmatpush1.bf16.msra.mxu0 %v10913_v8  ;;  %3738 = vmatpush1.bf16.msra.mxu1 %v10916_v9  ;;  %v11005_v8 = vld [vmem:[%s15231_s2 + $0x944] ss:$16 sps:$4 sm:$0xff]   ;;  %v11008_v9 = vld [vmem:[%s15231_s2 + $0x94c] ss:$16 sps:$4 sm:$0xff]  }
  0xf1   :  { %3411 = vmatprep.subr.bf16.mxu0 %v10921_v10  ;;  %3739 = vmatprep.subr.bf16.mxu1 %v10924_v11  ;;  %v11003_v10 = vld [vmem:[%s15231_s2 + $0x940] ss:$16 sps:$4 sm:$0xff]   ;;  %v11006_v11 = vld [vmem:[%s15231_s2 + $0x948] ss:$16 sps:$4 sm:$0xff]  }
  0xf4   :  { %3412 = vmatpush1.bf16.msra.mxu0 %v10919_v12  ;;  %3740 = vmatpush1.bf16.msra.mxu1 %v10922_v52  ;;  %v11011_v12 = vld [vmem:[%s15231_s2 + $0x964] ss:$16 sps:$4 sm:$0xff]   ;;  %v11014_v52 = vld [vmem:[%s15231_s2 + $0x96c] ss:$16 sps:$4 sm:$0xff]  }
  0xf5   :  { %3413 = vmatprep.subr.bf16.mxu0 %v10927_v15  ;;  %3741 = vmatprep.subr.bf16.mxu1 %v10930_v16  ;;  %v11009_v15 = vld [vmem:[%s15231_s2 + $0x960] ss:$16 sps:$4 sm:$0xff]   ;;  %v11012_v16 = vld [vmem:[%s15231_s2 + $0x968] ss:$16 sps:$4 sm:$0xff]  }
  0xf8   :  { %3414 = vmatpush1.bf16.msra.mxu0 %v10925_v17  ;;  %3742 = vmatpush1.bf16.msra.mxu1 %v10928_v18  ;;  %v11017_v17 = vld [vmem:[%s15231_s2 + $0x984] ss:$16 sps:$4 sm:$0xff]   ;;  %v11020_v18 = vld [vmem:[%s15231_s2 + $0x98c] ss:$16 sps:$4 sm:$0xff]  }
  0xf9   :  { %3415 = vmatprep.subr.bf16.mxu0 %v10933_v19  ;;  %3743 = vmatprep.subr.bf16.mxu1 %v10936_v20  ;;  %v11015_v19 = vld [vmem:[%s15231_s2 + $0x980] ss:$16 sps:$4 sm:$0xff]   ;;  %v11018_v20 = vld [vmem:[%s15231_s2 + $0x988] ss:$16 sps:$4 sm:$0xff]  }
  0xfc   :  { %3416 = vmatpush1.bf16.msra.mxu0 %v10931_v22  ;;  %3744 = vmatpush1.bf16.msra.mxu1 %v10934_v23  ;;  %v11023_v22 = vld [vmem:[%s15231_s2 + $0x9a4] ss:$16 sps:$4 sm:$0xff]   ;;  %v11026_v23 = vld [vmem:[%s15231_s2 + $0x9ac] ss:$16 sps:$4 sm:$0xff]  }
  0xfd   :  { %3417 = vmatprep.subr.bf16.mxu0 %v10939_v24  ;;  %3745 = vmatprep.subr.bf16.mxu1 %v10942_v13  ;;  %v11021_v24 = vld [vmem:[%s15231_s2 + $0x9a0] ss:$16 sps:$4 sm:$0xff]   ;;  %v11024_v13 = vld [vmem:[%s15231_s2 + $0x9a8] ss:$16 sps:$4 sm:$0xff]  }
 0x100   :  { %3418 = vmatpush1.bf16.msra.mxu0 %v10937_v27  ;;  %3746 = vmatpush1.bf16.msra.mxu1 %v10940_v28  ;;  %v11029_v27 = vld [vmem:[%s15231_s2 + $0x9c4] ss:$16 sps:$4 sm:$0xff]   ;;  %v11032_v28 = vld [vmem:[%s15231_s2 + $0x9cc] ss:$16 sps:$4 sm:$0xff]  }
 0x101   :  { %3428 = vmatprep.subr.bf16.mxu0 %v10945_v29  ;;  %3756 = vmatprep.subr.bf16.mxu1 %v10948_v14  ;;  %v11027_v29 = vld [vmem:[%s15231_s2 + $0x9c0] ss:$16 sps:$4 sm:$0xff]   ;;  %v11030_v14 = vld [vmem:[%s15231_s2 + $0x9c8] ss:$16 sps:$4 sm:$0xff]  }
 0x103   :  { %3420 = vmatmul.mubr.bf16.vlgmr.msra.gmra.mrb[0].mxu0 %v636_v31  ;;  %3748 = vmatmul.mubr.bf16.vlgmr.msra.gmra.mrb[0].mxu1 %v636_v31  ;;  %v11038_v31 = vld [vmem:[%s15231_s2 + $0x9ec] ss:$16 sps:$4 sm:$0xff]  }
 0x104   :  { %3429 = vmatpush1.bf16.msra.mxu0 %v10943_v25  ;;  %3757 = vmatpush1.bf16.msra.mxu1 %v10946_v32  ;;  %v11033_v25 = vld [vmem:[%s15231_s2 + $0x9e0] ss:$16 sps:$4 sm:$0xff]   ;;  %v11036_v32 = vld [vmem:[%s15231_s2 + $0x9e8] ss:$16 sps:$4 sm:$0xff]  }
 0x105   :  { %3430 = vmatprep.subr.bf16.mxu0 %v10951_v33  ;;  %3758 = vmatprep.subr.bf16.mxu1 %v10954_v26  ;;  %v11041_v33 = vld [vmem:[%s15231_s2 + $0xa04] ss:$16 sps:$4 sm:$0xff]   ;;  %v11044_v26 = vld [vmem:[%s15231_s2 + $0xa0c] ss:$16 sps:$4 sm:$0xff]  }
 0x106   :  { %3460 = vmatprep.mubr.bf16.mxu0 %v12395_v34  ;;  %3788 = vmatprep.mubr.bf16.mxu1 %v12395_v34 }
 0x108   :  { %3431 = vmatpush1.bf16.msra.mxu0 %v10949_v35  ;;  %3759 = vmatpush1.bf16.msra.mxu1 %v10952_v36  ;;  %v12581_v35 = vrot.slane %v12352_v21, %v11694_v49  ;;  %v11039_v36 = vld [vmem:[%s15231_s2 + $0xa00] ss:$16 sps:$4 sm:$0xff]   ;;  %v11050_v21 = vld [vmem:[%s15231_s2 + $0xa2c] ss:$16 sps:$4 sm:$0xff]  }
 0x109   :  { %3432 = vmatprep.subr.bf16.mxu0 %v10957_v37  ;;  %3760 = vmatprep.subr.bf16.mxu1 %v10960_v38  ;;  %v11042_v37 = vld [vmem:[%s15231_s2 + $0xa08] ss:$16 sps:$4 sm:$0xff]   ;;  %v11047_v38 = vld [vmem:[%s15231_s2 + $0xa24] ss:$16 sps:$4 sm:$0xff]  }
 0x10c   :  { %3433 = vmatpush1.bf16.msra.mxu0 %v10955_v39  ;;  %3761 = vmatpush1.bf16.msra.mxu1 %v10958_v40  ;;  %v686_v39 = vcombine.high %v12395_v34, %v12395_v34  ;;  %v11045_v40 = vld [vmem:[%s15231_s2 + $0xa20] ss:$16 sps:$4 sm:$0xff]   ;;  %v11053_v34 = vld [vmem:[%s15231_s2 + $0xa44] ss:$16 sps:$4 sm:$0xff]  }
 0x10d   :  { %3434 = vmatprep.subr.bf16.mxu0 %v10963_v41  ;;  %3762 = vmatprep.subr.bf16.mxu1 %v10966_v43  ;;  %v11048_v41 = vld [vmem:[%s15231_s2 + $0xa28] ss:$16 sps:$4 sm:$0xff]   ;;  %v11056_v43 = vld [vmem:[%s15231_s2 + $0xa4c] ss:$16 sps:$4 sm:$0xff]  }
 0x110   :  { %3435 = vmatpush1.bf16.msra.mxu0 %v10961_v44  ;;  %3763 = vmatpush1.bf16.msra.mxu1 %v10964_v45  ;;  %v11051_v44 = vld [vmem:[%s15231_s2 + $0xa40] ss:$16 sps:$4 sm:$0xff]   ;;  %v11054_v45 = vld [vmem:[%s15231_s2 + $0xa48] ss:$16 sps:$4 sm:$0xff]  }
 0x111   :  { %3436 = vmatprep.subr.bf16.mxu0 %v10969_v46  ;;  %3764 = vmatprep.subr.bf16.mxu1 %v10972_v47  ;;  %v11059_v46 = vld [vmem:[%s15231_s2 + $0xa64] ss:$16 sps:$4 sm:$0xff]   ;;  %v11062_v47 = vld [vmem:[%s15231_s2 + $0xa6c] ss:$16 sps:$4 sm:$0xff]  }
 0x114   :  { %3437 = vmatpush1.bf16.msra.mxu0 %v10967_v48  ;;  %3765 = vmatpush1.bf16.msra.mxu1 %v10970_v50  ;;  %v11057_v48 = vld [vmem:[%s15231_s2 + $0xa60] ss:$16 sps:$4 sm:$0xff]   ;;  %v11060_v50 = vld [vmem:[%s15231_s2 + $0xa68] ss:$16 sps:$4 sm:$0xff]  }
 0x115   :  { %3438 = vmatprep.subr.bf16.mxu0 %v10975_v51  ;;  %3766 = vmatprep.subr.bf16.mxu1 %v10978_v53  ;;  %v11065_v51 = vld [vmem:[%s15231_s2 + $0xa84] ss:$16 sps:$4 sm:$0xff]   ;;  %v11068_v53 = vld [vmem:[%s15231_s2 + $0xa8c] ss:$16 sps:$4 sm:$0xff]  }
 0x118   :  { %3439 = vmatpush1.bf16.msra.mxu0 %v10973_v54  ;;  %3767 = vmatpush1.bf16.msra.mxu1 %v10976_v55  ;;  %v11063_v54 = vld [vmem:[%s15231_s2 + $0xa80] ss:$16 sps:$4 sm:$0xff]   ;;  %v11066_v55 = vld [vmem:[%s15231_s2 + $0xa88] ss:$16 sps:$4 sm:$0xff]  }
 0x119   :  { %3440 = vmatprep.subr.bf16.mxu0 %v10981_v56  ;;  %3768 = vmatprep.subr.bf16.mxu1 %v10984_v57  ;;  %v11071_v56 = vld [vmem:[%s15231_s2 + $0xaa4] ss:$16 sps:$4 sm:$0xff]   ;;  %v11074_v57 = vld [vmem:[%s15231_s2 + $0xaac] ss:$16 sps:$4 sm:$0xff]  }
 0x11c   :  { %3441 = vmatpush1.bf16.msra.mxu0 %v10979_v58  ;;  %3769 = vmatpush1.bf16.msra.mxu1 %v10982_v59  ;;  %v11069_v58 = vld [vmem:[%s15231_s2 + $0xaa0] ss:$16 sps:$4 sm:$0xff]   ;;  %v11072_v59 = vld [vmem:[%s15231_s2 + $0xaa8] ss:$16 sps:$4 sm:$0xff]  }
 0x11d   :  { %3442 = vmatprep.subr.bf16.mxu0 %v10987_v60  ;;  %3770 = vmatprep.subr.bf16.mxu1 %v10990_v61  ;;  %v11077_v60 = vld [vmem:[%s15231_s2 + $0xac4] ss:$16 sps:$4 sm:$0xff]   ;;  %v11080_v61 = vld [vmem:[%s15231_s2 + $0xacc] ss:$16 sps:$4 sm:$0xff]  }
 0x120   :  { %3443 = vmatpush1.bf16.msra.mxu0 %v10985_v62  ;;  %3771 = vmatpush1.bf16.msra.mxu1 %v10988_v63  ;;  %v11075_v62 = vld [vmem:[%s15231_s2 + $0xac0] ss:$16 sps:$4 sm:$0xff]   ;;  %v11078_v63 = vld [vmem:[%s15231_s2 + $0xac8] ss:$16 sps:$4 sm:$0xff]  }
 0x121   :  { %3444 = vmatprep.subr.bf16.mxu0 %v10993_v0  ;;  %3772 = vmatprep.subr.bf16.mxu1 %v10996_v1  ;;  %v11083_v0 = vld [vmem:[%s15231_s2 + $0xae4] ss:$16 sps:$4 sm:$0xff]   ;;  %v11086_v1 = vld [vmem:[%s15231_s2 + $0xaec] ss:$16 sps:$4 sm:$0xff]  }
 0x124   :  { %3445 = vmatpush1.bf16.msra.mxu0 %v10991_v2  ;;  %3773 = vmatpush1.bf16.msra.mxu1 %v10994_v3  ;;  %v11081_v2 = vld [vmem:[%s15231_s2 + $0xae0] ss:$16 sps:$4 sm:$0xff]   ;;  %v11084_v3 = vld [vmem:[%s15231_s2 + $0xae8] ss:$16 sps:$4 sm:$0xff]  }
 0x125   :  { %3446 = vmatprep.subr.bf16.mxu0 %v10999_v4  ;;  %3774 = vmatprep.subr.bf16.mxu1 %v11002_v5  ;;  %v11089_v4 = vld [vmem:[%s15231_s2 + $0xb04] ss:$16 sps:$4 sm:$0xff]   ;;  %v11092_v5 = vld [vmem:[%s15231_s2 + $0xb0c] ss:$16 sps:$4 sm:$0xff]  }
 0x128   :  { %3447 = vmatpush1.bf16.msra.mxu0 %v10997_v6  ;;  %3775 = vmatpush1.bf16.msra.mxu1 %v11000_v7  ;;  %v11087_v6 = vld [vmem:[%s15231_s2 + $0xb00] ss:$16 sps:$4 sm:$0xff]   ;;  %v11090_v7 = vld [vmem:[%s15231_s2 + $0xb08] ss:$16 sps:$4 sm:$0xff]  }
 0x129   :  { %3448 = vmatprep.subr.bf16.mxu0 %v11005_v8  ;;  %3776 = vmatprep.subr.bf16.mxu1 %v11008_v9  ;;  %v11095_v8 = vld [vmem:[%s15231_s2 + $0xb24] ss:$16 sps:$4 sm:$0xff]   ;;  %v11098_v9 = vld [vmem:[%s15231_s2 + $0xb2c] ss:$16 sps:$4 sm:$0xff]  }
 0x12c   :  { %3449 = vmatpush1.bf16.msra.mxu0 %v11003_v10  ;;  %3777 = vmatpush1.bf16.msra.mxu1 %v11006_v11  ;;  %v11093_v10 = vld [vmem:[%s15231_s2 + $0xb20] ss:$16 sps:$4 sm:$0xff]   ;;  %v11096_v11 = vld [vmem:[%s15231_s2 + $0xb28] ss:$16 sps:$4 sm:$0xff]  }
 0x12d   :  { %3450 = vmatprep.subr.bf16.mxu0 %v11011_v12  ;;  %3778 = vmatprep.subr.bf16.mxu1 %v11014_v52  ;;  %v11101_v12 = vld [vmem:[%s15231_s2 + $0xb44] ss:$16 sps:$4 sm:$0xff]   ;;  %v11104_v52 = vld [vmem:[%s15231_s2 + $0xb4c] ss:$16 sps:$4 sm:$0xff]  }
 0x130   :  { %3451 = vmatpush1.bf16.msra.mxu0 %v11009_v15  ;;  %3779 = vmatpush1.bf16.msra.mxu1 %v11012_v16  ;;  %v11099_v15 = vld [vmem:[%s15231_s2 + $0xb40] ss:$16 sps:$4 sm:$0xff]   ;;  %v11102_v16 = vld [vmem:[%s15231_s2 + $0xb48] ss:$16 sps:$4 sm:$0xff]  }
 0x131   :  { %3452 = vmatprep.subr.bf16.mxu0 %v11017_v17  ;;  %3780 = vmatprep.subr.bf16.mxu1 %v11020_v18  ;;  %v11107_v17 = vld [vmem:[%s15231_s2 + $0xb64] ss:$16 sps:$4 sm:$0xff]   ;;  %v11110_v18 = vld [vmem:[%s15231_s2 + $0xb6c] ss:$16 sps:$4 sm:$0xff]  }
 0x134   :  { %3453 = vmatpush1.bf16.msra.mxu0 %v11015_v19  ;;  %3781 = vmatpush1.bf16.msra.mxu1 %v11018_v20  ;;  %v11105_v19 = vld [vmem:[%s15231_s2 + $0xb60] ss:$16 sps:$4 sm:$0xff]   ;;  %v11108_v20 = vld [vmem:[%s15231_s2 + $0xb68] ss:$16 sps:$4 sm:$0xff]  }
 0x135   :  { %3454 = vmatprep.subr.bf16.mxu0 %v11023_v22  ;;  %3782 = vmatprep.subr.bf16.mxu1 %v11026_v23  ;;  %v11113_v22 = vld [vmem:[%s15231_s2 + $0xb84] ss:$16 sps:$4 sm:$0xff]   ;;  %v11116_v23 = vld [vmem:[%s15231_s2 + $0xb8c] ss:$16 sps:$4 sm:$0xff]  }
 0x138   :  { %3455 = vmatpush1.bf16.msra.mxu0 %v11021_v24  ;;  %3783 = vmatpush1.bf16.msra.mxu1 %v11024_v13  ;;  %v11111_v24 = vld [vmem:[%s15231_s2 + $0xb80] ss:$16 sps:$4 sm:$0xff]   ;;  %v11114_v13 = vld [vmem:[%s15231_s2 + $0xb88] ss:$16 sps:$4 sm:$0xff]  }
 0x139   :  { %3456 = vmatprep.subr.bf16.mxu0 %v11029_v27  ;;  %3784 = vmatprep.subr.bf16.mxu1 %v11032_v28  ;;  %v11119_v27 = vld [vmem:[%s15231_s2 + $0xba4] ss:$16 sps:$4 sm:$0xff]   ;;  %v11122_v28 = vld [vmem:[%s15231_s2 + $0xbac] ss:$16 sps:$4 sm:$0xff]  }
 0x13c   :  { %3457 = vmatpush1.bf16.msra.mxu0 %v11027_v29  ;;  %3785 = vmatpush1.bf16.msra.mxu1 %v11030_v14  ;;  %v11117_v29 = vld [vmem:[%s15231_s2 + $0xba0] ss:$16 sps:$4 sm:$0xff]   ;;  %v11120_v14 = vld [vmem:[%s15231_s2 + $0xba8] ss:$16 sps:$4 sm:$0xff]  }
 0x13d   :  { %3458 = vmatprep.subr.bf16.mxu0 %v11035_v30  ;;  %3786 = vmatprep.subr.bf16.mxu1 %v11038_v31  ;;  %v11125_v30 = vld [vmem:[%s15231_s2 + $0xbc4] ss:$16 sps:$4 sm:$0xff]   ;;  %v11128_v31 = vld [vmem:[%s15231_s2 + $0xbcc] ss:$16 sps:$4 sm:$0xff]  }
 0x140   :  { %3459 = vmatpush1.bf16.msra.mxu0 %v11033_v25  ;;  %3787 = vmatpush1.bf16.msra.mxu1 %v11036_v32  ;;  %v11442_v25 = vld [vmem:[%s15248_s25 + $0x8] sm:$0xff] }
 0x141   :  { %3469 = vmatprep.subr.bf16.mxu0 %v11041_v33  ;;  %3797 = vmatprep.subr.bf16.mxu1 %v11044_v26  ;;  %v639_v32 = vcombine.high %v11442_v25, %v11442_v25  ;;  %v11123_v33 = vld [vmem:[%s15231_s2 + $0xbc0] ss:$16 sps:$4 sm:$0xff]   ;;  %v11126_v26 = vld [vmem:[%s15231_s2 + $0xbc8] ss:$16 sps:$4 sm:$0xff]  }
 0x143   :  { %3461 = vmatmul.mubr.bf16.vlgmr.msra.gmra.mrb[0].mxu0 %v12581_v35  ;;  %3789 = vmatmul.mubr.bf16.vlgmr.msra.gmra.mrb[0].mxu1 %v12581_v35 }
 0x144   :  { %3470 = vmatpush1.bf16.msra.mxu0 %v11039_v36  ;;  %3798 = vmatpush1.bf16.msra.mxu1 %v11042_v37  ;;  %v11131_v36 = vld [vmem:[%s15231_s2 + $0xbe4] ss:$16 sps:$4 sm:$0xff]   ;;  %v11134_v37 = vld [vmem:[%s15231_s2 + $0xbec] ss:$16 sps:$4 sm:$0xff]  }
 0x145   :  { %3471 = vmatprep.subr.bf16.mxu0 %v11047_v38  ;;  %3799 = vmatprep.subr.bf16.mxu1 %v11050_v21  ;;  %v12771_v38 = vrot.slane %v639_v32, %v11694_v49  ;;  %v11129_v21 = vld [vmem:[%s15231_s2 + $0xbe0] ss:$16 sps:$4 sm:$0xff]  }
 0x146   :  { %3501 = vmatprep.mubr.bf16.mxu0 %v686_v39  ;;  %3829 = vmatprep.mubr.bf16.mxu1 %v686_v39  ;;  %v11132_v39 = vld [vmem:[%s15231_s2 + $0xbe8] ss:$16 sps:$4 sm:$0xff]  }
 0x148   :  { %3472 = vmatpush1.bf16.msra.mxu0 %v11045_v40  ;;  %3800 = vmatpush1.bf16.msra.mxu1 %v11048_v41  ;;  %v11137_v40 = vld [vmem:[%s15231_s2 + $0xc04] ss:$16 sps:$4 sm:$0xff]   ;;  %v11140_v41 = vld [vmem:[%s15231_s2 + $0xc0c] ss:$16 sps:$4 sm:$0xff]  }
 0x149   :  { %3473 = vmatprep.subr.bf16.mxu0 %v11053_v34  ;;  %3801 = vmatprep.subr.bf16.mxu1 %v11056_v43  ;;  %v11135_v34 = vld [vmem:[%s15231_s2 + $0xc00] ss:$16 sps:$4 sm:$0xff]   ;;  %v11138_v43 = vld [vmem:[%s15231_s2 + $0xc08] ss:$16 sps:$4 sm:$0xff]  }
 0x14c   :  { %3474 = vmatpush1.bf16.msra.mxu0 %v11051_v44  ;;  %3802 = vmatpush1.bf16.msra.mxu1 %v11054_v45  ;;  %v655_v44 = vcombine.high %v12771_v38, %v12771_v38  ;;  %v684_v45 = vcombine.high %v12581_v35, %v12581_v35  ;;  %v11141_v35 = vld [vmem:[%s15231_s2 + $0xc20] ss:$16 sps:$4 sm:$0xff]  }
 0x14d   :  { %3475 = vmatprep.subr.bf16.mxu0 %v11059_v46  ;;  %3803 = vmatprep.subr.bf16.mxu1 %v11062_v47  ;;  %v11143_v46 = vld [vmem:[%s15231_s2 + $0xc24] ss:$16 sps:$4 sm:$0xff]   ;;  %v11146_v47 = vld [vmem:[%s15231_s2 + $0xc2c] ss:$16 sps:$4 sm:$0xff]  }
 0x150   :  { %3476 = vmatpush1.bf16.msra.mxu0 %v11057_v48  ;;  %3804 = vmatpush1.bf16.msra.mxu1 %v11060_v50  ;;  %v12802_v48 = vrot.slane %v655_v44, %v11694_v49  ;;  %v11144_v50 = vld [vmem:[%s15231_s2 + $0xc28] ss:$16 sps:$4 sm:$0xff]  }
 0x151   :  { %3477 = vmatprep.subr.bf16.mxu0 %v11065_v51  ;;  %3805 = vmatprep.subr.bf16.mxu1 %v11068_v53  ;;  %v11149_v51 = vld [vmem:[%s15231_s2 + $0xc44] ss:$16 sps:$4 sm:$0xff]   ;;  %v11152_v53 = vld [vmem:[%s15231_s2 + $0xc4c] ss:$16 sps:$4 sm:$0xff]  }
 0x154   :  { %3478 = vmatpush1.bf16.msra.mxu0 %v11063_v54  ;;  %3806 = vmatpush1.bf16.msra.mxu1 %v11066_v55  ;;  %v11147_v54 = vld [vmem:[%s15231_s2 + $0xc40] ss:$16 sps:$4 sm:$0xff]   ;;  %v11150_v55 = vld [vmem:[%s15231_s2 + $0xc48] ss:$16 sps:$4 sm:$0xff]  }
 0x155   :  { %3479 = vmatprep.subr.bf16.mxu0 %v11071_v56  ;;  %3807 = vmatprep.subr.bf16.mxu1 %v11074_v57  ;;  %v11155_v56 = vld [vmem:[%s15231_s2 + $0xc64] ss:$16 sps:$4 sm:$0xff]   ;;  %v11158_v57 = vld [vmem:[%s15231_s2 + $0xc6c] ss:$16 sps:$4 sm:$0xff]  }
 0x158   :  { %3480 = vmatpush1.bf16.msra.mxu0 %v11069_v58  ;;  %3808 = vmatpush1.bf16.msra.mxu1 %v11072_v59  ;;  %v11153_v58 = vld [vmem:[%s15231_s2 + $0xc60] ss:$16 sps:$4 sm:$0xff]   ;;  %v11156_v59 = vld [vmem:[%s15231_s2 + $0xc68] ss:$16 sps:$4 sm:$0xff]  }
 0x159   :  { %3481 = vmatprep.subr.bf16.mxu0 %v11077_v60  ;;  %3809 = vmatprep.subr.bf16.mxu1 %v11080_v61  ;;  %v11161_v60 = vld [vmem:[%s15231_s2 + $0xc84] ss:$16 sps:$4 sm:$0xff]   ;;  %v11164_v61 = vld [vmem:[%s15231_s2 + $0xc8c] ss:$16 sps:$4 sm:$0xff]  }
 0x15c   :  { %3482 = vmatpush1.bf16.msra.mxu0 %v11075_v62  ;;  %3810 = vmatpush1.bf16.msra.mxu1 %v11078_v63  ;;  %v11159_v62 = vld [vmem:[%s15231_s2 + $0xc80] ss:$16 sps:$4 sm:$0xff]   ;;  %v11162_v63 = vld [vmem:[%s15231_s2 + $0xc88] ss:$16 sps:$4 sm:$0xff]  }
 0x15d   :  { %3483 = vmatprep.subr.bf16.mxu0 %v11083_v0  ;;  %3811 = vmatprep.subr.bf16.mxu1 %v11086_v1  ;;  %v11167_v0 = vld [vmem:[%s15231_s2 + $0xca4] ss:$16 sps:$4 sm:$0xff]   ;;  %v11170_v1 = vld [vmem:[%s15231_s2 + $0xcac] ss:$16 sps:$4 sm:$0xff]  }
 0x160   :  { %3484 = vmatpush1.bf16.msra.mxu0 %v11081_v2  ;;  %3812 = vmatpush1.bf16.msra.mxu1 %v11084_v3  ;;  %v11165_v2 = vld [vmem:[%s15231_s2 + $0xca0] ss:$16 sps:$4 sm:$0xff]   ;;  %v11168_v3 = vld [vmem:[%s15231_s2 + $0xca8] ss:$16 sps:$4 sm:$0xff]  }
 0x161   :  { %3485 = vmatprep.subr.bf16.mxu0 %v11089_v4  ;;  %3813 = vmatprep.subr.bf16.mxu1 %v11092_v5  ;;  %v11173_v4 = vld [vmem:[%s15231_s2 + $0xcc4] ss:$16 sps:$4 sm:$0xff]   ;;  %v11176_v5 = vld [vmem:[%s15231_s2 + $0xccc] ss:$16 sps:$4 sm:$0xff]  }
 0x164   :  { %3486 = vmatpush1.bf16.msra.mxu0 %v11087_v6  ;;  %3814 = vmatpush1.bf16.msra.mxu1 %v11090_v7  ;;  %v11171_v6 = vld [vmem:[%s15231_s2 + $0xcc0] ss:$16 sps:$4 sm:$0xff]   ;;  %v11174_v7 = vld [vmem:[%s15231_s2 + $0xcc8] ss:$16 sps:$4 sm:$0xff]  }
 0x165   :  { %3487 = vmatprep.subr.bf16.mxu0 %v11095_v8  ;;  %3815 = vmatprep.subr.bf16.mxu1 %v11098_v9  ;;  %v11179_v8 = vld [vmem:[%s15231_s2 + $0xce4] ss:$16 sps:$4 sm:$0xff]   ;;  %v11182_v9 = vld [vmem:[%s15231_s2 + $0xcec] ss:$16 sps:$4 sm:$0xff]  }
 0x168   :  { %3488 = vmatpush1.bf16.msra.mxu0 %v11093_v10  ;;  %3816 = vmatpush1.bf16.msra.mxu1 %v11096_v11  ;;  %v11177_v10 = vld [vmem:[%s15231_s2 + $0xce0] ss:$16 sps:$4 sm:$0xff]   ;;  %v11180_v11 = vld [vmem:[%s15231_s2 + $0xce8] ss:$16 sps:$4 sm:$0xff]  }
 0x169   :  { %3489 = vmatprep.subr.bf16.mxu0 %v11101_v12  ;;  %3817 = vmatprep.subr.bf16.mxu1 %v11104_v52  ;;  %v11185_v12 = vld [vmem:[%s15231_s2 + $0xd04] ss:$16 sps:$4 sm:$0xff]   ;;  %v11188_v52 = vld [vmem:[%s15231_s2 + $0xd0c] ss:$16 sps:$4 sm:$0xff]  }
 0x16c   :  { %3490 = vmatpush1.bf16.msra.mxu0 %v11099_v15  ;;  %3818 = vmatpush1.bf16.msra.mxu1 %v11102_v16 }
 0x16d   :  { %3491 = vmatprep.subr.bf16.mxu0 %v11107_v17  ;;  %3819 = vmatprep.subr.bf16.mxu1 %v11110_v18 }
 0x170   :  { %3492 = vmatpush1.bf16.msra.mxu0 %v11105_v19  ;;  %3820 = vmatpush1.bf16.msra.mxu1 %v11108_v20 }
 0x171   :  { %3493 = vmatprep.subr.bf16.mxu0 %v11113_v22  ;;  %3821 = vmatprep.subr.bf16.mxu1 %v11116_v23 }
 0x174   :  { %3494 = vmatpush1.bf16.msra.mxu0 %v11111_v24  ;;  %3822 = vmatpush1.bf16.msra.mxu1 %v11114_v13 }
 0x175   :  { %3495 = vmatprep.subr.bf16.mxu0 %v11119_v27  ;;  %3823 = vmatprep.subr.bf16.mxu1 %v11122_v28 }
 0x178   :  { %3496 = vmatpush1.bf16.msra.mxu0 %v11117_v29  ;;  %3824 = vmatpush1.bf16.msra.mxu1 %v11120_v14 }
 0x179   :  { %3497 = vmatprep.subr.bf16.mxu0 %v11125_v30  ;;  %3825 = vmatprep.subr.bf16.mxu1 %v11128_v31 }
 0x17c   :  { %3498 = vmatpush1.bf16.msra.mxu0 %v11123_v33  ;;  %3826 = vmatpush1.bf16.msra.mxu1 %v11126_v26 }
 0x17d   :  { %3499 = vmatprep.subr.bf16.mxu0 %v11131_v36  ;;  %3827 = vmatprep.subr.bf16.mxu1 %v11134_v37 }
 0x180   :  { %3500 = vmatpush1.bf16.msra.mxu0 %v11129_v21  ;;  %3828 = vmatpush1.bf16.msra.mxu1 %v11132_v39 }
 0x181   :  { %3510 = vmatprep.subr.bf16.mxu0 %v11137_v40  ;;  %3838 = vmatprep.subr.bf16.mxu1 %v11140_v41 }
 0x183   :  { %3502 = vmatmul.mubr.bf16.vlgmr.msra.gmra.mrb[0].mxu0 %v684_v45  ;;  %3830 = vmatmul.mubr.bf16.vlgmr.msra.gmra.mrb[0].mxu1 %v684_v45 }
 0x184   :  { %3511 = vmatpush1.bf16.msra.mxu0 %v11135_v34  ;;  %3839 = vmatpush1.bf16.msra.mxu1 %v11138_v43 }
 0x185   :  { %3512 = vmatprep.subr.bf16.mxu0 %v11143_v46  ;;  %3840 = vmatprep.subr.bf16.mxu1 %v11146_v47 }
 0x186   :  { %3542 = vmatprep.mubr.bf16.mxu0 %v12802_v48  ;;  %3870 = vmatprep.mubr.bf16.mxu1 %v12802_v48 }
 0x188   :  { %3513 = vmatpush1.bf16.msra.mxu0 %v11141_v35  ;;  %3841 = vmatpush1.bf16.msra.mxu1 %v11144_v50 }
 0x189   :  { %3514 = vmatprep.subr.bf16.mxu0 %v11149_v51  ;;  %3842 = vmatprep.subr.bf16.mxu1 %v11152_v53 }
 0x18c   :  { %3515 = vmatpush1.bf16.msra.mxu0 %v11147_v54  ;;  %3843 = vmatpush1.bf16.msra.mxu1 %v11150_v55 }
 0x18d   :  { %3516 = vmatprep.subr.bf16.mxu0 %v11155_v56  ;;  %3844 = vmatprep.subr.bf16.mxu1 %v11158_v57 }
 0x190   :  { %3517 = vmatpush1.bf16.msra.mxu0 %v11153_v58  ;;  %3845 = vmatpush1.bf16.msra.mxu1 %v11156_v59 }
 0x191   :  { %3518 = vmatprep.subr.bf16.mxu0 %v11161_v60  ;;  %3846 = vmatprep.subr.bf16.mxu1 %v11164_v61 }
 0x194   :  { %3519 = vmatpush1.bf16.msra.mxu0 %v11159_v62  ;;  %3847 = vmatpush1.bf16.msra.mxu1 %v11162_v63 }
 0x195   :  { %3520 = vmatprep.subr.bf16.mxu0 %v11167_v0  ;;  %3848 = vmatprep.subr.bf16.mxu1 %v11170_v1 }
 0x198   :  { %3521 = vmatpush1.bf16.msra.mxu0 %v11165_v2  ;;  %3849 = vmatpush1.bf16.msra.mxu1 %v11168_v3 }
 0x199   :  { %3522 = vmatprep.subr.bf16.mxu0 %v11173_v4  ;;  %3850 = vmatprep.subr.bf16.mxu1 %v11176_v5 }
 0x19c   :  { %3523 = vmatpush1.bf16.msra.mxu0 %v11171_v6  ;;  %3851 = vmatpush1.bf16.msra.mxu1 %v11174_v7 }
 0x19d   :  { %3524 = vmatprep.subr.bf16.mxu0 %v11179_v8  ;;  %3852 = vmatprep.subr.bf16.mxu1 %v11182_v9 }
 0x19e   :  { %22 = vsyncpa [#allocation3], 0  ;;  %v11183_v15 = vld [vmem:[%s15231_s2 + $0xd00] ss:$16 sps:$4 sm:$0xff]   ;;  %v11186_v16 = vld [vmem:[%s15231_s2 + $0xd08] ss:$16 sps:$4 sm:$0xff]   ;;  %v12988_v35 = vrot.slane %v12771_v38, %v11694_v49  ;;  %v687_v54 = vcombine.high %v12802_v48, %v12802_v48 }
 0x19f   :  { %v11191_v17 = vld [vmem:[%s15231_s2 + $0xd24] ss:$16 sps:$4 sm:$0xff]   ;;  %v11194_v18 = vld [vmem:[%s15231_s2 + $0xd2c] ss:$16 sps:$4 sm:$0xff]   ;;  %v11189_v19 = vld [vmem:[%s15231_s2 + $0xd20] ss:$16 sps:$4 sm:$0xff]  }
 0x1a0   :  { %3525 = vmatpush1.bf16.msra.mxu0 %v11177_v10  ;;  %3853 = vmatpush1.bf16.msra.mxu1 %v11180_v11  ;;  %v11192_v20 = vld [vmem:[%s15231_s2 + $0xd28] ss:$16 sps:$4 sm:$0xff]   ;;  %v11197_v22 = vld [vmem:[%s15231_s2 + $0xd44] ss:$16 sps:$4 sm:$0xff]   ;;  %v11200_v23 = vld [vmem:[%s15231_s2 + $0xd4c] ss:$16 sps:$4 sm:$0xff]  }
 0x1a1   :  { %3526 = vmatprep.subr.bf16.mxu0 %v11185_v12  ;;  %3854 = vmatprep.subr.bf16.mxu1 %v11188_v52  ;;  %v11195_v24 = vld [vmem:[%s15231_s2 + $0xd40] ss:$16 sps:$4 sm:$0xff]   ;;  %v11198_v13 = vld [vmem:[%s15231_s2 + $0xd48] ss:$16 sps:$4 sm:$0xff]   ;;  %v11203_v27 = vld [vmem:[%s15231_s2 + $0xd64] ss:$16 sps:$4 sm:$0xff]  }
 0x1a2   :  { %v11206_v28 = vld [vmem:[%s15231_s2 + $0xd6c] ss:$16 sps:$4 sm:$0xff]   ;;  %v11201_v29 = vld [vmem:[%s15231_s2 + $0xd60] ss:$16 sps:$4 sm:$0xff]   ;;  %v11204_v14 = vld [vmem:[%s15231_s2 + $0xd68] ss:$16 sps:$4 sm:$0xff]  }
 0x1a3   :  { %v11209_v30 = vld [vmem:[%s15231_s2 + $0xd84] ss:$16 sps:$4 sm:$0xff]   ;;  %v11212_v31 = vld [vmem:[%s15231_s2 + $0xd8c] ss:$16 sps:$4 sm:$0xff]   ;;  %v11207_v25 = vld [vmem:[%s15231_s2 + $0xd80] ss:$16 sps:$4 sm:$0xff]  }
 0x1a4   :  { %3527 = vmatpush1.bf16.msra.mxu0 %v11183_v15  ;;  %3855 = vmatpush1.bf16.msra.mxu1 %v11186_v16  ;;  %v11210_v32 = vld [vmem:[%s15231_s2 + $0xd88] ss:$16 sps:$4 sm:$0xff]   ;;  %v11215_v33 = vld [vmem:[%s15231_s2 + $0xda4] ss:$16 sps:$4 sm:$0xff]   ;;  %v11218_v26 = vld [vmem:[%s15231_s2 + $0xdac] ss:$16 sps:$4 sm:$0xff]  }
 0x1a5   :  { %3528 = vmatprep.subr.bf16.mxu0 %v11191_v17  ;;  %3856 = vmatprep.subr.bf16.mxu1 %v11194_v18  ;;  %v11213_v36 = vld [vmem:[%s15231_s2 + $0xda0] ss:$16 sps:$4 sm:$0xff]   ;;  %v11216_v37 = vld [vmem:[%s15231_s2 + $0xda8] ss:$16 sps:$4 sm:$0xff]   ;;  %v11221_v21 = vld [vmem:[%s15231_s2 + $0xdc4] ss:$16 sps:$4 sm:$0xff]  }
 0x1a6   :  { %v11224_v39 = vld [vmem:[%s15231_s2 + $0xdcc] ss:$16 sps:$4 sm:$0xff]   ;;  %v11219_v40 = vld [vmem:[%s15231_s2 + $0xdc0] ss:$16 sps:$4 sm:$0xff]   ;;  %v11222_v41 = vld [vmem:[%s15231_s2 + $0xdc8] ss:$16 sps:$4 sm:$0xff]  }
 0x1a7   :  { %v11227_v34 = vld [vmem:[%s15231_s2 + $0xde4] ss:$16 sps:$4 sm:$0xff]   ;;  %v11230_v43 = vld [vmem:[%s15231_s2 + $0xdec] ss:$16 sps:$4 sm:$0xff]   ;;  %v11225_v44 = vld [vmem:[%s15231_s2 + $0xde0] ss:$16 sps:$4 sm:$0xff]  }
 0x1a8   :  { %3529 = vmatpush1.bf16.msra.mxu0 %v11189_v19  ;;  %3857 = vmatpush1.bf16.msra.mxu1 %v11192_v20  ;;  %v11228_v45 = vld [vmem:[%s15231_s2 + $0xde8] ss:$16 sps:$4 sm:$0xff]   ;;  %v11234_v46 = vld [vmem:[%s15231_s2 + $0xe04] ss:$16 sps:$4 sm:$0xff]   ;;  %v11237_v47 = vld [vmem:[%s15231_s2 + $0xe0c] ss:$16 sps:$4 sm:$0xff]  }
 0x1a9   :  { %3530 = vmatprep.subr.bf16.mxu0 %v11197_v22  ;;  %3858 = vmatprep.subr.bf16.mxu1 %v11200_v23  ;;  %v11232_v50 = vld [vmem:[%s15231_s2 + $0xe00] ss:$16 sps:$4 sm:$0xff]   ;;  %v11235_v51 = vld [vmem:[%s15231_s2 + $0xe08] ss:$16 sps:$4 sm:$0xff]   ;;  %v11240_v53 = vld [vmem:[%s15231_s2 + $0xe24] ss:$16 sps:$4 sm:$0xff]  }
 0x1aa   :  { %v11243_v38 = vld [vmem:[%s15231_s2 + $0xe2c] ss:$16 sps:$4 sm:$0xff]   ;;  %v11238_v55 = vld [vmem:[%s15231_s2 + $0xe20] ss:$16 sps:$4 sm:$0xff]   ;;  %v11241_v56 = vld [vmem:[%s15231_s2 + $0xe28] ss:$16 sps:$4 sm:$0xff]  }
 0x1ab   :  { %v11246_v48 = vld [vmem:[%s15231_s2 + $0xe44] ss:$16 sps:$4 sm:$0xff]   ;;  %v11249_v57 = vld [vmem:[%s15231_s2 + $0xe4c] ss:$16 sps:$4 sm:$0xff]   ;;  %v11244_v58 = vld [vmem:[%s15231_s2 + $0xe40] ss:$16 sps:$4 sm:$0xff]  }
 0x1ac   :  { %3531 = vmatpush1.bf16.msra.mxu0 %v11195_v24  ;;  %3859 = vmatpush1.bf16.msra.mxu1 %v11198_v13  ;;  %v11247_v59 = vld [vmem:[%s15231_s2 + $0xe48] ss:$16 sps:$4 sm:$0xff]   ;;  %v11252_v60 = vld [vmem:[%s15231_s2 + $0xe64] ss:$16 sps:$4 sm:$0xff]   ;;  %v11255_v61 = vld [vmem:[%s15231_s2 + $0xe6c] ss:$16 sps:$4 sm:$0xff]  }
 0x1ad   :  { %3532 = vmatprep.subr.bf16.mxu0 %v11203_v27  ;;  %3860 = vmatprep.subr.bf16.mxu1 %v11206_v28  ;;  %v11250_v62 = vld [vmem:[%s15231_s2 + $0xe60] ss:$16 sps:$4 sm:$0xff]   ;;  %v11253_v63 = vld [vmem:[%s15231_s2 + $0xe68] ss:$16 sps:$4 sm:$0xff]   ;;  %v11258_v0 = vld [vmem:[%s15231_s2 + $0xe84] ss:$16 sps:$4 sm:$0xff]  }
 0x1ae   :  { %v11261_v1 = vld [vmem:[%s15231_s2 + $0xe8c] ss:$16 sps:$4 sm:$0xff]   ;;  %v11256_v2 = vld [vmem:[%s15231_s2 + $0xe80] ss:$16 sps:$4 sm:$0xff]   ;;  %v11259_v3 = vld [vmem:[%s15231_s2 + $0xe88] ss:$16 sps:$4 sm:$0xff]  }
 0x1af   :  { %v11264_v4 = vld [vmem:[%s15231_s2 + $0xea4] ss:$16 sps:$4 sm:$0xff]   ;;  %v11267_v5 = vld [vmem:[%s15231_s2 + $0xeac] ss:$16 sps:$4 sm:$0xff]   ;;  %v11262_v6 = vld [vmem:[%s15231_s2 + $0xea0] ss:$16 sps:$4 sm:$0xff]  }
 0x1b0   :  { %3533 = vmatpush1.bf16.msra.mxu0 %v11201_v29  ;;  %3861 = vmatpush1.bf16.msra.mxu1 %v11204_v14  ;;  %v11265_v7 = vld [vmem:[%s15231_s2 + $0xea8] ss:$16 sps:$4 sm:$0xff]   ;;  %v11270_v8 = vld [vmem:[%s15231_s2 + $0xec4] ss:$16 sps:$4 sm:$0xff]   ;;  %v11273_v9 = vld [vmem:[%s15231_s2 + $0xecc] ss:$16 sps:$4 sm:$0xff]  }
 0x1b1   :  { %3534 = vmatprep.subr.bf16.mxu0 %v11209_v30  ;;  %3862 = vmatprep.subr.bf16.mxu1 %v11212_v31  ;;  %v11268_v10 = vld [vmem:[%s15231_s2 + $0xec0] ss:$16 sps:$4 sm:$0xff]   ;;  %v11271_v11 = vld [vmem:[%s15231_s2 + $0xec8] ss:$16 sps:$4 sm:$0xff]   ;;  %v11276_v12 = vld [vmem:[%s15231_s2 + $0xee4] ss:$16 sps:$4 sm:$0xff]  }
 0x1b2   :  { %v11279_v52 = vld [vmem:[%s15231_s2 + $0xeec] ss:$16 sps:$4 sm:$0xff]   ;;  %v11274_v15 = vld [vmem:[%s15231_s2 + $0xee0] ss:$16 sps:$4 sm:$0xff]   ;;  %v11277_v16 = vld [vmem:[%s15231_s2 + $0xee8] ss:$16 sps:$4 sm:$0xff]  }
 0x1b3   :  { %v11282_v17 = vld [vmem:[%s15231_s2 + $0xf04] ss:$16 sps:$4 sm:$0xff]   ;;  %v11285_v18 = vld [vmem:[%s15231_s2 + $0xf0c] ss:$16 sps:$4 sm:$0xff]   ;;  %v11280_v19 = vld [vmem:[%s15231_s2 + $0xf00] ss:$16 sps:$4 sm:$0xff]  }
 0x1b4   :  { %3535 = vmatpush1.bf16.msra.mxu0 %v11207_v25  ;;  %3863 = vmatpush1.bf16.msra.mxu1 %v11210_v32  ;;  %v11283_v20 = vld [vmem:[%s15231_s2 + $0xf08] ss:$16 sps:$4 sm:$0xff]   ;;  %v11288_v22 = vld [vmem:[%s15231_s2 + $0xf24] ss:$16 sps:$4 sm:$0xff]   ;;  %v11291_v23 = vld [vmem:[%s15231_s2 + $0xf2c] ss:$16 sps:$4 sm:$0xff]  }
 0x1b5   :  { %3536 = vmatprep.subr.bf16.mxu0 %v11215_v33  ;;  %3864 = vmatprep.subr.bf16.mxu1 %v11218_v26  ;;  %v11286_v24 = vld [vmem:[%s15231_s2 + $0xf20] ss:$16 sps:$4 sm:$0xff]   ;;  %v11289_v13 = vld [vmem:[%s15231_s2 + $0xf28] ss:$16 sps:$4 sm:$0xff]   ;;  %v11294_v27 = vld [vmem:[%s15231_s2 + $0xf44] ss:$16 sps:$4 sm:$0xff]  }
 0x1b6   :  { %v11297_v28 = vld [vmem:[%s15231_s2 + $0xf4c] ss:$16 sps:$4 sm:$0xff]   ;;  %v11292_v29 = vld [vmem:[%s15231_s2 + $0xf40] ss:$16 sps:$4 sm:$0xff]   ;;  %v11295_v14 = vld [vmem:[%s15231_s2 + $0xf48] ss:$16 sps:$4 sm:$0xff]  }
 0x1b7   :  { %v11300_v30 = vld [vmem:[%s15231_s2 + $0xf64] ss:$16 sps:$4 sm:$0xff]   ;;  %v11303_v31 = vld [vmem:[%s15231_s2 + $0xf6c] ss:$16 sps:$4 sm:$0xff]   ;;  %v11298_v25 = vld [vmem:[%s15231_s2 + $0xf60] ss:$16 sps:$4 sm:$0xff]  }
 0x1b8   :  { %3537 = vmatpush1.bf16.msra.mxu0 %v11213_v36  ;;  %3865 = vmatpush1.bf16.msra.mxu1 %v11216_v37  ;;  %v11301_v32 = vld [vmem:[%s15231_s2 + $0xf68] ss:$16 sps:$4 sm:$0xff]   ;;  %v11306_v33 = vld [vmem:[%s15231_s2 + $0xf84] ss:$16 sps:$4 sm:$0xff]   ;;  %v11309_v26 = vld [vmem:[%s15231_s2 + $0xf8c] ss:$16 sps:$4 sm:$0xff]  }
 0x1b9   :  { %3538 = vmatprep.subr.bf16.mxu0 %v11221_v21  ;;  %3866 = vmatprep.subr.bf16.mxu1 %v11224_v39  ;;  %v11304_v36 = vld [vmem:[%s15231_s2 + $0xf80] ss:$16 sps:$4 sm:$0xff]   ;;  %v11307_v37 = vld [vmem:[%s15231_s2 + $0xf88] ss:$16 sps:$4 sm:$0xff]   ;;  %v11312_v21 = vld [vmem:[%s15231_s2 + $0xfa4] ss:$16 sps:$4 sm:$0xff]  }
 0x1ba   :  { %v11315_v39 = vld [vmem:[%s15231_s2 + $0xfac] ss:$16 sps:$4 sm:$0xff]   ;;  %vm4271_vm0 = vcmask 517120   ;;  %vm4392_vm1 = vcmask 523264   ;;  %vm11472_vm2 = vmmov 0   ;;  %vm8861_vm3 = vcmask 130048  }
 0x1bc   :  { %3539 = vmatpush1.bf16.msra.mxu0 %v11219_v40  ;;  %3867 = vmatpush1.bf16.msra.mxu1 %v11222_v41  ;;  %v11310_v40 = vld [vmem:[%s15231_s2 + $0xfa0] ss:$16 sps:$4 sm:$0xff]   ;;  %v11313_v41 = vld [vmem:[%s15231_s2 + $0xfa8] ss:$16 sps:$4 sm:$0xff]  }
 0x1bd   :  { %3540 = vmatprep.subr.bf16.mxu0 %v11227_v34  ;;  %3868 = vmatprep.subr.bf16.mxu1 %v11230_v43  ;;  %v11318_v34 = vld [vmem:[%s15231_s2 + $0xfc4] ss:$16 sps:$4 sm:$0xff]   ;;  %v11321_v43 = vld [vmem:[%s15231_s2 + $0xfcc] ss:$16 sps:$4 sm:$0xff]  }
 0x1c0   :  { %3541 = vmatpush1.bf16.msra.mxu0 %v11225_v44  ;;  %3869 = vmatpush1.bf16.msra.mxu1 %v11228_v45  ;;  %v11316_v44 = vld [vmem:[%s15231_s2 + $0xfc0] ss:$16 sps:$4 sm:$0xff]   ;;  %v11319_v45 = vld [vmem:[%s15231_s2 + $0xfc8] ss:$16 sps:$4 sm:$0xff]  }
 0x1c1   :  { %3551 = vmatprep.subr.bf16.mxu0 %v11234_v46  ;;  %3879 = vmatprep.subr.bf16.mxu1 %v11237_v47  ;;  %v11324_v46 = vld [vmem:[%s15231_s2 + $0xfe4] ss:$16 sps:$4 sm:$0xff]   ;;  %v11327_v47 = vld [vmem:[%s15231_s2 + $0xfec] ss:$16 sps:$4 sm:$0xff]  }
 0x1c3   :  { %3543 = vmatmul.mubr.bf16.vlgmr.msra.gmra.mrb[0].mxu0 %v12988_v35  ;;  %3871 = vmatmul.mubr.bf16.vlgmr.msra.gmra.mrb[0].mxu1 %v12988_v35 }
 0x1c4   :  { %3552 = vmatpush1.bf16.msra.mxu0 %v11232_v50  ;;  %3880 = vmatpush1.bf16.msra.mxu1 %v11235_v51  ;;  %v11322_v50 = vld [vmem:[%s15231_s2 + $0xfe0] ss:$16 sps:$4 sm:$0xff]   ;;  %v11325_v51 = vld [vmem:[%s15231_s2 + $0xfe8] ss:$16 sps:$4 sm:$0xff]  }
 0x1c5   :  { %3553 = vmatprep.subr.bf16.mxu0 %v11240_v53  ;;  %3881 = vmatprep.subr.bf16.mxu1 %v11243_v38  ;;  %v11328_v53 = vld [vmem:[%s15233_s4 + $0x40] sm:$0xff]  }
 0x1c6   :  { %3583 = vmatprep.mubr.bf16.mxu0 %v687_v54  ;;  %3911 = vmatprep.mubr.bf16.mxu1 %v687_v54  ;;  %v11329_v38 = vld [vmem:[%s15233_s4 + $0xc0] sm:$0xff]   ;;  %v685_v54 = vcombine.high %v12988_v35, %v12988_v35  ;;  %v11333_v35 = vld [vmem:[%s15233_s4 + $0xc8] sm:$0xff]  }
 0x1c8   :  { %3554 = vmatpush1.bf16.msra.mxu0 %v11238_v55  ;;  %3882 = vmatpush1.bf16.msra.mxu1 %v11241_v56  ;;  %v11330_v55 = vld [vmem:[%s15233_s4] sm:$0xff]  }
 0x1c9   :  { %3555 = vmatprep.subr.bf16.mxu0 %v11246_v48  ;;  %3883 = vmatprep.subr.bf16.mxu1 %v11249_v57  ;;  %v11331_v56 = vld [vmem:[%s15233_s4 + $0x80] sm:$0xff]   ;;  %v11332_v48 = vld [vmem:[%s15233_s4 + $0x48] sm:$0xff]  }
 0x1ca   :  { %v11334_v57 = vld [vmem:[%s15233_s4 + $0x8] sm:$0xff]  }
 0x1cc   :  { %3556 = vmatpush1.bf16.msra.mxu0 %v11244_v58  ;;  %3884 = vmatpush1.bf16.msra.mxu1 %v11247_v59  ;;  %v11335_v58 = vld [vmem:[%s15233_s4 + $0x88] sm:$0xff]   ;;  %v11336_v59 = vld [vmem:[%s15233_s4 + $0x50] sm:$0xff]  }
 0x1cd   :  { %3557 = vmatprep.subr.bf16.mxu0 %v11252_v60  ;;  %3885 = vmatprep.subr.bf16.mxu1 %v11255_v61  ;;  %v11337_v60 = vld [vmem:[%s15233_s4 + $0xd0] sm:$0xff]  }
 0x1ce   :  { %v11338_v61 = vld [vmem:[%s15233_s4 + $0x10] sm:$0xff]  }
 0x1d0   :  { %3558 = vmatpush1.bf16.msra.mxu0 %v11250_v62  ;;  %3886 = vmatpush1.bf16.msra.mxu1 %v11253_v63  ;;  %v11339_v62 = vld [vmem:[%s15233_s4 + $0x90] sm:$0xff]   ;;  %v11340_v63 = vld [vmem:[%s15233_s4 + $0x58] sm:$0xff]  }
 0x1d1   :  { %3559 = vmatprep.subr.bf16.mxu0 %v11258_v0  ;;  %3887 = vmatprep.subr.bf16.mxu1 %v11261_v1  ;;  %v11341_v0 = vld [vmem:[%s15233_s4 + $0xd8] sm:$0xff]  }
 0x1d2   :  { %v11342_v1 = vld [vmem:[%s15233_s4 + $0x18] sm:$0xff]  }
 0x1d4   :  { %3560 = vmatpush1.bf16.msra.mxu0 %v11256_v2  ;;  %3888 = vmatpush1.bf16.msra.mxu1 %v11259_v3  ;;  %v11343_v2 = vld [vmem:[%s15233_s4 + $0x98] sm:$0xff]   ;;  %v11344_v3 = vld [vmem:[%s15233_s4 + $0x60] sm:$0xff]  }
 0x1d5   :  { %3561 = vmatprep.subr.bf16.mxu0 %v11264_v4  ;;  %3889 = vmatprep.subr.bf16.mxu1 %v11267_v5  ;;  %v11345_v4 = vld [vmem:[%s15233_s4 + $0xe0] sm:$0xff]  }
 0x1d6   :  { %v11346_v5 = vld [vmem:[%s15233_s4 + $0x20] sm:$0xff]  }
 0x1d8   :  { %3562 = vmatpush1.bf16.msra.mxu0 %v11262_v6  ;;  %3890 = vmatpush1.bf16.msra.mxu1 %v11265_v7  ;;  %v11347_v6 = vld [vmem:[%s15233_s4 + $0xa0] sm:$0xff]   ;;  %v11348_v7 = vld [vmem:[%s15233_s4 + $0x68] sm:$0xff]  }
 0x1d9   :  { %3563 = vmatprep.subr.bf16.mxu0 %v11270_v8  ;;  %3891 = vmatprep.subr.bf16.mxu1 %v11273_v9  ;;  %v11349_v8 = vld [vmem:[%s15233_s4 + $0xe8] sm:$0xff]  }
 0x1da   :  { %v11350_v9 = vld [vmem:[%s15233_s4 + $0x28] sm:$0xff]  }
 0x1dc   :  { %3564 = vmatpush1.bf16.msra.mxu0 %v11268_v10  ;;  %3892 = vmatpush1.bf16.msra.mxu1 %v11271_v11  ;;  %v11351_v10 = vld [vmem:[%s15233_s4 + $0xa8] sm:$0xff]   ;;  %v11352_v11 = vld [vmem:[%s15233_s4 + $0x70] sm:$0xff]  }
 0x1dd   :  { %3565 = vmatprep.subr.bf16.mxu0 %v11276_v12  ;;  %3893 = vmatprep.subr.bf16.mxu1 %v11279_v52  ;;  %v11353_v12 = vld [vmem:[%s15233_s4 + $0xf0] sm:$0xff]  }
 0x1de   :  { %v11354_v52 = vld [vmem:[%s15233_s4 + $0x30] sm:$0xff]  }
 0x1e0   :  { %3566 = vmatpush1.bf16.msra.mxu0 %v11274_v15  ;;  %3894 = vmatpush1.bf16.msra.mxu1 %v11277_v16  ;;  %v11355_v15 = vld [vmem:[%s15233_s4 + $0xb0] sm:$0xff]   ;;  %v11356_v16 = vld [vmem:[%s15233_s4 + $0x78] sm:$0xff]  }
 0x1e1   :  { %3567 = vmatprep.subr.bf16.mxu0 %v11282_v17  ;;  %3895 = vmatprep.subr.bf16.mxu1 %v11285_v18  ;;  %v11357_v17 = vld [vmem:[%s15233_s4 + $0xf8] sm:$0xff]  }
 0x1e2   :  { %v11358_v18 = vld [vmem:[%s15233_s4 + $0x38] sm:$0xff]  }
 0x1e4   :  { %3568 = vmatpush1.bf16.msra.mxu0 %v11280_v19  ;;  %3896 = vmatpush1.bf16.msra.mxu1 %v11283_v20  ;;  %v11359_v19 = vld [vmem:[%s15233_s4 + $0xb8] sm:$0xff]   ;;  %v11362_v20 = vld [vmem:[%s15235_s6 + $0x4] ss:$16 sps:$4 sm:$0xff]  }
 0x1e5   :  { %3569 = vmatprep.subr.bf16.mxu0 %v11288_v22  ;;  %3897 = vmatprep.subr.bf16.mxu1 %v11291_v23  ;;  %v11365_v22 = vld [vmem:[%s15235_s6 + $0xc] ss:$16 sps:$4 sm:$0xff]   ;;  %v13285_v23 = vsub.s32 0, %v11676_v42 }
 0x1e8   :  { %3570 = vmatpush1.bf16.msra.mxu0 %v11286_v24  ;;  %3898 = vmatpush1.bf16.msra.mxu1 %v11289_v13  ;;  %v13288_v24 = vsub.s32 2, %v11676_v42  ;;  %v566_v13 = vld [vmem:[%s15232_s3] sm:$0xf] }
 0x1e9   :  { %3571 = vmatprep.subr.bf16.mxu0 %v11294_v27  ;;  %3899 = vmatprep.subr.bf16.mxu1 %v11297_v28  ;;  %v13294_v27 = vsub.s32 1, %v11676_v42  ;;  %v13297_v28 = vsub.s32 3, %v11676_v42 }
 0x1ec   :  { %3572 = vmatpush1.bf16.msra.mxu0 %v11292_v29  ;;  %3900 = vmatpush1.bf16.msra.mxu1 %v11295_v14  ;;  %v571_v29 = vrot.slane %v566_v13, %v13285_v23  ;;  %v579_v14 = vrot.slane %v566_v13, %v13288_v24 }
 0x1ed   :  { %3573 = vmatprep.subr.bf16.mxu0 %v11300_v30  ;;  %3901 = vmatprep.subr.bf16.mxu1 %v11303_v31  ;;  %v575_v30 = vrot.slane %v566_v13, %v13294_v27  ;;  %v583_v31 = vrot.slane %v566_v13, %v13297_v28 }
 0x1f0   :  { %3574 = vmatpush1.bf16.msra.mxu0 %v11298_v25  ;;  %3902 = vmatpush1.bf16.msra.mxu1 %v11301_v32 }
 0x1f1   :  { %3575 = vmatprep.subr.bf16.mxu0 %v11306_v33  ;;  %3903 = vmatprep.subr.bf16.mxu1 %v11309_v26 }
 0x1f4   :  { %3576 = vmatpush1.bf16.msra.mxu0 %v11304_v36  ;;  %3904 = vmatpush1.bf16.msra.mxu1 %v11307_v37 }
 0x1f5   :  { %3577 = vmatprep.subr.bf16.mxu0 %v11312_v21  ;;  %3905 = vmatprep.subr.bf16.mxu1 %v11315_v39 }
 0x1f8   :  { %3578 = vmatpush1.bf16.msra.mxu0 %v11310_v40  ;;  %3906 = vmatpush1.bf16.msra.mxu1 %v11313_v41 }
 0x1f9   :  { %3579 = vmatprep.subr.bf16.mxu0 %v11318_v34  ;;  %3907 = vmatprep.subr.bf16.mxu1 %v11321_v43 }
 0x1fc   :  { %3580 = vmatpush1.bf16.msra.mxu0 %v11316_v44  ;;  %3908 = vmatpush1.bf16.msra.mxu1 %v11319_v45 }
 0x1fd   :  { %3581 = vmatprep.subr.bf16.mxu0 %v11324_v46  ;;  %3909 = vmatprep.subr.bf16.mxu1 %v11327_v47 }
 0x200   :  { %3582 = vmatpush1.bf16.msra.mxu0 %v11322_v50  ;;  %3910 = vmatpush1.bf16.msra.mxu1 %v11325_v51 }
 0x201   :  { %10297 = vmatprep.subr.bf16.mxu0 %v11328_v53  ;;  %10319 = vmatprep.subr.bf16.mxu1 %v11329_v38  ;;  %v11360_v53 = vld [vmem:[%s15235_s6] ss:$16 sps:$4 sm:$0xff]   ;;  %v11363_v38 = vld [vmem:[%s15235_s6 + $0x8] ss:$16 sps:$4 sm:$0xff]  }
 0x203   :  { %3584 = vmatmul.mubr.bf16.vlgmr.msra.gmra.mrb[0].mxu0 %v685_v54  ;;  %3912 = vmatmul.mubr.bf16.vlgmr.msra.gmra.mrb[0].mxu1 %v685_v54 }
 0x204   :  { %10298 = vmatpush3.bf16.msra.mxu0 %v11330_v55  ;;  %10320 = vmatpush3.bf16.msra.mxu1 %v11331_v56  ;;  %v11368_v56 = vld [vmem:[%s15235_s6 + $0x24] ss:$16 sps:$4 sm:$0xff]  }
 0x205   :  { %10299 = vmatprep.subr.bf16.mxu0 %v11332_v48  ;;  %10321 = vmatprep.subr.bf16.mxu1 %v11333_v35  ;;  %v11371_v48 = vld [vmem:[%s15235_s6 + $0x2c] ss:$16 sps:$4 sm:$0xff]   ;;  %v11366_v35 = vld [vmem:[%s15235_s6 + $0x20] ss:$16 sps:$4 sm:$0xff]  }
 0x208   :  { %10300 = vmatpush3.bf16.msra.mxu0 %v11334_v57  ;;  %10322 = vmatpush3.bf16.msra.mxu1 %v11335_v58  ;;  %v11369_v57 = vld [vmem:[%s15235_s6 + $0x28] ss:$16 sps:$4 sm:$0xff]   ;;  %v11374_v58 = vld [vmem:[%s15235_s6 + $0x44] ss:$16 sps:$4 sm:$0xff]  }
 0x209   :  { %10301 = vmatprep.subr.bf16.mxu0 %v11336_v59  ;;  %10323 = vmatprep.subr.bf16.mxu1 %v11337_v60  ;;  %v11377_v59 = vld [vmem:[%s15235_s6 + $0x4c] ss:$16 sps:$4 sm:$0xff]   ;;  %v11372_v60 = vld [vmem:[%s15235_s6 + $0x40] ss:$16 sps:$4 sm:$0xff]  }
 0x20c   :  { %10302 = vmatpush3.bf16.msra.mxu0 %v11338_v61  ;;  %10324 = vmatpush3.bf16.msra.mxu1 %v11339_v62  ;;  %v11375_v61 = vld [vmem:[%s15235_s6 + $0x48] ss:$16 sps:$4 sm:$0xff]   ;;  %v11380_v62 = vld [vmem:[%s15235_s6 + $0x64] ss:$16 sps:$4 sm:$0xff]  }
 0x20d   :  { %10303 = vmatprep.subr.bf16.mxu0 %v11340_v63  ;;  %10325 = vmatprep.subr.bf16.mxu1 %v11341_v0  ;;  %v11383_v63 = vld [vmem:[%s15235_s6 + $0x6c] ss:$16 sps:$4 sm:$0xff]   ;;  %v11378_v0 = vld [vmem:[%s15235_s6 + $0x60] ss:$16 sps:$4 sm:$0xff]  }
 0x210   :  { %10304 = vmatpush3.bf16.msra.mxu0 %v11342_v1  ;;  %10326 = vmatpush3.bf16.msra.mxu1 %v11343_v2  ;;  %v11381_v1 = vld [vmem:[%s15235_s6 + $0x68] ss:$16 sps:$4 sm:$0xff]   ;;  %v11469_v2 = vmov 0  }
 0x211   :  { %10305 = vmatprep.subr.bf16.mxu0 %v11344_v3  ;;  %10327 = vmatprep.subr.bf16.mxu1 %v11345_v4  ;;  %v4486_v3 = vld [vmem:[%s15237_s8] sm:$0xff] }
 0x212   :  { %v4494_v4 = vld [vmem:[%s15237_s8 + $0x40] sm:$0xff] }
 0x214   :  { %10306 = vmatpush3.bf16.msra.mxu0 %v11346_v5  ;;  %10328 = vmatpush3.bf16.msra.mxu1 %v11347_v6  ;;  %v4487_v5 = vld [vmem:[%s15237_s8 + $0x8] sm:$0xff]  ;;  %v9725_v6 = vcombine.low %v4486_v3, %v4494_v4 }
 0x215   :  { %10307 = vmatprep.subr.bf16.mxu0 %v11348_v7  ;;  %10329 = vmatprep.subr.bf16.mxu1 %v11349_v8  ;;  %v9726_v7 = vcombine.high %v4486_v3, %v4494_v4  ;;  %v4495_v8 = vld [vmem:[%s15237_s8 + $0x48] sm:$0xff] }
 0x218   :  { %10308 = vmatpush3.bf16.msra.mxu0 %v11350_v9  ;;  %10330 = vmatpush3.bf16.msra.mxu1 %v11351_v10  ;;  %v9727_v9 = vcombine.low %v4487_v5, %v4495_v8  ;;  %v9728_v10 = vcombine.high %v4487_v5, %v4495_v8  ;;  %v4582_v5 = vld [vmem:[%s15237_s8 + $0x300] sm:$0xff]  ;;  %v4591_v8 = vld [vmem:[%s15237_s8 + $0x348] sm:$0xff] }
 0x219   :  { %10309 = vmatprep.subr.bf16.mxu0 %v11352_v11  ;;  %10331 = vmatprep.subr.bf16.mxu1 %v11353_v12 }
 0x21c   :  { %10310 = vmatpush3.bf16.msra.mxu0 %v11354_v52  ;;  %10332 = vmatpush3.bf16.msra.mxu1 %v11355_v15  ;;  %v9674_v52 = vld [vmem:[%s15234_s5] ss:$0 sm:$0xff] }
 0x21d   :  { %10311 = vmatprep.subr.bf16.mxu0 %v11356_v16  ;;  %10333 = vmatprep.subr.bf16.mxu1 %v11357_v17 }
 0x220   :  { %10312 = vmatpush3.bf16.msra.mxu0 %v11358_v18  ;;  %10334 = vmatpush3.bf16.msra.mxu1 %v11359_v19 }
 0x221   :  { %4396 = vmatprep.subr.bf16.mxu0 %v11362_v20  ;;  %4437 = vmatprep.subr.bf16.mxu1 %v11365_v22 }
 0x2d6   :  { %v3585_v25 = vpop.f32.mrb[0].mxu0  ;;  %v3913_v32 = vpop.f32.mrb[0].mxu1 }
 0x2d7   :  { %v10444_v33 = vadd.f32 %v3585_v25, %v571_v29  ;;  %v10446_v26 = vadd.f32 %v3913_v32, %v579_v14  ;;  %v3587_v36 = vpop.f32.mrb[1].mxu0  ;;  %v3915_v37 = vpop.f32.mrb[1].mxu1  ;;  %v4502_v14 = vld [vmem:[%s15237_s8 + $0x80] sm:$0xff]  ;;  %v4511_v25 = vld [vmem:[%s15237_s8 + $0xc8] sm:$0xff] }
 0x2d8   :  { %v10445_v21 = vadd.f32 %v3587_v36, %v575_v30  ;;  %v10447_v39 = vadd.f32 %v3915_v37, %v583_v31  ;;  %v3589_v40 = vpop.f32.mrb[2].mxu0  ;;  %v3917_v41 = vpop.f32.mrb[2].mxu1  ;;  %v4510_v30 = vld [vmem:[%s15237_s8 + $0xc0] sm:$0xff]  ;;  %v4503_v31 = vld [vmem:[%s15237_s8 + $0x88] sm:$0xff] }
 0x2d9   :  { %v3920_v34 = vmax.f32 %v10444_v33, 0.0  ;;  %v3922_v43 = vmax.f32 %v10446_v26, 0.0  ;;  %v3590_v44 = vpop.f32.mrb[3].mxu0  ;;  %v3918_v45 = vpop.f32.mrb[3].mxu1  ;;  %v9742_v26 = vcombine.high %v4502_v14, %v4510_v30  ;;  %v9744_v36 = vcombine.high %v4503_v31, %v4511_v25  ;;  %v4518_v37 = vld [vmem:[%s15237_s8 + $0x100] sm:$0xff]  ;;  %v4527_v40 = vld [vmem:[%s15237_s8 + $0x148] sm:$0xff] }
 0x2da   :  { %v3921_v46 = vmax.f32 %v10445_v21, 0.0  ;;  %v3923_v47 = vmax.f32 %v10447_v39, 0.0  ;;  %v4526_v21 = vld [vmem:[%s15237_s8 + $0x140] sm:$0xff]  ;;  %v4519_v39 = vld [vmem:[%s15237_s8 + $0x108] sm:$0xff]  ;;  %v9741_v41 = vcombine.low %v4502_v14, %v4510_v30 }
 0x2db   :  { %v3924_v54 = vpack.c.bf16 %v3920_v34, %v3920_v34  ;;  %v3926_v55 = vpack.c.bf16 %v3922_v43, %v3922_v43  ;;  %v9743_v34 = vcombine.low %v4503_v31, %v4511_v25  ;;  %v9758_v43 = vcombine.high %v4518_v37, %v4526_v21  ;;  %v4534_v45 = vld [vmem:[%s15237_s8 + $0x180] sm:$0xff]  ;;  %v4615_v14 = vld [vmem:[%s15237_s8 + $0x408] sm:$0xff] }
 0x2dc   :  { %v3925_v50 = vpack.c.bf16 %v3921_v46, %v3921_v46  ;;  %v3927_v51 = vpack.c.bf16 %v3923_v47, %v3923_v47  ;;  %v9760_v44 = vcombine.high %v4519_v39, %v4527_v40  ;;  %v4542_v46 = vld [vmem:[%s15237_s8 + $0x1c0] sm:$0xff]  ;;  %v4535_v47 = vld [vmem:[%s15237_s8 + $0x188] sm:$0xff] }
 0x2dd   :  { %v4623_v30 = vld [vmem:[%s15237_s8 + $0x448] sm:$0xff] }
 0x2de   :  { %4223 = vmatprep.mubr.bf16.mxu0 %v3925_v50  ;;  %4263 = vmatprep.mubr.bf16.mxu1 %v3927_v51  ;;  %v4543_v50 = vld [vmem:[%s15237_s8 + $0x1c8] sm:$0xff]  ;;  %v9757_v51 = vcombine.low %v4518_v37, %v4526_v21 }
 0x2df   :  { %4224 = vmatmul.mubr.bf16.vlgmr.msra.gmra.mrb[4].mxu0 %v3924_v54  ;;  %4264 = vmatmul.mubr.bf16.vlgmr.msra.gmra.mrb[4].mxu1 %v3926_v55  ;;  %v9776_v54 = vcombine.high %v4535_v47, %v4543_v50  ;;  %v4550_v55 = vld [vmem:[%s15237_s8 + $0x200] sm:$0xff]  ;;  %v4631_v37 = vld [vmem:[%s15237_s8 + $0x488] sm:$0xff] }
 0x2e0   :  { %4397 = vmatpush1.bf16.msra.mxu0 %v11360_v53  ;;  %4438 = vmatpush1.bf16.msra.mxu1 %v11363_v38  ;;  %v9759_v53 = vcombine.low %v4519_v39, %v4527_v40  ;;  %v9774_v38 = vcombine.high %v4534_v45, %v4542_v46  ;;  %v4639_v21 = vld [vmem:[%s15237_s8 + $0x4c8] sm:$0xff]  ;;  %v9855_v40 = vcombine.low %v4615_v14, %v4623_v30 }
 0x2e1   :  { %4398 = vmatprep.subr.bf16.mxu0 %v11368_v56  ;;  %4439 = vmatprep.subr.bf16.mxu1 %v11371_v48  ;;  %v4558_v56 = vld [vmem:[%s15237_s8 + $0x240] sm:$0xff]  ;;  %v4551_v48 = vld [vmem:[%s15237_s8 + $0x208] sm:$0xff] }
 0x2e2   :  { %4428 = vmatprep.mubr.bf16.mxu0 %v11469_v2  ;;  %4469 = vmatprep.mubr.bf16.mxu1 %v11469_v2 }
 0x2e4   :  { %4399 = vmatpush1.bf16.msra.mxu0 %v11366_v35  ;;  %4440 = vmatpush1.bf16.msra.mxu1 %v11369_v57  ;;  %v4559_v35 = vld [vmem:[%s15237_s8 + $0x248] sm:$0xff]  ;;  %v9773_v57 = vcombine.low %v4534_v45, %v4542_v46 }
 0x2e5   :  { %4400 = vmatprep.subr.bf16.mxu0 %v11374_v58  ;;  %4441 = vmatprep.subr.bf16.mxu1 %v11377_v59  ;;  %v9775_v58 = vcombine.low %v4535_v47, %v4543_v50  ;;  %v9790_v59 = vcombine.high %v4550_v55, %v4558_v56  ;;  %v9791_v2 = vcombine.low %v4551_v48, %v4559_v35  ;;  %v4647_v45 = vld [vmem:[%s15237_s8 + $0x508] sm:$0xff] }
 0x2e6   :  { %v4655_v46 = vld [vmem:[%s15237_s8 + $0x548] sm:$0xff]  ;;  %v9871_v50 = vcombine.low %v4631_v37, %v4639_v21 }
 0x2e8   :  { %4401 = vmatpush1.bf16.msra.mxu0 %v11372_v60  ;;  %4442 = vmatpush1.bf16.msra.mxu1 %v11375_v61  ;;  %v9792_v60 = vcombine.high %v4551_v48, %v4559_v35  ;;  %v4566_v61 = vld [vmem:[%s15237_s8 + $0x280] sm:$0xff]  ;;  %v9887_v35 = vcombine.low %v4647_v45, %v4655_v46 }
 0x2e9   :  { %4402 = vmatprep.subr.bf16.mxu0 %v11380_v62  ;;  %4443 = vmatprep.subr.bf16.mxu1 %v11383_v63  ;;  %v4574_v62 = vld [vmem:[%s15237_s8 + $0x2c0] sm:$0xff]  ;;  %v4567_v63 = vld [vmem:[%s15237_s8 + $0x288] sm:$0xff] }
 0x2ea   :  { %v9806_v3 = vcombine.high %v4566_v61, %v4574_v62 }
 0x2ec   :  { %4403 = vmatpush1.bf16.msra.mxu0 %v11378_v0  ;;  %4444 = vmatpush1.bf16.msra.mxu1 %v11381_v1  ;;  %v4575_v0 = vld [vmem:[%s15237_s8 + $0x2c8] sm:$0xff]  ;;  %v9789_v1 = vcombine.low %v4550_v55, %v4558_v56 }
 0x2ed   :  { %7642 = vmatprep.subr.bf16.mxu0 %v9726_v7  ;;  %7724 = vmatprep.subr.bf16.mxu1 %v9728_v10  ;;  %v9808_v4 = vcombine.high %v4567_v63, %v4575_v0  ;;  %v4583_v7 = vld [vmem:[%s15237_s8 + $0x308] sm:$0xff]  ;;  %v9807_v10 = vcombine.low %v4567_v63, %v4575_v0 }
 0x2ee   :  { %v4663_v55 = vld [vmem:[%s15237_s8 + $0x588] sm:$0xff] }
 0x2ef   :  { %v4671_v56 = vld [vmem:[%s15237_s8 + $0x5c8] sm:$0xff] }
 0x2f0   :  { %v9903_v0 = vcombine.low %v4663_v55, %v4671_v56 }
 0x3b2   :  { %v10313_v11 = vpop.f32.mrb[4].mxu0  ;;  %v10335_v12 = vpop.f32.mrb[4].mxu1 }
 0x3b3   :  { %v10314_v15 = vpop.f32.mrb[5].mxu0  ;;  %v10336_v16 = vpop.f32.mrb[5].mxu1 }
 0x3b4   :  { %v10315_v17 = vadd.f32 %v10314_v15, %v10313_v11  ;;  %v10337_v18 = vadd.f32 %v10336_v16, %v10335_v12  ;;  %v10316_v19 = vpop.f32.mrb[6].mxu0  ;;  %v10338_v20 = vpop.f32.mrb[6].mxu1  ;;  %v9824_v12 = vcombine.high %v4583_v7, %v4591_v8  ;;  %v4606_v15 = vld [vmem:[%s15237_s8 + $0x3c0] sm:$0xff]  ;;  %v4599_v16 = vld [vmem:[%s15237_s8 + $0x388] sm:$0xff] }
 0x3b5   :  { %v10317_v22 = vpop.f32.mrb[7].mxu0  ;;  %v10339_v13 = vpop.f32.mrb[7].mxu1  ;;  %v9823_v19 = vcombine.low %v4583_v7, %v4591_v8 }
 0x3b6   :  { %v4226_v29 = vadd.f32 %v10315_v17, %v9674_v52  ;;  %v4598_v52 = vld [vmem:[%s15237_s8 + $0x380] sm:$0xff]  ;;  %v4607_v17 = vld [vmem:[%s15237_s8 + $0x3c8] sm:$0xff] }
 0x3b7   :  { %v9838_v20 = vcombine.high %v4598_v52, %v4606_v15  ;;  %v9840_v22 = vcombine.high %v4599_v16, %v4607_v17  ;;  %v4614_v13 = vld [vmem:[%s15237_s8 + $0x400] sm:$0xff]  ;;  %v9837_v31 = vcombine.low %v4598_v52, %v4606_v15  ;;  %v9839_v25 = vcombine.low %v4599_v16, %v4607_v17  ;;  %v4711_v16 = vld [vmem:[%s15237_s8 + $0x708] sm:$0xff] }
 0x3b8   :  { %v4266_v32 = vadd.f32 %v10337_v18, %v4226_v29  ;;  %v4622_v29 = vld [vmem:[%s15237_s8 + $0x440] sm:$0xff] }
 0x3b9   :  { %v9853_v39 = vcombine.low %v4614_v13, %v4622_v29  ;;  %v4710_v52 = vld [vmem:[%s15237_s8 + $0x700] sm:$0xff] }
 0x3ba   :  { %v4273_v33 = vpack.c.bf16 %v4266_v32, %v4266_v32  ;;  %4272 = vst.msk [vmem:[#allocation2] sm:$0x3] %vm4271_vm0, %v4266_v32  ;;  %v9854_v32 = vcombine.high %v4614_v13, %v4622_v29  ;;  %v4718_v15 = vld [vmem:[%s15237_s8 + $0x740] sm:$0xff] }
 0x3bb   :  { %v9950_v17 = vcombine.high %v4710_v52, %v4718_v15  ;;  %v4726_v13 = vld [vmem:[%s15237_s8 + $0x780] sm:$0xff] }
 0x3bc   :  { %9723 = vmatmul.mubr.msk.bf16.vlgmr.msra.gmra.mrb[8].mxu0 %vm4392_vm1, %v4273_v33  ;;  %9724 = vmatmul.mubr.msk.bf16.vlgmr.msra.gmra.mrb[8].mxu1 %vm4392_vm1, %v4273_v33  ;;  %v9856_v33 = vcombine.high %v4615_v14, %v4623_v30  ;;  %v4734_v29 = vld [vmem:[%s15237_s8 + $0x7c0] sm:$0xff]  ;;  %v4727_v14 = vld [vmem:[%s15237_s8 + $0x788] sm:$0xff] }
 0x3bd   :  { %7643 = vmatpush1.bf16.msra.mxu0 %v9725_v6  ;;  %7725 = vmatpush1.bf16.msra.mxu1 %v9727_v9  ;;  %v4590_v6 = vld [vmem:[%s15237_s8 + $0x340] sm:$0xff]  ;;  %v9805_v9 = vcombine.low %v4566_v61, %v4574_v62  ;;  %v4679_v61 = vld [vmem:[%s15237_s8 + $0x608] sm:$0xff]  ;;  %v9966_v30 = vcombine.high %v4726_v13, %v4734_v29 }
 0x3be   :  { %7644 = vmatprep.subr.bf16.mxu0 %v9742_v26  ;;  %7726 = vmatprep.subr.bf16.mxu1 %v9744_v36  ;;  %v9822_v11 = vcombine.high %v4582_v5, %v4590_v6  ;;  %v9821_v18 = vcombine.low %v4582_v5, %v4590_v6  ;;  %v4630_v26 = vld [vmem:[%s15237_s8 + $0x480] sm:$0xff]  ;;  %v4687_v62 = vld [vmem:[%s15237_s8 + $0x648] sm:$0xff] }
 0x3bf   :  { %v4638_v36 = vld [vmem:[%s15237_s8 + $0x4c0] sm:$0xff]  ;;  %v4695_v5 = vld [vmem:[%s15237_s8 + $0x688] sm:$0xff]  ;;  %v9919_v8 = vcombine.low %v4679_v61, %v4687_v62 }
 0x3c0   :  { %v9869_v47 = vcombine.low %v4630_v26, %v4638_v36  ;;  %v4703_v6 = vld [vmem:[%s15237_s8 + $0x6c8] sm:$0xff] }
 0x3c1   :  { %7645 = vmatpush1.bf16.msra.mxu0 %v9741_v41  ;;  %7727 = vmatpush1.bf16.msra.mxu1 %v9743_v34  ;;  %v9870_v41 = vcombine.high %v4630_v26, %v4638_v36  ;;  %v9872_v34 = vcombine.high %v4631_v37, %v4639_v21  ;;  %v4742_v26 = vld [vmem:[%s15237_s8 + $0x800] sm:$0xff]  ;;  %v4743_v37 = vld [vmem:[%s15237_s8 + $0x808] sm:$0xff] }
 0x3c2   :  { %7646 = vmatprep.subr.bf16.mxu0 %v9758_v43  ;;  %7728 = vmatprep.subr.bf16.mxu1 %v9760_v44  ;;  %v4646_v43 = vld [vmem:[%s15237_s8 + $0x500] sm:$0xff] }
 0x3c3   :  { %v4654_v44 = vld [vmem:[%s15237_s8 + $0x540] sm:$0xff] }
 0x3c4   :  { %v9885_v48 = vcombine.low %v4646_v43, %v4654_v44  ;;  %v4750_v36 = vld [vmem:[%s15237_s8 + $0x840] sm:$0xff] }
 0x3c5   :  { %7647 = vmatpush1.bf16.msra.mxu0 %v9757_v51  ;;  %7729 = vmatpush1.bf16.msra.mxu1 %v9759_v53  ;;  %v9886_v51 = vcombine.high %v4646_v43, %v4654_v44  ;;  %v9888_v53 = vcombine.high %v4647_v45, %v4655_v46  ;;  %v9982_v21 = vcombine.high %v4742_v26, %v4750_v36  ;;  %v13555_v43 = vld [vmem:[%s15236_s7] sm:$0xf] }
 0x3c6   :  { %7648 = vmatprep.subr.bf16.mxu0 %v9774_v38  ;;  %7730 = vmatprep.subr.bf16.mxu1 %v9776_v54  ;;  %v4662_v38 = vld [vmem:[%s15237_s8 + $0x580] sm:$0xff]  ;;  %v4295_v44 = vrot.slane %v13555_v43, %v13285_v23  ;;  %v4299_v45 = vrot.slane %v13555_v43, %v13294_v27  ;;  %v4307_v46 = vrot.slane %v13555_v43, %v13297_v28 }
 0x3c7   :  { %v4670_v54 = vld [vmem:[%s15237_s8 + $0x5c0] sm:$0xff] }
 0x3c8   :  { %v9901_v63 = vcombine.low %v4662_v38, %v4670_v54 }
 0x3c9   :  { %7649 = vmatpush1.bf16.msra.mxu0 %v9773_v57  ;;  %7731 = vmatpush1.bf16.msra.mxu1 %v9775_v58  ;;  %v9902_v57 = vcombine.high %v4662_v38, %v4670_v54  ;;  %v9904_v58 = vcombine.high %v4663_v55, %v4671_v56 }
 0x3ca   :  { %7650 = vmatprep.subr.bf16.mxu0 %v9790_v59  ;;  %7732 = vmatprep.subr.bf16.mxu1 %v9792_v60  ;;  %v4678_v59 = vld [vmem:[%s15237_s8 + $0x600] sm:$0xff] }
 0x3cb   :  { %v4686_v60 = vld [vmem:[%s15237_s8 + $0x640] sm:$0xff] }
 0x3cc   :  { %v9917_v7 = vcombine.low %v4678_v59, %v4686_v60 }
 0x3cd   :  { %7651 = vmatpush1.bf16.msra.mxu0 %v9789_v1  ;;  %7733 = vmatpush1.bf16.msra.mxu1 %v9791_v2  ;;  %v9918_v1 = vcombine.high %v4678_v59, %v4686_v60  ;;  %v9920_v2 = vcombine.high %v4679_v61, %v4687_v62  ;;  %v4758_v60 = vld [vmem:[%s15237_s8 + $0x880] sm:$0xff] }
 0x3ce   :  { %7652 = vmatprep.subr.bf16.mxu0 %v9806_v3  ;;  %7734 = vmatprep.subr.bf16.mxu1 %v9808_v4  ;;  %v4694_v3 = vld [vmem:[%s15237_s8 + $0x680] sm:$0xff] }
 0x3cf   :  { %v4702_v4 = vld [vmem:[%s15237_s8 + $0x6c0] sm:$0xff] }
 0x3d0   :  { %v4766_v62 = vld [vmem:[%s15237_s8 + $0x8c0] sm:$0xff] }
 0x3d1   :  { %7653 = vmatpush1.bf16.msra.mxu0 %v9805_v9  ;;  %7735 = vmatpush1.bf16.msra.mxu1 %v9807_v10  ;;  %v9934_v9 = vcombine.high %v4694_v3, %v4702_v4  ;;  %v9936_v10 = vcombine.high %v4695_v5, %v4703_v6 }
 0x3d2   :  { %7654 = vmatprep.subr.bf16.mxu0 %v9822_v11  ;;  %7736 = vmatprep.subr.bf16.mxu1 %v9824_v12  ;;  %v9933_v11 = vcombine.low %v4694_v3, %v4702_v4  ;;  %v9935_v12 = vcombine.low %v4695_v5, %v4703_v6  ;;  %v4774_v3 = vld [vmem:[%s15237_s8 + $0x900] sm:$0xff]  ;;  %v9998_v4 = vcombine.high %v4758_v60, %v4766_v62 }
 0x3d3   :  { %v4782_v6 = vld [vmem:[%s15237_s8 + $0x940] sm:$0xff] }
 0x3d5   :  { %7655 = vmatpush1.bf16.msra.mxu0 %v9821_v18  ;;  %7737 = vmatpush1.bf16.msra.mxu1 %v9823_v19  ;;  %v4719_v18 = vld [vmem:[%s15237_s8 + $0x748] sm:$0xff]  ;;  %v9949_v19 = vcombine.low %v4710_v52, %v4718_v15  ;;  %v4790_v15 = vld [vmem:[%s15237_s8 + $0x980] sm:$0xff] }
 0x3d6   :  { %7656 = vmatprep.subr.bf16.mxu0 %v9838_v20  ;;  %7738 = vmatprep.subr.bf16.mxu1 %v9840_v22  ;;  %v9951_v20 = vcombine.low %v4711_v16, %v4719_v18  ;;  %v9952_v22 = vcombine.high %v4711_v16, %v4719_v18  ;;  %v4798_v16 = vld [vmem:[%s15237_s8 + $0x9c0] sm:$0xff]  ;;  %v4799_v18 = vld [vmem:[%s15237_s8 + $0x9c8] sm:$0xff] }
 0x3d9   :  { %7657 = vmatpush1.bf16.msra.mxu0 %v9837_v31  ;;  %7739 = vmatpush1.bf16.msra.mxu1 %v9839_v25  ;;  %v4735_v31 = vld [vmem:[%s15237_s8 + $0x7c8] sm:$0xff]  ;;  %v9965_v25 = vcombine.low %v4726_v13, %v4734_v29  ;;  %v4806_v29 = vld [vmem:[%s15237_s8 + $0xa00] sm:$0xff] }
 0x3da   :  { %7658 = vmatprep.subr.bf16.mxu0 %v9854_v32  ;;  %7740 = vmatprep.subr.bf16.mxu1 %v9856_v33  ;;  %v9967_v32 = vcombine.low %v4727_v14, %v4735_v31  ;;  %v9968_v33 = vcombine.high %v4727_v14, %v4735_v31  ;;  %v4814_v14 = vld [vmem:[%s15237_s8 + $0xa40] sm:$0xff]  ;;  %v4815_v31 = vld [vmem:[%s15237_s8 + $0xa48] sm:$0xff] }
 0x3dd   :  { %7659 = vmatpush1.bf16.msra.mxu0 %v9853_v39  ;;  %7741 = vmatpush1.bf16.msra.mxu1 %v9855_v40  ;;  %v4751_v39 = vld [vmem:[%s15237_s8 + $0x848] sm:$0xff]  ;;  %v9981_v40 = vcombine.low %v4742_v26, %v4750_v36  ;;  %v4822_v36 = vld [vmem:[%s15237_s8 + $0xa80] sm:$0xff] }
 0x3de   :  { %7660 = vmatprep.subr.bf16.mxu0 %v9870_v41  ;;  %7742 = vmatprep.subr.bf16.mxu1 %v9872_v34  ;;  %v9983_v41 = vcombine.low %v4743_v37, %v4751_v39  ;;  %v9984_v34 = vcombine.high %v4743_v37, %v4751_v39  ;;  %v4830_v37 = vld [vmem:[%s15237_s8 + $0xac0] sm:$0xff]  ;;  %v4831_v39 = vld [vmem:[%s15237_s8 + $0xac8] sm:$0xff] }
 0x3e1   :  { %7661 = vmatpush1.bf16.msra.mxu0 %v9869_v47  ;;  %7743 = vmatpush1.bf16.msra.mxu1 %v9871_v50 }
 0x3e2   :  { %7662 = vmatprep.subr.bf16.mxu0 %v9886_v51  ;;  %7744 = vmatprep.subr.bf16.mxu1 %v9888_v53 }
 0x3e5   :  { %7663 = vmatpush1.bf16.msra.mxu0 %v9885_v48  ;;  %7745 = vmatpush1.bf16.msra.mxu1 %v9887_v35 }
 0x3e6   :  { %7664 = vmatprep.subr.bf16.mxu0 %v9902_v57  ;;  %7746 = vmatprep.subr.bf16.mxu1 %v9904_v58 }
 0x3e9   :  { %7665 = vmatpush1.bf16.msra.mxu0 %v9901_v63  ;;  %7747 = vmatpush1.bf16.msra.mxu1 %v9903_v0  ;;  %v4759_v63 = vld [vmem:[%s15237_s8 + $0x888] sm:$0xff] }
 0x3ea   :  { %7666 = vmatprep.subr.bf16.mxu0 %v9918_v1  ;;  %7748 = vmatprep.subr.bf16.mxu1 %v9920_v2  ;;  %v4767_v0 = vld [vmem:[%s15237_s8 + $0x8c8] sm:$0xff] }
 0x3eb   :  { %v10000_v5 = vcombine.high %v4759_v63, %v4767_v0 }
 0x3ed   :  { %7667 = vmatpush1.bf16.msra.mxu0 %v9917_v7  ;;  %7749 = vmatpush1.bf16.msra.mxu1 %v9919_v8  ;;  %v4775_v7 = vld [vmem:[%s15237_s8 + $0x908] sm:$0xff] }
 0x3ee   :  { %7668 = vmatprep.subr.bf16.mxu0 %v9934_v9  ;;  %7750 = vmatprep.subr.bf16.mxu1 %v9936_v10  ;;  %v4783_v8 = vld [vmem:[%s15237_s8 + $0x948] sm:$0xff]  ;;  %v9997_v10 = vcombine.low %v4758_v60, %v4766_v62  ;;  %v4870_v62 = vld [vmem:[%s15237_s8 + $0xc00] sm:$0xff] }
 0x3ef   :  { %v10016_v52 = vcombine.high %v4775_v7, %v4783_v8 }
 0x3f1   :  { %7669 = vmatpush1.bf16.msra.mxu0 %v9933_v11  ;;  %7751 = vmatpush1.bf16.msra.mxu1 %v9935_v12  ;;  %v9999_v11 = vcombine.low %v4759_v63, %v4767_v0  ;;  %v10014_v12 = vcombine.high %v4774_v3, %v4782_v6  ;;  %v4878_v63 = vld [vmem:[%s15237_s8 + $0xc40] sm:$0xff]  ;;  %v4871_v0 = vld [vmem:[%s15237_s8 + $0xc08] sm:$0xff] }
 0x3f2   :  { %7670 = vmatprep.subr.bf16.mxu0 %v9950_v17  ;;  %7752 = vmatprep.subr.bf16.mxu1 %v9952_v22  ;;  %v4791_v17 = vld [vmem:[%s15237_s8 + $0x988] sm:$0xff]  ;;  %v10030_v22 = vcombine.high %v4790_v15, %v4798_v16 }
 0x3f3   :  { %v10032_v13 = vcombine.high %v4791_v17, %v4799_v18 }
 0x3f5   :  { %7671 = vmatpush1.bf16.msra.mxu0 %v9949_v19  ;;  %7753 = vmatpush1.bf16.msra.mxu1 %v9951_v20  ;;  %v10013_v19 = vcombine.low %v4774_v3, %v4782_v6  ;;  %v10015_v20 = vcombine.low %v4775_v7, %v4783_v8  ;;  %v4879_v3 = vld [vmem:[%s15237_s8 + $0xc48] sm:$0xff]  ;;  %v10110_v6 = vcombine.high %v4870_v62, %v4878_v63  ;;  %v4886_v8 = vld [vmem:[%s15237_s8 + $0xc80] sm:$0xff] }
 0x3f6   :  { %7672 = vmatprep.subr.bf16.mxu0 %v9966_v30  ;;  %7754 = vmatprep.subr.bf16.mxu1 %v9968_v33  ;;  %v4807_v30 = vld [vmem:[%s15237_s8 + $0xa08] sm:$0xff]  ;;  %v10046_v33 = vcombine.high %v4806_v29, %v4814_v14  ;;  %v10112_v7 = vcombine.high %v4871_v0, %v4879_v3 }
 0x3f7   :  { %v10048_v26 = vcombine.high %v4807_v30, %v4815_v31 }
 0x3f9   :  { %7673 = vmatpush1.bf16.msra.mxu0 %v9965_v25  ;;  %7755 = vmatpush1.bf16.msra.mxu1 %v9967_v32  ;;  %v10029_v25 = vcombine.low %v4790_v15, %v4798_v16  ;;  %v10031_v32 = vcombine.low %v4791_v17, %v4799_v18  ;;  %v10111_v15 = vcombine.low %v4871_v0, %v4879_v3  ;;  %v4902_v18 = vld [vmem:[%s15237_s8 + $0xd00] sm:$0xff] }
 0x3fa   :  { %7683 = vmatprep.subr.bf16.mxu0 %v9982_v21  ;;  %7765 = vmatprep.subr.bf16.mxu1 %v9984_v34  ;;  %v4823_v21 = vld [vmem:[%s15237_s8 + $0xa88] sm:$0xff]  ;;  %v10062_v34 = vcombine.high %v4822_v36, %v4830_v37 }
 0x48f   :  { %v4430_v47 = vpop.f32.mrb[8].mxu0  ;;  %v13563_v50 = vpop.f32.mrb[8].mxu1 }
 0x490   :  { %v4431_v51 = vadd.f32 %v4430_v47, %v4295_v44  ;;  %v4432_v53 = vpop.f32.mrb[9].mxu0  ;;  %v4473_v38 = vpop.f32.mrb[9].mxu1  ;;  %v10064_v44 = vcombine.high %v4823_v21, %v4831_v39  ;;  %v4839_v47 = vld [vmem:[%s15237_s8 + $0xb08] sm:$0xff] }
 0x491   :  { %v4433_v54 = vadd.f32 %v4432_v53, %v4299_v45  ;;  %v4474_v55 = vadd.f32 %v4473_v38, %v4307_v46  ;;  %v4434_v56 = vpop.f32.mrb[10].mxu0  ;;  %v4475_v48 = vpop.f32.mrb[10].mxu1  ;;  %v4838_v45 = vld [vmem:[%s15237_s8 + $0xb00] sm:$0xff]  ;;  %v10061_v53 = vcombine.low %v4822_v36, %v4830_v37  ;;  %v10063_v38 = vcombine.low %v4823_v21, %v4831_v39 }
 0x492   :  { %v4478_v35 = vmax.f32 %v4431_v51, 0.0  ;;  %v4435_v57 = vpop.f32.mrb[11].mxu0  ;;  %v4476_v58 = vpop.f32.mrb[11].mxu1  ;;  %v4846_v46 = vld [vmem:[%s15237_s8 + $0xb40] sm:$0xff]  ;;  %v4847_v51 = vld [vmem:[%s15237_s8 + $0xb48] sm:$0xff] }
 0x493   :  { %v4479_v59 = vmax.f32 %v4433_v54, 0.0  ;;  %v4481_v61 = vmax.f32 %v4474_v55, 0.0  ;;  %v10078_v54 = vcombine.high %v4838_v45, %v4846_v46  ;;  %v10080_v55 = vcombine.high %v4839_v47, %v4847_v51  ;;  %v4854_v56 = vld [vmem:[%s15237_s8 + $0xb80] sm:$0xff]  ;;  %v4863_v57 = vld [vmem:[%s15237_s8 + $0xbc8] sm:$0xff] }
 0x494   :  { %v13579_v2 = vpack.c.bf16 %v4478_v35, %v4478_v35  ;;  %v4862_v48 = vld [vmem:[%s15237_s8 + $0xbc0] sm:$0xff]  ;;  %v4855_v35 = vld [vmem:[%s15237_s8 + $0xb88] sm:$0xff]  ;;  %v10077_v58 = vcombine.low %v4838_v45, %v4846_v46 }
 0x495   :  { %v13577_v1 = vpack.c.bf16 %v4479_v59, %v4479_v59  ;;  %v13595_v9 = vpack.c.bf16 %v4481_v61, %v4481_v61  ;;  %v10079_v59 = vcombine.low %v4839_v47, %v4847_v51  ;;  %v10094_v60 = vcombine.high %v4854_v56, %v4862_v48  ;;  %v4934_v39 = vld [vmem:[%s15237_s8 + $0xe00] sm:$0xff] }
 0x496   :  { %v10096_v61 = vcombine.high %v4855_v35, %v4863_v57  ;;  %v4950_v51 = vld [vmem:[%s15237_s8 + $0xe80] sm:$0xff] }
 0x497   :  { %7674 = vmatprep.mubr.bf16.mxu0 %v13577_v1  ;;  %7756 = vmatprep.mubr.bf16.mxu1 %v13577_v1 }
 0x498   :  { %7675 = vmatmul.mubr.bf16.vlgmr.msra.gmra.mrb[12].mxu0 %v13579_v2  ;;  %7757 = vmatmul.mubr.bf16.vlgmr.msra.gmra.mrb[12].mxu1 %v13579_v2 }
 0x499   :  { %7684 = vmatpush1.bf16.msra.mxu0 %v9981_v40  ;;  %7766 = vmatpush1.bf16.msra.mxu1 %v9983_v41  ;;  %v10045_v40 = vcombine.low %v4806_v29, %v4814_v14  ;;  %v10047_v41 = vcombine.low %v4807_v30, %v4815_v31  ;;  %v4918_v31 = vld [vmem:[%s15237_s8 + $0xd80] sm:$0xff] }
 0x49a   :  { %7715 = vmatprep.mubr.bf16.mxu0 %v13595_v9  ;;  %7797 = vmatprep.mubr.bf16.mxu1 %v13595_v9 }
 0x49b   :  { %7685 = vmatprep.subr.bf16.mxu0 %v9998_v4  ;;  %7767 = vmatprep.subr.bf16.mxu1 %v10000_v5  ;;  %v10093_v4 = vcombine.low %v4854_v56, %v4862_v48  ;;  %v10095_v5 = vcombine.low %v4855_v35, %v4863_v57  ;;  %v4966_v57 = vld [vmem:[%s15237_s8 + $0xf00] sm:$0xff] }
 0x49d   :  { %7686 = vmatpush1.bf16.msra.mxu0 %v9997_v10  ;;  %7768 = vmatpush1.bf16.msra.mxu1 %v9999_v11  ;;  %v4894_v10 = vld [vmem:[%s15237_s8 + $0xcc0] sm:$0xff]  ;;  %v4887_v11 = vld [vmem:[%s15237_s8 + $0xc88] sm:$0xff] }
 0x49e   :  { %7687 = vmatprep.subr.bf16.mxu0 %v10014_v12  ;;  %7769 = vmatprep.subr.bf16.mxu1 %v10016_v52  ;;  %v4895_v12 = vld [vmem:[%s15237_s8 + $0xcc8] sm:$0xff]  ;;  %v10109_v52 = vcombine.low %v4870_v62, %v4878_v63  ;;  %v10126_v16 = vcombine.high %v4886_v8, %v4894_v10  ;;  %v4303_v63 = vrot.slane %v13555_v43, %v13288_v24 }
 0x49f   :  { %v10128_v17 = vcombine.high %v4887_v11, %v4895_v12  ;;  %v10127_v29 = vcombine.low %v4887_v11, %v4895_v12  ;;  %v4991_v43 = vld [vmem:[%s15237_s8 + $0xfc8] sm:$0xff] }
 0x4a1   :  { %7688 = vmatpush1.bf16.msra.mxu0 %v10013_v19  ;;  %7770 = vmatpush1.bf16.msra.mxu1 %v10015_v20  ;;  %v4910_v19 = vld [vmem:[%s15237_s8 + $0xd40] sm:$0xff]  ;;  %v4903_v20 = vld [vmem:[%s15237_s8 + $0xd08] sm:$0xff] }
 0x4a2   :  { %7689 = vmatprep.subr.bf16.mxu0 %v10030_v22  ;;  %7771 = vmatprep.subr.bf16.mxu1 %v10032_v13  ;;  %v4911_v22 = vld [vmem:[%s15237_s8 + $0xd48] sm:$0xff]  ;;  %v10125_v13 = vcombine.low %v4886_v8, %v4894_v10  ;;  %v10142_v14 = vcombine.high %v4902_v18, %v4910_v19  ;;  %v4472_v10 = vadd.f32 %v13563_v50, %v4303_v63  ;;  %v4497_v50 = vld [vmem:[%s15237_s8 + $0x58] sm:$0xff]  ;;  %v4576_v63 = vld [vmem:[%s15237_s8 + $0x2d0] sm:$0xff] }
 0x4a3   :  { %v10144_v30 = vcombine.high %v4903_v20, %v4911_v22  ;;  %v10143_v36 = vcombine.low %v4903_v20, %v4911_v22 }
 0x4a5   :  { %7690 = vmatpush1.bf16.msra.mxu0 %v10029_v25  ;;  %7772 = vmatpush1.bf16.msra.mxu1 %v10031_v32  ;;  %v4926_v25 = vld [vmem:[%s15237_s8 + $0xdc0] sm:$0xff]  ;;  %v4919_v32 = vld [vmem:[%s15237_s8 + $0xd88] sm:$0xff] }
 0x4a6   :  { %7691 = vmatprep.subr.bf16.mxu0 %v10046_v33  ;;  %7773 = vmatprep.subr.bf16.mxu1 %v10048_v26  ;;  %v4927_v33 = vld [vmem:[%s15237_s8 + $0xdc8] sm:$0xff]  ;;  %v10141_v26 = vcombine.low %v4902_v18, %v4910_v19  ;;  %v10158_v37 = vcombine.high %v4918_v31, %v4926_v25  ;;  %v4480_v19 = vmax.f32 %v4472_v10, 0.0  ;;  %v4585_v10 = vld [vmem:[%s15237_s8 + $0x318] sm:$0xff] }
 0x4a7   :  { %v10160_v21 = vcombine.high %v4919_v32, %v4927_v33  ;;  %v10159_v45 = vcombine.low %v4919_v32, %v4927_v33 }
 0x4a9   :  { %7692 = vmatpush1.bf16.msra.mxu0 %v10045_v40  ;;  %7774 = vmatpush1.bf16.msra.mxu1 %v10047_v41  ;;  %v4942_v40 = vld [vmem:[%s15237_s8 + $0xe40] sm:$0xff]  ;;  %v4935_v41 = vld [vmem:[%s15237_s8 + $0xe08] sm:$0xff] }
 0x4aa   :  { %7693 = vmatprep.subr.bf16.mxu0 %v10062_v34  ;;  %7775 = vmatprep.subr.bf16.mxu1 %v10064_v44  ;;  %v4943_v34 = vld [vmem:[%s15237_s8 + $0xe48] sm:$0xff]  ;;  %v10157_v44 = vcombine.low %v4918_v31, %v4926_v25  ;;  %v10174_v46 = vcombine.high %v4934_v39, %v4942_v40  ;;  %v13784_v25 = vpack.c.bf16 %v4480_v19, %v4480_v19  ;;  %v4609_v19 = vld [vmem:[%s15237_s8 + $0x3d8] sm:$0xff] }
 0x4ab   :  { %v10176_v47 = vcombine.high %v4935_v41, %v4943_v34  ;;  %v10175_v56 = vcombine.low %v4935_v41, %v4943_v34 }
 0x4ad   :  { %7694 = vmatpush1.bf16.msra.mxu0 %v10061_v53  ;;  %7776 = vmatpush1.bf16.msra.mxu1 %v10063_v38  ;;  %v4958_v53 = vld [vmem:[%s15237_s8 + $0xec0] sm:$0xff]  ;;  %v4951_v38 = vld [vmem:[%s15237_s8 + $0xe88] sm:$0xff] }
 0x4ae   :  { %7695 = vmatprep.subr.bf16.mxu0 %v10078_v54  ;;  %7777 = vmatprep.subr.bf16.mxu1 %v10080_v55  ;;  %v4959_v54 = vld [vmem:[%s15237_s8 + $0xec8] sm:$0xff]  ;;  %v10173_v55 = vcombine.low %v4934_v39, %v4942_v40  ;;  %v10190_v48 = vcombine.high %v4950_v51, %v4958_v53  ;;  %v4529_v39 = vld [vmem:[%s15237_s8 + $0x158] sm:$0xff] }
 0x4af   :  { %v10192_v35 = vcombine.high %v4951_v38, %v4959_v54  ;;  %v10191_v62 = vcombine.low %v4951_v38, %v4959_v54 }
 0x4b1   :  { %7696 = vmatpush1.bf16.msra.mxu0 %v10077_v58  ;;  %7778 = vmatpush1.bf16.msra.mxu1 %v10079_v59  ;;  %v4974_v58 = vld [vmem:[%s15237_s8 + $0xf40] sm:$0xff]  ;;  %v4967_v59 = vld [vmem:[%s15237_s8 + $0xf08] sm:$0xff] }
 0x4b2   :  { %7697 = vmatprep.subr.bf16.mxu0 %v10094_v60  ;;  %7779 = vmatprep.subr.bf16.mxu1 %v10096_v61  ;;  %v4975_v60 = vld [vmem:[%s15237_s8 + $0xf48] sm:$0xff]  ;;  %v10189_v61 = vcombine.low %v4950_v51, %v4958_v53  ;;  %v10206_v0 = vcombine.high %v4966_v57, %v4974_v58  ;;  %v4545_v51 = vld [vmem:[%s15237_s8 + $0x1d8] sm:$0xff] }
 0x4b3   :  { %v10208_v3 = vcombine.high %v4967_v59, %v4975_v60  ;;  %v10207_v8 = vcombine.low %v4967_v59, %v4975_v60 }
 0x4b5   :  { %7698 = vmatpush1.bf16.msra.mxu0 %v10093_v4  ;;  %7780 = vmatpush1.bf16.msra.mxu1 %v10095_v5  ;;  %v4982_v4 = vld [vmem:[%s15237_s8 + $0xf80] sm:$0xff] }
 0x4b6   :  { %7699 = vmatprep.subr.bf16.mxu0 %v10110_v6  ;;  %7781 = vmatprep.subr.bf16.mxu1 %v10112_v7  ;;  %v4990_v5 = vld [vmem:[%s15237_s8 + $0xfc0] sm:$0xff]  ;;  %v4983_v6 = vld [vmem:[%s15237_s8 + $0xf88] sm:$0xff]  ;;  %v10205_v7 = vcombine.low %v4966_v57, %v4974_v58  ;;  %v4561_v57 = vld [vmem:[%s15237_s8 + $0x258] sm:$0xff] }
 0x4b7   :  { %v10222_v11 = vcombine.high %v4982_v4, %v4990_v5  ;;  %v10224_v12 = vcombine.high %v4983_v6, %v4991_v43  ;;  %v10223_v18 = vcombine.low %v4983_v6, %v4991_v43 }
 0x4b9   :  { %7700 = vmatpush1.bf16.msra.mxu0 %v10109_v52  ;;  %7782 = vmatpush1.bf16.msra.mxu1 %v10111_v15  ;;  %v4488_v52 = vld [vmem:[%s15237_s8 + $0x10] sm:$0xff] }
 0x4ba   :  { %7701 = vmatprep.subr.bf16.mxu0 %v10126_v16  ;;  %7783 = vmatprep.subr.bf16.mxu1 %v10128_v17  ;;  %v4496_v15 = vld [vmem:[%s15237_s8 + $0x50] sm:$0xff]  ;;  %v4489_v16 = vld [vmem:[%s15237_s8 + $0x18] sm:$0xff]  ;;  %v10221_v17 = vcombine.low %v4982_v4, %v4990_v5 }
 0x4bb   :  { %v9730_v20 = vcombine.high %v4488_v52, %v4496_v15  ;;  %v9732_v22 = vcombine.high %v4489_v16, %v4497_v50  ;;  %v9729_v31 = vcombine.low %v4488_v52, %v4496_v15  ;;  %v9731_v32 = vcombine.low %v4489_v16, %v4497_v50  ;;  %v4600_v50 = vld [vmem:[%s15237_s8 + $0x390] sm:$0xff] }
 0x4bd   :  { %7702 = vmatpush1.bf16.msra.mxu0 %v10125_v13  ;;  %7784 = vmatpush1.bf16.msra.mxu1 %v10127_v29  ;;  %v4504_v13 = vld [vmem:[%s15237_s8 + $0x90] sm:$0xff] }
 0x4be   :  { %7703 = vmatprep.subr.bf16.mxu0 %v10142_v14  ;;  %7785 = vmatprep.subr.bf16.mxu1 %v10144_v30  ;;  %v4512_v29 = vld [vmem:[%s15237_s8 + $0xd0] sm:$0xff]  ;;  %v4505_v14 = vld [vmem:[%s15237_s8 + $0x98] sm:$0xff] }
 0x4bf   :  { %v4513_v30 = vld [vmem:[%s15237_s8 + $0xd8] sm:$0xff]  ;;  %v9746_v33 = vcombine.high %v4504_v13, %v4512_v29  ;;  %v9745_v40 = vcombine.low %v4504_v13, %v4512_v29 }
 0x4c0   :  { %v9747_v41 = vcombine.low %v4505_v14, %v4513_v30 }
 0x4c1   :  { %7704 = vmatpush1.bf16.msra.mxu0 %v10141_v26  ;;  %7786 = vmatpush1.bf16.msra.mxu1 %v10143_v36  ;;  %v9748_v26 = vcombine.high %v4505_v14, %v4513_v30  ;;  %v4520_v36 = vld [vmem:[%s15237_s8 + $0x110] sm:$0xff] }
 0x4c2   :  { %7705 = vmatprep.subr.bf16.mxu0 %v10158_v37  ;;  %7787 = vmatprep.subr.bf16.mxu1 %v10160_v21  ;;  %v4528_v37 = vld [vmem:[%s15237_s8 + $0x150] sm:$0xff]  ;;  %v4521_v21 = vld [vmem:[%s15237_s8 + $0x118] sm:$0xff] }
 0x4c3   :  { %v9762_v34 = vcombine.high %v4520_v36, %v4528_v37  ;;  %v9761_v53 = vcombine.low %v4520_v36, %v4528_v37  ;;  %v9763_v38 = vcombine.low %v4521_v21, %v4529_v39  ;;  %v4616_v14 = vld [vmem:[%s15237_s8 + $0x410] sm:$0xff] }
 0x4c4   :  { %v4624_v30 = vld [vmem:[%s15237_s8 + $0x450] sm:$0xff] }
 0x4c5   :  { %7706 = vmatpush1.bf16.msra.mxu0 %v10157_v44  ;;  %7788 = vmatpush1.bf16.msra.mxu1 %v10159_v45  ;;  %v9764_v44 = vcombine.high %v4521_v21, %v4529_v39  ;;  %v4536_v45 = vld [vmem:[%s15237_s8 + $0x190] sm:$0xff]  ;;  %v9858_v36 = vcombine.high %v4616_v14, %v4624_v30 }
 0x4c6   :  { %7707 = vmatprep.subr.bf16.mxu0 %v10174_v46  ;;  %7789 = vmatprep.subr.bf16.mxu1 %v10176_v47  ;;  %v4544_v46 = vld [vmem:[%s15237_s8 + $0x1d0] sm:$0xff]  ;;  %v4537_v47 = vld [vmem:[%s15237_s8 + $0x198] sm:$0xff] }
 0x4c7   :  { %v9778_v54 = vcombine.high %v4536_v45, %v4544_v46  ;;  %v9777_v58 = vcombine.low %v4536_v45, %v4544_v46  ;;  %v9779_v59 = vcombine.low %v4537_v47, %v4545_v51  ;;  %v4632_v21 = vld [vmem:[%s15237_s8 + $0x490] sm:$0xff] }
 0x4c8   :  { %v4640_v39 = vld [vmem:[%s15237_s8 + $0x4d0] sm:$0xff] }
 0x4c9   :  { %7708 = vmatpush1.bf16.msra.mxu0 %v10173_v55  ;;  %7790 = vmatpush1.bf16.msra.mxu1 %v10175_v56  ;;  %v9780_v55 = vcombine.high %v4537_v47, %v4545_v51  ;;  %v4552_v56 = vld [vmem:[%s15237_s8 + $0x210] sm:$0xff]  ;;  %v9874_v45 = vcombine.high %v4632_v21, %v4640_v39 }
 0x4ca   :  { %7709 = vmatprep.subr.bf16.mxu0 %v10190_v48  ;;  %7791 = vmatprep.subr.bf16.mxu1 %v10192_v35  ;;  %v4560_v48 = vld [vmem:[%s15237_s8 + $0x250] sm:$0xff]  ;;  %v4553_v35 = vld [vmem:[%s15237_s8 + $0x218] sm:$0xff] }
 0x4cb   :  { %v9794_v60 = vcombine.high %v4552_v56, %v4560_v48  ;;  %v9793_v4 = vcombine.low %v4552_v56, %v4560_v48  ;;  %v9795_v5 = vcombine.low %v4553_v35, %v4561_v57  ;;  %v4648_v47 = vld [vmem:[%s15237_s8 + $0x510] sm:$0xff] }
 0x4cc   :  { %v4656_v51 = vld [vmem:[%s15237_s8 + $0x550] sm:$0xff] }
 0x4cd   :  { %7710 = vmatpush1.bf16.msra.mxu0 %v10189_v61  ;;  %7792 = vmatpush1.bf16.msra.mxu1 %v10191_v62  ;;  %v9796_v61 = vcombine.high %v4553_v35, %v4561_v57  ;;  %v4568_v62 = vld [vmem:[%s15237_s8 + $0x290] sm:$0xff]  ;;  %v9890_v56 = vcombine.high %v4648_v47, %v4656_v51 }
 0x4ce   :  { %7711 = vmatprep.subr.bf16.mxu0 %v10206_v0  ;;  %7793 = vmatprep.subr.bf16.mxu1 %v10208_v3  ;;  %v4569_v0 = vld [vmem:[%s15237_s8 + $0x298] sm:$0xff]  ;;  %v9810_v6 = vcombine.high %v4568_v62, %v4576_v63  ;;  %v4664_v35 = vld [vmem:[%s15237_s8 + $0x590] sm:$0xff] }
 0x4cf   :  { %v4577_v3 = vld [vmem:[%s15237_s8 + $0x2d8] sm:$0xff]  ;;  %v4672_v57 = vld [vmem:[%s15237_s8 + $0x5d0] sm:$0xff] }
 0x4d0   :  { %v9812_v43 = vcombine.high %v4569_v0, %v4577_v3  ;;  %v9811_v52 = vcombine.low %v4569_v0, %v4577_v3  ;;  %v4680_v0 = vld [vmem:[%s15237_s8 + $0x610] sm:$0xff] }
 0x4d1   :  { %7712 = vmatpush1.bf16.msra.mxu0 %v10205_v7  ;;  %7794 = vmatpush1.bf16.msra.mxu1 %v10207_v8  ;;  %v4584_v7 = vld [vmem:[%s15237_s8 + $0x310] sm:$0xff] }
 0x4d2   :  { %7713 = vmatprep.subr.bf16.mxu0 %v10222_v11  ;;  %7795 = vmatprep.subr.bf16.mxu1 %v10224_v12  ;;  %v4592_v8 = vld [vmem:[%s15237_s8 + $0x350] sm:$0xff]  ;;  %v4593_v11 = vld [vmem:[%s15237_s8 + $0x358] sm:$0xff]  ;;  %v9809_v12 = vcombine.low %v4568_v62, %v4576_v63  ;;  %v9906_v62 = vcombine.high %v4664_v35, %v4672_v57 }
 0x4d3   :  { %v9826_v15 = vcombine.high %v4584_v7, %v4592_v8  ;;  %v9828_v16 = vcombine.high %v4585_v10, %v4593_v11  ;;  %v4688_v3 = vld [vmem:[%s15237_s8 + $0x650] sm:$0xff] }
 0x4d5   :  { %7714 = vmatpush1.bf16.msra.mxu0 %v10221_v17  ;;  %7796 = vmatpush1.bf16.msra.mxu1 %v10223_v18  ;;  %v4608_v17 = vld [vmem:[%s15237_s8 + $0x3d0] sm:$0xff]  ;;  %v4601_v18 = vld [vmem:[%s15237_s8 + $0x398] sm:$0xff] }
 0x4d6   :  { %7806 = vmatprep.subr.bf16.mxu0 %v9730_v20  ;;  %7888 = vmatprep.subr.bf16.mxu1 %v9732_v22  ;;  %v9825_v20 = vcombine.low %v4584_v7, %v4592_v8  ;;  %v9827_v22 = vcombine.low %v4585_v10, %v4593_v11  ;;  %v9842_v13 = vcombine.high %v4600_v50, %v4608_v17  ;;  %v4696_v10 = vld [vmem:[%s15237_s8 + $0x690] sm:$0xff] }
 0x4d7   :  { %v9844_v29 = vcombine.high %v4601_v18, %v4609_v19  ;;  %v9922_v7 = vcombine.high %v4680_v0, %v4688_v3  ;;  %v4704_v11 = vld [vmem:[%s15237_s8 + $0x6d0] sm:$0xff] }
 0x4d8   :  { %7716 = vmatmul.mubr.bf16.vlgmr.msra.gmra.mrb[12].mxu0 %v13784_v25  ;;  %7798 = vmatmul.mubr.bf16.vlgmr.msra.gmra.mrb[12].mxu1 %v13784_v25 }
 0x4d9   :  { %7807 = vmatpush1.bf16.msra.mxu0 %v9729_v31  ;;  %7838 = vmatprep.mubr.bf16.mxu0 %v13577_v1  ;;  %v4617_v31 = vld [vmem:[%s15237_s8 + $0x418] sm:$0xff] }
 0x4da   :  { %7889 = vmatpush1.bf16.msra.mxu1 %v9731_v32  ;;  %7920 = vmatprep.mubr.bf16.mxu1 %v13577_v1  ;;  %v4625_v32 = vld [vmem:[%s15237_s8 + $0x458] sm:$0xff] }
 0x4db   :  { %7808 = vmatprep.subr.bf16.mxu0 %v9746_v33  ;;  %7890 = vmatprep.subr.bf16.mxu1 %v9748_v26  ;;  %v9841_v33 = vcombine.low %v4600_v50, %v4608_v17  ;;  %v9843_v26 = vcombine.low %v4601_v18, %v4609_v19  ;;  %v9860_v37 = vcombine.high %v4617_v31, %v4625_v32  ;;  %v4712_v18 = vld [vmem:[%s15237_s8 + $0x710] sm:$0xff] }
 0x4dc   :  { %v9938_v50 = vcombine.high %v4696_v10, %v4704_v11  ;;  %v4720_v19 = vld [vmem:[%s15237_s8 + $0x750] sm:$0xff] }
 0x4dd   :  { %7809 = vmatpush1.bf16.msra.mxu0 %v9745_v40  ;;  %v4633_v40 = vld [vmem:[%s15237_s8 + $0x498] sm:$0xff] }
 0x4de   :  { %7891 = vmatpush1.bf16.msra.mxu1 %v9747_v41  ;;  %7810 = vmatprep.subr.bf16.mxu0 %v9762_v34  ;;  %v4641_v41 = vld [vmem:[%s15237_s8 + $0x4d8] sm:$0xff]  ;;  %v9857_v34 = vcombine.low %v4616_v14, %v4624_v30  ;;  %v9954_v14 = vcombine.high %v4712_v18, %v4720_v19 }
 0x4df   :  { %7892 = vmatprep.subr.bf16.mxu1 %v9764_v44  ;;  %v9859_v44 = vcombine.low %v4617_v31, %v4625_v32  ;;  %v9876_v46 = vcombine.high %v4633_v40, %v4641_v41  ;;  %v4728_v31 = vld [vmem:[%s15237_s8 + $0x790] sm:$0xff] }
 0x4e0   :  { %v4736_v32 = vld [vmem:[%s15237_s8 + $0x7d0] sm:$0xff] }
 0x4e1   :  { %7811 = vmatpush1.bf16.msra.mxu0 %v9761_v53  ;;  %v4649_v53 = vld [vmem:[%s15237_s8 + $0x518] sm:$0xff] }
 0x4e2   :  { %7893 = vmatpush1.bf16.msra.mxu1 %v9763_v38  ;;  %7812 = vmatprep.subr.bf16.mxu0 %v9778_v54  ;;  %v4657_v38 = vld [vmem:[%s15237_s8 + $0x558] sm:$0xff]  ;;  %v9873_v54 = vcombine.low %v4632_v21, %v4640_v39  ;;  %v9970_v21 = vcombine.high %v4728_v31, %v4736_v32 }
 0x4e3   :  { %7894 = vmatprep.subr.bf16.mxu1 %v9780_v55  ;;  %v9875_v55 = vcombine.low %v4633_v40, %v4641_v41  ;;  %v9892_v48 = vcombine.high %v4649_v53, %v4657_v38  ;;  %v4744_v40 = vld [vmem:[%s15237_s8 + $0x810] sm:$0xff] }
 0x4e4   :  { %v4752_v41 = vld [vmem:[%s15237_s8 + $0x850] sm:$0xff] }
 0x4e5   :  { %7813 = vmatpush1.bf16.msra.mxu0 %v9777_v58  ;;  %v4665_v58 = vld [vmem:[%s15237_s8 + $0x598] sm:$0xff] }
 0x4e6   :  { %7895 = vmatpush1.bf16.msra.mxu1 %v9779_v59  ;;  %7814 = vmatprep.subr.bf16.mxu0 %v9794_v60  ;;  %v4673_v59 = vld [vmem:[%s15237_s8 + $0x5d8] sm:$0xff]  ;;  %v9889_v60 = vcombine.low %v4648_v47, %v4656_v51  ;;  %v9986_v47 = vcombine.high %v4744_v40, %v4752_v41 }
 0x4e7   :  { %7896 = vmatprep.subr.bf16.mxu1 %v9796_v61  ;;  %v9891_v61 = vcombine.low %v4649_v53, %v4657_v38  ;;  %v9908_v63 = vcombine.high %v4665_v58, %v4673_v59  ;;  %v4760_v53 = vld [vmem:[%s15237_s8 + $0x890] sm:$0xff] }
 0x4e8   :  { %v4768_v38 = vld [vmem:[%s15237_s8 + $0x8d0] sm:$0xff] }
 0x4e9   :  { %7815 = vmatpush1.bf16.msra.mxu0 %v9793_v4  ;;  %v4681_v4 = vld [vmem:[%s15237_s8 + $0x618] sm:$0xff] }
 0x4ea   :  { %7897 = vmatpush1.bf16.msra.mxu1 %v9795_v5  ;;  %7816 = vmatprep.subr.bf16.mxu0 %v9810_v6  ;;  %v4689_v5 = vld [vmem:[%s15237_s8 + $0x658] sm:$0xff]  ;;  %v9905_v6 = vcombine.low %v4664_v35, %v4672_v57  ;;  %v10002_v35 = vcombine.high %v4760_v53, %v4768_v38  ;;  %v4776_v57 = vld [vmem:[%s15237_s8 + $0x910] sm:$0xff] }
 0x4eb   :  { %7898 = vmatprep.subr.bf16.mxu1 %v9812_v43  ;;  %v9907_v43 = vcombine.low %v4665_v58, %v4673_v59  ;;  %v9924_v8 = vcombine.high %v4681_v4, %v4689_v5  ;;  %v4784_v58 = vld [vmem:[%s15237_s8 + $0x950] sm:$0xff] }
 0x4ed   :  { %7817 = vmatpush1.bf16.msra.mxu0 %v9809_v12  ;;  %v4697_v12 = vld [vmem:[%s15237_s8 + $0x698] sm:$0xff] }
 0x4ee   :  { %7899 = vmatpush1.bf16.msra.mxu1 %v9811_v52  ;;  %7818 = vmatprep.subr.bf16.mxu0 %v9826_v15  ;;  %v4705_v52 = vld [vmem:[%s15237_s8 + $0x6d8] sm:$0xff]  ;;  %v9921_v15 = vcombine.low %v4680_v0, %v4688_v3  ;;  %v10018_v0 = vcombine.high %v4776_v57, %v4784_v58 }
 0x4ef   :  { %7900 = vmatprep.subr.bf16.mxu1 %v9828_v16  ;;  %v9923_v16 = vcombine.low %v4681_v4, %v4689_v5  ;;  %v9940_v17 = vcombine.high %v4697_v12, %v4705_v52  ;;  %v4792_v4 = vld [vmem:[%s15237_s8 + $0x990] sm:$0xff] }
 0x4f0   :  { %v4800_v5 = vld [vmem:[%s15237_s8 + $0x9d0] sm:$0xff] }
 0x4f1   :  { %7819 = vmatpush1.bf16.msra.mxu0 %v9825_v20  ;;  %v4713_v20 = vld [vmem:[%s15237_s8 + $0x718] sm:$0xff] }
 0x4f2   :  { %7901 = vmatpush1.bf16.msra.mxu1 %v9827_v22  ;;  %7820 = vmatprep.subr.bf16.mxu0 %v9842_v13  ;;  %v4721_v22 = vld [vmem:[%s15237_s8 + $0x758] sm:$0xff]  ;;  %v9937_v13 = vcombine.low %v4696_v10, %v4704_v11  ;;  %v10034_v10 = vcombine.high %v4792_v4, %v4800_v5 }
 0x4f3   :  { %7902 = vmatprep.subr.bf16.mxu1 %v9844_v29  ;;  %v9939_v29 = vcombine.low %v4697_v12, %v4705_v52  ;;  %v9956_v30 = vcombine.high %v4713_v20, %v4721_v22  ;;  %v4808_v12 = vld [vmem:[%s15237_s8 + $0xa10] sm:$0xff] }
 0x4f4   :  { %v4816_v52 = vld [vmem:[%s15237_s8 + $0xa50] sm:$0xff] }
 0x4f5   :  { %7821 = vmatpush1.bf16.msra.mxu0 %v9841_v33  ;;  %v4729_v33 = vld [vmem:[%s15237_s8 + $0x798] sm:$0xff] }
 0x4f6   :  { %7903 = vmatpush1.bf16.msra.mxu1 %v9843_v26  ;;  %7822 = vmatprep.subr.bf16.mxu0 %v9858_v36  ;;  %v4737_v26 = vld [vmem:[%s15237_s8 + $0x7d8] sm:$0xff]  ;;  %v9953_v36 = vcombine.low %v4712_v18, %v4720_v19  ;;  %v10050_v18 = vcombine.high %v4808_v12, %v4816_v52 }
 0x4f7   :  { %7904 = vmatprep.subr.bf16.mxu1 %v9860_v37  ;;  %v9955_v37 = vcombine.low %v4713_v20, %v4721_v22  ;;  %v9972_v39 = vcombine.high %v4729_v33, %v4737_v26  ;;  %v4824_v20 = vld [vmem:[%s15237_s8 + $0xa90] sm:$0xff] }
 0x4f8   :  { %v4832_v22 = vld [vmem:[%s15237_s8 + $0xad0] sm:$0xff] }
 0x4f9   :  { %7823 = vmatpush1.bf16.msra.mxu0 %v9857_v34  ;;  %v4745_v34 = vld [vmem:[%s15237_s8 + $0x818] sm:$0xff] }
 0x4fa   :  { %7905 = vmatpush1.bf16.msra.mxu1 %v9859_v44  ;;  %7824 = vmatprep.subr.bf16.mxu0 %v9874_v45  ;;  %v4753_v44 = vld [vmem:[%s15237_s8 + $0x858] sm:$0xff]  ;;  %v9969_v45 = vcombine.low %v4728_v31, %v4736_v32  ;;  %v10066_v31 = vcombine.high %v4824_v20, %v4832_v22 }
 0x4fb   :  { %7906 = vmatprep.subr.bf16.mxu1 %v9876_v46  ;;  %v9971_v46 = vcombine.low %v4729_v33, %v4737_v26  ;;  %v9988_v51 = vcombine.high %v4745_v34, %v4753_v44  ;;  %v4840_v33 = vld [vmem:[%s15237_s8 + $0xb10] sm:$0xff] }
 0x4fc   :  { %v4848_v26 = vld [vmem:[%s15237_s8 + $0xb50] sm:$0xff] }
 0x4fd   :  { %7825 = vmatpush1.bf16.msra.mxu0 %v9873_v54  ;;  %v9985_v54 = vcombine.low %v4744_v40, %v4752_v41  ;;  %v10082_v40 = vcombine.high %v4840_v33, %v4848_v26 }
 0x4fe   :  { %7907 = vmatpush1.bf16.msra.mxu1 %v9875_v55  ;;  %7826 = vmatprep.subr.bf16.mxu0 %v9890_v56  ;;  %v4761_v55 = vld [vmem:[%s15237_s8 + $0x898] sm:$0xff] }
 0x4ff   :  { %7908 = vmatprep.subr.bf16.mxu1 %v9892_v48  ;;  %v4769_v56 = vld [vmem:[%s15237_s8 + $0x8d8] sm:$0xff]  ;;  %v9987_v48 = vcombine.low %v4745_v34, %v4753_v44  ;;  %v4856_v34 = vld [vmem:[%s15237_s8 + $0xb90] sm:$0xff] }
 0x500   :  { %v10004_v59 = vcombine.high %v4761_v55, %v4769_v56  ;;  %v4864_v44 = vld [vmem:[%s15237_s8 + $0xbd0] sm:$0xff] }
 0x501   :  { %7827 = vmatpush1.bf16.msra.mxu0 %v9889_v60  ;;  %v4777_v60 = vld [vmem:[%s15237_s8 + $0x918] sm:$0xff] }
 0x502   :  { %7909 = vmatpush1.bf16.msra.mxu1 %v9891_v61  ;;  %7828 = vmatprep.subr.bf16.mxu0 %v9906_v62  ;;  %v4785_v61 = vld [vmem:[%s15237_s8 + $0x958] sm:$0xff]  ;;  %v10001_v62 = vcombine.low %v4760_v53, %v4768_v38  ;;  %v10098_v53 = vcombine.high %v4856_v34, %v4864_v44 }
 0x503   :  { %7910 = vmatprep.subr.bf16.mxu1 %v9908_v63  ;;  %v10003_v63 = vcombine.low %v4761_v55, %v4769_v56  ;;  %v10020_v3 = vcombine.high %v4777_v60, %v4785_v61  ;;  %v4880_v55 = vld [vmem:[%s15237_s8 + $0xc50] sm:$0xff]  ;;  %v4873_v56 = vld [vmem:[%s15237_s8 + $0xc18] sm:$0xff] }
 0x505   :  { %7829 = vmatpush1.bf16.msra.mxu0 %v9905_v6  ;;  %v4793_v6 = vld [vmem:[%s15237_s8 + $0x998] sm:$0xff] }
 0x506   :  { %7911 = vmatpush1.bf16.msra.mxu1 %v9907_v43  ;;  %7830 = vmatprep.subr.bf16.mxu0 %v9922_v7  ;;  %v4801_v43 = vld [vmem:[%s15237_s8 + $0x9d8] sm:$0xff]  ;;  %v10017_v7 = vcombine.low %v4776_v57, %v4784_v58 }
 0x507   :  { %7912 = vmatprep.subr.bf16.mxu1 %v9924_v8  ;;  %v10019_v8 = vcombine.low %v4777_v60, %v4785_v61  ;;  %v10036_v11 = vcombine.high %v4793_v6, %v4801_v43  ;;  %v4888_v60 = vld [vmem:[%s15237_s8 + $0xc90] sm:$0xff] }
 0x508   :  { %v4896_v61 = vld [vmem:[%s15237_s8 + $0xcd0] sm:$0xff] }
 0x509   :  { %7831 = vmatpush1.bf16.msra.mxu0 %v9921_v15  ;;  %v4809_v15 = vld [vmem:[%s15237_s8 + $0xa18] sm:$0xff] }
 0x50a   :  { %7913 = vmatpush1.bf16.msra.mxu1 %v9923_v16  ;;  %7832 = vmatprep.subr.bf16.mxu0 %v9938_v50  ;;  %v4817_v16 = vld [vmem:[%s15237_s8 + $0xa58] sm:$0xff]  ;;  %v10033_v50 = vcombine.low %v4792_v4, %v4800_v5  ;;  %v10130_v4 = vcombine.high %v4888_v60, %v4896_v61 }
 0x50b   :  { %7914 = vmatprep.subr.bf16.mxu1 %v9940_v17  ;;  %v10035_v17 = vcombine.low %v4793_v6, %v4801_v43  ;;  %v10052_v19 = vcombine.high %v4809_v15, %v4817_v16  ;;  %v4904_v6 = vld [vmem:[%s15237_s8 + $0xd10] sm:$0xff] }
 0x50c   :  { %v4912_v43 = vld [vmem:[%s15237_s8 + $0xd50] sm:$0xff] }
 0x50d   :  { %7833 = vmatpush1.bf16.msra.mxu0 %v9937_v13  ;;  %v4825_v13 = vld [vmem:[%s15237_s8 + $0xa98] sm:$0xff] }
 0x50e   :  { %7915 = vmatpush1.bf16.msra.mxu1 %v9939_v29  ;;  %7834 = vmatprep.subr.bf16.mxu0 %v9954_v14  ;;  %v4833_v29 = vld [vmem:[%s15237_s8 + $0xad8] sm:$0xff]  ;;  %v10049_v14 = vcombine.low %v4808_v12, %v4816_v52  ;;  %v10146_v12 = vcombine.high %v4904_v6, %v4912_v43 }
 0x50f   :  { %7916 = vmatprep.subr.bf16.mxu1 %v9956_v30  ;;  %v10051_v30 = vcombine.low %v4809_v15, %v4817_v16  ;;  %v10068_v32 = vcombine.high %v4825_v13, %v4833_v29  ;;  %v4920_v15 = vld [vmem:[%s15237_s8 + $0xd90] sm:$0xff] }
 0x510   :  { %v4928_v16 = vld [vmem:[%s15237_s8 + $0xdd0] sm:$0xff] }
 0x511   :  { %7835 = vmatpush1.bf16.msra.mxu0 %v9953_v36  ;;  %v4841_v36 = vld [vmem:[%s15237_s8 + $0xb18] sm:$0xff] }
 0x512   :  { %7917 = vmatpush1.bf16.msra.mxu1 %v9955_v37  ;;  %7836 = vmatprep.subr.bf16.mxu0 %v9970_v21  ;;  %v4849_v37 = vld [vmem:[%s15237_s8 + $0xb58] sm:$0xff]  ;;  %v10065_v21 = vcombine.low %v4824_v20, %v4832_v22  ;;  %v10162_v20 = vcombine.high %v4920_v15, %v4928_v16 }
 0x513   :  { %7918 = vmatprep.subr.bf16.mxu1 %v9972_v39  ;;  %v10067_v39 = vcombine.low %v4825_v13, %v4833_v29  ;;  %v10084_v41 = vcombine.high %v4841_v36, %v4849_v37  ;;  %v4936_v13 = vld [vmem:[%s15237_s8 + $0xe10] sm:$0xff] }
 0x514   :  { %v4944_v29 = vld [vmem:[%s15237_s8 + $0xe50] sm:$0xff] }
 0x515   :  { %7837 = vmatpush1.bf16.msra.mxu0 %v9969_v45  ;;  %v4857_v45 = vld [vmem:[%s15237_s8 + $0xb98] sm:$0xff] }
 0x516   :  { %7919 = vmatpush1.bf16.msra.mxu1 %v9971_v46  ;;  %7847 = vmatprep.subr.bf16.mxu0 %v9986_v47  ;;  %v4865_v46 = vld [vmem:[%s15237_s8 + $0xbd8] sm:$0xff]  ;;  %v10081_v47 = vcombine.low %v4840_v33, %v4848_v26  ;;  %v10178_v33 = vcombine.high %v4936_v13, %v4944_v29 }
 0x517   :  { %7929 = vmatprep.subr.bf16.mxu1 %v9988_v51  ;;  %v10083_v51 = vcombine.low %v4841_v36, %v4849_v37  ;;  %v10100_v38 = vcombine.high %v4857_v45, %v4865_v46  ;;  %v10099_v57 = vcombine.low %v4857_v45, %v4865_v46  ;;  %v4952_v36 = vld [vmem:[%s15237_s8 + $0xe90] sm:$0xff] }
 0x518   :  { %7839 = vmatmul.mubr.bf16.vlgmr.msra.gmra.mrb[16].mxu0 %v13579_v2  ;;  %v4960_v37 = vld [vmem:[%s15237_s8 + $0xed0] sm:$0xff] }
 0x519   :  { %7921 = vmatmul.mubr.bf16.vlgmr.msra.gmra.mrb[16].mxu1 %v13579_v2  ;;  %7848 = vmatpush1.bf16.msra.mxu0 %v9985_v54  ;;  %v4872_v54 = vld [vmem:[%s15237_s8 + $0xc10] sm:$0xff] }
 0x51a   :  { %7879 = vmatprep.mubr.bf16.mxu0 %v13595_v9  ;;  %7930 = vmatpush1.bf16.msra.mxu1 %v9987_v48  ;;  %v4881_v48 = vld [vmem:[%s15237_s8 + $0xc58] sm:$0xff]  ;;  %v10114_v58 = vcombine.high %v4872_v54, %v4880_v55  ;;  %v4968_v45 = vld [vmem:[%s15237_s8 + $0xf10] sm:$0xff] }
 0x51b   :  { %7961 = vmatprep.mubr.bf16.mxu1 %v13595_v9  ;;  %7849 = vmatprep.subr.bf16.mxu0 %v10002_v35  ;;  %v10097_v35 = vcombine.low %v4856_v34, %v4864_v44  ;;  %v10194_v34 = vcombine.high %v4952_v36, %v4960_v37  ;;  %v4976_v46 = vld [vmem:[%s15237_s8 + $0xf50] sm:$0xff] }
 0x51c   :  { %7931 = vmatprep.subr.bf16.mxu1 %v10004_v59  ;;  %v10116_v59 = vcombine.high %v4873_v56, %v4881_v48 }
 0x51d   :  { %7850 = vmatpush1.bf16.msra.mxu0 %v10001_v62  ;;  %v4889_v62 = vld [vmem:[%s15237_s8 + $0xc98] sm:$0xff] }
 0x51e   :  { %7932 = vmatpush1.bf16.msra.mxu1 %v10003_v63  ;;  %7851 = vmatprep.subr.bf16.mxu0 %v10018_v0  ;;  %v4897_v63 = vld [vmem:[%s15237_s8 + $0xcd8] sm:$0xff]  ;;  %v10113_v0 = vcombine.low %v4872_v54, %v4880_v55  ;;  %v10210_v54 = vcombine.high %v4968_v45, %v4976_v46 }
 0x51f   :  { %7933 = vmatprep.subr.bf16.mxu1 %v10020_v3  ;;  %v10115_v3 = vcombine.low %v4873_v56, %v4881_v48  ;;  %v10132_v5 = vcombine.high %v4889_v62, %v4897_v63  ;;  %v4984_v56 = vld [vmem:[%s15237_s8 + $0xf90] sm:$0xff] }
 0x520   :  { %v4992_v48 = vld [vmem:[%s15237_s8 + $0xfd0] sm:$0xff] }
 0x521   :  { %7852 = vmatpush1.bf16.msra.mxu0 %v10017_v7  ;;  %v4905_v7 = vld [vmem:[%s15237_s8 + $0xd18] sm:$0xff] }
 0x522   :  { %7934 = vmatpush1.bf16.msra.mxu1 %v10019_v8  ;;  %7853 = vmatprep.subr.bf16.mxu0 %v10034_v10  ;;  %v4913_v8 = vld [vmem:[%s15237_s8 + $0xd58] sm:$0xff]  ;;  %v10129_v10 = vcombine.low %v4888_v60, %v4896_v61  ;;  %v10226_v60 = vcombine.high %v4984_v56, %v4992_v48 }
 0x523   :  { %7935 = vmatprep.subr.bf16.mxu1 %v10036_v11  ;;  %v10131_v11 = vcombine.low %v4889_v62, %v4897_v63  ;;  %v10148_v52 = vcombine.high %v4905_v7, %v4913_v8  ;;  %v4490_v62 = vld [vmem:[%s15237_s8 + $0x20] sm:$0xff] }
 0x524   :  { %v4498_v63 = vld [vmem:[%s15237_s8 + $0x60] sm:$0xff] }
 0x525   :  { %7854 = vmatpush1.bf16.msra.mxu0 %v10033_v50  ;;  %v4921_v50 = vld [vmem:[%s15237_s8 + $0xd98] sm:$0xff] }
 0x526   :  { %7936 = vmatpush1.bf16.msra.mxu1 %v10035_v17  ;;  %7855 = vmatprep.subr.bf16.mxu0 %v10050_v18  ;;  %v4929_v17 = vld [vmem:[%s15237_s8 + $0xdd8] sm:$0xff]  ;;  %v10145_v18 = vcombine.low %v4904_v6, %v4912_v43  ;;  %v9734_v6 = vcombine.high %v4490_v62, %v4498_v63 }
 0x527   :  { %7937 = vmatprep.subr.bf16.mxu1 %v10052_v19  ;;  %v10147_v19 = vcombine.low %v4905_v7, %v4913_v8  ;;  %v10164_v22 = vcombine.high %v4921_v50, %v4929_v17  ;;  %v4506_v7 = vld [vmem:[%s15237_s8 + $0xa0] sm:$0xff] }
 0x528   :  { %v4514_v8 = vld [vmem:[%s15237_s8 + $0xe0] sm:$0xff] }
 0x529   :  { %7856 = vmatpush1.bf16.msra.mxu0 %v10049_v14  ;;  %v4937_v14 = vld [vmem:[%s15237_s8 + $0xe18] sm:$0xff] }
 0x52a   :  { %7938 = vmatpush1.bf16.msra.mxu1 %v10051_v30  ;;  %7857 = vmatprep.subr.bf16.mxu0 %v10066_v31  ;;  %v4945_v30 = vld [vmem:[%s15237_s8 + $0xe58] sm:$0xff]  ;;  %v10161_v31 = vcombine.low %v4920_v15, %v4928_v16  ;;  %v9750_v15 = vcombine.high %v4506_v7, %v4514_v8  ;;  %v4522_v16 = vld [vmem:[%s15237_s8 + $0x120] sm:$0xff] }
 0x52b   :  { %7939 = vmatprep.subr.bf16.mxu1 %v10068_v32  ;;  %v10163_v32 = vcombine.low %v4921_v50, %v4929_v17  ;;  %v10180_v26 = vcombine.high %v4937_v14, %v4945_v30  ;;  %v4530_v50 = vld [vmem:[%s15237_s8 + $0x160] sm:$0xff] }
 0x52d   :  { %7858 = vmatpush1.bf16.msra.mxu0 %v10065_v21  ;;  %v4953_v21 = vld [vmem:[%s15237_s8 + $0xe98] sm:$0xff] }
 0x52e   :  { %7940 = vmatpush1.bf16.msra.mxu1 %v10067_v39  ;;  %7859 = vmatprep.subr.bf16.mxu0 %v10082_v40  ;;  %v4961_v39 = vld [vmem:[%s15237_s8 + $0xed8] sm:$0xff]  ;;  %v10177_v40 = vcombine.low %v4936_v13, %v4944_v29  ;;  %v9766_v13 = vcombine.high %v4522_v16, %v4530_v50 }
 0x52f   :  { %7941 = vmatprep.subr.bf16.mxu1 %v10084_v41  ;;  %v10179_v41 = vcombine.low %v4937_v14, %v4945_v30  ;;  %v10196_v44 = vcombine.high %v4953_v21, %v4961_v39  ;;  %v4538_v14 = vld [vmem:[%s15237_s8 + $0x1a0] sm:$0xff] }
 0x530   :  { %v4546_v30 = vld [vmem:[%s15237_s8 + $0x1e0] sm:$0xff] }
 0x531   :  { %7860 = vmatpush1.bf16.msra.mxu0 %v10081_v47  ;;  %v4969_v47 = vld [vmem:[%s15237_s8 + $0xf18] sm:$0xff] }
 0x532   :  { %7942 = vmatpush1.bf16.msra.mxu1 %v10083_v51  ;;  %7861 = vmatprep.subr.bf16.mxu0 %v10098_v53  ;;  %v4977_v51 = vld [vmem:[%s15237_s8 + $0xf58] sm:$0xff]  ;;  %v10193_v53 = vcombine.low %v4952_v36, %v4960_v37  ;;  %v9782_v36 = vcombine.high %v4538_v14, %v4546_v30 }
 0x533   :  { %7943 = vmatprep.subr.bf16.mxu1 %v10100_v38  ;;  %v10195_v38 = vcombine.low %v4953_v21, %v4961_v39  ;;  %v10212_v55 = vcombine.high %v4969_v47, %v4977_v51  ;;  %v4554_v21 = vld [vmem:[%s15237_s8 + $0x220] sm:$0xff] }
 0x534   :  { %v4562_v39 = vld [vmem:[%s15237_s8 + $0x260] sm:$0xff] }
 0x535   :  { %7862 = vmatpush1.bf16.msra.mxu0 %v10097_v35  ;;  %v4985_v35 = vld [vmem:[%s15237_s8 + $0xf98] sm:$0xff] }
 0x536   :  { %7944 = vmatpush1.bf16.msra.mxu1 %v10099_v57  ;;  %7863 = vmatprep.subr.bf16.mxu0 %v10114_v58  ;;  %v4993_v57 = vld [vmem:[%s15237_s8 + $0xfd8] sm:$0xff]  ;;  %v10209_v58 = vcombine.low %v4968_v45, %v4976_v46  ;;  %v9798_v45 = vcombine.high %v4554_v21, %v4562_v39 }
 0x537   :  { %7945 = vmatprep.subr.bf16.mxu1 %v10116_v59  ;;  %v10211_v59 = vcombine.low %v4969_v47, %v4977_v51  ;;  %v10228_v61 = vcombine.high %v4985_v35, %v4993_v57  ;;  %v4570_v47 = vld [vmem:[%s15237_s8 + $0x2a0] sm:$0xff] }
 0x538   :  { %v4578_v51 = vld [vmem:[%s15237_s8 + $0x2e0] sm:$0xff] }
 0x539   :  { %7864 = vmatpush1.bf16.msra.mxu0 %v10113_v0  ;;  %v4491_v0 = vld [vmem:[%s15237_s8 + $0x28] sm:$0xff] }
 0x53a   :  { %7946 = vmatpush1.bf16.msra.mxu1 %v10115_v3  ;;  %7865 = vmatprep.subr.bf16.mxu0 %v10130_v4  ;;  %v4499_v3 = vld [vmem:[%s15237_s8 + $0x68] sm:$0xff]  ;;  %v10225_v4 = vcombine.low %v4984_v56, %v4992_v48  ;;  %v9814_v56 = vcombine.high %v4570_v47, %v4578_v51 }
 0x53b   :  { %7947 = vmatprep.subr.bf16.mxu1 %v10132_v5  ;;  %v10227_v5 = vcombine.low %v4985_v35, %v4993_v57  ;;  %v9736_v43 = vcombine.high %v4491_v0, %v4499_v3  ;;  %v4586_v35 = vld [vmem:[%s15237_s8 + $0x320] sm:$0xff] }
 0x53c   :  { %v4594_v57 = vld [vmem:[%s15237_s8 + $0x360] sm:$0xff] }
 0x53d   :  { %7866 = vmatpush1.bf16.msra.mxu0 %v10129_v10  ;;  %v9733_v10 = vcombine.low %v4490_v62, %v4498_v63  ;;  %v9830_v62 = vcombine.high %v4586_v35, %v4594_v57 }
 0x53e   :  { %7948 = vmatpush1.bf16.msra.mxu1 %v10131_v11  ;;  %7867 = vmatprep.subr.bf16.mxu0 %v10146_v12  ;;  %v4507_v11 = vld [vmem:[%s15237_s8 + $0xa8] sm:$0xff] }
 0x53f   :  { %7949 = vmatprep.subr.bf16.mxu1 %v10148_v52  ;;  %v4515_v12 = vld [vmem:[%s15237_s8 + $0xe8] sm:$0xff]  ;;  %v9735_v52 = vcombine.low %v4491_v0, %v4499_v3  ;;  %v4602_v0 = vld [vmem:[%s15237_s8 + $0x3a0] sm:$0xff] }
 0x540   :  { %v9752_v17 = vcombine.high %v4507_v11, %v4515_v12  ;;  %v4610_v3 = vld [vmem:[%s15237_s8 + $0x3e0] sm:$0xff] }
 0x541   :  { %7868 = vmatpush1.bf16.msra.mxu0 %v10145_v18  ;;  %v4523_v18 = vld [vmem:[%s15237_s8 + $0x128] sm:$0xff] }
 0x542   :  { %7950 = vmatpush1.bf16.msra.mxu1 %v10147_v19  ;;  %7869 = vmatprep.subr.bf16.mxu0 %v10162_v20  ;;  %v4531_v19 = vld [vmem:[%s15237_s8 + $0x168] sm:$0xff]  ;;  %v9749_v20 = vcombine.low %v4506_v7, %v4514_v8  ;;  %v9846_v7 = vcombine.high %v4602_v0, %v4610_v3 }
 0x543   :  { %7951 = vmatprep.subr.bf16.mxu1 %v10164_v22  ;;  %v9751_v22 = vcombine.low %v4507_v11, %v4515_v12  ;;  %v9768_v29 = vcombine.high %v4523_v18, %v4531_v19  ;;  %v4626_v11 = vld [vmem:[%s15237_s8 + $0x460] sm:$0xff]  ;;  %v4619_v12 = vld [vmem:[%s15237_s8 + $0x428] sm:$0xff] }
 0x545   :  { %7870 = vmatpush1.bf16.msra.mxu0 %v10161_v31  ;;  %v4539_v31 = vld [vmem:[%s15237_s8 + $0x1a8] sm:$0xff] }
 0x546   :  { %7952 = vmatpush1.bf16.msra.mxu1 %v10163_v32  ;;  %7871 = vmatprep.subr.bf16.mxu0 %v10178_v33  ;;  %v4547_v32 = vld [vmem:[%s15237_s8 + $0x1e8] sm:$0xff]  ;;  %v9765_v33 = vcombine.low %v4522_v16, %v4530_v50 }
 0x547   :  { %7953 = vmatprep.subr.bf16.mxu1 %v10180_v26  ;;  %v9767_v26 = vcombine.low %v4523_v18, %v4531_v19  ;;  %v9784_v37 = vcombine.high %v4539_v31, %v4547_v32  ;;  %v4634_v18 = vld [vmem:[%s15237_s8 + $0x4a0] sm:$0xff] }
 0x548   :  { %v4642_v19 = vld [vmem:[%s15237_s8 + $0x4e0] sm:$0xff] }
 0x549   :  { %7872 = vmatpush1.bf16.msra.mxu0 %v10177_v40  ;;  %v4555_v40 = vld [vmem:[%s15237_s8 + $0x228] sm:$0xff] }
 0x54a   :  { %7954 = vmatpush1.bf16.msra.mxu1 %v10179_v41  ;;  %7873 = vmatprep.subr.bf16.mxu0 %v10194_v34  ;;  %v4563_v41 = vld [vmem:[%s15237_s8 + $0x268] sm:$0xff]  ;;  %v9781_v34 = vcombine.low %v4538_v14, %v4546_v30  ;;  %v9878_v14 = vcombine.high %v4634_v18, %v4642_v19 }
 0x54b   :  { %7955 = vmatprep.subr.bf16.mxu1 %v10196_v44  ;;  %v9783_v44 = vcombine.low %v4539_v31, %v4547_v32  ;;  %v9800_v46 = vcombine.high %v4555_v40, %v4563_v41  ;;  %v4650_v31 = vld [vmem:[%s15237_s8 + $0x520] sm:$0xff] }
 0x54c   :  { %v4658_v32 = vld [vmem:[%s15237_s8 + $0x560] sm:$0xff] }
 0x54d   :  { %7874 = vmatpush1.bf16.msra.mxu0 %v10193_v53  ;;  %v4571_v53 = vld [vmem:[%s15237_s8 + $0x2a8] sm:$0xff] }
 0x54e   :  { %7956 = vmatpush1.bf16.msra.mxu1 %v10195_v38  ;;  %7875 = vmatprep.subr.bf16.mxu0 %v10210_v54  ;;  %v4579_v38 = vld [vmem:[%s15237_s8 + $0x2e8] sm:$0xff]  ;;  %v9797_v54 = vcombine.low %v4554_v21, %v4562_v39  ;;  %v9894_v21 = vcombine.high %v4650_v31, %v4658_v32 }
 0x54f   :  { %7957 = vmatprep.subr.bf16.mxu1 %v10212_v55  ;;  %v9799_v55 = vcombine.low %v4555_v40, %v4563_v41  ;;  %v9816_v48 = vcombine.high %v4571_v53, %v4579_v38  ;;  %v4666_v40 = vld [vmem:[%s15237_s8 + $0x5a0] sm:$0xff] }
 0x550   :  { %v4674_v41 = vld [vmem:[%s15237_s8 + $0x5e0] sm:$0xff] }
 0x551   :  { %7876 = vmatpush1.bf16.msra.mxu0 %v10209_v58  ;;  %v4587_v58 = vld [vmem:[%s15237_s8 + $0x328] sm:$0xff] }
 0x552   :  { %7958 = vmatpush1.bf16.msra.mxu1 %v10211_v59  ;;  %7877 = vmatprep.subr.bf16.mxu0 %v10226_v60  ;;  %v4595_v59 = vld [vmem:[%s15237_s8 + $0x368] sm:$0xff]  ;;  %v9813_v60 = vcombine.low %v4570_v47, %v4578_v51  ;;  %v9910_v47 = vcombine.high %v4666_v40, %v4674_v41 }
 0x553   :  { %7959 = vmatprep.subr.bf16.mxu1 %v10228_v61  ;;  %v9815_v61 = vcombine.low %v4571_v53, %v4579_v38  ;;  %v9832_v63 = vcombine.high %v4587_v58, %v4595_v59  ;;  %v4682_v53 = vld [vmem:[%s15237_s8 + $0x620] sm:$0xff] }
 0x554   :  { %v4690_v38 = vld [vmem:[%s15237_s8 + $0x660] sm:$0xff] }
 0x555   :  { %7878 = vmatpush1.bf16.msra.mxu0 %v10225_v4  ;;  %v4603_v4 = vld [vmem:[%s15237_s8 + $0x3a8] sm:$0xff] }
 0x556   :  { %7960 = vmatpush1.bf16.msra.mxu1 %v10227_v5  ;;  %7970 = vmatprep.subr.bf16.mxu0 %v9734_v6  ;;  %v4611_v5 = vld [vmem:[%s15237_s8 + $0x3e8] sm:$0xff]  ;;  %v9829_v6 = vcombine.low %v4586_v35, %v4594_v57  ;;  %v9926_v35 = vcombine.high %v4682_v53, %v4690_v38 }
 0x557   :  { %8052 = vmatprep.subr.bf16.mxu1 %v9736_v43  ;;  %v9831_v43 = vcombine.low %v4587_v58, %v4595_v59  ;;  %v9848_v8 = vcombine.high %v4603_v4, %v4611_v5  ;;  %v9847_v16 = vcombine.low %v4603_v4, %v4611_v5  ;;  %v4698_v58 = vld [vmem:[%s15237_s8 + $0x6a0] sm:$0xff] }
 0x558   :  { %7880 = vmatmul.mubr.bf16.vlgmr.msra.gmra.mrb[16].mxu0 %v13784_v25  ;;  %v4706_v59 = vld [vmem:[%s15237_s8 + $0x6e0] sm:$0xff] }
 0x559   :  { %7962 = vmatmul.mubr.bf16.vlgmr.msra.gmra.mrb[16].mxu1 %v13784_v25  ;;  %7971 = vmatpush1.bf16.msra.mxu0 %v9733_v10  ;;  %v4618_v10 = vld [vmem:[%s15237_s8 + $0x420] sm:$0xff] }
 0x55a   :  { %8002 = vmatprep.mubr.bf16.mxu0 %v13577_v1  ;;  %8053 = vmatpush1.bf16.msra.mxu1 %v9735_v52  ;;  %v4627_v52 = vld [vmem:[%s15237_s8 + $0x468] sm:$0xff]  ;;  %v9862_v50 = vcombine.high %v4618_v10, %v4626_v11  ;;  %v4714_v4 = vld [vmem:[%s15237_s8 + $0x720] sm:$0xff] }
 0x55b   :  { %8084 = vmatprep.mubr.bf16.mxu1 %v13577_v1  ;;  %7972 = vmatprep.subr.bf16.mxu0 %v9750_v15  ;;  %v9845_v15 = vcombine.low %v4602_v0, %v4610_v3  ;;  %v9942_v0 = vcombine.high %v4698_v58, %v4706_v59  ;;  %v4722_v5 = vld [vmem:[%s15237_s8 + $0x760] sm:$0xff] }
 0x55c   :  { %8054 = vmatprep.subr.bf16.mxu1 %v9752_v17  ;;  %v9864_v17 = vcombine.high %v4619_v12, %v4627_v52 }
 0x55d   :  { %7973 = vmatpush1.bf16.msra.mxu0 %v9749_v20  ;;  %v4635_v20 = vld [vmem:[%s15237_s8 + $0x4a8] sm:$0xff] }
 0x55e   :  { %8055 = vmatpush1.bf16.msra.mxu1 %v9751_v22  ;;  %7974 = vmatprep.subr.bf16.mxu0 %v9766_v13  ;;  %v4643_v22 = vld [vmem:[%s15237_s8 + $0x4e8] sm:$0xff]  ;;  %v9861_v13 = vcombine.low %v4618_v10, %v4626_v11  ;;  %v9958_v10 = vcombine.high %v4714_v4, %v4722_v5 }
 0x55f   :  { %8056 = vmatprep.subr.bf16.mxu1 %v9768_v29  ;;  %v9863_v29 = vcombine.low %v4619_v12, %v4627_v52  ;;  %v9880_v30 = vcombine.high %v4635_v20, %v4643_v22  ;;  %v4730_v12 = vld [vmem:[%s15237_s8 + $0x7a0] sm:$0xff] }
 0x560   :  { %v4738_v52 = vld [vmem:[%s15237_s8 + $0x7e0] sm:$0xff] }
 0x561   :  { %7975 = vmatpush1.bf16.msra.mxu0 %v9765_v33  ;;  %v4651_v33 = vld [vmem:[%s15237_s8 + $0x528] sm:$0xff] }
 0x562   :  { %8057 = vmatpush1.bf16.msra.mxu1 %v9767_v26  ;;  %7976 = vmatprep.subr.bf16.mxu0 %v9782_v36  ;;  %v4659_v26 = vld [vmem:[%s15237_s8 + $0x568] sm:$0xff]  ;;  %v9877_v36 = vcombine.low %v4634_v18, %v4642_v19  ;;  %v9974_v18 = vcombine.high %v4730_v12, %v4738_v52 }
 0x563   :  { %8058 = vmatprep.subr.bf16.mxu1 %v9784_v37  ;;  %v9879_v37 = vcombine.low %v4635_v20, %v4643_v22  ;;  %v9896_v39 = vcombine.high %v4651_v33, %v4659_v26  ;;  %v4746_v20 = vld [vmem:[%s15237_s8 + $0x820] sm:$0xff] }
 0x564   :  { %v4754_v22 = vld [vmem:[%s15237_s8 + $0x860] sm:$0xff] }
 0x565   :  { %7977 = vmatpush1.bf16.msra.mxu0 %v9781_v34  ;;  %v4667_v34 = vld [vmem:[%s15237_s8 + $0x5a8] sm:$0xff] }
 0x566   :  { %8059 = vmatpush1.bf16.msra.mxu1 %v9783_v44  ;;  %7978 = vmatprep.subr.bf16.mxu0 %v9798_v45  ;;  %v4675_v44 = vld [vmem:[%s15237_s8 + $0x5e8] sm:$0xff]  ;;  %v9893_v45 = vcombine.low %v4650_v31, %v4658_v32  ;;  %v9990_v31 = vcombine.high %v4746_v20, %v4754_v22 }
 0x567   :  { %8060 = vmatprep.subr.bf16.mxu1 %v9800_v46  ;;  %v9895_v46 = vcombine.low %v4651_v33, %v4659_v26  ;;  %v9912_v51 = vcombine.high %v4667_v34, %v4675_v44  ;;  %v4762_v33 = vld [vmem:[%s15237_s8 + $0x8a0] sm:$0xff] }
 0x568   :  { %v4770_v26 = vld [vmem:[%s15237_s8 + $0x8e0] sm:$0xff] }
 0x569   :  { %7979 = vmatpush1.bf16.msra.mxu0 %v9797_v54  ;;  %v4683_v54 = vld [vmem:[%s15237_s8 + $0x628] sm:$0xff] }
 0x56a   :  { %8061 = vmatpush1.bf16.msra.mxu1 %v9799_v55  ;;  %7980 = vmatprep.subr.bf16.mxu0 %v9814_v56  ;;  %v4691_v55 = vld [vmem:[%s15237_s8 + $0x668] sm:$0xff]  ;;  %v9909_v56 = vcombine.low %v4666_v40, %v4674_v41  ;;  %v10006_v40 = vcombine.high %v4762_v33, %v4770_v26  ;;  %v4778_v41 = vld [vmem:[%s15237_s8 + $0x920] sm:$0xff] }
 0x56b   :  { %8062 = vmatprep.subr.bf16.mxu1 %v9816_v48  ;;  %v9911_v48 = vcombine.low %v4667_v34, %v4675_v44  ;;  %v9928_v57 = vcombine.high %v4683_v54, %v4691_v55  ;;  %v4786_v34 = vld [vmem:[%s15237_s8 + $0x960] sm:$0xff] }
 0x56d   :  { %7981 = vmatpush1.bf16.msra.mxu0 %v9813_v60  ;;  %v4699_v60 = vld [vmem:[%s15237_s8 + $0x6a8] sm:$0xff] }
 0x56e   :  { %8063 = vmatpush1.bf16.msra.mxu1 %v9815_v61  ;;  %7982 = vmatprep.subr.bf16.mxu0 %v9830_v62  ;;  %v4707_v61 = vld [vmem:[%s15237_s8 + $0x6e8] sm:$0xff]  ;;  %v9925_v62 = vcombine.low %v4682_v53, %v4690_v38  ;;  %v10022_v53 = vcombine.high %v4778_v41, %v4786_v34 }
 0x56f   :  { %8064 = vmatprep.subr.bf16.mxu1 %v9832_v63  ;;  %v9927_v63 = vcombine.low %v4683_v54, %v4691_v55  ;;  %v9944_v3 = vcombine.high %v4699_v60, %v4707_v61  ;;  %v4794_v54 = vld [vmem:[%s15237_s8 + $0x9a0] sm:$0xff] }
 0x570   :  { %v4802_v55 = vld [vmem:[%s15237_s8 + $0x9e0] sm:$0xff] }
 0x571   :  { %7983 = vmatpush1.bf16.msra.mxu0 %v9829_v6  ;;  %v4715_v6 = vld [vmem:[%s15237_s8 + $0x728] sm:$0xff] }
 0x572   :  { %8065 = vmatpush1.bf16.msra.mxu1 %v9831_v43  ;;  %7984 = vmatprep.subr.bf16.mxu0 %v9846_v7  ;;  %v4723_v43 = vld [vmem:[%s15237_s8 + $0x768] sm:$0xff]  ;;  %v9941_v7 = vcombine.low %v4698_v58, %v4706_v59  ;;  %v10038_v58 = vcombine.high %v4794_v54, %v4802_v55 }
 0x573   :  { %8066 = vmatprep.subr.bf16.mxu1 %v9848_v8  ;;  %v9943_v8 = vcombine.low %v4699_v60, %v4707_v61  ;;  %v9960_v11 = vcombine.high %v4715_v6, %v4723_v43  ;;  %v4810_v60 = vld [vmem:[%s15237_s8 + $0xa20] sm:$0xff] }
 0x574   :  { %v4818_v61 = vld [vmem:[%s15237_s8 + $0xa60] sm:$0xff] }
 0x575   :  { %7985 = vmatpush1.bf16.msra.mxu0 %v9845_v15  ;;  %v4731_v15 = vld [vmem:[%s15237_s8 + $0x7a8] sm:$0xff] }
 0x576   :  { %8067 = vmatpush1.bf16.msra.mxu1 %v9847_v16  ;;  %7986 = vmatprep.subr.bf16.mxu0 %v9862_v50  ;;  %v4739_v16 = vld [vmem:[%s15237_s8 + $0x7e8] sm:$0xff]  ;;  %v9957_v50 = vcombine.low %v4714_v4, %v4722_v5  ;;  %v10054_v4 = vcombine.high %v4810_v60, %v4818_v61 }
 0x577   :  { %8068 = vmatprep.subr.bf16.mxu1 %v9864_v17  ;;  %v9959_v17 = vcombine.low %v4715_v6, %v4723_v43  ;;  %v9976_v19 = vcombine.high %v4731_v15, %v4739_v16  ;;  %v4826_v6 = vld [vmem:[%s15237_s8 + $0xaa0] sm:$0xff] }
 0x578   :  { %v4834_v43 = vld [vmem:[%s15237_s8 + $0xae0] sm:$0xff] }
 0x579   :  { %7987 = vmatpush1.bf16.msra.mxu0 %v9861_v13  ;;  %v4747_v13 = vld [vmem:[%s15237_s8 + $0x828] sm:$0xff] }
 0x57a   :  { %8069 = vmatpush1.bf16.msra.mxu1 %v9863_v29  ;;  %7988 = vmatprep.subr.bf16.mxu0 %v9878_v14  ;;  %v4755_v29 = vld [vmem:[%s15237_s8 + $0x868] sm:$0xff]  ;;  %v9973_v14 = vcombine.low %v4730_v12, %v4738_v52  ;;  %v10070_v52 = vcombine.high %v4826_v6, %v4834_v43 }
 0x57b   :  { %8070 = vmatprep.subr.bf16.mxu1 %v9880_v30  ;;  %v9975_v30 = vcombine.low %v4731_v15, %v4739_v16  ;;  %v9992_v32 = vcombine.high %v4747_v13, %v4755_v29  ;;  %v11470_v15 = vmov 1983009808  }
 0x57c   :  { %v8333_v16 = vunpack.c.l.s4 %v11470_v15  ;;  %v4890_v15 = vld [vmem:[%s15237_s8 + $0xca0] sm:$0xff] }
 0x57d   :  { %7989 = vmatpush1.bf16.msra.mxu0 %v9877_v36  ;;  %v9989_v36 = vcombine.low %v4746_v20, %v4754_v22  ;;  %v4843_v22 = vld [vmem:[%s15237_s8 + $0xb28] sm:$0xff] }
 0x57e   :  { %8071 = vmatpush1.bf16.msra.mxu1 %v9879_v37  ;;  %7990 = vmatprep.subr.bf16.mxu0 %v9894_v21  ;;  %v4763_v37 = vld [vmem:[%s15237_s8 + $0x8a8] sm:$0xff] }
 0x57f   :  { %8072 = vmatprep.subr.bf16.mxu1 %v9896_v39  ;;  %v4771_v21 = vld [vmem:[%s15237_s8 + $0x8e8] sm:$0xff]  ;;  %v9991_v39 = vcombine.low %v4747_v13, %v4755_v29 }
 0x580   :  { %v10008_v44 = vcombine.high %v4763_v37, %v4771_v21  ;;  %v4851_v13 = vld [vmem:[%s15237_s8 + $0xb68] sm:$0xff] }
 0x581   :  { %7991 = vmatpush1.bf16.msra.mxu0 %v9893_v45  ;;  %v4779_v45 = vld [vmem:[%s15237_s8 + $0x928] sm:$0xff] }
 0x582   :  { %8073 = vmatpush1.bf16.msra.mxu1 %v9895_v46  ;;  %7992 = vmatprep.subr.bf16.mxu0 %v9910_v47  ;;  %v4787_v46 = vld [vmem:[%s15237_s8 + $0x968] sm:$0xff]  ;;  %v10005_v47 = vcombine.low %v4762_v33, %v4770_v26 }
 0x583   :  { %8074 = vmatprep.subr.bf16.mxu1 %v9912_v51  ;;  %v10007_v51 = vcombine.low %v4763_v37, %v4771_v21  ;;  %v10024_v38 = vcombine.high %v4779_v45, %v4787_v46  ;;  %v10088_v37 = vcombine.high %v4843_v22, %v4851_v13  ;;  %v4858_v21 = vld [vmem:[%s15237_s8 + $0xba0] sm:$0xff] }
 0x585   :  { %7993 = vmatpush1.bf16.msra.mxu0 %v9909_v56  ;;  %v4795_v56 = vld [vmem:[%s15237_s8 + $0x9a8] sm:$0xff] }
 0x586   :  { %8075 = vmatpush1.bf16.msra.mxu1 %v9911_v48  ;;  %7994 = vmatprep.subr.bf16.mxu0 %v9926_v35  ;;  %v4803_v48 = vld [vmem:[%s15237_s8 + $0x9e8] sm:$0xff]  ;;  %v10021_v35 = vcombine.low %v4778_v41, %v4786_v34 }
 0x587   :  { %8076 = vmatprep.subr.bf16.mxu1 %v9928_v57  ;;  %v10023_v57 = vcombine.low %v4779_v45, %v4787_v46  ;;  %v10040_v59 = vcombine.high %v4795_v56, %v4803_v48  ;;  %v4859_v45 = vld [vmem:[%s15237_s8 + $0xba8] sm:$0xff] }
 0x588   :  { %v4867_v46 = vld [vmem:[%s15237_s8 + $0xbe8] sm:$0xff] }
 0x589   :  { %7995 = vmatpush1.bf16.msra.mxu0 %v9925_v62  ;;  %v4811_v62 = vld [vmem:[%s15237_s8 + $0xa28] sm:$0xff] }
 0x58a   :  { %8077 = vmatpush1.bf16.msra.mxu1 %v9927_v63  ;;  %7996 = vmatprep.subr.bf16.mxu0 %v9942_v0  ;;  %v4819_v63 = vld [vmem:[%s15237_s8 + $0xa68] sm:$0xff]  ;;  %v10037_v0 = vcombine.low %v4794_v54, %v4802_v55 }
 0x58b   :  { %8078 = vmatprep.subr.bf16.mxu1 %v9944_v3  ;;  %v10039_v3 = vcombine.low %v4795_v56, %v4803_v48  ;;  %v10056_v5 = vcombine.high %v4811_v62, %v4819_v63  ;;  %v10055_v12 = vcombine.low %v4811_v62, %v4819_v63  ;;  %v10104_v62 = vcombine.high %v4859_v45, %v4867_v46  ;;  %v4874_v63 = vld [vmem:[%s15237_s8 + $0xc20] sm:$0xff] }
 0x58d   :  { %7997 = vmatpush1.bf16.msra.mxu0 %v9941_v7  ;;  %v4827_v7 = vld [vmem:[%s15237_s8 + $0xaa8] sm:$0xff] }
 0x58e   :  { %8079 = vmatpush1.bf16.msra.mxu1 %v9943_v8  ;;  %7998 = vmatprep.subr.bf16.mxu0 %v9958_v10  ;;  %v4835_v8 = vld [vmem:[%s15237_s8 + $0xae8] sm:$0xff]  ;;  %v10053_v10 = vcombine.low %v4810_v60, %v4818_v61 }
 0x58f   :  { %8080 = vmatprep.subr.bf16.mxu1 %v9960_v11  ;;  %v14429_v11 = vld [vmem:[%s15238_s9] sm:$0xff] }
 0x590   :  { %v5013_v20 = vrot.slane %v14429_v11, %v13288_v24  ;;  %v5009_v29 = vrot.slane %v14429_v11, %v13294_v27 }
 0x591   :  { %7999 = vmatpush1.bf16.msra.mxu0 %v9957_v50  ;;  %v10072_v50 = vcombine.high %v4827_v7, %v4835_v8 }
 0x592   :  { %8081 = vmatpush1.bf16.msra.mxu1 %v9959_v17  ;;  %8000 = vmatprep.subr.bf16.mxu0 %v9974_v18  ;;  %v4842_v17 = vld [vmem:[%s15237_s8 + $0xb20] sm:$0xff] }
 0x593   :  { %8082 = vmatprep.subr.bf16.mxu1 %v9976_v19  ;;  %v4850_v18 = vld [vmem:[%s15237_s8 + $0xb60] sm:$0xff]  ;;  %v5005_v19 = vrot.slane %v14429_v11, %v13285_v23 }
 0x594   :  { %v10085_v54 = vcombine.low %v4842_v17, %v4850_v18 }
 0x595   :  { %8001 = vmatpush1.bf16.msra.mxu0 %v9973_v14  ;;  %v5017_v14 = vrot.slane %v14429_v11, %v13297_v28 }
 0x596   :  { %8083 = vmatpush1.bf16.msra.mxu1 %v9975_v30  ;;  %8011 = vmatprep.subr.bf16.mxu0 %v9990_v31  ;;  %v10069_v30 = vcombine.low %v4826_v6, %v4834_v43  ;;  %v10071_v31 = vcombine.low %v4827_v7, %v4835_v8  ;;  %v10103_v7 = vcombine.low %v4859_v45, %v4867_v46  ;;  %v4938_v46 = vld [vmem:[%s15237_s8 + $0xe20] sm:$0xff] }
 0x597   :  { %8093 = vmatprep.subr.bf16.mxu1 %v9992_v32  ;;  %v10086_v32 = vcombine.high %v4842_v17, %v4850_v18  ;;  %v4899_v17 = vld [vmem:[%s15237_s8 + $0xce8] sm:$0xff] }
 0x598   :  { %8003 = vmatmul.mubr.bf16.vlgmr.msra.gmra.mrb[20].mxu0 %v13579_v2 }
 0x599   :  { %8085 = vmatmul.mubr.bf16.vlgmr.msra.gmra.mrb[20].mxu1 %v13579_v2  ;;  %8012 = vmatpush1.bf16.msra.mxu0 %v9989_v36  ;;  %v8334_v36 = vunpack.c.0.s8 %v8333_v16  ;;  %v4898_v16 = vld [vmem:[%s15237_s8 + $0xce0] sm:$0xff] }
 0x59a   :  { %8043 = vmatprep.mubr.bf16.mxu0 %v13595_v9  ;;  %8094 = vmatpush1.bf16.msra.mxu1 %v9991_v39  ;;  %v4866_v39 = vld [vmem:[%s15237_s8 + $0xbe0] sm:$0xff] }
 0x59b   :  { %8125 = vmatprep.mubr.bf16.mxu1 %v13595_v9  ;;  %8013 = vmatprep.subr.bf16.mxu0 %v10006_v40  ;;  %v14464_v60 = vsub.s32 %v8334_v36, %v11676_v42  ;;  %v10101_v43 = vcombine.low %v4858_v21, %v4866_v39 }
 0x59c   :  { %8095 = vmatprep.subr.bf16.mxu1 %v10008_v44 }
 0x59d   :  { %8014 = vmatpush1.bf16.msra.mxu0 %v10005_v47 }
 0x59e   :  { %8096 = vmatpush1.bf16.msra.mxu1 %v10007_v51  ;;  %8015 = vmatprep.subr.bf16.mxu0 %v10022_v53 }
 0x59f   :  { %8097 = vmatprep.subr.bf16.mxu1 %v10024_v38 }
 0x5a1   :  { %8016 = vmatpush1.bf16.msra.mxu0 %v10021_v35 }
 0x5a2   :  { %8098 = vmatpush1.bf16.msra.mxu1 %v10023_v57  ;;  %8017 = vmatprep.subr.bf16.mxu0 %v10038_v58  ;;  %v10087_v57 = vcombine.low %v4843_v22, %v4851_v13  ;;  %v10102_v58 = vcombine.high %v4858_v21, %v4866_v39  ;;  %v10134_v22 = vcombine.high %v4890_v15, %v4898_v16  ;;  %v4930_v21 = vld [vmem:[%s15237_s8 + $0xde0] sm:$0xff]  ;;  %v4923_v39 = vld [vmem:[%s15237_s8 + $0xda8] sm:$0xff] }
 0x5a3   :  { %8099 = vmatprep.subr.bf16.mxu1 %v10040_v59 }
 0x5a5   :  { %8018 = vmatpush1.bf16.msra.mxu0 %v10037_v0  ;;  %v4882_v0 = vld [vmem:[%s15237_s8 + $0xc60] sm:$0xff] }
 0x5a6   :  { %8100 = vmatpush1.bf16.msra.mxu1 %v10039_v3  ;;  %8019 = vmatprep.subr.bf16.mxu0 %v10054_v4  ;;  %v4875_v3 = vld [vmem:[%s15237_s8 + $0xc28] sm:$0xff]  ;;  %v10118_v8 = vcombine.high %v4874_v63, %v4882_v0 }
 0x5a7   :  { %8101 = vmatprep.subr.bf16.mxu1 %v10056_v5  ;;  %v4883_v4 = vld [vmem:[%s15237_s8 + $0xc68] sm:$0xff] }
 0x5a9   :  { %8020 = vmatpush1.bf16.msra.mxu0 %v10053_v10 }
 0x5aa   :  { %8102 = vmatpush1.bf16.msra.mxu1 %v10055_v12  ;;  %8021 = vmatprep.subr.bf16.mxu0 %v10070_v52  ;;  %v10120_v52 = vcombine.high %v4875_v3, %v4883_v4 }
 0x5ab   :  { %v7717_v33 = vpop.f32.mrb[12].mxu0  ;;  %v7799_v26 = vpop.f32.mrb[12].mxu1  ;;  %8103 = vmatprep.subr.bf16.mxu1 %v10072_v50  ;;  %v4891_v50 = vld [vmem:[%s15237_s8 + $0xca8] sm:$0xff] }
 0x5ac   :  { %v10448_v40 = vadd.f32 %v7717_v33, %v5005_v19  ;;  %v10450_v41 = vadd.f32 %v7799_v26, %v5013_v20  ;;  %v7719_v34 = vpop.f32.mrb[13].mxu0  ;;  %v7801_v44 = vpop.f32.mrb[13].mxu1  ;;  %v10117_v19 = vcombine.low %v4874_v63, %v4882_v0  ;;  %v10119_v20 = vcombine.low %v4875_v3, %v4883_v4  ;;  %v4970_v0 = vld [vmem:[%s15237_s8 + $0xf20] sm:$0xff]  ;;  %v4971_v4 = vld [vmem:[%s15237_s8 + $0xf28] sm:$0xff] }
 0x5ad   :  { %v10449_v47 = vadd.f32 %v7719_v34, %v5009_v29  ;;  %v10451_v51 = vadd.f32 %v7801_v44, %v5017_v14  ;;  %v7721_v53 = vpop.f32.mrb[14].mxu0  ;;  %v7803_v38 = vpop.f32.mrb[14].mxu1  ;;  %8022 = vmatpush1.bf16.msra.mxu0 %v10069_v30  ;;  %v10136_v13 = vcombine.high %v4891_v50, %v4899_v17  ;;  %v4906_v29 = vld [vmem:[%s15237_s8 + $0xd20] sm:$0xff]  ;;  %v4907_v30 = vld [vmem:[%s15237_s8 + $0xd28] sm:$0xff]  ;;  %v10135_v33 = vcombine.low %v4891_v50, %v4899_v17 }
 0x5ae   :  { %v8298_v55 = vmax.f32 %v10448_v40, 0.0  ;;  %v8300_v56 = vmax.f32 %v10450_v41, 0.0  ;;  %8104 = vmatpush1.bf16.msra.mxu1 %v10071_v31  ;;  %v7722_v48 = vpop.f32.mrb[15].mxu0  ;;  %v7804_v35 = vpop.f32.mrb[15].mxu1  ;;  %8023 = vmatprep.subr.bf16.mxu0 %v10086_v32  ;;  %v4914_v14 = vld [vmem:[%s15237_s8 + $0xd60] sm:$0xff]  ;;  %v4915_v31 = vld [vmem:[%s15237_s8 + $0xd68] sm:$0xff]  ;;  %v10133_v32 = vcombine.low %v4890_v15, %v4898_v16 }
 0x5af   :  { %v8299_v59 = vmax.f32 %v10449_v47, 0.0  ;;  %v8301_v61 = vmax.f32 %v10451_v51, 0.0  ;;  %8105 = vmatprep.subr.bf16.mxu1 %v10088_v37  ;;  %v10150_v26 = vcombine.high %v4906_v29, %v4914_v14  ;;  %v10152_v36 = vcombine.high %v4907_v30, %v4915_v31  ;;  %v4922_v37 = vld [vmem:[%s15237_s8 + $0xda0] sm:$0xff]  ;;  %v4931_v40 = vld [vmem:[%s15237_s8 + $0xde8] sm:$0xff] }
 0x5b0   :  { %v10149_v41 = vcombine.low %v4906_v29, %v4914_v14  ;;  %v10151_v34 = vcombine.low %v4907_v30, %v4915_v31  ;;  %v10166_v44 = vcombine.high %v4922_v37, %v4930_v21  ;;  %v10168_v45 = vcombine.high %v4923_v39, %v4931_v40  ;;  %v4946_v47 = vld [vmem:[%s15237_s8 + $0xe60] sm:$0xff]  ;;  %v4939_v51 = vld [vmem:[%s15237_s8 + $0xe28] sm:$0xff] }
 0x5b1   :  { %v8330_v5 = vcombine.low %v8298_v55, %v8299_v59  ;;  %v8331_v6 = vcombine.low %v8300_v56, %v8301_v61  ;;  %8024 = vmatpush1.bf16.msra.mxu0 %v10085_v54  ;;  %v4947_v53 = vld [vmem:[%s15237_s8 + $0xe68] sm:$0xff]  ;;  %v10165_v38 = vcombine.low %v4922_v37, %v4930_v21  ;;  %v10167_v54 = vcombine.low %v4923_v39, %v4931_v40  ;;  %v4954_v48 = vld [vmem:[%s15237_s8 + $0xea0] sm:$0xff]  ;;  %v4517_v37 = vld [vmem:[%s15237_s8 + $0xf8] sm:$0xff] }
 0x5b2   :  { %8106 = vmatpush1.bf16.msra.mxu1 %v10087_v57  ;;  %8025 = vmatprep.subr.bf16.mxu0 %v10102_v58  ;;  %v10182_v55 = vcombine.high %v4938_v46, %v4946_v47  ;;  %v10184_v56 = vcombine.high %v4939_v51, %v4947_v53  ;;  %v4962_v35 = vld [vmem:[%s15237_s8 + $0xee0] sm:$0xff]  ;;  %v4955_v57 = vld [vmem:[%s15237_s8 + $0xea8] sm:$0xff]  ;;  %v10181_v59 = vcombine.low %v4938_v46, %v4946_v47  ;;  %v4524_v40 = vld [vmem:[%s15237_s8 + $0x130] sm:$0xff] }
 0x5b3   :  { %v8338_v10 = vrot.slane %v8330_v5, %v14464_v60  ;;  %v8345_v12 = vrot.slane %v8331_v6, %v14464_v60  ;;  %8107 = vmatprep.subr.bf16.mxu1 %v10104_v62  ;;  %v4963_v58 = vld [vmem:[%s15237_s8 + $0xee8] sm:$0xff]  ;;  %v10183_v61 = vcombine.low %v4939_v51, %v4947_v53  ;;  %v10198_v62 = vcombine.high %v4954_v48, %v4962_v35  ;;  %v4978_v3 = vld [vmem:[%s15237_s8 + $0xf60] sm:$0xff] }
 0x5b4   :  { %v10200_v63 = vcombine.high %v4955_v57, %v4963_v58  ;;  %v4979_v5 = vld [vmem:[%s15237_s8 + $0xf68] sm:$0xff]  ;;  %v10197_v6 = vcombine.low %v4954_v48, %v4962_v35  ;;  %v10213_v16 = vcombine.low %v4970_v0, %v4978_v3 }
 0x5b5   :  { %v8346_v18 = vcombine.low %v8338_v10, %v8345_v12  ;;  %8026 = vmatpush1.bf16.msra.mxu0 %v10101_v43  ;;  %v10199_v43 = vcombine.low %v4955_v57, %v4963_v58  ;;  %v4986_v10 = vld [vmem:[%s15237_s8 + $0xfa0] sm:$0xff]  ;;  %v4995_v15 = vld [vmem:[%s15237_s8 + $0xfe8] sm:$0xff]  ;;  %v10215_v50 = vcombine.low %v4971_v4, %v4979_v5  ;;  %v4556_v58 = vld [vmem:[%s15237_s8 + $0x230] sm:$0xff] }
 0x5b6   :  { %8108 = vmatpush1.bf16.msra.mxu1 %v10103_v7  ;;  %8027 = vmatprep.subr.bf16.mxu0 %v10118_v8  ;;  %v10214_v7 = vcombine.high %v4970_v0, %v4978_v3  ;;  %v10216_v8 = vcombine.high %v4971_v4, %v4979_v5  ;;  %v4994_v12 = vld [vmem:[%s15237_s8 + $0xfe0] sm:$0xff]  ;;  %v4572_v5 = vld [vmem:[%s15237_s8 + $0x2b0] sm:$0xff] }
 0x5b7   :  { %8402 = vst [vmem:[%s15244_s15] sm:$0xff] %v8346_v18  ;;  %8109 = vmatprep.subr.bf16.mxu1 %v10120_v52  ;;  %v4987_v52 = vld [vmem:[%s15237_s8 + $0xfa8] sm:$0xff]  ;;  %v10230_v17 = vcombine.high %v4986_v10, %v4994_v12  ;;  %v10229_v29 = vcombine.low %v4986_v10, %v4994_v12 }
 0x5b8   :  { %v10232_v18 = vcombine.high %v4987_v52, %v4995_v15  ;;  %v10231_v14 = vcombine.low %v4987_v52, %v4995_v15  ;;  %v4588_v15 = vld [vmem:[%s15237_s8 + $0x330] sm:$0xff] }
 0x5b9   :  { %8028 = vmatpush1.bf16.msra.mxu0 %v10117_v19  ;;  %v4492_v19 = vld [vmem:[%s15237_s8 + $0x30] sm:$0xff] }
 0x5ba   :  { %8110 = vmatpush1.bf16.msra.mxu1 %v10119_v20  ;;  %8029 = vmatprep.subr.bf16.mxu0 %v10134_v22  ;;  %v4500_v20 = vld [vmem:[%s15237_s8 + $0x70] sm:$0xff]  ;;  %v4493_v22 = vld [vmem:[%s15237_s8 + $0x38] sm:$0xff] }
 0x5bb   :  { %8111 = vmatprep.subr.bf16.mxu1 %v10136_v13  ;;  %v4501_v13 = vld [vmem:[%s15237_s8 + $0x78] sm:$0xff]  ;;  %v9738_v30 = vcombine.high %v4492_v19, %v4500_v20 }
 0x5bc   :  { %v9740_v31 = vcombine.high %v4493_v22, %v4501_v13  ;;  %v9739_v21 = vcombine.low %v4493_v22, %v4501_v13  ;;  %v4604_v13 = vld [vmem:[%s15237_s8 + $0x3b0] sm:$0xff] }
 0x5bd   :  { %8030 = vmatpush1.bf16.msra.mxu0 %v10133_v32  ;;  %v4508_v32 = vld [vmem:[%s15237_s8 + $0xb0] sm:$0xff] }
 0x5be   :  { %8112 = vmatpush1.bf16.msra.mxu1 %v10135_v33  ;;  %8031 = vmatprep.subr.bf16.mxu0 %v10150_v26  ;;  %v4516_v33 = vld [vmem:[%s15237_s8 + $0xf0] sm:$0xff]  ;;  %v9737_v26 = vcombine.low %v4492_v19, %v4500_v20 }
 0x5bf   :  { %8113 = vmatprep.subr.bf16.mxu1 %v10152_v36  ;;  %v4509_v36 = vld [vmem:[%s15237_s8 + $0xb8] sm:$0xff]  ;;  %v9754_v39 = vcombine.high %v4508_v32, %v4516_v33  ;;  %v9753_v46 = vcombine.low %v4508_v32, %v4516_v33 }
 0x5c0   :  { %v9755_v47 = vcombine.low %v4509_v36, %v4517_v37 }
 0x5c1   :  { %8032 = vmatpush1.bf16.msra.mxu0 %v10149_v41  ;;  %v4532_v41 = vld [vmem:[%s15237_s8 + $0x170] sm:$0xff] }
 0x5c2   :  { %8114 = vmatpush1.bf16.msra.mxu1 %v10151_v34  ;;  %8033 = vmatprep.subr.bf16.mxu0 %v10166_v44  ;;  %v9756_v34 = vcombine.high %v4509_v36, %v4517_v37  ;;  %v4525_v44 = vld [vmem:[%s15237_s8 + $0x138] sm:$0xff]  ;;  %v9770_v51 = vcombine.high %v4524_v40, %v4532_v41  ;;  %v4620_v36 = vld [vmem:[%s15237_s8 + $0x430] sm:$0xff] }
 0x5c3   :  { %8115 = vmatprep.subr.bf16.mxu1 %v10168_v45  ;;  %v4533_v45 = vld [vmem:[%s15237_s8 + $0x178] sm:$0xff]  ;;  %v4628_v37 = vld [vmem:[%s15237_s8 + $0x470] sm:$0xff] }
 0x5c4   :  { %v9772_v53 = vcombine.high %v4525_v44, %v4533_v45  ;;  %v9771_v48 = vcombine.low %v4525_v44, %v4533_v45  ;;  %v4636_v45 = vld [vmem:[%s15237_s8 + $0x4b0] sm:$0xff] }
 0x5c5   :  { %8034 = vmatpush1.bf16.msra.mxu0 %v10165_v38  ;;  %v4540_v38 = vld [vmem:[%s15237_s8 + $0x1b0] sm:$0xff] }
 0x5c6   :  { %8116 = vmatpush1.bf16.msra.mxu1 %v10167_v54  ;;  %8035 = vmatprep.subr.bf16.mxu0 %v10182_v55  ;;  %v4548_v54 = vld [vmem:[%s15237_s8 + $0x1f0] sm:$0xff]  ;;  %v4541_v55 = vld [vmem:[%s15237_s8 + $0x1b8] sm:$0xff] }
 0x5c7   :  { %8117 = vmatprep.subr.bf16.mxu1 %v10184_v56  ;;  %v4549_v56 = vld [vmem:[%s15237_s8 + $0x1f8] sm:$0xff]  ;;  %v9786_v35 = vcombine.high %v4540_v38, %v4548_v54 }
 0x5c8   :  { %v9788_v57 = vcombine.high %v4541_v55, %v4549_v56  ;;  %v9787_v0 = vcombine.low %v4541_v55, %v4549_v56  ;;  %v4652_v56 = vld [vmem:[%s15237_s8 + $0x530] sm:$0xff] }
 0x5c9   :  { %8036 = vmatpush1.bf16.msra.mxu0 %v10181_v59  ;;  %v4564_v59 = vld [vmem:[%s15237_s8 + $0x270] sm:$0xff] }
 0x5ca   :  { %8118 = vmatpush1.bf16.msra.mxu1 %v10183_v61  ;;  %8037 = vmatprep.subr.bf16.mxu0 %v10198_v62  ;;  %v4557_v61 = vld [vmem:[%s15237_s8 + $0x238] sm:$0xff]  ;;  %v9802_v3 = vcombine.high %v4556_v58, %v4564_v59 }
 0x5cb   :  { %8119 = vmatprep.subr.bf16.mxu1 %v10200_v63  ;;  %v4565_v62 = vld [vmem:[%s15237_s8 + $0x278] sm:$0xff]  ;;  %v9785_v63 = vcombine.low %v4540_v38, %v4548_v54 }
 0x5cc   :  { %v9804_v4 = vcombine.high %v4557_v61, %v4565_v62  ;;  %v9803_v10 = vcombine.low %v4557_v61, %v4565_v62  ;;  %v4668_v62 = vld [vmem:[%s15237_s8 + $0x5b0] sm:$0xff] }
 0x5cd   :  { %8038 = vmatpush1.bf16.msra.mxu0 %v10197_v6  ;;  %v4580_v6 = vld [vmem:[%s15237_s8 + $0x2f0] sm:$0xff] }
 0x5ce   :  { %8120 = vmatpush1.bf16.msra.mxu1 %v10199_v43  ;;  %8039 = vmatprep.subr.bf16.mxu0 %v10214_v7  ;;  %v4573_v43 = vld [vmem:[%s15237_s8 + $0x2b8] sm:$0xff]  ;;  %v9818_v12 = vcombine.high %v4572_v5, %v4580_v6 }
 0x5cf   :  { %8121 = vmatprep.subr.bf16.mxu1 %v10216_v8  ;;  %v4581_v7 = vld [vmem:[%s15237_s8 + $0x2f8] sm:$0xff]  ;;  %v9801_v8 = vcombine.low %v4556_v58, %v4564_v59 }
 0x5d0   :  { %v9820_v52 = vcombine.high %v4573_v43, %v4581_v7  ;;  %v9819_v19 = vcombine.low %v4573_v43, %v4581_v7  ;;  %v4684_v7 = vld [vmem:[%s15237_s8 + $0x630] sm:$0xff] }
 0x5d1   :  { %8040 = vmatpush1.bf16.msra.mxu0 %v10213_v16  ;;  %v4596_v16 = vld [vmem:[%s15237_s8 + $0x370] sm:$0xff] }
 0x5d2   :  { %8122 = vmatpush1.bf16.msra.mxu1 %v10215_v50  ;;  %8041 = vmatprep.subr.bf16.mxu0 %v10230_v17  ;;  %v4589_v50 = vld [vmem:[%s15237_s8 + $0x338] sm:$0xff]  ;;  %v9834_v20 = vcombine.high %v4588_v15, %v4596_v16 }
 0x5d3   :  { %8123 = vmatprep.subr.bf16.mxu1 %v10232_v18  ;;  %v4597_v17 = vld [vmem:[%s15237_s8 + $0x378] sm:$0xff]  ;;  %v9817_v18 = vcombine.low %v4572_v5, %v4580_v6 }
 0x5d4   :  { %v9836_v22 = vcombine.high %v4589_v50, %v4597_v17  ;;  %v9835_v32 = vcombine.low %v4589_v50, %v4597_v17  ;;  %v4700_v17 = vld [vmem:[%s15237_s8 + $0x6b0] sm:$0xff] }
 0x5d5   :  { %8042 = vmatpush1.bf16.msra.mxu0 %v10229_v29  ;;  %v4612_v29 = vld [vmem:[%s15237_s8 + $0x3f0] sm:$0xff] }
 0x5d6   :  { %8124 = vmatpush1.bf16.msra.mxu1 %v10231_v14  ;;  %8134 = vmatprep.subr.bf16.mxu0 %v9738_v30  ;;  %v4605_v14 = vld [vmem:[%s15237_s8 + $0x3b8] sm:$0xff]  ;;  %v9850_v33 = vcombine.high %v4604_v13, %v4612_v29 }
 0x5d7   :  { %8216 = vmatprep.subr.bf16.mxu1 %v9740_v31  ;;  %v4613_v30 = vld [vmem:[%s15237_s8 + $0x3f8] sm:$0xff]  ;;  %v9833_v31 = vcombine.low %v4588_v15, %v4596_v16 }
 0x5d8   :  { %8044 = vmatmul.mubr.bf16.vlgmr.msra.gmra.mrb[20].mxu0 %v13784_v25 }
 0x5d9   :  { %8126 = vmatmul.mubr.bf16.vlgmr.msra.gmra.mrb[20].mxu1 %v13784_v25  ;;  %8135 = vmatpush1.bf16.msra.mxu0 %v9737_v26  ;;  %v9852_v26 = vcombine.high %v4605_v14, %v4613_v30 }
 0x5da   :  { %8166 = vmatprep.mubr.bf16.mxu0 %v13577_v1  ;;  %8217 = vmatpush1.bf16.msra.mxu1 %v9739_v21  ;;  %v4621_v21 = vld [vmem:[%s15237_s8 + $0x438] sm:$0xff] }
 0x5db   :  { %8248 = vmatprep.mubr.bf16.mxu1 %v13577_v1  ;;  %8136 = vmatprep.subr.bf16.mxu0 %v9754_v39  ;;  %v9769_v1 = vcombine.low %v4524_v40, %v4532_v41  ;;  %v4629_v39 = vld [vmem:[%s15237_s8 + $0x478] sm:$0xff]  ;;  %v9849_v40 = vcombine.low %v4604_v13, %v4612_v29  ;;  %v9851_v41 = vcombine.low %v4605_v14, %v4613_v30  ;;  %v4716_v30 = vld [vmem:[%s15237_s8 + $0x730] sm:$0xff] }
 0x5dc   :  { %8218 = vmatprep.subr.bf16.mxu1 %v9756_v34  ;;  %v9866_v34 = vcombine.high %v4620_v36, %v4628_v37  ;;  %v9868_v44 = vcombine.high %v4621_v21, %v4629_v39  ;;  %v9867_v38 = vcombine.low %v4621_v21, %v4629_v39  ;;  %v4732_v39 = vld [vmem:[%s15237_s8 + $0x7b0] sm:$0xff] }
 0x5dd   :  { %8137 = vmatpush1.bf16.msra.mxu0 %v9753_v46  ;;  %v4644_v46 = vld [vmem:[%s15237_s8 + $0x4f0] sm:$0xff] }
 0x5de   :  { %8219 = vmatpush1.bf16.msra.mxu1 %v9755_v47  ;;  %8138 = vmatprep.subr.bf16.mxu0 %v9770_v51  ;;  %v4637_v47 = vld [vmem:[%s15237_s8 + $0x4b8] sm:$0xff]  ;;  %v9882_v54 = vcombine.high %v4636_v45, %v4644_v46 }
 0x5df   :  { %8220 = vmatprep.subr.bf16.mxu1 %v9772_v53  ;;  %v4645_v51 = vld [vmem:[%s15237_s8 + $0x4f8] sm:$0xff]  ;;  %v9865_v53 = vcombine.low %v4620_v36, %v4628_v37 }
 0x5e0   :  { %v9884_v55 = vcombine.high %v4637_v47, %v4645_v51  ;;  %v9883_v58 = vcombine.low %v4637_v47, %v4645_v51  ;;  %v4748_v51 = vld [vmem:[%s15237_s8 + $0x830] sm:$0xff] }
 0x5e1   :  { %8139 = vmatpush1.bf16.msra.mxu0 %v9769_v1  ;;  %v4660_v1 = vld [vmem:[%s15237_s8 + $0x570] sm:$0xff] }
 0x5e2   :  { %8221 = vmatpush1.bf16.msra.mxu1 %v9771_v48  ;;  %8140 = vmatprep.subr.bf16.mxu0 %v9786_v35  ;;  %v4653_v48 = vld [vmem:[%s15237_s8 + $0x538] sm:$0xff]  ;;  %v9898_v59 = vcombine.high %v4652_v56, %v4660_v1 }
 0x5e3   :  { %8222 = vmatprep.subr.bf16.mxu1 %v9788_v57  ;;  %v4661_v35 = vld [vmem:[%s15237_s8 + $0x578] sm:$0xff]  ;;  %v9881_v57 = vcombine.low %v4636_v45, %v4644_v46 }
 0x5e4   :  { %v9900_v61 = vcombine.high %v4653_v48, %v4661_v35  ;;  %v9899_v5 = vcombine.low %v4653_v48, %v4661_v35  ;;  %v4764_v35 = vld [vmem:[%s15237_s8 + $0x8b0] sm:$0xff] }
 0x5e5   :  { %8141 = vmatpush1.bf16.msra.mxu0 %v9785_v63  ;;  %v4676_v63 = vld [vmem:[%s15237_s8 + $0x5f0] sm:$0xff] }
 0x5e6   :  { %8223 = vmatpush1.bf16.msra.mxu1 %v9787_v0  ;;  %8142 = vmatprep.subr.bf16.mxu0 %v9802_v3  ;;  %v4669_v0 = vld [vmem:[%s15237_s8 + $0x5b8] sm:$0xff]  ;;  %v9914_v6 = vcombine.high %v4668_v62, %v4676_v63 }
 0x5e7   :  { %8224 = vmatprep.subr.bf16.mxu1 %v9804_v4  ;;  %v4677_v3 = vld [vmem:[%s15237_s8 + $0x5f8] sm:$0xff]  ;;  %v9897_v4 = vcombine.low %v4652_v56, %v4660_v1 }
 0x5e8   :  { %v9916_v43 = vcombine.high %v4669_v0, %v4677_v3  ;;  %v9915_v15 = vcombine.low %v4669_v0, %v4677_v3  ;;  %v4780_v0 = vld [vmem:[%s15237_s8 + $0x930] sm:$0xff] }
 0x5e9   :  { %8143 = vmatpush1.bf16.msra.mxu0 %v9801_v8  ;;  %v4692_v8 = vld [vmem:[%s15237_s8 + $0x670] sm:$0xff] }
 0x5ea   :  { %8225 = vmatpush1.bf16.msra.mxu1 %v9803_v10  ;;  %8144 = vmatprep.subr.bf16.mxu0 %v9818_v12  ;;  %v4685_v10 = vld [vmem:[%s15237_s8 + $0x638] sm:$0xff]  ;;  %v9930_v16 = vcombine.high %v4684_v7, %v4692_v8  ;;  %v4788_v3 = vld [vmem:[%s15237_s8 + $0x970] sm:$0xff] }
 0x5eb   :  { %8226 = vmatprep.subr.bf16.mxu1 %v9820_v52  ;;  %v4693_v12 = vld [vmem:[%s15237_s8 + $0x678] sm:$0xff]  ;;  %v9913_v52 = vcombine.low %v4668_v62, %v4676_v63 }
 0x5ec   :  { %v9932_v50 = vcombine.high %v4685_v10, %v4693_v12  ;;  %v9931_v13 = vcombine.low %v4685_v10, %v4693_v12  ;;  %v4796_v12 = vld [vmem:[%s15237_s8 + $0x9b0] sm:$0xff] }
 0x5ed   :  { %8145 = vmatpush1.bf16.msra.mxu0 %v9817_v18  ;;  %v4708_v18 = vld [vmem:[%s15237_s8 + $0x6f0] sm:$0xff] }
 0x5ee   :  { %8227 = vmatpush1.bf16.msra.mxu1 %v9819_v19  ;;  %8146 = vmatprep.subr.bf16.mxu0 %v9834_v20  ;;  %v4701_v19 = vld [vmem:[%s15237_s8 + $0x6b8] sm:$0xff]  ;;  %v9946_v29 = vcombine.high %v4700_v17, %v4708_v18 }
 0x5ef   :  { %8228 = vmatprep.subr.bf16.mxu1 %v9836_v22  ;;  %v4709_v20 = vld [vmem:[%s15237_s8 + $0x6f8] sm:$0xff]  ;;  %v9929_v22 = vcombine.low %v4684_v7, %v4692_v8  ;;  %v10026_v8 = vcombine.high %v4780_v0, %v4788_v3 }
 0x5f0   :  { %v9948_v14 = vcombine.high %v4701_v19, %v4709_v20  ;;  %v9947_v36 = vcombine.low %v4701_v19, %v4709_v20  ;;  %v4820_v19 = vld [vmem:[%s15237_s8 + $0xa70] sm:$0xff]  ;;  %v4813_v20 = vld [vmem:[%s15237_s8 + $0xa38] sm:$0xff] }
 0x5f1   :  { %8147 = vmatpush1.bf16.msra.mxu0 %v9833_v31  ;;  %v4724_v31 = vld [vmem:[%s15237_s8 + $0x770] sm:$0xff] }
 0x5f2   :  { %8229 = vmatpush1.bf16.msra.mxu1 %v9835_v32  ;;  %8148 = vmatprep.subr.bf16.mxu0 %v9850_v33  ;;  %v4717_v32 = vld [vmem:[%s15237_s8 + $0x738] sm:$0xff]  ;;  %v9962_v37 = vcombine.high %v4716_v30, %v4724_v31 }
 0x5f3   :  { %8230 = vmatprep.subr.bf16.mxu1 %v9852_v26  ;;  %v4725_v33 = vld [vmem:[%s15237_s8 + $0x778] sm:$0xff]  ;;  %v9945_v26 = vcombine.low %v4700_v17, %v4708_v18  ;;  %v4812_v18 = vld [vmem:[%s15237_s8 + $0xa30] sm:$0xff] }
 0x5f4   :  { %v9964_v21 = vcombine.high %v4717_v32, %v4725_v33  ;;  %v9963_v45 = vcombine.low %v4717_v32, %v4725_v33  ;;  %v4836_v32 = vld [vmem:[%s15237_s8 + $0xaf0] sm:$0xff]  ;;  %v5020_v33 = vsub.s32 4, %v11676_v42 }
 0x5f5   :  { %8149 = vmatpush1.bf16.msra.mxu0 %v9849_v40  ;;  %v4740_v40 = vld [vmem:[%s15237_s8 + $0x7f0] sm:$0xff] }
 0x5f6   :  { %8231 = vmatpush1.bf16.msra.mxu1 %v9851_v41  ;;  %8150 = vmatprep.subr.bf16.mxu0 %v9866_v34  ;;  %v4733_v41 = vld [vmem:[%s15237_s8 + $0x7b8] sm:$0xff]  ;;  %v9978_v46 = vcombine.high %v4732_v39, %v4740_v40 }
 0x5f7   :  { %8232 = vmatprep.subr.bf16.mxu1 %v9868_v44  ;;  %v4741_v34 = vld [vmem:[%s15237_s8 + $0x7f8] sm:$0xff]  ;;  %v9961_v44 = vcombine.low %v4716_v30, %v4724_v31  ;;  %v4828_v31 = vld [vmem:[%s15237_s8 + $0xab0] sm:$0xff] }
 0x5f8   :  { %v9980_v47 = vcombine.high %v4733_v41, %v4741_v34  ;;  %v9979_v56 = vcombine.low %v4733_v41, %v4741_v34  ;;  %v5032_v41 = vsub.s32 7, %v11676_v42  ;;  %v10074_v34 = vcombine.high %v4828_v31, %v4836_v32 }
 0x5f9   :  { %8151 = vmatpush1.bf16.msra.mxu0 %v9865_v53  ;;  %v4756_v53 = vld [vmem:[%s15237_s8 + $0x870] sm:$0xff] }
 0x5fa   :  { %8233 = vmatpush1.bf16.msra.mxu1 %v9867_v38  ;;  %8152 = vmatprep.subr.bf16.mxu0 %v9882_v54  ;;  %v4749_v38 = vld [vmem:[%s15237_s8 + $0x838] sm:$0xff]  ;;  %v9994_v1 = vcombine.high %v4748_v51, %v4756_v53 }
 0x5fb   :  { %8234 = vmatprep.subr.bf16.mxu1 %v9884_v55  ;;  %v4757_v54 = vld [vmem:[%s15237_s8 + $0x878] sm:$0xff]  ;;  %v9977_v55 = vcombine.low %v4732_v39, %v4740_v40  ;;  %v5024_v39 = vsub.s32 5, %v11676_v42 }
 0x5fc   :  { %v9996_v48 = vcombine.high %v4749_v38, %v4757_v54  ;;  %v9995_v62 = vcombine.low %v4749_v38, %v4757_v54 }
 0x5fd   :  { %8153 = vmatpush1.bf16.msra.mxu0 %v9881_v57  ;;  %v4772_v57 = vld [vmem:[%s15237_s8 + $0x8f0] sm:$0xff]  ;;  %v5025_v54 = vrot.slane %v14429_v11, %v5024_v39 }
 0x5fe   :  { %8235 = vmatpush1.bf16.msra.mxu1 %v9883_v58  ;;  %8154 = vmatprep.subr.bf16.mxu0 %v9898_v59  ;;  %v9993_v58 = vcombine.low %v4748_v51, %v4756_v53  ;;  %v4765_v59 = vld [vmem:[%s15237_s8 + $0x8b8] sm:$0xff]  ;;  %v10010_v63 = vcombine.high %v4764_v35, %v4772_v57 }
 0x5ff   :  { %8236 = vmatprep.subr.bf16.mxu1 %v9900_v61  ;;  %v4773_v61 = vld [vmem:[%s15237_s8 + $0x8f8] sm:$0xff] }
 0x600   :  { %v10011_v7 = vcombine.low %v4765_v59, %v4773_v61  ;;  %v4845_v51 = vld [vmem:[%s15237_s8 + $0xb38] sm:$0xff] }
 0x601   :  { %8155 = vmatpush1.bf16.msra.mxu0 %v9897_v4  ;;  %v10012_v4 = vcombine.high %v4765_v59, %v4773_v61  ;;  %v4853_v53 = vld [vmem:[%s15237_s8 + $0xb78] sm:$0xff]  ;;  %v4868_v59 = vld [vmem:[%s15237_s8 + $0xbf0] sm:$0xff] }
 0x602   :  { %8237 = vmatpush1.bf16.msra.mxu1 %v9899_v5  ;;  %8156 = vmatprep.subr.bf16.mxu0 %v9914_v6  ;;  %v4781_v5 = vld [vmem:[%s15237_s8 + $0x938] sm:$0xff] }
 0x603   :  { %8238 = vmatprep.subr.bf16.mxu1 %v9916_v43  ;;  %v4789_v6 = vld [vmem:[%s15237_s8 + $0x978] sm:$0xff]  ;;  %v10009_v43 = vcombine.low %v4764_v35, %v4772_v57  ;;  %v10092_v57 = vcombine.high %v4845_v51, %v4853_v53 }
 0x604   :  { %v10028_v10 = vcombine.high %v4781_v5, %v4789_v6 }
 0x605   :  { %8157 = vmatpush1.bf16.msra.mxu0 %v9913_v52  ;;  %v4804_v52 = vld [vmem:[%s15237_s8 + $0x9f0] sm:$0xff] }
 0x606   :  { %8239 = vmatpush1.bf16.msra.mxu1 %v9915_v15  ;;  %8158 = vmatprep.subr.bf16.mxu0 %v9930_v16  ;;  %v4805_v15 = vld [vmem:[%s15237_s8 + $0x9f8] sm:$0xff]  ;;  %v10027_v16 = vcombine.low %v4781_v5, %v4789_v6 }
 0x607   :  { %8240 = vmatprep.subr.bf16.mxu1 %v9932_v50  ;;  %v10042_v50 = vcombine.high %v4796_v12, %v4804_v52 }
 0x609   :  { %8159 = vmatpush1.bf16.msra.mxu0 %v9929_v22  ;;  %v4821_v22 = vld [vmem:[%s15237_s8 + $0xa78] sm:$0xff] }
 0x60a   :  { %8241 = vmatpush1.bf16.msra.mxu1 %v9931_v13  ;;  %8160 = vmatprep.subr.bf16.mxu0 %v9946_v29  ;;  %v10041_v13 = vcombine.low %v4796_v12, %v4804_v52  ;;  %v10060_v30 = vcombine.high %v4813_v20, %v4821_v22  ;;  %v10059_v40 = vcombine.low %v4813_v20, %v4821_v22  ;;  %v4877_v20 = vld [vmem:[%s15237_s8 + $0xc38] sm:$0xff] }
 0x60b   :  { %8242 = vmatprep.subr.bf16.mxu1 %v9948_v14  ;;  %v10058_v14 = vcombine.high %v4812_v18, %v4820_v19  ;;  %v10091_v52 = vcombine.low %v4845_v51, %v4853_v53  ;;  %v4885_v22 = vld [vmem:[%s15237_s8 + $0xc78] sm:$0xff] }
 0x60d   :  { %8161 = vmatpush1.bf16.msra.mxu0 %v9945_v26  ;;  %v4829_v26 = vld [vmem:[%s15237_s8 + $0xab8] sm:$0xff] }
 0x60e   :  { %8243 = vmatpush1.bf16.msra.mxu1 %v9947_v36  ;;  %8162 = vmatprep.subr.bf16.mxu0 %v9962_v37  ;;  %v4837_v36 = vld [vmem:[%s15237_s8 + $0xaf8] sm:$0xff]  ;;  %v10057_v37 = vcombine.low %v4812_v18, %v4820_v19  ;;  %v4884_v18 = vld [vmem:[%s15237_s8 + $0xc70] sm:$0xff] }
 0x60f   :  { %8244 = vmatprep.subr.bf16.mxu1 %v9964_v21  ;;  %v5028_v21 = vsub.s32 6, %v11676_v42 }
 0x611   :  { %8163 = vmatpush1.bf16.msra.mxu0 %v9961_v44  ;;  %v10076_v44 = vcombine.high %v4829_v26, %v4837_v36  ;;  %v5029_v38 = vrot.slane %v14429_v11, %v5028_v21 }
 0x612   :  { %8245 = vmatpush1.bf16.msra.mxu1 %v9963_v45  ;;  %8164 = vmatprep.subr.bf16.mxu0 %v9978_v46  ;;  %v4844_v45 = vld [vmem:[%s15237_s8 + $0xb30] sm:$0xff] }
 0x613   :  { %8246 = vmatprep.subr.bf16.mxu1 %v9980_v47  ;;  %v4852_v46 = vld [vmem:[%s15237_s8 + $0xb70] sm:$0xff]  ;;  %v5021_v47 = vrot.slane %v14429_v11, %v5020_v33 }
 0x615   :  { %8165 = vmatpush1.bf16.msra.mxu0 %v9977_v55  ;;  %v10073_v55 = vcombine.low %v4828_v31, %v4836_v32 }
 0x616   :  { %8247 = vmatpush1.bf16.msra.mxu1 %v9979_v56  ;;  %8175 = vmatprep.subr.bf16.mxu0 %v9994_v1  ;;  %v5033_v56 = vrot.slane %v14429_v11, %v5032_v41  ;;  %v10075_v1 = vcombine.low %v4829_v26, %v4837_v36  ;;  %v4861_v11 = vld [vmem:[%s15237_s8 + $0xbb8] sm:$0xff]  ;;  %v10124_v26 = vcombine.high %v4877_v20, %v4885_v22  ;;  %v4892_v36 = vld [vmem:[%s15237_s8 + $0xcb0] sm:$0xff] }
 0x617   :  { %8257 = vmatprep.subr.bf16.mxu1 %v9996_v48  ;;  %v10090_v48 = vcombine.high %v4844_v45, %v4852_v46 }
 0x618   :  { %8167 = vmatmul.mubr.bf16.vlgmr.msra.gmra.mrb[24].mxu0 %v13579_v2 }
 0x619   :  { %8249 = vmatmul.mubr.bf16.vlgmr.msra.gmra.mrb[24].mxu1 %v13579_v2  ;;  %8176 = vmatpush1.bf16.msra.mxu0 %v9993_v58  ;;  %v4797_v2 = vld [vmem:[%s15237_s8 + $0x9b8] sm:$0xff]  ;;  %v4860_v58 = vld [vmem:[%s15237_s8 + $0xbb0] sm:$0xff] }
 0x61a   :  { %8207 = vmatprep.mubr.bf16.mxu0 %v13595_v9  ;;  %8258 = vmatpush1.bf16.msra.mxu1 %v9995_v62  ;;  %v10044_v17 = vcombine.high %v4797_v2, %v4805_v15  ;;  %v10043_v29 = vcombine.low %v4797_v2, %v4805_v15  ;;  %v10106_v2 = vcombine.high %v4860_v58, %v4868_v59 }
 0x61b   :  { %8289 = vmatprep.mubr.bf16.mxu1 %v13595_v9  ;;  %8177 = vmatprep.subr.bf16.mxu0 %v10010_v63  ;;  %v10025_v9 = vcombine.low %v4780_v0, %v4788_v3  ;;  %v4869_v0 = vld [vmem:[%s15237_s8 + $0xbf8] sm:$0xff] }
 0x61c   :  { %8259 = vmatprep.subr.bf16.mxu1 %v10012_v4 }
 0x61d   :  { %8178 = vmatpush1.bf16.msra.mxu0 %v10009_v43  ;;  %v10089_v43 = vcombine.low %v4844_v45, %v4852_v46 }
 0x61e   :  { %8260 = vmatpush1.bf16.msra.mxu1 %v10011_v7  ;;  %8179 = vmatprep.subr.bf16.mxu0 %v10026_v8 }
 0x61f   :  { %8261 = vmatprep.subr.bf16.mxu1 %v10028_v10 }
 0x621   :  { %8180 = vmatpush1.bf16.msra.mxu0 %v10025_v9 }
 0x622   :  { %8262 = vmatpush1.bf16.msra.mxu1 %v10027_v16  ;;  %8181 = vmatprep.subr.bf16.mxu0 %v10042_v50  ;;  %v10108_v50 = vcombine.high %v4861_v11, %v4869_v0 }
 0x623   :  { %8263 = vmatprep.subr.bf16.mxu1 %v10044_v17  ;;  %v4876_v17 = vld [vmem:[%s15237_s8 + $0xc30] sm:$0xff] }
 0x624   :  { %v10122_v31 = vcombine.high %v4876_v17, %v4884_v18  ;;  %v10121_v45 = vcombine.low %v4876_v17, %v4884_v18 }
 0x625   :  { %8182 = vmatpush1.bf16.msra.mxu0 %v10041_v13 }
 0x626   :  { %8264 = vmatpush1.bf16.msra.mxu1 %v10043_v29  ;;  %8183 = vmatprep.subr.bf16.mxu0 %v10058_v14  ;;  %v10105_v29 = vcombine.low %v4860_v58, %v4868_v59  ;;  %v4924_v58 = vld [vmem:[%s15237_s8 + $0xdb0] sm:$0xff] }
 0x627   :  { %8265 = vmatprep.subr.bf16.mxu1 %v10060_v30  ;;  %v10107_v30 = vcombine.low %v4861_v11, %v4869_v0  ;;  %v4932_v59 = vld [vmem:[%s15237_s8 + $0xdf0] sm:$0xff] }
 0x628   :  { %v10170_v0 = vcombine.high %v4924_v58, %v4932_v59 }
 0x629   :  { %8184 = vmatpush1.bf16.msra.mxu0 %v10057_v37  ;;  %v4900_v37 = vld [vmem:[%s15237_s8 + $0xcf0] sm:$0xff] }
 0x62a   :  { %8266 = vmatpush1.bf16.msra.mxu1 %v10059_v40  ;;  %8185 = vmatprep.subr.bf16.mxu0 %v10074_v34  ;;  %v4893_v34 = vld [vmem:[%s15237_s8 + $0xcb8] sm:$0xff]  ;;  %v10138_v51 = vcombine.high %v4892_v36, %v4900_v37 }
 0x62b   :  { %v7881_v35 = vpop.f32.mrb[16].mxu0  ;;  %8267 = vmatprep.subr.bf16.mxu1 %v10076_v44  ;;  %v4901_v44 = vld [vmem:[%s15237_s8 + $0xcf8] sm:$0xff] }
 0x62c   :  { %v10452_v61 = vadd.f32 %v7881_v35, %v5021_v47  ;;  %v7963_v62 = vpop.f32.mrb[16].mxu1  ;;  %v7883_v63 = vpop.f32.mrb[17].mxu0  ;;  %v10123_v47 = vcombine.low %v4877_v20, %v4885_v22  ;;  %v10140_v53 = vcombine.high %v4893_v34, %v4901_v44  ;;  %v4980_v20 = vld [vmem:[%s15237_s8 + $0xf70] sm:$0xff]  ;;  %v4973_v22 = vld [vmem:[%s15237_s8 + $0xf38] sm:$0xff] }
 0x62d   :  { %v10454_v3 = vadd.f32 %v7963_v62, %v5029_v38  ;;  %v10453_v4 = vadd.f32 %v7883_v63, %v5025_v54  ;;  %v7965_v5 = vpop.f32.mrb[17].mxu1  ;;  %v7885_v6 = vpop.f32.mrb[18].mxu0  ;;  %8186 = vmatpush1.bf16.msra.mxu0 %v10073_v55  ;;  %v4908_v38 = vld [vmem:[%s15237_s8 + $0xd30] sm:$0xff]  ;;  %v4909_v55 = vld [vmem:[%s15237_s8 + $0xd38] sm:$0xff] }
 0x62e   :  { %v8302_v7 = vmax.f32 %v10452_v61, 0.0  ;;  %v10455_v8 = vadd.f32 %v7965_v5, %v5033_v56  ;;  %v7967_v10 = vpop.f32.mrb[18].mxu1  ;;  %8268 = vmatpush1.bf16.msra.mxu1 %v10075_v1  ;;  %v7886_v12 = vpop.f32.mrb[19].mxu0  ;;  %8187 = vmatprep.subr.bf16.mxu0 %v10090_v48  ;;  %v4916_v54 = vld [vmem:[%s15237_s8 + $0xd70] sm:$0xff]  ;;  %v4917_v56 = vld [vmem:[%s15237_s8 + $0xd78] sm:$0xff]  ;;  %v10137_v1 = vcombine.low %v4892_v36, %v4900_v37  ;;  %v10139_v48 = vcombine.low %v4893_v34, %v4901_v44 }
 0x62f   :  { %v8304_v15 = vmax.f32 %v10454_v3, 0.0  ;;  %v8303_v9 = vmax.f32 %v10453_v4, 0.0  ;;  %v7968_v16 = vpop.f32.mrb[19].mxu1  ;;  %8269 = vmatprep.subr.bf16.mxu1 %v10092_v57  ;;  %v10154_v35 = vcombine.high %v4908_v38, %v4916_v54  ;;  %v10156_v57 = vcombine.high %v4909_v55, %v4917_v56  ;;  %v4925_v61 = vld [vmem:[%s15237_s8 + $0xdb8] sm:$0xff]  ;;  %v4940_v4 = vld [vmem:[%s15237_s8 + $0xe30] sm:$0xff] }
 0x630   :  { %v8305_v19 = vmax.f32 %v10455_v8, 0.0  ;;  %v4933_v62 = vld [vmem:[%s15237_s8 + $0xdf8] sm:$0xff]  ;;  %v10153_v63 = vcombine.low %v4908_v38, %v4916_v54  ;;  %v10155_v11 = vcombine.low %v4909_v55, %v4917_v56  ;;  %v4948_v5 = vld [vmem:[%s15237_s8 + $0xe70] sm:$0xff]  ;;  %v11384_v54 = vld [vmem:[%s15239_s10 + $0x40] sm:$0xff]  }
 0x631   :  { %v8347_v13 = vcombine.low %v8302_v7, %v8303_v9  ;;  %8188 = vmatpush1.bf16.msra.mxu0 %v10089_v43  ;;  %v10172_v3 = vcombine.high %v4925_v61, %v4933_v62  ;;  %v4941_v6 = vld [vmem:[%s15237_s8 + $0xe38] sm:$0xff]  ;;  %v10169_v7 = vcombine.low %v4924_v58, %v4932_v59  ;;  %v10171_v8 = vcombine.low %v4925_v61, %v4933_v62  ;;  %v4996_v36 = vld [vmem:[%s15237_s8 + $0xff0] sm:$0xff]  ;;  %v11386_v55 = vld [vmem:[%s15239_s10 + $0xc0] sm:$0xff]  }
 0x632   :  { %v8348_v14 = vcombine.low %v8304_v15, %v8305_v19  ;;  %8270 = vmatpush1.bf16.msra.mxu1 %v10091_v52  ;;  %8189 = vmatprep.subr.bf16.mxu0 %v10106_v2  ;;  %v4949_v43 = vld [vmem:[%s15237_s8 + $0xe78] sm:$0xff]  ;;  %v10186_v10 = vcombine.high %v4940_v4, %v4948_v5  ;;  %v4956_v52 = vld [vmem:[%s15237_s8 + $0xeb0] sm:$0xff]  ;;  %v10185_v16 = vcombine.low %v4940_v4, %v4948_v5  ;;  %v11389_v59 = vld [vmem:[%s15239_s10 + $0x8] sm:$0xff]  }
 0x633   :  { %v8355_v32 = vrot.slane %v8347_v13, %v14464_v60  ;;  %8271 = vmatprep.subr.bf16.mxu1 %v10108_v50  ;;  %v10188_v12 = vcombine.high %v4941_v6, %v4949_v43  ;;  %v4964_v2 = vld [vmem:[%s15237_s8 + $0xef0] sm:$0xff]  ;;  %v4957_v15 = vld [vmem:[%s15237_s8 + $0xeb8] sm:$0xff]  ;;  %v10187_v50 = vcombine.low %v4941_v6, %v4949_v43  ;;  %v11391_v61 = vld [vmem:[%s15239_s10 + $0x88] sm:$0xff]  }
 0x634   :  { %v8362_v40 = vrot.slane %v8348_v14, %v14464_v60  ;;  %v4965_v9 = vld [vmem:[%s15237_s8 + $0xef8] sm:$0xff]  ;;  %v10202_v17 = vcombine.high %v4956_v52, %v4964_v2  ;;  %v4972_v19 = vld [vmem:[%s15237_s8 + $0xf30] sm:$0xff]  ;;  %v14971_v14 = vld [vmem:[%s15230_s1] sm:$0x7f] }
 0x635   :  { %8190 = vmatpush1.bf16.msra.mxu0 %v10105_v29  ;;  %v10204_v18 = vcombine.high %v4957_v15, %v4965_v9  ;;  %v4981_v13 = vld [vmem:[%s15237_s8 + $0xf78] sm:$0xff]  ;;  %v10201_v29 = vcombine.low %v4956_v52, %v4964_v2  ;;  %v14987_v34 = vrot.slane %v14971_v14, %v11694_v49  ;;  %v10217_v44 = vcombine.low %v4972_v19, %v4980_v20  ;;  %v11392_v62 = vld [vmem:[%s15239_s10 + $0x50] sm:$0xff]   ;;  %v11400_v6 = vld [vmem:[%s15239_s10 + $0x60] sm:$0xff]  }
 0x636   :  { %v8363_v46 = vcombine.low %v8355_v32, %v8362_v40  ;;  %8272 = vmatpush1.bf16.msra.mxu1 %v10107_v30  ;;  %8191 = vmatprep.subr.bf16.mxu0 %v10122_v31  ;;  %v10203_v30 = vcombine.low %v4957_v15, %v4965_v9  ;;  %v10218_v31 = vcombine.high %v4972_v19, %v4980_v20  ;;  %v4989_v37 = vld [vmem:[%s15237_s8 + $0xfb8] sm:$0xff]  ;;  %v11402_v43 = vld [vmem:[%s15239_s10 + $0xe0] sm:$0xff]   ;;  %v11405_v52 = vld [vmem:[%s15239_s10 + $0x28] sm:$0xff]  }
 0x637   :  { %8273 = vmatprep.subr.bf16.mxu1 %v10124_v26  ;;  %v10220_v32 = vcombine.high %v4973_v22, %v4981_v13  ;;  %v4988_v26 = vld [vmem:[%s15237_s8 + $0xfb0] sm:$0xff]  ;;  %v4997_v40 = vld [vmem:[%s15237_s8 + $0xff8] sm:$0xff]  ;;  %v11407_v2 = vld [vmem:[%s15239_s10 + $0xa8] sm:$0xff]  }
 0x638   :  { %8403 = vst [vmem:[%s15244_s15 + $0x8] sm:$0xff] %v8363_v46  ;;  %v10234_v46 = vcombine.high %v4988_v26, %v4996_v36  ;;  %v10235_v38 = vcombine.low %v4989_v37, %v4997_v40  ;;  %v11397_v4 = vld [vmem:[%s15239_s10 + $0x18] sm:$0xff]   ;;  %v11408_v15 = vld [vmem:[%s15239_s10 + $0x70] sm:$0xff]  }
 0x639   :  { %8192 = vmatpush1.bf16.msra.mxu0 %v10121_v45  ;;  %v10219_v45 = vcombine.low %v4973_v22, %v4981_v13  ;;  %v11399_v5 = vld [vmem:[%s15239_s10 + $0x98] sm:$0xff]   ;;  %v11410_v9 = vld [vmem:[%s15239_s10 + $0xf0] sm:$0xff]   ;;  %v8536_v13 = vrot.slane %v14987_v34, %v11694_v49 }
 0x63a   :  { %8274 = vmatpush1.bf16.msra.mxu1 %v10123_v47  ;;  %8193 = vmatprep.subr.bf16.mxu0 %v10138_v51  ;;  %v10236_v47 = vcombine.high %v4989_v37, %v4997_v40  ;;  %v8528_v51 = vcombine.high %v14987_v34, %v14987_v34  ;;  %v11414_v19 = vld [vmem:[%s15239_s10 + $0xf8] sm:$0xff]   ;;  %v11471_v37 = vmov 0.0   ;;  %v11419_v34 = vld [vmem:[%s15239_s10 + $0x108] sm:$0xff]  }
 0x63b   :  { %8275 = vmatprep.subr.bf16.mxu1 %v10140_v53  ;;  %v10233_v53 = vcombine.low %v4988_v26, %v4996_v36  ;;  %v11413_v22 = vld [vmem:[%s15239_s10 + $0x38] sm:$0xff]   ;;  %v11418_v26 = vld [vmem:[%s15239_s10 + $0x148] sm:$0xff]   ;;  %v11432_v36 = vld [vmem:[%s15239_s10 + $0x180] sm:$0xff]  }
 0x63c   :  { %v8550_v56 = vrot.slane %v8528_v51, %v11694_v49  ;;  %v11423_v51 = vld [vmem:[%s15239_s10 + $0x118] sm:$0xff]  }
 0x63d   :  { %8194 = vmatpush1.bf16.msra.mxu0 %v10137_v1  ;;  %v11385_v1 = vld [vmem:[%s15239_s10] sm:$0xff]  }
 0x63e   :  { %8276 = vmatpush1.bf16.msra.mxu1 %v10139_v48  ;;  %8195 = vmatprep.subr.bf16.mxu0 %v10154_v35  ;;  %v11387_v48 = vld [vmem:[%s15239_s10 + $0x80] sm:$0xff]   ;;  %v11388_v35 = vld [vmem:[%s15239_s10 + $0x48] sm:$0xff]   ;;  %v8560_v58 = vcombine.high %v8550_v56, %v8550_v56 }
 0x63f   :  { %8277 = vmatprep.subr.bf16.mxu1 %v10156_v57  ;;  %v11390_v57 = vld [vmem:[%s15239_s10 + $0xc8] sm:$0xff]  }
 0x641   :  { %8196 = vmatpush1.bf16.msra.mxu0 %v10153_v63  ;;  %v11393_v63 = vld [vmem:[%s15239_s10 + $0x10] sm:$0xff]  }
 0x642   :  { %8278 = vmatpush1.bf16.msra.mxu1 %v10155_v11  ;;  %8197 = vmatprep.subr.bf16.mxu0 %v10170_v0  ;;  %v11395_v11 = vld [vmem:[%s15239_s10 + $0x90] sm:$0xff]   ;;  %v11396_v0 = vld [vmem:[%s15239_s10 + $0x58] sm:$0xff]  }
 0x643   :  { %8279 = vmatprep.subr.bf16.mxu1 %v10172_v3  ;;  %v11398_v3 = vld [vmem:[%s15239_s10 + $0xd8] sm:$0xff]  }
 0x645   :  { %8198 = vmatpush1.bf16.msra.mxu0 %v10169_v7  ;;  %v11401_v7 = vld [vmem:[%s15239_s10 + $0x20] sm:$0xff]  }
 0x646   :  { %8280 = vmatpush1.bf16.msra.mxu1 %v10171_v8  ;;  %8199 = vmatprep.subr.bf16.mxu0 %v10186_v10  ;;  %v11403_v8 = vld [vmem:[%s15239_s10 + $0xa0] sm:$0xff]   ;;  %v11404_v10 = vld [vmem:[%s15239_s10 + $0x68] sm:$0xff]  }
 0x647   :  { %8281 = vmatprep.subr.bf16.mxu1 %v10188_v12  ;;  %v11406_v12 = vld [vmem:[%s15239_s10 + $0xe8] sm:$0xff]  }
 0x649   :  { %8200 = vmatpush1.bf16.msra.mxu0 %v10185_v16  ;;  %v8513_v16 = vcombine.high %v14971_v14, %v14971_v14  ;;  %v11416_v14 = vld [vmem:[%s15239_s10 + $0x140] sm:$0xff]  }
 0x64a   :  { %8282 = vmatpush1.bf16.msra.mxu1 %v10187_v50  ;;  %8201 = vmatprep.subr.bf16.mxu0 %v10202_v17  ;;  %v11409_v50 = vld [vmem:[%s15239_s10 + $0x30] sm:$0xff]  }
 0x64b   :  { %8283 = vmatprep.subr.bf16.mxu1 %v10204_v18  ;;  %v11411_v17 = vld [vmem:[%s15239_s10 + $0xb0] sm:$0xff]   ;;  %v11412_v18 = vld [vmem:[%s15239_s10 + $0x78] sm:$0xff]   ;;  %v8527_v20 = vrot.slane %v8513_v16, %v11694_v49  ;;  %v11434_v16 = vld [vmem:[%s15241_s12] sm:$0xff]  }
 0x64d   :  { %8202 = vmatpush1.bf16.msra.mxu0 %v10201_v29  ;;  %v11415_v29 = vld [vmem:[%s15239_s10 + $0xb8] sm:$0xff]  }
 0x64e   :  { %8284 = vmatpush1.bf16.msra.mxu1 %v10203_v30  ;;  %8203 = vmatprep.subr.bf16.mxu0 %v10218_v31  ;;  %v8529_v30 = vcombine.high %v8527_v20, %v8527_v20  ;;  %v11417_v31 = vld [vmem:[%s15239_s10 + $0x100] sm:$0xff]  }
 0x64f   :  { %8285 = vmatprep.subr.bf16.mxu1 %v10220_v32  ;;  %v8558_v32 = vcombine.high %v8536_v13, %v8536_v13 }
 0x650   :  { %v8557_v40 = vrot.slane %v8529_v30, %v11694_v49 }
 0x651   :  { %8204 = vmatpush1.bf16.msra.mxu0 %v10217_v44  ;;  %v8543_v44 = vrot.slane %v8527_v20, %v11694_v49  ;;  %v11422_v49 = vld [vmem:[%s15239_s10 + $0x158] sm:$0xff]   ;;  %v11439_v20 = vld [vmem:[%s15241_s12 + $0x28] sm:$0xff]  }
 0x652   :  { %8286 = vmatpush1.bf16.msra.mxu1 %v10219_v45  ;;  %8205 = vmatprep.subr.bf16.mxu0 %v10234_v46  ;;  %v11420_v45 = vld [vmem:[%s15239_s10 + $0x150] sm:$0xff]  }
 0x653   :  { %8287 = vmatprep.subr.bf16.mxu1 %v10236_v47  ;;  %v11421_v46 = vld [vmem:[%s15239_s10 + $0x110] sm:$0xff]   ;;  %v8559_v47 = vcombine.high %v8543_v44, %v8543_v44 }
 0x655   :  { %8206 = vmatpush1.bf16.msra.mxu0 %v10233_v53  ;;  %v11424_v53 = vld [vmem:[%s15239_s10 + $0x160] sm:$0xff]  }
 0x656   :  { %8288 = vmatpush1.bf16.msra.mxu1 %v10235_v38  ;;  %10341 = vmatprep.subr.bf16.mxu0 %v11384_v54  ;;  %v11425_v38 = vld [vmem:[%s15239_s10 + $0x120] sm:$0xff]   ;;  %v11426_v54 = vld [vmem:[%s15239_s10 + $0x168] sm:$0xff]  }
 0x657   :  { %10363 = vmatprep.subr.bf16.mxu1 %v11386_v55  ;;  %v11427_v55 = vld [vmem:[%s15239_s10 + $0x128] sm:$0xff]  }
 0x658   :  { %8208 = vmatmul.mubr.bf16.vlgmr.msra.gmra.mrb[24].mxu0 %v13784_v25 }
 0x659   :  { %8290 = vmatmul.mubr.bf16.vlgmr.msra.gmra.mrb[24].mxu1 %v13784_v25  ;;  %10342 = vmatpush3.bf16.msra.mxu0 %v11385_v1  ;;  %v11394_v25 = vld [vmem:[%s15239_s10 + $0xd0] sm:$0xff]  }
 0x65a   :  { %10364 = vmatpush3.bf16.msra.mxu1 %v11387_v48  ;;  %10343 = vmatprep.subr.bf16.mxu0 %v11388_v35  ;;  %v11429_v1 = vld [vmem:[%s15239_s10 + $0x130] sm:$0xff]   ;;  %v11430_v48 = vld [vmem:[%s15239_s10 + $0x178] sm:$0xff]  }
 0x65b   :  { %10365 = vmatprep.subr.bf16.mxu1 %v11390_v57  ;;  %8897 = vmatprep.mubr.bf16.mxu0 %v8550_v56  ;;  %v11428_v56 = vld [vmem:[%s15239_s10 + $0x170] sm:$0xff]   ;;  %v11431_v35 = vld [vmem:[%s15239_s10 + $0x138] sm:$0xff]   ;;  %v4999_v57 = vld [vmem:[%s15238_s9 + $0x8] sm:$0xff] }
 0x65c   :  { %8937 = vmatprep.mubr.bf16.mxu1 %v8560_v58  ;;  %v5037_v58 = vrot.slane %v4999_v57, %v13285_v23  ;;  %v5057_v30 = vrot.slane %v4999_v57, %v5024_v39 }
 0x65d   :  { %10344 = vmatpush3.bf16.msra.mxu0 %v11389_v59  ;;  %v5045_v59 = vrot.slane %v4999_v57, %v13288_v24 }
 0x65e   :  { %10366 = vmatpush3.bf16.msra.mxu1 %v11391_v61  ;;  %10345 = vmatprep.subr.bf16.mxu0 %v11392_v62  ;;  %v5041_v61 = vrot.slane %v4999_v57, %v13294_v27  ;;  %v5049_v62 = vrot.slane %v4999_v57, %v13297_v28 }
 0x65f   :  { %10367 = vmatprep.subr.bf16.mxu1 %v11394_v25 }
 0x661   :  { %10346 = vmatpush3.bf16.msra.mxu0 %v11393_v63 }
 0x662   :  { %10368 = vmatpush3.bf16.msra.mxu1 %v11395_v11  ;;  %10347 = vmatprep.subr.bf16.mxu0 %v11396_v0 }
 0x663   :  { %10369 = vmatprep.subr.bf16.mxu1 %v11398_v3 }
 0x665   :  { %10348 = vmatpush3.bf16.msra.mxu0 %v11397_v4 }
 0x666   :  { %10370 = vmatpush3.bf16.msra.mxu1 %v11399_v5  ;;  %10349 = vmatprep.subr.bf16.mxu0 %v11400_v6 }
 0x667   :  { %10371 = vmatprep.subr.bf16.mxu1 %v11402_v43 }
 0x669   :  { %10350 = vmatpush3.bf16.msra.mxu0 %v11401_v7 }
 0x66a   :  { %10372 = vmatpush3.bf16.msra.mxu1 %v11403_v8  ;;  %10351 = vmatprep.subr.bf16.mxu0 %v11404_v10 }
 0x66b   :  { %10373 = vmatprep.subr.bf16.mxu1 %v11406_v12 }
 0x66d   :  { %10352 = vmatpush3.bf16.msra.mxu0 %v11405_v52 }
 0x66e   :  { %10374 = vmatpush3.bf16.msra.mxu1 %v11407_v2  ;;  %10353 = vmatprep.subr.bf16.mxu0 %v11408_v15 }
 0x66f   :  { %10375 = vmatprep.subr.bf16.mxu1 %v11410_v9 }
 0x671   :  { %10354 = vmatpush3.bf16.msra.mxu0 %v11409_v50  ;;  %v11435_v50 = vld [vmem:[%s15241_s12 + $0x8] sm:$0xff]  }
 0x672   :  { %10376 = vmatpush3.bf16.msra.mxu1 %v11411_v17  ;;  %10355 = vmatprep.subr.bf16.mxu0 %v11412_v18  ;;  %v11436_v17 = vld [vmem:[%s15241_s12 + $0x10] sm:$0xff]   ;;  %v11437_v18 = vld [vmem:[%s15241_s12 + $0x18] sm:$0xff]  }
 0x673   :  { %10377 = vmatprep.subr.bf16.mxu1 %v11414_v19  ;;  %v11438_v19 = vld [vmem:[%s15241_s12 + $0x20] sm:$0xff]  }
 0x675   :  { %10356 = vmatpush3.bf16.msra.mxu0 %v11413_v22  ;;  %v11440_v22 = vld [vmem:[%s15241_s12 + $0x30] sm:$0xff]  }
 0x676   :  { %10378 = vmatpush3.bf16.msra.mxu1 %v11415_v29  ;;  %10385 = vmatprep.subr.bf16.mxu0 %v11416_v14  ;;  %v5053_v29 = vrot.slane %v4999_v57, %v5020_v33  ;;  %v5061_v14 = vrot.slane %v4999_v57, %v5028_v21 }
 0x677   :  { %10418 = vmatprep.subr.bf16.mxu1 %v11471_v37 }
 0x678   :  { %8898 = vmatmul.mubr.bf16.vlgmr.msra.gmra.mrb[28].mxu0 %v8536_v13  ;;  %v11441_v13 = vld [vmem:[%s15241_s12 + $0x38] sm:$0xff]  }
 0x679   :  { %10386 = vmatpush3.bf16.msra.mxu0 %v11417_v31  ;;  %8938 = vmatmul.mubr.bf16.vlgmr.msra.gmra.mrb[28].mxu1 %v8558_v32  ;;  %v5065_v31 = vrot.slane %v4999_v57, %v5032_v41 }
 0x67a   :  { %10387 = vmatprep.subr.bf16.mxu0 %v11418_v26  ;;  %10419 = vmatpush3.bf16.msra.mxu1 %v11432_v36 }
 0x67b   :  { %8977 = vmatprep.mubr.bf16.mxu0 %v8557_v40  ;;  %10420 = vmatprep.mubr.msk.bf16.mxu1 %vm11472_vm2, %v11471_v37 }
 0x67c   :  { %10424 = vmatprep.subr.bf16.mxu1 %v11471_v37 }
 0x67d   :  { %10388 = vmatpush3.bf16.msra.mxu0 %v11419_v34 }
 0x67e   :  { %10389 = vmatprep.subr.bf16.mxu0 %v11420_v45 }
 0x681   :  { %10390 = vmatpush3.bf16.msra.mxu0 %v11421_v46  ;;  %10421 = vmatmul.mubr.msk.bf16.vlgmr.msra.gmra.mrb[32].mxu1 %vm8861_vm3, %v8559_v47 }
 0x682   :  { %10391 = vmatprep.subr.bf16.mxu0 %v11422_v49  ;;  %10440 = vmatprep.mubr.msk.bf16.mxu1 %vm11472_vm2, %v11471_v37 }
 0x683   :  { %10425 = vmatpush3.bf16.msra.mxu1 %v11434_v16 }
 0x684   :  { %10426 = vmatprep.subr.bf16.mxu1 %v11471_v37 }
 0x685   :  { %10392 = vmatpush3.bf16.msra.mxu0 %v11423_v51 }
 0x686   :  { %10393 = vmatprep.subr.bf16.mxu0 %v11424_v53 }
 0x687   :  { %10427 = vmatpush3.bf16.msra.mxu1 %v11435_v50 }
 0x688   :  { %10428 = vmatprep.subr.bf16.mxu1 %v11471_v37 }
 0x689   :  { %10394 = vmatpush3.bf16.msra.mxu0 %v11425_v38 }
 0x68a   :  { %10395 = vmatprep.subr.bf16.mxu0 %v11426_v54 }
 0x68b   :  { %10429 = vmatpush3.bf16.msra.mxu1 %v11436_v17 }
 0x68c   :  { %10430 = vmatprep.subr.bf16.mxu1 %v11471_v37 }
 0x68d   :  { %10396 = vmatpush3.bf16.msra.mxu0 %v11427_v55 }
 0x68e   :  { %10397 = vmatprep.subr.bf16.mxu0 %v11428_v56 }
 0x68f   :  { %10431 = vmatpush3.bf16.msra.mxu1 %v11437_v18 }
 0x690   :  { %10432 = vmatprep.subr.bf16.mxu1 %v11471_v37 }
 0x691   :  { %10398 = vmatpush3.bf16.msra.mxu0 %v11429_v1  ;;  %v10237_v1 = vld [vmem:[%s15240_s11] ss:$0 sm:$0xff]  ;;  %s11473_s11 = smov [#allocation2]  }
 0x692   :  { %10399 = vmatprep.subr.bf16.mxu0 %v11430_v48 }
 0x693   :  { %10433 = vmatpush3.bf16.msra.mxu1 %v11438_v19 }
 0x694   :  { %10434 = vmatprep.subr.bf16.mxu1 %v11471_v37 }
 0x695   :  { %10400 = vmatpush3.bf16.msra.mxu0 %v11431_v35 }
 0x697   :  { %10435 = vmatpush3.bf16.msra.mxu1 %v11439_v20 }
 0x698   :  { %8978 = vmatmul.mubr.bf16.vlgmr.msra.gmra.mrb[32].mxu0 %v8543_v44  ;;  %10436 = vmatprep.subr.bf16.mxu1 %v11471_v37 }
 0x69b   :  { %10437 = vmatpush3.bf16.msra.mxu1 %v11440_v22 }
 0x69c   :  { %10438 = vmatprep.subr.bf16.mxu1 %v11471_v37 }
 0x69f   :  { %10439 = vmatpush3.bf16.msra.mxu1 %v11441_v13 }
 0x6ab   :  { %v8045_v25 = vpop.f32.mrb[20].mxu0 }
 0x6ac   :  { %v10456_v63 = vadd.f32 %v8045_v25, %v5037_v58  ;;  %v8127_v11 = vpop.f32.mrb[20].mxu1  ;;  %v8047_v0 = vpop.f32.mrb[21].mxu0 }
 0x6ad   :  { %v10458_v3 = vadd.f32 %v8127_v11, %v5045_v59  ;;  %v10457_v4 = vadd.f32 %v8047_v0, %v5041_v61  ;;  %v8129_v5 = vpop.f32.mrb[21].mxu1  ;;  %v8049_v6 = vpop.f32.mrb[22].mxu0 }
 0x6ae   :  { %v8306_v43 = vmax.f32 %v10456_v63, 0.0  ;;  %v10459_v7 = vadd.f32 %v8129_v5, %v5049_v62  ;;  %v8131_v8 = vpop.f32.mrb[22].mxu1  ;;  %v8050_v10 = vpop.f32.mrb[23].mxu0 }
 0x6af   :  { %v8308_v12 = vmax.f32 %v10458_v3, 0.0  ;;  %v8307_v23 = vmax.f32 %v10457_v4, 0.0  ;;  %v8132_v52 = vpop.f32.mrb[23].mxu1 }
 0x6b0   :  { %v8309_v24 = vmax.f32 %v10459_v7, 0.0 }
 0x6b1   :  { %v8364_v2 = vcombine.low %v8306_v43, %v8307_v23 }
 0x6b2   :  { %v8365_v27 = vcombine.low %v8308_v12, %v8309_v24 }
 0x6b3   :  { %v8372_v28 = vrot.slane %v8364_v2, %v14464_v60 }
 0x6b4   :  { %v8379_v15 = vrot.slane %v8365_v27, %v14464_v60 }
 0x6b6   :  { %v8380_v9 = vcombine.low %v8372_v28, %v8379_v15 }
 0x6b8   :  { %8404 = vst [vmem:[%s15244_s15 + $0x10] sm:$0xff] %v8380_v9 }
 0x72b   :  { %v8209_v32 = vpop.f32.mrb[24].mxu0 }
 0x72c   :  { %v10460_v26 = vadd.f32 %v8209_v32, %v5053_v29  ;;  %v8291_v36 = vpop.f32.mrb[24].mxu1  ;;  %v8211_v37 = vpop.f32.mrb[25].mxu0 }
 0x72d   :  { %v10462_v40 = vadd.f32 %v8291_v36, %v5061_v14  ;;  %v10461_v34 = vadd.f32 %v8211_v37, %v5057_v30  ;;  %v8293_v44 = vpop.f32.mrb[25].mxu1  ;;  %v8213_v45 = vpop.f32.mrb[26].mxu0 }
 0x72e   :  { %v8310_v46 = vmax.f32 %v10460_v26, 0.0  ;;  %v10463_v47 = vadd.f32 %v8293_v44, %v5065_v31  ;;  %v8295_v33 = vpop.f32.mrb[26].mxu1  ;;  %v8214_v49 = vpop.f32.mrb[27].mxu0 }
 0x72f   :  { %v8312_v51 = vmax.f32 %v10462_v40, 0.0  ;;  %v8311_v21 = vmax.f32 %v10461_v34, 0.0  ;;  %v8296_v53 = vpop.f32.mrb[27].mxu1 }
 0x730   :  { %v8313_v38 = vmax.f32 %v10463_v47, 0.0 }
 0x731   :  { %v8381_v39 = vcombine.low %v8310_v46, %v8311_v21 }
 0x732   :  { %v8382_v54 = vcombine.low %v8312_v51, %v8313_v38 }
 0x733   :  { %v8389_v42 = vrot.slane %v8381_v39, %v14464_v60 }
 0x734   :  { %v8396_v41 = vrot.slane %v8382_v54, %v14464_v60 }
 0x736   :  { %v8397_v55 = vcombine.low %v8389_v42, %v8396_v41 }
 0x738   :  { %8405 = vst [vmem:[%s15244_s15 + $0x18] sm:$0xff] %v8397_v55  ;;  %s9146_s15 = sshll.u32 %s11473_s11, 4  ;;  %s9147_s15 = int_to_ptr.vmem [resolvable:$true] %s9146_s15 }
 0x739   :  { %s11444_s29 = scalar_lea.vmem %s9147_s15, 32  ;;  %p11449_p1 = scmp.lt.s32.totalorder %s9147_s15, %s9147_s15 }
 0x73a   :  { %p11445_p0 = scmp.ne.s32.totalorder %s9147_s15, %s11444_s29  ;;  %p11450_p2 = scmp.lt.s32.totalorder %s11444_s29, %s11444_s29 }
 0x73c   :  { %p11451_p3 = por %p11450_p2, %p11449_p1 }
 0x73e   :  { %p11452_p4 = pnand %p11451_p3, %p11445_p0 }
 0x74b   :  { %v10357_v56 = vpop.f32.mrb[28].mxu0 }
 0x74c   :  { %v10358_v48 = vpop.f32.mrb[29].mxu0  ;;  %v10379_v35 = vpop.f32.mrb[28].mxu1 }
 0x74d   :  { %v10359_v57 = vadd.f32 %v10358_v48, %v10357_v56  ;;  %v10360_v58 = vpop.f32.mrb[30].mxu0  ;;  %v10380_v59 = vpop.f32.mrb[29].mxu1 }
 0x74e   :  { %v10361_v61 = vpop.f32.mrb[31].mxu0  ;;  %v10381_v62 = vadd.f32 %v10380_v59, %v10379_v35  ;;  %v10382_v25 = vpop.f32.mrb[30].mxu1 }
 0x74f   :  { %v8900_v63 = vadd.f32 %v10359_v57, %v10237_v1  ;;  %v10383_v60 = vpop.f32.mrb[31].mxu1 }
 0x751   :  { %v8940_v11 = vadd.f32 %v10381_v62, %v8900_v63 }
 0x754   :  { %v9019_v0 = vpop.f32.mrb[32].mxu1 }
 0x755   :  { %v10422_v3 = vpop.f32.mrb[33].mxu1 }
 0x756   :  { %v9022_v4 = vpop.f32.mrb[34].mxu1 }
 0x757   :  { %v10423_v5 = vpop.f32.mrb[35].mxu1 }
 0x76b   :  { %v10401_v6 = vpop.f32.mrb[32].mxu0 }
 0x76c   :  { %v10402_v43 = vpop.f32.mrb[33].mxu0 }
 0x76d   :  { %v10403_v7 = vadd.f32 %v10402_v43, %v10401_v6  ;;  %v10404_v8 = vpop.f32.mrb[34].mxu0 }
 0x76e   :  { %v10405_v10 = vpop.f32.mrb[35].mxu0 }
 0x76f   :  { %v8980_v12 = vadd.f32 %v10403_v7, %v8940_v11 }
 0x771   :  { %v9020_v23 = vadd.f32 %v9019_v0, %v8980_v12 }
 0x773   :  { %v9025_v52 = vmax.f32 %v9020_v23, 0.0 }
 0x775   :  { %v9026_v24 = vpack.c.bf16 %v9025_v52, %v9025_v52 }
 0x777   :  { %10441 = vmatmul.mubr.bf16.vlgmr.msra.gmra.mrb[36].mxu1 %v9026_v24 }
 0x778   :  { %11455 = shalt.err (!%p11452_p4)
}
 0x779   :  { %s11456_s30 = scalar_lea.hbm %s15243_s14, 32 }
 0x77a   :  { %p11457_p5 = scmp.ne.s32.totalorder %s15243_s14, %s11456_s30  ;;  %p11460_p6 = scmp.lt.u32.totalorder %s11456_s30, %s15243_s14 }
 0x77c   :  { %p11462_p7 = pnand %p11460_p6, %p11457_p5 }
 0x77e   :  { %11465 = shalt.err (!%p11462_p7)
}
 0x77f   :  { %9149 = dma.vmem_to_hbm [thread:$0]  %s9147_s15, 32, %s15243_s14, [#allocation3]   ;;  %v10288_v2 = vld [vmem:[%s15242_s13] ss:$0 sm:$0xff]  ;;  %vm9138_vm4 = vcmask 41984  }
 0x84a   :  { %v9132_v27 = vpop.f32.mrb[36].mxu1 }
 0x84b   :  { %v9133_v28 = vadd.f32 %v10288_v2, %v9132_v27  ;;  %v10442_v15 = vpop.f32.mrb[37].mxu1 }
 0x84c   :  { %v9135_v9 = vpop.f32.mrb[38].mxu1 }
 0x84d   :  { %9139 = vst.msk [vmem:[%s15245_s16] sm:$0x3] %vm9138_vm4, %v9133_v28  ;;  %v10443_v16 = vpop.f32.mrb[39].mxu1 }
 0x84e   :  { %11466 = dma.done.wait [#allocation3], 32  }
 0x84f   :  { %11467 = vsyncadd [#allocation3], 4294967264 }
 0x850   :  { %9161 = vsyncpa [#allocation3], 1 }

// kernel: affine_invariant_autoencoder_forward.11
= control target key start
LH: loop header
LB: loop body
LE: loop exit
PB: predicated region body
PF: predicated region fallthrough
CT: control target
= control target key end

     0   :  { %v1656_v1 = vmov 0   ;;  %vm1196_vm0 = vcmask 801792   ;;  %s2072_s1 = inlined_call_operand.vmem [shape: bf16[1152,98], index: 1, kind: input, shape index: {}]   ;;  %s2073_s0 = inlined_call_operand.vmem [shape: bf16[64,1152], index: 0, kind: input, shape index: {}]   ;;  %s2074_s2 = inlined_call_operand.vmem [shape: f32[64,1], index: 2, kind: input, shape index: {}]   ;;  %s2075_s3 = inlined_call_operand.vmem [shape: f32[64,98], index: 3, kind: output, shape index: {}]  }
   0x1   :  { %v1532_v0 = vld [vmem:[%s2072_s1 + $0x40] sm:$0xff]   ;;  %1530 = vset.pattern.permute.xlu0 %v1656_v1  ;;  %1531 = vset.pattern.permute.xlu1 %v1656_v1  ;;  %v1536_v5 = vld [vmem:[%s2072_s1 + $0x48] sm:$0xff]   ;;  %v1540_v9 = vld [vmem:[%s2072_s1 + $0x50] sm:$0xff]  }
   0x2   :  { %v1533_v2 = vld [vmem:[%s2072_s1 + $0xc0] sm:$0xff]   ;;  %1317 = vmatprep.subr.bf16.mxu0 %v1532_v0  ;;  %v1537_v6 = vld [vmem:[%s2072_s1 + $0xc8] sm:$0xff]   ;;  %v1541_v10 = vld [vmem:[%s2072_s1 + $0xd0] sm:$0xff]  }
   0x3   :  { %v1534_v3 = vld [vmem:[%s2072_s1] sm:$0xff]   ;;  %1357 = vmatprep.subr.bf16.mxu1 %v1533_v2  ;;  %v1538_v7 = vld [vmem:[%s2072_s1 + $0x8] sm:$0xff]   ;;  %v1542_v11 = vld [vmem:[%s2072_s1 + $0x10] sm:$0xff]  }
   0x4   :  { %v1535_v4 = vld [vmem:[%s2072_s1 + $0x80] sm:$0xff]   ;;  %1318 = vmatpush3.bf16.msra.mxu0 %v1534_v3  ;;  %v1539_v8 = vld [vmem:[%s2072_s1 + $0x88] sm:$0xff]   ;;  %v1543_v12 = vld [vmem:[%s2072_s1 + $0x90] sm:$0xff]  }
   0x5   :  { %1358 = vmatpush3.bf16.msra.mxu1 %v1535_v4  ;;  %1319 = vmatprep.subr.bf16.mxu0 %v1536_v5  ;;  %v1544_v13 = vld [vmem:[%s2072_s1 + $0x58] sm:$0xff]   ;;  %v1548_v17 = vld [vmem:[%s2072_s1 + $0x60] sm:$0xff]   ;;  %v1552_v21 = vld [vmem:[%s2072_s1 + $0x68] sm:$0xff]  }
   0x6   :  { %1359 = vmatprep.subr.bf16.mxu1 %v1537_v6  ;;  %v1545_v14 = vld [vmem:[%s2072_s1 + $0xd8] sm:$0xff]   ;;  %v1549_v18 = vld [vmem:[%s2072_s1 + $0xe0] sm:$0xff]   ;;  %v1553_v22 = vld [vmem:[%s2072_s1 + $0xe8] sm:$0xff]  }
   0x7   :  { %v1546_v15 = vld [vmem:[%s2072_s1 + $0x18] sm:$0xff]   ;;  %v1550_v19 = vld [vmem:[%s2072_s1 + $0x20] sm:$0xff]   ;;  %v1554_v23 = vld [vmem:[%s2072_s1 + $0x28] sm:$0xff]  }
   0x8   :  { %1320 = vmatpush3.bf16.msra.mxu0 %v1538_v7  ;;  %v1547_v16 = vld [vmem:[%s2072_s1 + $0x98] sm:$0xff]   ;;  %v1551_v20 = vld [vmem:[%s2072_s1 + $0xa0] sm:$0xff]   ;;  %v1555_v24 = vld [vmem:[%s2072_s1 + $0xa8] sm:$0xff]  }
   0x9   :  { %1360 = vmatpush3.bf16.msra.mxu1 %v1539_v8  ;;  %1321 = vmatprep.subr.bf16.mxu0 %v1540_v9  ;;  %v1556_v25 = vld [vmem:[%s2072_s1 + $0x70] sm:$0xff]   ;;  %v1560_v29 = vld [vmem:[%s2072_s1 + $0x78] sm:$0xff]   ;;  %v1564_v33 = vld [vmem:[%s2073_s0] ss:$36 sps:$4 sm:$0xff]  }
   0xa   :  { %1361 = vmatprep.subr.bf16.mxu1 %v1541_v10  ;;  %v1557_v26 = vld [vmem:[%s2072_s1 + $0xf0] sm:$0xff]   ;;  %v1561_v30 = vld [vmem:[%s2072_s1 + $0xf8] sm:$0xff]   ;;  %v1566_v34 = vld [vmem:[%s2073_s0 + $0x4] ss:$36 sps:$4 sm:$0xff]  }
   0xb   :  { %v1558_v27 = vld [vmem:[%s2072_s1 + $0x30] sm:$0xff]   ;;  %v1562_v31 = vld [vmem:[%s2072_s1 + $0x38] sm:$0xff]   ;;  %v1567_v35 = vld [vmem:[%s2073_s0 + $0x8] ss:$36 sps:$4 sm:$0xff]   ;;  %895 = vmatprep.mubr.bf16.mxu0 %v1566_v34 }
   0xc   :  { %1322 = vmatpush3.bf16.msra.mxu0 %v1542_v11  ;;  %v1559_v28 = vld [vmem:[%s2072_s1 + $0xb0] sm:$0xff]   ;;  %v1563_v32 = vld [vmem:[%s2072_s1 + $0xb8] sm:$0xff]   ;;  %v1570_v37 = vld [vmem:[%s2072_s1 + $0x140] sm:$0xff]  }
   0xd   :  { %1362 = vmatpush3.bf16.msra.mxu1 %v1543_v12  ;;  %1323 = vmatprep.subr.bf16.mxu0 %v1544_v13  ;;  %v1569_v36 = vld [vmem:[%s2073_s0 + $0xc] ss:$36 sps:$4 sm:$0xff]   ;;  %v1571_v38 = vld [vmem:[%s2072_s1 + $0x1c0] sm:$0xff]   ;;  %v1580_v46 = vld [vmem:[%s2073_s0 + $0x54] ss:$36 sps:$4 sm:$0xff]  }
   0xe   :  { %1363 = vmatprep.subr.bf16.mxu1 %v1545_v14  ;;  %960 = vmatprep.mubr.bf16.mxu1 %v1569_v36  ;;  %v1572_v39 = vld [vmem:[%s2072_s1 + $0x100] sm:$0xff]   ;;  %v1574_v41 = vld [vmem:[%s2072_s1 + $0x148] sm:$0xff]   ;;  %v1583_v48 = vld [vmem:[%s2073_s0 + $0x50] ss:$36 sps:$4 sm:$0xff]  }
   0xf   :  { %v1573_v40 = vld [vmem:[%s2072_s1 + $0x180] sm:$0xff]   ;;  %v1575_v42 = vld [vmem:[%s2072_s1 + $0x1c8] sm:$0xff]   ;;  %v1584_v49 = vld [vmem:[%s2072_s1 + $0x150] sm:$0xff]  }
  0x10   :  { %1324 = vmatpush3.bf16.msra.mxu0 %v1546_v15  ;;  %v1576_v43 = vld [vmem:[%s2072_s1 + $0x108] sm:$0xff]   ;;  %v1585_v50 = vld [vmem:[%s2072_s1 + $0x1d0] sm:$0xff]   ;;  %v1588_v53 = vld [vmem:[%s2072_s1 + $0x158] sm:$0xff]  }
  0x11   :  { %1364 = vmatpush3.bf16.msra.mxu1 %v1547_v16  ;;  %1325 = vmatprep.subr.bf16.mxu0 %v1548_v17  ;;  %v1577_v44 = vld [vmem:[%s2072_s1 + $0x188] sm:$0xff]   ;;  %v1586_v51 = vld [vmem:[%s2072_s1 + $0x110] sm:$0xff]   ;;  %v1589_v54 = vld [vmem:[%s2072_s1 + $0x1d8] sm:$0xff]  }
  0x12   :  { %1365 = vmatprep.subr.bf16.mxu1 %v1549_v18  ;;  %v1578_v45 = vld [vmem:[%s2073_s0 + $0x4c] ss:$36 sps:$4 sm:$0xff]   ;;  %v1590_v55 = vld [vmem:[%s2072_s1 + $0x118] sm:$0xff]   ;;  %v1598_v61 = vld [vmem:[%s2072_s1 + $0x160] sm:$0xff]  }
  0x13   :  { %v1582_v47 = vld [vmem:[%s2073_s0 + $0x48] ss:$36 sps:$4 sm:$0xff]   ;;  %v1587_v52 = vld [vmem:[%s2072_s1 + $0x190] sm:$0xff]   ;;  %v1591_v56 = vld [vmem:[%s2072_s1 + $0x198] sm:$0xff]  }
  0x14   :  { %1326 = vmatpush3.bf16.msra.mxu0 %v1550_v19  ;;  %v1592_v57 = vld [vmem:[%s2073_s0 + $0x94] ss:$36 sps:$4 sm:$0xff]   ;;  %v1594_v58 = vld [vmem:[%s2073_s0 + $0x9c] ss:$36 sps:$4 sm:$0xff]   ;;  %v1602_v1 = vld [vmem:[%s2072_s1 + $0x168] sm:$0xff]  }
  0x15   :  { %1366 = vmatpush3.bf16.msra.mxu1 %v1551_v20  ;;  %1327 = vmatprep.subr.bf16.mxu0 %v1552_v21  ;;  %v1596_v59 = vld [vmem:[%s2073_s0 + $0x90] ss:$36 sps:$4 sm:$0xff]   ;;  %v1597_v60 = vld [vmem:[%s2073_s0 + $0x98] ss:$36 sps:$4 sm:$0xff]   ;;  %v1599_v62 = vld [vmem:[%s2072_s1 + $0x1e0] sm:$0xff]  }
  0x16   :  { %1367 = vmatprep.subr.bf16.mxu1 %v1553_v22  ;;  %v1600_v63 = vld [vmem:[%s2072_s1 + $0x120] sm:$0xff]   ;;  %v1603_v2 = vld [vmem:[%s2072_s1 + $0x1e8] sm:$0xff]   ;;  %v1610_v7 = vld [vmem:[%s2073_s0 + $0xd8] ss:$36 sps:$4 sm:$0xff]  }
  0x17   :  { %v1601_v0 = vld [vmem:[%s2072_s1 + $0x1a0] sm:$0xff]   ;;  %v1604_v3 = vld [vmem:[%s2072_s1 + $0x128] sm:$0xff]   ;;  %v1612_v9 = vld [vmem:[%s2072_s1 + $0x170] sm:$0xff]  }
  0x18   :  { %1328 = vmatpush3.bf16.msra.mxu0 %v1554_v23  ;;  %v1605_v4 = vld [vmem:[%s2072_s1 + $0x1a8] sm:$0xff]   ;;  %v1606_v5 = vld [vmem:[%s2073_s0 + $0xdc] ss:$36 sps:$4 sm:$0xff]   ;;  %v1613_v10 = vld [vmem:[%s2072_s1 + $0x1f0] sm:$0xff]  }
  0x19   :  { %1368 = vmatpush3.bf16.msra.mxu1 %v1555_v24  ;;  %1329 = vmatprep.subr.bf16.mxu0 %v1556_v25  ;;  %v1608_v6 = vld [vmem:[%s2073_s0 + $0xe4] ss:$36 sps:$4 sm:$0xff]   ;;  %v1614_v11 = vld [vmem:[%s2072_s1 + $0x130] sm:$0xff]   ;;  %v1616_v13 = vld [vmem:[%s2072_s1 + $0x178] sm:$0xff]  }
  0x1a   :  { %1369 = vmatprep.subr.bf16.mxu1 %v1557_v26  ;;  %v1611_v8 = vld [vmem:[%s2073_s0 + $0xe0] ss:$36 sps:$4 sm:$0xff]   ;;  %v1615_v12 = vld [vmem:[%s2072_s1 + $0x1b0] sm:$0xff]   ;;  %v1617_v14 = vld [vmem:[%s2072_s1 + $0x1f8] sm:$0xff]  }
  0x1b   :  { %v1618_v15 = vld [vmem:[%s2072_s1 + $0x138] sm:$0xff]   ;;  %v1620_v17 = vld [vmem:[%s2073_s0 + $0x10] ss:$36 sps:$4 sm:$0xff]   ;;  %v1626_v21 = vld [vmem:[%s2072_s1 + $0x200] sm:$0xff]  }
  0x1c   :  { %1330 = vmatpush3.bf16.msra.mxu0 %v1558_v27  ;;  %v1619_v16 = vld [vmem:[%s2072_s1 + $0x1b8] sm:$0xff]   ;;  %v1627_v22 = vld [vmem:[%s2072_s1 + $0x208] sm:$0xff]   ;;  %v1633_v26 = vld [vmem:[%s2073_s0 + $0x60] ss:$36 sps:$4 sm:$0xff]  }
  0x1d   :  { %1370 = vmatpush3.bf16.msra.mxu1 %v1559_v28  ;;  %1331 = vmatprep.subr.bf16.mxu0 %v1560_v29  ;;  %v1622_v18 = vld [vmem:[%s2073_s0 + $0x14] ss:$36 sps:$4 sm:$0xff]   ;;  %v1625_v20 = vld [vmem:[%s2073_s0 + $0x1c] ss:$36 sps:$4 sm:$0xff]   ;;  %v1630_v24 = vld [vmem:[%s2073_s0 + $0x64] ss:$36 sps:$4 sm:$0xff]  }
  0x1e   :  { %1371 = vmatprep.subr.bf16.mxu1 %v1561_v30  ;;  %v1623_v19 = vld [vmem:[%s2073_s0 + $0x18] ss:$36 sps:$4 sm:$0xff]   ;;  %v1634_v27 = vld [vmem:[%s2072_s1 + $0x210] sm:$0xff]   ;;  %v1636_v28 = vld [vmem:[%s2073_s0 + $0xa4] ss:$36 sps:$4 sm:$0xff]  }
  0x1f   :  { %v1628_v23 = vld [vmem:[%s2073_s0 + $0x5c] ss:$36 sps:$4 sm:$0xff]   ;;  %v1638_v29 = vld [vmem:[%s2073_s0 + $0xac] ss:$36 sps:$4 sm:$0xff]  }
  0x20   :  { %1332 = vmatpush3.bf16.msra.mxu0 %v1562_v31  ;;  %v1632_v25 = vld [vmem:[%s2073_s0 + $0x58] ss:$36 sps:$4 sm:$0xff]   ;;  %v1640_v31 = vld [vmem:[%s2073_s0 + $0xa0] ss:$36 sps:$4 sm:$0xff]   ;;  %v1644_v34 = vld [vmem:[%s2073_s0 + $0xec] ss:$36 sps:$4 sm:$0xff]  }
  0x21   :  { %1372 = vmatpush3.bf16.msra.mxu1 %v1563_v32  ;;  %1397 = vmatprep.subr.bf16.mxu0 %v1570_v37  ;;  %v1635_v30 = vld [vmem:[%s2072_s1 + $0x218] sm:$0xff]   ;;  %v1641_v32 = vld [vmem:[%s2073_s0 + $0xa8] ss:$36 sps:$4 sm:$0xff]   ;;  %v199_v37 = vld [vmem:[%s2074_s2] sm:$0xff] }
  0x22   :  { %1437 = vmatprep.subr.bf16.mxu1 %v1571_v38  ;;  %v1643_v36 = vld [vmem:[%s2072_s1 + $0x228] sm:$0xff]   ;;  %209 = vperm.xlu0 %1530, %v199_v37  }
  0x23   :  { %896 = vmatmul.mubr.bf16.vlgmr.msra.gmra.mrb[0].mxu0 %v1564_v33  ;;  %v1642_v33 = vld [vmem:[%s2072_s1 + $0x220] sm:$0xff]   ;;  %v1648_v38 = vld [vmem:[%s2073_s0 + $0xe8] ss:$36 sps:$4 sm:$0xff]  }
  0x24   :  { %961 = vmatmul.mubr.bf16.vlgmr.msra.gmra.mrb[0].mxu1 %v1567_v35  ;;  %1398 = vmatpush3.bf16.msra.mxu0 %v1572_v39  ;;  %v1646_v35 = vld [vmem:[%s2073_s0 + $0xf4] ss:$36 sps:$4 sm:$0xff]  }
  0x25   :  { %1438 = vmatpush3.bf16.msra.mxu1 %v1573_v40  ;;  %1399 = vmatprep.subr.bf16.mxu0 %v1574_v41  ;;  %v201_v39 = vld [vmem:[%s2074_s2 + $0x10] sm:$0xff] }
  0x26   :  { %1439 = vmatprep.subr.bf16.mxu1 %v1575_v42  ;;  %903 = vmatprep.mubr.bf16.mxu0 %v1578_v45  ;;  %v1650_v40 = vld [vmem:[%s2072_s1 + $0x230] sm:$0xff]   ;;  %v1652_v42 = vld [vmem:[%s2073_s0 + $0x20] ss:$36 sps:$4 sm:$0xff]   ;;  %v200_v45 = vld [vmem:[%s2074_s2 + $0x8] sm:$0xff] }
  0x27   :  { %968 = vmatprep.mubr.bf16.mxu1 %v1580_v46  ;;  %v1649_v41 = vld [vmem:[%s2073_s0 + $0xf0] ss:$36 sps:$4 sm:$0xff]   ;;  %219 = vperm.xlu1 %1531, %v201_v39   ;;  %v202_v46 = vld [vmem:[%s2074_s2 + $0x18] sm:$0xff] }
  0x28   :  { %1400 = vmatpush3.bf16.msra.mxu0 %v1576_v43  ;;  %v1653_v43 = vld [vmem:[%s2073_s0 + $0xb0] ss:$36 sps:$4 sm:$0xff]   ;;  %214 = vperm.xlu0 %1530, %v200_v45  }
  0x29   :  { %1440 = vmatpush3.bf16.msra.mxu1 %v1577_v44  ;;  %1401 = vmatprep.subr.bf16.mxu0 %v1584_v49  ;;  %v1651_v44 = vld [vmem:[%s2072_s1 + $0x238] sm:$0xff]  }
  0x2a   :  { %1441 = vmatprep.subr.bf16.mxu1 %v1585_v50  ;;  %v1655_v49 = vld [vmem:[%s2073_s0 + $0xf8] ss:$36 sps:$4 sm:$0xff]   ;;  %v204_v50 = vld [vmem:[%s2074_s2 + $0x28] sm:$0xff] }
  0x2b   :  { %904 = vmatmul.mubr.bf16.gmra.mrb[4].mxu0 %v1582_v47  ;;  %v1654_v47 = vld [vmem:[%s2073_s0 + $0x68] ss:$36 sps:$4 sm:$0xff]   ;;  %224 = vperm.xlu1 %1531, %v202_v46  }
  0x2c   :  { %969 = vmatmul.mubr.bf16.gmra.mrb[4].mxu1 %v1583_v48  ;;  %1402 = vmatpush3.bf16.msra.mxu0 %v1586_v51  ;;  %v203_v48 = vld [vmem:[%s2074_s2 + $0x20] sm:$0xff]  ;;  %v205_v51 = vld [vmem:[%s2074_s2 + $0x30] sm:$0xff] }
  0x2d   :  { %1442 = vmatpush3.bf16.msra.mxu1 %v1587_v52  ;;  %1403 = vmatprep.subr.bf16.mxu0 %v1588_v53  ;;  %v206_v52 = vld [vmem:[%s2074_s2 + $0x38] sm:$0xff] }
  0x2e   :  { %1443 = vmatprep.subr.bf16.mxu1 %v1589_v54  ;;  %911 = vmatprep.mubr.bf16.mxu0 %v1592_v57 }
  0x2f   :  { %976 = vmatprep.mubr.bf16.mxu1 %v1594_v58  ;;  %229 = vperm.xlu0 %1530, %v203_v48  }
  0x30   :  { %1404 = vmatpush3.bf16.msra.mxu0 %v1590_v55  ;;  %234 = vperm.xlu1 %1531, %v204_v50  }
  0x31   :  { %1444 = vmatpush3.bf16.msra.mxu1 %v1591_v56  ;;  %1405 = vmatprep.subr.bf16.mxu0 %v1598_v61 }
  0x32   :  { %1445 = vmatprep.subr.bf16.mxu1 %v1599_v62 }
  0x33   :  { %912 = vmatmul.mubr.bf16.gmra.mrb[8].mxu0 %v1596_v59  ;;  %239 = vperm.xlu0 %1530, %v205_v51  }
  0x34   :  { %977 = vmatmul.mubr.bf16.gmra.mrb[8].mxu1 %v1597_v60  ;;  %1406 = vmatpush3.bf16.msra.mxu0 %v1600_v63 }
  0x35   :  { %1446 = vmatpush3.bf16.msra.mxu1 %v1601_v0  ;;  %1407 = vmatprep.subr.bf16.mxu0 %v1602_v1 }
  0x36   :  { %1447 = vmatprep.subr.bf16.mxu1 %v1603_v2  ;;  %919 = vmatprep.mubr.bf16.mxu0 %v1606_v5 }
  0x37   :  { %984 = vmatprep.mubr.bf16.mxu1 %v1608_v6  ;;  %244 = vperm.xlu1 %1531, %v206_v52  }
  0x38   :  { %1408 = vmatpush3.bf16.msra.mxu0 %v1604_v3 }
  0x39   :  { %1448 = vmatpush3.bf16.msra.mxu1 %v1605_v4  ;;  %1409 = vmatprep.subr.bf16.mxu0 %v1612_v9 }
  0x3a   :  { %1449 = vmatprep.subr.bf16.mxu1 %v1613_v10 }
  0x3b   :  { %920 = vmatmul.mubr.bf16.gmra.mrb[12].mxu0 %v1610_v7 }
  0x3c   :  { %985 = vmatmul.mubr.bf16.gmra.mrb[12].mxu1 %v1611_v8  ;;  %1410 = vmatpush3.bf16.msra.mxu0 %v1614_v11 }
  0x3d   :  { %1450 = vmatpush3.bf16.msra.mxu1 %v1615_v12  ;;  %1411 = vmatprep.subr.bf16.mxu0 %v1616_v13 }
  0x3e   :  { %1451 = vmatprep.subr.bf16.mxu1 %v1617_v14  ;;  %1025 = vmatprep.mubr.bf16.mxu0 %v1622_v18 }
  0x3f   :  { %1090 = vmatprep.mubr.bf16.mxu1 %v1625_v20 }
  0x40   :  { %1412 = vmatpush3.bf16.msra.mxu0 %v1618_v15 }
  0x41   :  { %1452 = vmatpush3.bf16.msra.mxu1 %v1619_v16  ;;  %1489 = vmatprep.subr.bf16.mxu0 %v1626_v21 }
  0x42   :  { %1513 = vmatprep.subr.bf16.mxu1 %v1626_v21 }
  0x43   :  { %1026 = vmatmul.mubr.bf16.vlgmr.msra.gmra.mrb[16].mxu0 %v1620_v17 }
  0x44   :  { %1091 = vmatmul.mubr.bf16.vlgmr.msra.gmra.mrb[16].mxu1 %v1623_v19  ;;  %1490 = vmatpush3.bf16.msra.mxu0 %v1626_v21 }
  0x45   :  { %1521 = vmatpush3.bf16.msra.mxu1 %v1626_v21  ;;  %1491 = vmatprep.subr.bf16.mxu0 %v1627_v22 }
  0x46   :  { %1514 = vmatprep.subr.bf16.mxu1 %v1627_v22  ;;  %1033 = vmatprep.mubr.bf16.mxu0 %v1628_v23 }
  0x47   :  { %1098 = vmatprep.mubr.bf16.mxu1 %v1630_v24 }
  0x48   :  { %1492 = vmatpush3.bf16.msra.mxu0 %v1627_v22 }
  0x49   :  { %1522 = vmatpush3.bf16.msra.mxu1 %v1627_v22  ;;  %1493 = vmatprep.subr.bf16.mxu0 %v1634_v27 }
  0x4a   :  { %1515 = vmatprep.subr.bf16.mxu1 %v1634_v27 }
  0x4b   :  { %1034 = vmatmul.mubr.bf16.gmra.mrb[20].mxu0 %v1632_v25 }
  0x4c   :  { %1099 = vmatmul.mubr.bf16.gmra.mrb[20].mxu1 %v1633_v26  ;;  %1041 = vmatprep.mubr.bf16.mxu0 %v1636_v28 }
  0x4d   :  { %1494 = vmatpush3.bf16.msra.mxu0 %v1634_v27  ;;  %1106 = vmatprep.mubr.bf16.mxu1 %v1638_v29 }
  0x4e   :  { %1523 = vmatpush3.bf16.msra.mxu1 %v1634_v27  ;;  %1495 = vmatprep.subr.bf16.mxu0 %v1635_v30 }
  0x4f   :  { %1516 = vmatprep.subr.bf16.mxu1 %v1635_v30 }
  0x51   :  { %1496 = vmatpush3.bf16.msra.mxu0 %v1635_v30 }
  0x52   :  { %1524 = vmatpush3.bf16.msra.mxu1 %v1635_v30  ;;  %1497 = vmatprep.subr.bf16.mxu0 %v1642_v33 }
  0x53   :  { %1042 = vmatmul.mubr.bf16.gmra.mrb[24].mxu0 %v1640_v31  ;;  %1517 = vmatprep.subr.bf16.mxu1 %v1642_v33 }
  0x54   :  { %1107 = vmatmul.mubr.bf16.gmra.mrb[24].mxu1 %v1641_v32  ;;  %1049 = vmatprep.mubr.bf16.mxu0 %v1644_v34 }
  0x55   :  { %1498 = vmatpush3.bf16.msra.mxu0 %v1642_v33  ;;  %1114 = vmatprep.mubr.bf16.mxu1 %v1646_v35 }
  0x56   :  { %1525 = vmatpush3.bf16.msra.mxu1 %v1642_v33  ;;  %1499 = vmatprep.subr.bf16.mxu0 %v1643_v36 }
  0x57   :  { %1518 = vmatprep.subr.bf16.mxu1 %v1643_v36 }
  0x59   :  { %1500 = vmatpush3.bf16.msra.mxu0 %v1643_v36 }
  0x5a   :  { %1526 = vmatpush3.bf16.msra.mxu1 %v1643_v36  ;;  %1501 = vmatprep.subr.bf16.mxu0 %v1650_v40 }
  0x5b   :  { %1050 = vmatmul.mubr.bf16.gmra.mrb[28].mxu0 %v1648_v38  ;;  %1519 = vmatprep.subr.bf16.mxu1 %v1650_v40 }
  0x5c   :  { %1115 = vmatmul.mubr.bf16.gmra.mrb[28].mxu1 %v1649_v41  ;;  %1505 = vmatprep.mubr.bf16.mxu0 %v1652_v42 }
  0x5d   :  { %1502 = vmatpush3.bf16.msra.mxu0 %v1650_v40  ;;  %1509 = vmatprep.mubr.bf16.mxu1 %v1653_v43 }
  0x5e   :  { %1527 = vmatpush3.bf16.msra.mxu1 %v1650_v40  ;;  %1503 = vmatprep.subr.bf16.mxu0 %v1651_v44 }
  0x5f   :  { %1520 = vmatprep.subr.bf16.mxu1 %v1651_v44 }
  0x61   :  { %1504 = vmatpush3.bf16.msra.mxu0 %v1651_v44 }
  0x62   :  { %1528 = vmatpush3.bf16.msra.mxu1 %v1651_v44 }
  0x64   :  { %1506 = vmatmul.mubr.bf16.vlgmr.msra.gmra.mrb[32].mxu0 %v1654_v47 }
  0x65   :  { %1510 = vmatmul.mubr.bf16.vlgmr.msra.gmra.mrb[32].mxu1 %v1655_v49 }
  0xa1   :  { %v210_v53 = vpop.permute.xlu0 %209 }
  0xa6   :  { %v220_v3 = vpop.permute.xlu1 %219 }
  0xa7   :  { %v215_v55 = vpop.permute.xlu0 %214 }
  0xaa   :  { %v225_v9 = vpop.permute.xlu1 %224 }
  0xae   :  { %v230_v25 = vpop.permute.xlu0 %229 }
  0xaf   :  { %v235_v27 = vpop.permute.xlu1 %234 }
  0xb2   :  { %v240_v43 = vpop.permute.xlu0 %239 }
  0xb6   :  { %v245_v44 = vpop.permute.xlu1 %244 }
  0xf6   :  { %v1333_v54 = vpop.f32.mrb[0].mxu0 }
  0xf7   :  { %v1373_v56 = vpop.f32.mrb[0].mxu1  ;;  %v1334_v57 = vpop.f32.mrb[1].mxu0 }
  0xf8   :  { %v1335_v58 = vadd.f32 %v1334_v57, %v1333_v54  ;;  %v1374_v59 = vpop.f32.mrb[1].mxu1  ;;  %v1336_v60 = vpop.f32.mrb[2].mxu0 }
  0xf9   :  { %v1375_v61 = vadd.f32 %v1374_v59, %v1373_v56  ;;  %v1376_v62 = vpop.f32.mrb[2].mxu1  ;;  %v1337_v63 = vpop.f32.mrb[3].mxu0 }
  0xfa   :  { %v898_v0 = vadd.f32 %v1335_v58, %v210_v53  ;;  %v1338_v1 = vadd.f32 %v1337_v63, %v1336_v60  ;;  %v1377_v2 = vpop.f32.mrb[3].mxu1 }
  0xfb   :  { %v1378_v4 = vadd.f32 %v1377_v2, %v1376_v62 }
  0xfc   :  { %v2025_v5 = vadd.f32 %v1375_v61, %v898_v0  ;;  %v901_v6 = vadd.f32 %v1338_v1, %v215_v55 }
  0xfe   :  { %v2027_v7 = vadd.f32 %v1378_v4, %v901_v6  ;;  %v1339_v8 = vpop.f32.mrb[4].mxu0 }
  0xff   :  { %v1379_v10 = vpop.f32.mrb[4].mxu1  ;;  %v1340_v11 = vpop.f32.mrb[5].mxu0 }
 0x100   :  { %v1341_v12 = vadd.f32 %v1340_v11, %v1339_v8  ;;  %v1380_v13 = vpop.f32.mrb[5].mxu1  ;;  %v1342_v14 = vpop.f32.mrb[6].mxu0 }
 0x101   :  { %v1381_v15 = vadd.f32 %v1380_v13, %v1379_v10  ;;  %v1382_v16 = vpop.f32.mrb[6].mxu1  ;;  %v1343_v17 = vpop.f32.mrb[7].mxu0 }
 0x102   :  { %v906_v18 = vadd.f32 %v1341_v12, %v220_v3  ;;  %v1344_v19 = vadd.f32 %v1343_v17, %v1342_v14  ;;  %v1383_v20 = vpop.f32.mrb[7].mxu1 }
 0x103   :  { %v1384_v21 = vadd.f32 %v1383_v20, %v1382_v16 }
 0x104   :  { %v971_v22 = vadd.f32 %v1381_v15, %v906_v18  ;;  %v909_v23 = vadd.f32 %v1344_v19, %v225_v9 }
 0x106   :  { %v2029_v24 = vadd.f32 %v1384_v21, %v909_v23  ;;  %v1345_v26 = vpop.f32.mrb[8].mxu0 }
 0x107   :  { %v1385_v28 = vpop.f32.mrb[8].mxu1  ;;  %v1346_v29 = vpop.f32.mrb[9].mxu0 }
 0x108   :  { %v1347_v30 = vadd.f32 %v1346_v29, %v1345_v26  ;;  %v1386_v31 = vpop.f32.mrb[9].mxu1  ;;  %v1348_v32 = vpop.f32.mrb[10].mxu0 }
 0x109   :  { %v1387_v33 = vadd.f32 %v1386_v31, %v1385_v28  ;;  %v1388_v34 = vpop.f32.mrb[10].mxu1  ;;  %v1349_v35 = vpop.f32.mrb[11].mxu0 }
 0x10a   :  { %v914_v36 = vadd.f32 %v1347_v30, %v230_v25  ;;  %v1350_v37 = vadd.f32 %v1349_v35, %v1348_v32  ;;  %v1389_v38 = vpop.f32.mrb[11].mxu1 }
 0x10b   :  { %v1390_v39 = vadd.f32 %v1389_v38, %v1388_v34 }
 0x10c   :  { %v979_v40 = vadd.f32 %v1387_v33, %v914_v36  ;;  %v917_v41 = vadd.f32 %v1350_v37, %v235_v27 }
 0x10e   :  { %v2031_v42 = vadd.f32 %v1390_v39, %v917_v41  ;;  %v1351_v45 = vpop.f32.mrb[12].mxu0 }
 0x10f   :  { %v1391_v46 = vpop.f32.mrb[12].mxu1  ;;  %v1352_v47 = vpop.f32.mrb[13].mxu0 }
 0x110   :  { %v1392_v48 = vpop.f32.mrb[13].mxu1  ;;  %v1353_v49 = vadd.f32 %v1352_v47, %v1351_v45  ;;  %v1354_v51 = vpop.f32.mrb[14].mxu0 }
 0x111   :  { %v1393_v50 = vadd.f32 %v1392_v48, %v1391_v46  ;;  %v1394_v52 = vpop.f32.mrb[14].mxu1  ;;  %v1355_v53 = vpop.f32.mrb[15].mxu0 }
 0x112   :  { %v1395_v54 = vpop.f32.mrb[15].mxu1  ;;  %v922_v55 = vadd.f32 %v1353_v49, %v240_v43  ;;  %v1356_v56 = vadd.f32 %v1355_v53, %v1354_v51 }
 0x113   :  { %v1396_v57 = vadd.f32 %v1395_v54, %v1394_v52 }
 0x114   :  { %v987_v58 = vadd.f32 %v1393_v50, %v922_v55  ;;  %v925_v59 = vadd.f32 %v1356_v56, %v245_v44 }
 0x116   :  { %v990_v60 = vadd.f32 %v1396_v57, %v925_v59  ;;  %v1413_v61 = vpop.f32.mrb[16].mxu0 }
 0x117   :  { %v1414_v62 = vpop.f32.mrb[17].mxu0  ;;  %v1453_v63 = vpop.f32.mrb[16].mxu1 }
 0x118   :  { %v1415_v0 = vadd.f32 %v1414_v62, %v1413_v61  ;;  %v1416_v1 = vpop.f32.mrb[18].mxu0  ;;  %v1454_v2 = vpop.f32.mrb[17].mxu1 }
 0x119   :  { %v1417_v3 = vpop.f32.mrb[19].mxu0  ;;  %v1455_v6 = vadd.f32 %v1454_v2, %v1453_v63  ;;  %v1456_v8 = vpop.f32.mrb[18].mxu1 }
 0x11a   :  { %v1028_v4 = vadd.f32 %v1415_v0, %v2025_v5  ;;  %v1418_v9 = vadd.f32 %v1417_v3, %v1416_v1  ;;  %v1457_v10 = vpop.f32.mrb[19].mxu1 }
 0x11b   :  { %v1458_v12 = vadd.f32 %v1457_v10, %v1456_v8 }
 0x11c   :  { %v1031_v11 = vadd.f32 %v1418_v9, %v2027_v7  ;;  %v1093_v13 = vadd.f32 %v1455_v6, %v1028_v4 }
 0x11e   :  { %v1419_v14 = vpop.f32.mrb[20].mxu0  ;;  %v2035_v15 = vadd.f32 %v1458_v12, %v1031_v11 }
 0x11f   :  { %v1420_v16 = vpop.f32.mrb[21].mxu0  ;;  %v1459_v17 = vpop.f32.mrb[20].mxu1 }
 0x120   :  { %v1421_v18 = vadd.f32 %v1420_v16, %v1419_v14  ;;  %v1422_v19 = vpop.f32.mrb[22].mxu0  ;;  %v1460_v20 = vpop.f32.mrb[21].mxu1 }
 0x121   :  { %v1423_v21 = vpop.f32.mrb[23].mxu0  ;;  %v1461_v25 = vadd.f32 %v1460_v20, %v1459_v17  ;;  %v1462_v5 = vpop.f32.mrb[22].mxu1 }
 0x122   :  { %v1036_v23 = vadd.f32 %v1421_v18, %v971_v22  ;;  %v1424_v26 = vadd.f32 %v1423_v21, %v1422_v19  ;;  %v1463_v27 = vpop.f32.mrb[23].mxu1 }
 0x123   :  { %v1464_v29 = vadd.f32 %v1463_v27, %v1462_v5 }
 0x124   :  { %v1039_v28 = vadd.f32 %v1424_v26, %v2029_v24  ;;  %v1101_v7 = vadd.f32 %v1461_v25, %v1036_v23 }
 0x126   :  { %v1425_v30 = vpop.f32.mrb[24].mxu0  ;;  %v1104_v31 = vadd.f32 %v1464_v29, %v1039_v28 }
 0x127   :  { %v1426_v32 = vpop.f32.mrb[25].mxu0  ;;  %v1465_v33 = vpop.f32.mrb[24].mxu1 }
 0x128   :  { %v1427_v34 = vadd.f32 %v1426_v32, %v1425_v30  ;;  %v1428_v35 = vpop.f32.mrb[26].mxu0  ;;  %v1466_v36 = vpop.f32.mrb[25].mxu1 }
 0x129   :  { %v1429_v37 = vpop.f32.mrb[27].mxu0  ;;  %v1467_v39 = vadd.f32 %v1466_v36, %v1465_v33  ;;  %v1468_v41 = vpop.f32.mrb[26].mxu1 }
 0x12a   :  { %v1044_v38 = vadd.f32 %v1427_v34, %v979_v40  ;;  %v1430_v22 = vadd.f32 %v1429_v37, %v1428_v35  ;;  %v1469_v43 = vpop.f32.mrb[27].mxu1 }
 0x12b   :  { %v1470_v45 = vadd.f32 %v1469_v43, %v1468_v41 }
 0x12c   :  { %v1047_v44 = vadd.f32 %v1430_v22, %v2031_v42  ;;  %v1109_v46 = vadd.f32 %v1467_v39, %v1044_v38 }
 0x12e   :  { %v1431_v24 = vpop.f32.mrb[28].mxu0  ;;  %v1112_v47 = vadd.f32 %v1470_v45, %v1047_v44 }
 0x12f   :  { %v1432_v48 = vpop.f32.mrb[29].mxu0  ;;  %v1471_v49 = vpop.f32.mrb[28].mxu1 }
 0x130   :  { %v1433_v50 = vadd.f32 %v1432_v48, %v1431_v24  ;;  %v1434_v51 = vpop.f32.mrb[30].mxu0  ;;  %v1472_v52 = vpop.f32.mrb[29].mxu1 }
 0x131   :  { %v1435_v53 = vpop.f32.mrb[31].mxu0  ;;  %v1473_v55 = vadd.f32 %v1472_v52, %v1471_v49  ;;  %v1474_v56 = vpop.f32.mrb[30].mxu1 }
 0x132   :  { %v1052_v54 = vadd.f32 %v1433_v50, %v987_v58  ;;  %v1436_v40 = vadd.f32 %v1435_v53, %v1434_v51  ;;  %v1475_v57 = vpop.f32.mrb[31].mxu1 }
 0x133   :  { %v1476_v61 = vadd.f32 %v1475_v57, %v1474_v56 }
 0x134   :  { %v1055_v59 = vadd.f32 %v1436_v40, %v990_v60  ;;  %v1117_v62 = vadd.f32 %v1473_v55, %v1052_v54 }
 0x136   :  { %v1120_v63 = vadd.f32 %v1476_v61, %v1055_v59 }
 0x137   :  { %v1507_v42 = vpop.f32.mrb[32].mxu0 }
 0x138   :  { %v1166_v0 = vadd.f32 %v1507_v42, %v1101_v7  ;;  %v1511_v1 = vpop.f32.mrb[32].mxu1  ;;  %v1157_v2 = vpop.f32.mrb[33].mxu0 }
 0x139   :  { %v1182_v3 = vadd.f32 %v1511_v1, %v1117_v62  ;;  %v1158_v4 = vadd.f32 %v1157_v2, %v1093_v13  ;;  %v1173_v6 = vpop.f32.mrb[33].mxu1  ;;  %v1508_v8 = vpop.f32.mrb[34].mxu0 }
 0x13a   :  { %v1190_v9 = vmax.f32 %v1166_v0, 0.0  ;;  %v1174_v10 = vadd.f32 %v1173_v6, %v1109_v46  ;;  %v1169_v58 = vadd.f32 %v1508_v8, %v1104_v31  ;;  %v1512_v11 = vpop.f32.mrb[34].mxu1  ;;  %v1160_v12 = vpop.f32.mrb[35].mxu0 }
 0x13b   :  { %v1194_v14 = vmax.f32 %v1182_v3, 0.0  ;;  %v1188_v16 = vmax.f32 %v1158_v4, 0.0  ;;  %v1185_v60 = vadd.f32 %v1512_v11, %v1120_v63  ;;  %v1161_v17 = vadd.f32 %v1160_v12, %v2035_v15  ;;  %v1176_v18 = vpop.f32.mrb[35].mxu1 }
 0x13c   :  { %1199 = vst.msk [vmem:[%s2075_s3 + $0x10] sm:$0xff] %vm1196_vm0, %v1190_v9  ;;  %v1192_v19 = vmax.f32 %v1174_v10, 0.0  ;;  %v1191_v13 = vmax.f32 %v1169_v58, 0.0  ;;  %v1177_v20 = vadd.f32 %v1176_v18, %v1112_v47 }
 0x13d   :  { %1203 = vst.msk [vmem:[%s2075_s3 + $0x30] sm:$0xff] %vm1196_vm0, %v1194_v14  ;;  %1197 = vst.msk [vmem:[%s2075_s3] sm:$0xff] %vm1196_vm0, %v1188_v16  ;;  %v1195_v15 = vmax.f32 %v1185_v60, 0.0  ;;  %v1189_v21 = vmax.f32 %v1161_v17, 0.0 }
 0x13e   :  { %1201 = vst.msk [vmem:[%s2075_s3 + $0x20] sm:$0xff] %vm1196_vm0, %v1192_v19  ;;  %1200 = vst.msk [vmem:[%s2075_s3 + $0x18] sm:$0xff] %vm1196_vm0, %v1191_v13  ;;  %v1193_v23 = vmax.f32 %v1177_v20, 0.0 }
 0x13f   :  { %1204 = vst.msk [vmem:[%s2075_s3 + $0x38] sm:$0xff] %vm1196_vm0, %v1195_v15  ;;  %1198 = vst.msk [vmem:[%s2075_s3 + $0x8] sm:$0xff] %vm1196_vm0, %v1189_v21 }
 0x140   :  { %1202 = vst.msk [vmem:[%s2075_s3 + $0x28] sm:$0xff] %vm1196_vm0, %v1193_v23 }

// kernel: affine_invariant_autoencoder_forward.12
= control target key start
LH: loop header
LB: loop body
LE: loop exit
PB: predicated region body
PF: predicated region fallthrough
CT: control target
= control target key end

     0   :  { %vm2113_vm0 = vcmask 64512   ;;  %s3779_s1 = inlined_call_operand.vmem [shape: bf16[1024,392], index: 1, kind: input, shape index: {}]   ;;  %s3780_s0 = inlined_call_operand.vmem [shape: bf16[32,1024], index: 0, kind: input, shape index: {}]   ;;  %s3781_s2 = inlined_call_operand.vmem [shape: f32[32,1], index: 2, kind: input, shape index: {}]   ;;  %s3782_s3 = inlined_call_operand.vmem [shape: f32[32,392], index: 3, kind: output, shape index: {}]  }
   0x1   :  { %v2470_v0 = vld [vmem:[%s3779_s1 + $0x4] ss:$16 sps:$4 sm:$0xff]   ;;  %v2472_v1 = vld [vmem:[%s3779_s1 + $0xc] ss:$16 sps:$4 sm:$0xff]   ;;  %v2474_v2 = vld [vmem:[%s3779_s1] ss:$16 sps:$4 sm:$0xff]  }
   0x2   :  { %1670 = vmatprep.subr.bf16.mxu0 %v2470_v0  ;;  %v2475_v3 = vld [vmem:[%s3779_s1 + $0x8] ss:$16 sps:$4 sm:$0xff]   ;;  %1882 = vmatprep.subr.bf16.mxu1 %v2472_v1  ;;  %v2476_v4 = vld [vmem:[%s3779_s1 + $0x24] ss:$16 sps:$4 sm:$0xff]   ;;  %v2478_v5 = vld [vmem:[%s3779_s1 + $0x2c] ss:$16 sps:$4 sm:$0xff]  }
   0x3   :  { %1671 = vmatpush1.bf16.msra.mxu0 %v2474_v2  ;;  %1883 = vmatpush1.bf16.msra.mxu1 %v2475_v3  ;;  %v2480_v6 = vld [vmem:[%s3779_s1 + $0x20] ss:$16 sps:$4 sm:$0xff]   ;;  %v2481_v7 = vld [vmem:[%s3779_s1 + $0x28] ss:$16 sps:$4 sm:$0xff]   ;;  %v2482_v8 = vld [vmem:[%s3779_s1 + $0x44] ss:$16 sps:$4 sm:$0xff]  }
   0x4   :  { %1672 = vmatprep.subr.bf16.mxu0 %v2476_v4  ;;  %1884 = vmatprep.subr.bf16.mxu1 %v2478_v5  ;;  %v2484_v9 = vld [vmem:[%s3779_s1 + $0x4c] ss:$16 sps:$4 sm:$0xff]   ;;  %v2486_v10 = vld [vmem:[%s3779_s1 + $0x40] ss:$16 sps:$4 sm:$0xff]   ;;  %v2487_v11 = vld [vmem:[%s3779_s1 + $0x48] ss:$16 sps:$4 sm:$0xff]  }
   0x5   :  { %v2488_v12 = vld [vmem:[%s3779_s1 + $0x64] ss:$16 sps:$4 sm:$0xff]   ;;  %v2490_v13 = vld [vmem:[%s3779_s1 + $0x6c] ss:$16 sps:$4 sm:$0xff]   ;;  %v2492_v14 = vld [vmem:[%s3779_s1 + $0x60] ss:$16 sps:$4 sm:$0xff]  }
   0x6   :  { %v2493_v15 = vld [vmem:[%s3779_s1 + $0x68] ss:$16 sps:$4 sm:$0xff]   ;;  %v2494_v16 = vld [vmem:[%s3779_s1 + $0x84] ss:$16 sps:$4 sm:$0xff]   ;;  %v2496_v17 = vld [vmem:[%s3779_s1 + $0x8c] ss:$16 sps:$4 sm:$0xff]  }
   0x7   :  { %1673 = vmatpush1.bf16.msra.mxu0 %v2480_v6  ;;  %1885 = vmatpush1.bf16.msra.mxu1 %v2481_v7  ;;  %v2498_v18 = vld [vmem:[%s3779_s1 + $0x80] ss:$16 sps:$4 sm:$0xff]   ;;  %v2499_v19 = vld [vmem:[%s3779_s1 + $0x88] ss:$16 sps:$4 sm:$0xff]   ;;  %v2500_v20 = vld [vmem:[%s3779_s1 + $0xa4] ss:$16 sps:$4 sm:$0xff]  }
   0x8   :  { %1674 = vmatprep.subr.bf16.mxu0 %v2482_v8  ;;  %1886 = vmatprep.subr.bf16.mxu1 %v2484_v9  ;;  %v2502_v21 = vld [vmem:[%s3779_s1 + $0xac] ss:$16 sps:$4 sm:$0xff]   ;;  %v2504_v22 = vld [vmem:[%s3779_s1 + $0xa0] ss:$16 sps:$4 sm:$0xff]   ;;  %v2505_v23 = vld [vmem:[%s3779_s1 + $0xa8] ss:$16 sps:$4 sm:$0xff]  }
   0x9   :  { %v2506_v24 = vld [vmem:[%s3779_s1 + $0xc4] ss:$16 sps:$4 sm:$0xff]   ;;  %v2508_v25 = vld [vmem:[%s3779_s1 + $0xcc] ss:$16 sps:$4 sm:$0xff]   ;;  %v2510_v26 = vld [vmem:[%s3779_s1 + $0xc0] ss:$16 sps:$4 sm:$0xff]  }
   0xa   :  { %v2511_v27 = vld [vmem:[%s3779_s1 + $0xc8] ss:$16 sps:$4 sm:$0xff]   ;;  %v2512_v28 = vld [vmem:[%s3779_s1 + $0xe4] ss:$16 sps:$4 sm:$0xff]   ;;  %v2514_v29 = vld [vmem:[%s3779_s1 + $0xec] ss:$16 sps:$4 sm:$0xff]  }
   0xb   :  { %1675 = vmatpush1.bf16.msra.mxu0 %v2486_v10  ;;  %1887 = vmatpush1.bf16.msra.mxu1 %v2487_v11  ;;  %v2516_v30 = vld [vmem:[%s3779_s1 + $0xe0] ss:$16 sps:$4 sm:$0xff]   ;;  %v2517_v31 = vld [vmem:[%s3779_s1 + $0xe8] ss:$16 sps:$4 sm:$0xff]   ;;  %v2518_v32 = vld [vmem:[%s3779_s1 + $0x104] ss:$16 sps:$4 sm:$0xff]  }
   0xc   :  { %1676 = vmatprep.subr.bf16.mxu0 %v2488_v12  ;;  %1888 = vmatprep.subr.bf16.mxu1 %v2490_v13  ;;  %v2520_v33 = vld [vmem:[%s3779_s1 + $0x10c] ss:$16 sps:$4 sm:$0xff]   ;;  %v2522_v34 = vld [vmem:[%s3779_s1 + $0x100] ss:$16 sps:$4 sm:$0xff]   ;;  %v2523_v35 = vld [vmem:[%s3779_s1 + $0x108] ss:$16 sps:$4 sm:$0xff]  }
   0xd   :  { %v2524_v36 = vld [vmem:[%s3779_s1 + $0x124] ss:$16 sps:$4 sm:$0xff]   ;;  %v2526_v37 = vld [vmem:[%s3779_s1 + $0x12c] ss:$16 sps:$4 sm:$0xff]   ;;  %v2528_v38 = vld [vmem:[%s3779_s1 + $0x120] ss:$16 sps:$4 sm:$0xff]  }
   0xe   :  { %v2529_v39 = vld [vmem:[%s3779_s1 + $0x128] ss:$16 sps:$4 sm:$0xff]   ;;  %v2530_v40 = vld [vmem:[%s3779_s1 + $0x144] ss:$16 sps:$4 sm:$0xff]   ;;  %v2532_v41 = vld [vmem:[%s3779_s1 + $0x14c] ss:$16 sps:$4 sm:$0xff]  }
   0xf   :  { %1677 = vmatpush1.bf16.msra.mxu0 %v2492_v14  ;;  %1889 = vmatpush1.bf16.msra.mxu1 %v2493_v15  ;;  %v2534_v42 = vld [vmem:[%s3779_s1 + $0x140] ss:$16 sps:$4 sm:$0xff]   ;;  %v2535_v43 = vld [vmem:[%s3779_s1 + $0x148] ss:$16 sps:$4 sm:$0xff]   ;;  %v2536_v44 = vld [vmem:[%s3779_s1 + $0x164] ss:$16 sps:$4 sm:$0xff]  }
  0x10   :  { %1678 = vmatprep.subr.bf16.mxu0 %v2494_v16  ;;  %1890 = vmatprep.subr.bf16.mxu1 %v2496_v17  ;;  %v2538_v45 = vld [vmem:[%s3779_s1 + $0x16c] ss:$16 sps:$4 sm:$0xff]   ;;  %v14_v46 = vld [vmem:[%s3780_s0] sm:$0xff]  ;;  %v2541_v49 = vld [vmem:[%s3779_s1 + $0x168] ss:$16 sps:$4 sm:$0xff]  }
  0x11   :  { %v18_v47 = vld [vmem:[%s3780_s0 + $0x20] sm:$0xff]  ;;  %v2544_v52 = vld [vmem:[%s3779_s1 + $0x18c] ss:$16 sps:$4 sm:$0xff]   ;;  %v2547_v54 = vld [vmem:[%s3779_s1 + $0x188] ss:$16 sps:$4 sm:$0xff]  }
  0x12   :  { %v2540_v48 = vld [vmem:[%s3779_s1 + $0x160] ss:$16 sps:$4 sm:$0xff]   ;;  %v2132_v50 = vcombine.high %v14_v46, %v18_v47  ;;  %v2542_v51 = vld [vmem:[%s3779_s1 + $0x184] ss:$16 sps:$4 sm:$0xff]   ;;  %v2550_v56 = vld [vmem:[%s3779_s1 + $0x1ac] ss:$16 sps:$4 sm:$0xff]   ;;  %v2131_v5 = vcombine.low %v14_v46, %v18_v47 }
  0x13   :  { %1679 = vmatpush1.bf16.msra.mxu0 %v2498_v18  ;;  %1891 = vmatpush1.bf16.msra.mxu1 %v2499_v19  ;;  %v2546_v53 = vld [vmem:[%s3779_s1 + $0x180] ss:$16 sps:$4 sm:$0xff]   ;;  %v2548_v55 = vld [vmem:[%s3779_s1 + $0x1a4] ss:$16 sps:$4 sm:$0xff]   ;;  %v2553_v58 = vld [vmem:[%s3779_s1 + $0x1a8] ss:$16 sps:$4 sm:$0xff]  }
  0x14   :  { %1680 = vmatprep.subr.bf16.mxu0 %v2500_v20  ;;  %1892 = vmatprep.subr.bf16.mxu1 %v2502_v21  ;;  %v2552_v57 = vld [vmem:[%s3779_s1 + $0x1a0] ss:$16 sps:$4 sm:$0xff]   ;;  %v2554_v59 = vld [vmem:[%s3779_s1 + $0x1c4] ss:$16 sps:$4 sm:$0xff]   ;;  %v2556_v60 = vld [vmem:[%s3779_s1 + $0x1cc] ss:$16 sps:$4 sm:$0xff]  }
  0x15   :  { %1702 = vmatprep.mubr.bf16.mxu0 %v2132_v50  ;;  %1914 = vmatprep.mubr.bf16.mxu1 %v2132_v50  ;;  %v2558_v61 = vld [vmem:[%s3779_s1 + $0x1c0] ss:$16 sps:$4 sm:$0xff]   ;;  %v2559_v62 = vld [vmem:[%s3779_s1 + $0x1c8] ss:$16 sps:$4 sm:$0xff]   ;;  %v2560_v63 = vld [vmem:[%s3779_s1 + $0x1e4] ss:$16 sps:$4 sm:$0xff]  }
  0x16   :  { %v2562_v0 = vld [vmem:[%s3779_s1 + $0x1ec] ss:$16 sps:$4 sm:$0xff]   ;;  %v2564_v1 = vld [vmem:[%s3779_s1 + $0x1e0] ss:$16 sps:$4 sm:$0xff]   ;;  %v2565_v2 = vld [vmem:[%s3779_s1 + $0x1e8] ss:$16 sps:$4 sm:$0xff]  }
  0x17   :  { %1681 = vmatpush1.bf16.msra.mxu0 %v2504_v22  ;;  %1893 = vmatpush1.bf16.msra.mxu1 %v2505_v23  ;;  %v2568_v3 = vld [vmem:[%s3779_s1 + $0x204] ss:$16 sps:$4 sm:$0xff]   ;;  %v2571_v4 = vld [vmem:[%s3779_s1 + $0x20c] ss:$16 sps:$4 sm:$0xff]   ;;  %v2566_v6 = vld [vmem:[%s3779_s1 + $0x200] ss:$16 sps:$4 sm:$0xff]  }
  0x18   :  { %1682 = vmatprep.subr.bf16.mxu0 %v2506_v24  ;;  %1894 = vmatprep.subr.bf16.mxu1 %v2508_v25  ;;  %v2569_v7 = vld [vmem:[%s3779_s1 + $0x208] ss:$16 sps:$4 sm:$0xff]   ;;  %v2574_v8 = vld [vmem:[%s3779_s1 + $0x224] ss:$16 sps:$4 sm:$0xff]   ;;  %v2577_v9 = vld [vmem:[%s3779_s1 + $0x22c] ss:$16 sps:$4 sm:$0xff]  }
  0x19   :  { %v2572_v10 = vld [vmem:[%s3779_s1 + $0x220] ss:$16 sps:$4 sm:$0xff]   ;;  %v2575_v11 = vld [vmem:[%s3779_s1 + $0x228] ss:$16 sps:$4 sm:$0xff]   ;;  %v2580_v12 = vld [vmem:[%s3779_s1 + $0x244] ss:$16 sps:$4 sm:$0xff]  }
  0x1a   :  { %v2583_v13 = vld [vmem:[%s3779_s1 + $0x24c] ss:$16 sps:$4 sm:$0xff]   ;;  %v2578_v14 = vld [vmem:[%s3779_s1 + $0x240] ss:$16 sps:$4 sm:$0xff]   ;;  %v2581_v15 = vld [vmem:[%s3779_s1 + $0x248] ss:$16 sps:$4 sm:$0xff]  }
  0x1b   :  { %1683 = vmatpush1.bf16.msra.mxu0 %v2510_v26  ;;  %1895 = vmatpush1.bf16.msra.mxu1 %v2511_v27  ;;  %v2586_v16 = vld [vmem:[%s3779_s1 + $0x264] ss:$16 sps:$4 sm:$0xff]   ;;  %v2589_v17 = vld [vmem:[%s3779_s1 + $0x26c] ss:$16 sps:$4 sm:$0xff]   ;;  %v2584_v18 = vld [vmem:[%s3779_s1 + $0x260] ss:$16 sps:$4 sm:$0xff]  }
  0x1c   :  { %1684 = vmatprep.subr.bf16.mxu0 %v2512_v28  ;;  %1896 = vmatprep.subr.bf16.mxu1 %v2514_v29  ;;  %v2587_v19 = vld [vmem:[%s3779_s1 + $0x268] ss:$16 sps:$4 sm:$0xff]   ;;  %v2592_v20 = vld [vmem:[%s3779_s1 + $0x284] ss:$16 sps:$4 sm:$0xff]   ;;  %v2595_v21 = vld [vmem:[%s3779_s1 + $0x28c] ss:$16 sps:$4 sm:$0xff]  }
  0x1d   :  { %v2590_v22 = vld [vmem:[%s3779_s1 + $0x280] ss:$16 sps:$4 sm:$0xff]   ;;  %v2593_v23 = vld [vmem:[%s3779_s1 + $0x288] ss:$16 sps:$4 sm:$0xff]   ;;  %v2598_v24 = vld [vmem:[%s3779_s1 + $0x2a4] ss:$16 sps:$4 sm:$0xff]  }
  0x1e   :  { %v2601_v25 = vld [vmem:[%s3779_s1 + $0x2ac] ss:$16 sps:$4 sm:$0xff]   ;;  %v22_v26 = vld [vmem:[%s3780_s0 + $0x40] sm:$0xff]  ;;  %v2617_v46 = vld [vmem:[%s3779_s1 + $0x308] ss:$16 sps:$4 sm:$0xff]  }
  0x1f   :  { %1685 = vmatpush1.bf16.msra.mxu0 %v2516_v30  ;;  %1897 = vmatpush1.bf16.msra.mxu1 %v2517_v31  ;;  %v26_v27 = vld [vmem:[%s3780_s0 + $0x60] sm:$0xff]  ;;  %v2599_v30 = vld [vmem:[%s3779_s1 + $0x2a8] ss:$16 sps:$4 sm:$0xff]  }
  0x20   :  { %1686 = vmatprep.subr.bf16.mxu0 %v2518_v32  ;;  %1898 = vmatprep.subr.bf16.mxu1 %v2520_v33  ;;  %v2140_v28 = vcombine.high %v22_v26, %v26_v27  ;;  %v2596_v29 = vld [vmem:[%s3779_s1 + $0x2a0] ss:$16 sps:$4 sm:$0xff]   ;;  %v2139_v31 = vcombine.low %v22_v26, %v26_v27  ;;  %v2604_v32 = vld [vmem:[%s3779_s1 + $0x2c4] ss:$16 sps:$4 sm:$0xff]   ;;  %v2607_v33 = vld [vmem:[%s3779_s1 + $0x2cc] ss:$16 sps:$4 sm:$0xff]  }
  0x21   :  { %v2622_v47 = vld [vmem:[%s3779_s1 + $0x324] ss:$16 sps:$4 sm:$0xff]   ;;  %v2623_v50 = vld [vmem:[%s3779_s1 + $0x328] ss:$16 sps:$4 sm:$0xff]  }
  0x22   :  { %v3329_v27 = vld [vmem:[%s3780_s0 + $0x30] sm:$0xff] }
  0x23   :  { %1687 = vmatpush1.bf16.msra.mxu0 %v2522_v34  ;;  %1899 = vmatpush1.bf16.msra.mxu1 %v2523_v35  ;;  %v3160_v34 = vld [vmem:[%s3780_s0 + $0x8] sm:$0xff] }
  0x24   :  { %1688 = vmatprep.subr.bf16.mxu0 %v2524_v36  ;;  %1900 = vmatprep.subr.bf16.mxu1 %v2526_v37  ;;  %v3165_v35 = vld [vmem:[%s3780_s0 + $0x28] sm:$0xff]  ;;  %v2602_v36 = vld [vmem:[%s3779_s1 + $0x2c0] ss:$16 sps:$4 sm:$0xff]  }
  0x25   :  { %v2605_v37 = vld [vmem:[%s3779_s1 + $0x2c8] ss:$16 sps:$4 sm:$0xff]  }
  0x27   :  { %1689 = vmatpush1.bf16.msra.mxu0 %v2528_v38  ;;  %1901 = vmatpush1.bf16.msra.mxu1 %v2529_v39  ;;  %v2134_v38 = vcombine.high %v3160_v34, %v3165_v35  ;;  %v2610_v39 = vld [vmem:[%s3779_s1 + $0x2e4] ss:$16 sps:$4 sm:$0xff]  }
  0x28   :  { %1690 = vmatprep.subr.bf16.mxu0 %v2530_v40  ;;  %1902 = vmatprep.subr.bf16.mxu1 %v2532_v41  ;;  %v2613_v40 = vld [vmem:[%s3779_s1 + $0x2ec] ss:$16 sps:$4 sm:$0xff]   ;;  %v2608_v41 = vld [vmem:[%s3779_s1 + $0x2e0] ss:$16 sps:$4 sm:$0xff]  }
  0x2b   :  { %1691 = vmatpush1.bf16.msra.mxu0 %v2534_v42  ;;  %1903 = vmatpush1.bf16.msra.mxu1 %v2535_v43  ;;  %v2611_v42 = vld [vmem:[%s3779_s1 + $0x2e8] ss:$16 sps:$4 sm:$0xff]   ;;  %v2616_v43 = vld [vmem:[%s3779_s1 + $0x304] ss:$16 sps:$4 sm:$0xff]  }
  0x2c   :  { %1692 = vmatprep.subr.bf16.mxu0 %v2536_v44  ;;  %1904 = vmatprep.subr.bf16.mxu1 %v2538_v45  ;;  %v2619_v44 = vld [vmem:[%s3779_s1 + $0x30c] ss:$16 sps:$4 sm:$0xff]   ;;  %v2614_v45 = vld [vmem:[%s3779_s1 + $0x300] ss:$16 sps:$4 sm:$0xff]  }
  0x2f   :  { %1693 = vmatpush1.bf16.msra.mxu0 %v2540_v48  ;;  %1905 = vmatpush1.bf16.msra.mxu1 %v2541_v49  ;;  %v2625_v48 = vld [vmem:[%s3779_s1 + $0x32c] ss:$16 sps:$4 sm:$0xff]   ;;  %v2620_v49 = vld [vmem:[%s3779_s1 + $0x320] ss:$16 sps:$4 sm:$0xff]  }
  0x30   :  { %1694 = vmatprep.subr.bf16.mxu0 %v2542_v51  ;;  %1906 = vmatprep.subr.bf16.mxu1 %v2544_v52  ;;  %v2628_v51 = vld [vmem:[%s3779_s1 + $0x344] ss:$16 sps:$4 sm:$0xff]   ;;  %v2631_v52 = vld [vmem:[%s3779_s1 + $0x34c] ss:$16 sps:$4 sm:$0xff]  }
  0x33   :  { %1695 = vmatpush1.bf16.msra.mxu0 %v2546_v53  ;;  %1907 = vmatpush1.bf16.msra.mxu1 %v2547_v54  ;;  %v2626_v53 = vld [vmem:[%s3779_s1 + $0x340] ss:$16 sps:$4 sm:$0xff]   ;;  %v2629_v54 = vld [vmem:[%s3779_s1 + $0x348] ss:$16 sps:$4 sm:$0xff]  }
  0x34   :  { %1696 = vmatprep.subr.bf16.mxu0 %v2548_v55  ;;  %1908 = vmatprep.subr.bf16.mxu1 %v2550_v56  ;;  %v2634_v55 = vld [vmem:[%s3779_s1 + $0x364] ss:$16 sps:$4 sm:$0xff]   ;;  %v2637_v56 = vld [vmem:[%s3779_s1 + $0x36c] ss:$16 sps:$4 sm:$0xff]  }
  0x37   :  { %1697 = vmatpush1.bf16.msra.mxu0 %v2552_v57  ;;  %1909 = vmatpush1.bf16.msra.mxu1 %v2553_v58  ;;  %v2632_v57 = vld [vmem:[%s3779_s1 + $0x360] ss:$16 sps:$4 sm:$0xff]   ;;  %v2635_v58 = vld [vmem:[%s3779_s1 + $0x368] ss:$16 sps:$4 sm:$0xff]  }
  0x38   :  { %1698 = vmatprep.subr.bf16.mxu0 %v2554_v59  ;;  %1910 = vmatprep.subr.bf16.mxu1 %v2556_v60  ;;  %v2640_v59 = vld [vmem:[%s3779_s1 + $0x384] ss:$16 sps:$4 sm:$0xff]   ;;  %v2643_v60 = vld [vmem:[%s3779_s1 + $0x38c] ss:$16 sps:$4 sm:$0xff]  }
  0x3b   :  { %1699 = vmatpush1.bf16.msra.mxu0 %v2558_v61  ;;  %1911 = vmatpush1.bf16.msra.mxu1 %v2559_v62  ;;  %v2638_v61 = vld [vmem:[%s3779_s1 + $0x380] ss:$16 sps:$4 sm:$0xff]   ;;  %v2641_v62 = vld [vmem:[%s3779_s1 + $0x388] ss:$16 sps:$4 sm:$0xff]  }
  0x3c   :  { %1700 = vmatprep.subr.bf16.mxu0 %v2560_v63  ;;  %1912 = vmatprep.subr.bf16.mxu1 %v2562_v0  ;;  %v2646_v63 = vld [vmem:[%s3779_s1 + $0x3a4] ss:$16 sps:$4 sm:$0xff]   ;;  %v2649_v0 = vld [vmem:[%s3779_s1 + $0x3ac] ss:$16 sps:$4 sm:$0xff]  }
  0x3f   :  { %1701 = vmatpush1.bf16.msra.mxu0 %v2564_v1  ;;  %1913 = vmatpush1.bf16.msra.mxu1 %v2565_v2  ;;  %v2644_v1 = vld [vmem:[%s3779_s1 + $0x3a0] ss:$16 sps:$4 sm:$0xff]   ;;  %v2647_v2 = vld [vmem:[%s3779_s1 + $0x3a8] ss:$16 sps:$4 sm:$0xff]  }
  0x40   :  { %1723 = vmatprep.subr.bf16.mxu0 %v2568_v3  ;;  %1935 = vmatprep.subr.bf16.mxu1 %v2571_v4  ;;  %v2652_v3 = vld [vmem:[%s3779_s1 + $0x3c4] ss:$16 sps:$4 sm:$0xff]   ;;  %v2655_v4 = vld [vmem:[%s3779_s1 + $0x3cc] ss:$16 sps:$4 sm:$0xff]  }
  0x42   :  { %1703 = vmatmul.mubr.bf16.vlgmr.msra.gmra.mrb[0].mxu0 %v2131_v5  ;;  %1915 = vmatmul.mubr.bf16.vlgmr.msra.gmra.mrb[0].mxu1 %v2131_v5  ;;  %v2650_v5 = vld [vmem:[%s3779_s1 + $0x3c0] ss:$16 sps:$4 sm:$0xff]  }
  0x43   :  { %1724 = vmatpush1.bf16.msra.mxu0 %v2566_v6  ;;  %1936 = vmatpush1.bf16.msra.mxu1 %v2569_v7  ;;  %v2653_v6 = vld [vmem:[%s3779_s1 + $0x3c8] ss:$16 sps:$4 sm:$0xff]   ;;  %v2658_v7 = vld [vmem:[%s3779_s1 + $0x3e4] ss:$16 sps:$4 sm:$0xff]  }
  0x44   :  { %1725 = vmatprep.subr.bf16.mxu0 %v2574_v8  ;;  %1937 = vmatprep.subr.bf16.mxu1 %v2577_v9  ;;  %v2661_v8 = vld [vmem:[%s3779_s1 + $0x3ec] ss:$16 sps:$4 sm:$0xff]   ;;  %v2656_v9 = vld [vmem:[%s3779_s1 + $0x3e0] ss:$16 sps:$4 sm:$0xff]  }
  0x45   :  { %1712 = vmatprep.mubr.bf16.mxu0 %v2140_v28  ;;  %1924 = vmatprep.mubr.bf16.mxu1 %v2140_v28  ;;  %v2674_v28 = vld [vmem:[%s3779_s1 + $0x440] ss:$16 sps:$4 sm:$0xff]  }
  0x47   :  { %1726 = vmatpush1.bf16.msra.mxu0 %v2572_v10  ;;  %1938 = vmatpush1.bf16.msra.mxu1 %v2575_v11  ;;  %v2659_v10 = vld [vmem:[%s3779_s1 + $0x3e8] ss:$16 sps:$4 sm:$0xff]   ;;  %v2664_v11 = vld [vmem:[%s3779_s1 + $0x404] ss:$16 sps:$4 sm:$0xff]  }
  0x48   :  { %1727 = vmatprep.subr.bf16.mxu0 %v2580_v12  ;;  %1939 = vmatprep.subr.bf16.mxu1 %v2583_v13  ;;  %v2667_v12 = vld [vmem:[%s3779_s1 + $0x40c] ss:$16 sps:$4 sm:$0xff]   ;;  %v2662_v13 = vld [vmem:[%s3779_s1 + $0x400] ss:$16 sps:$4 sm:$0xff]  }
  0x4a   :  { %1713 = vmatmul.mubr.bf16.gmra.mrb[4].mxu0 %v2139_v31  ;;  %1925 = vmatmul.mubr.bf16.gmra.mrb[4].mxu1 %v2139_v31  ;;  %v2685_v31 = vld [vmem:[%s3779_s1 + $0x46c] ss:$16 sps:$4 sm:$0xff]  }
  0x4b   :  { %1728 = vmatpush1.bf16.msra.mxu0 %v2578_v14  ;;  %1940 = vmatpush1.bf16.msra.mxu1 %v2581_v15  ;;  %v2665_v14 = vld [vmem:[%s3779_s1 + $0x408] ss:$16 sps:$4 sm:$0xff]   ;;  %v2133_v15 = vcombine.low %v3160_v34, %v3165_v35  ;;  %v2688_v35 = vld [vmem:[%s3779_s1 + $0x484] ss:$16 sps:$4 sm:$0xff]  }
  0x4c   :  { %1729 = vmatprep.subr.bf16.mxu0 %v2586_v16  ;;  %1941 = vmatprep.subr.bf16.mxu1 %v2589_v17  ;;  %v23_v16 = vld [vmem:[%s3780_s0 + $0x48] sm:$0xff] }
  0x4d   :  { %1755 = vmatprep.mubr.bf16.mxu0 %v2134_v38  ;;  %1967 = vmatprep.mubr.bf16.mxu1 %v2134_v38  ;;  %v27_v17 = vld [vmem:[%s3780_s0 + $0x68] sm:$0xff]  ;;  %v2686_v38 = vld [vmem:[%s3779_s1 + $0x480] ss:$16 sps:$4 sm:$0xff]  }
  0x4e   :  { %v2141_v26 = vcombine.low %v23_v16, %v27_v17  ;;  %v2683_v34 = vld [vmem:[%s3779_s1 + $0x468] ss:$16 sps:$4 sm:$0xff]  }
  0x4f   :  { %1730 = vmatpush1.bf16.msra.mxu0 %v2584_v18  ;;  %1942 = vmatpush1.bf16.msra.mxu1 %v2587_v19  ;;  %v2670_v18 = vld [vmem:[%s3779_s1 + $0x424] ss:$16 sps:$4 sm:$0xff]   ;;  %v2673_v19 = vld [vmem:[%s3779_s1 + $0x42c] ss:$16 sps:$4 sm:$0xff]  }
  0x50   :  { %1731 = vmatprep.subr.bf16.mxu0 %v2592_v20  ;;  %1943 = vmatprep.subr.bf16.mxu1 %v2595_v21  ;;  %v2142_v20 = vcombine.high %v23_v16, %v27_v17  ;;  %v2668_v21 = vld [vmem:[%s3779_s1 + $0x420] ss:$16 sps:$4 sm:$0xff]   ;;  %v2748_v16 = vld [vmem:[%s3779_s1 + $0x5c4] ss:$16 sps:$4 sm:$0xff]   ;;  %v2751_v17 = vld [vmem:[%s3779_s1 + $0x5cc] ss:$16 sps:$4 sm:$0xff]  }
  0x53   :  { %1732 = vmatpush1.bf16.msra.mxu0 %v2590_v22  ;;  %1944 = vmatpush1.bf16.msra.mxu1 %v2593_v23  ;;  %v2671_v22 = vld [vmem:[%s3779_s1 + $0x428] ss:$16 sps:$4 sm:$0xff]   ;;  %v2676_v23 = vld [vmem:[%s3779_s1 + $0x444] ss:$16 sps:$4 sm:$0xff]  }
  0x54   :  { %1733 = vmatprep.subr.bf16.mxu0 %v2598_v24  ;;  %1945 = vmatprep.subr.bf16.mxu1 %v2601_v25  ;;  %v2679_v24 = vld [vmem:[%s3779_s1 + $0x44c] ss:$16 sps:$4 sm:$0xff]   ;;  %v3324_v25 = vld [vmem:[%s3780_s0 + $0x10] sm:$0xff] }
  0x57   :  { %1734 = vmatpush1.bf16.msra.mxu0 %v2596_v29  ;;  %1946 = vmatpush1.bf16.msra.mxu1 %v2599_v30  ;;  %v2677_v29 = vld [vmem:[%s3779_s1 + $0x448] ss:$16 sps:$4 sm:$0xff]   ;;  %v2682_v30 = vld [vmem:[%s3779_s1 + $0x464] ss:$16 sps:$4 sm:$0xff]  }
  0x58   :  { %1735 = vmatprep.subr.bf16.mxu0 %v2604_v32  ;;  %1947 = vmatprep.subr.bf16.mxu1 %v2607_v33  ;;  %v2136_v32 = vcombine.high %v3324_v25, %v3329_v27  ;;  %v2680_v33 = vld [vmem:[%s3779_s1 + $0x460] ss:$16 sps:$4 sm:$0xff]  }
  0x5b   :  { %1736 = vmatpush1.bf16.msra.mxu0 %v2602_v36  ;;  %1948 = vmatpush1.bf16.msra.mxu1 %v2605_v37  ;;  %v2691_v36 = vld [vmem:[%s3779_s1 + $0x48c] ss:$16 sps:$4 sm:$0xff]   ;;  %v2854_v37 = vmov 0  }
  0x5c   :  { %1737 = vmatprep.subr.bf16.mxu0 %v2610_v39  ;;  %1949 = vmatprep.subr.bf16.mxu1 %v2613_v40  ;;  %v2689_v39 = vld [vmem:[%s3779_s1 + $0x488] ss:$16 sps:$4 sm:$0xff]   ;;  %v2694_v40 = vld [vmem:[%s3779_s1 + $0x4a4] ss:$16 sps:$4 sm:$0xff]  }
  0x5d   :  { %2468 = vset.pattern.permute.xlu0 %v2854_v37  ;;  %2469 = vset.pattern.permute.xlu1 %v2854_v37  ;;  %v2775_v37 = vld [vmem:[%s3779_s1 + $0x64c] ss:$16 sps:$4 sm:$0xff]  }
  0x5f   :  { %1738 = vmatpush1.bf16.msra.mxu0 %v2608_v41  ;;  %1950 = vmatpush1.bf16.msra.mxu1 %v2611_v42  ;;  %v2697_v41 = vld [vmem:[%s3779_s1 + $0x4ac] ss:$16 sps:$4 sm:$0xff]   ;;  %v2692_v42 = vld [vmem:[%s3779_s1 + $0x4a0] ss:$16 sps:$4 sm:$0xff]  }
  0x60   :  { %1739 = vmatprep.subr.bf16.mxu0 %v2616_v43  ;;  %1951 = vmatprep.subr.bf16.mxu1 %v2619_v44  ;;  %v2695_v43 = vld [vmem:[%s3779_s1 + $0x4a8] ss:$16 sps:$4 sm:$0xff]   ;;  %v2700_v44 = vld [vmem:[%s3779_s1 + $0x4c4] ss:$16 sps:$4 sm:$0xff]  }
  0x63   :  { %1740 = vmatpush1.bf16.msra.mxu0 %v2614_v45  ;;  %1952 = vmatpush1.bf16.msra.mxu1 %v2617_v46  ;;  %v2703_v45 = vld [vmem:[%s3779_s1 + $0x4cc] ss:$16 sps:$4 sm:$0xff]   ;;  %v2698_v46 = vld [vmem:[%s3779_s1 + $0x4c0] ss:$16 sps:$4 sm:$0xff]  }
  0x64   :  { %1741 = vmatprep.subr.bf16.mxu0 %v2622_v47  ;;  %1953 = vmatprep.subr.bf16.mxu1 %v2625_v48  ;;  %v2701_v47 = vld [vmem:[%s3779_s1 + $0x4c8] ss:$16 sps:$4 sm:$0xff]   ;;  %v2706_v48 = vld [vmem:[%s3779_s1 + $0x4e4] ss:$16 sps:$4 sm:$0xff]  }
  0x67   :  { %1742 = vmatpush1.bf16.msra.mxu0 %v2620_v49  ;;  %1954 = vmatpush1.bf16.msra.mxu1 %v2623_v50  ;;  %v2709_v49 = vld [vmem:[%s3779_s1 + $0x4ec] ss:$16 sps:$4 sm:$0xff]   ;;  %v2704_v50 = vld [vmem:[%s3779_s1 + $0x4e0] ss:$16 sps:$4 sm:$0xff]  }
  0x68   :  { %1743 = vmatprep.subr.bf16.mxu0 %v2628_v51  ;;  %1955 = vmatprep.subr.bf16.mxu1 %v2631_v52  ;;  %v2707_v51 = vld [vmem:[%s3779_s1 + $0x4e8] ss:$16 sps:$4 sm:$0xff]   ;;  %v2712_v52 = vld [vmem:[%s3779_s1 + $0x504] ss:$16 sps:$4 sm:$0xff]  }
  0x6b   :  { %1744 = vmatpush1.bf16.msra.mxu0 %v2626_v53  ;;  %1956 = vmatpush1.bf16.msra.mxu1 %v2629_v54  ;;  %v2715_v53 = vld [vmem:[%s3779_s1 + $0x50c] ss:$16 sps:$4 sm:$0xff]   ;;  %v2710_v54 = vld [vmem:[%s3779_s1 + $0x500] ss:$16 sps:$4 sm:$0xff]  }
  0x6c   :  { %1745 = vmatprep.subr.bf16.mxu0 %v2634_v55  ;;  %1957 = vmatprep.subr.bf16.mxu1 %v2637_v56  ;;  %v2713_v55 = vld [vmem:[%s3779_s1 + $0x508] ss:$16 sps:$4 sm:$0xff]   ;;  %v2718_v56 = vld [vmem:[%s3779_s1 + $0x524] ss:$16 sps:$4 sm:$0xff]  }
  0x6f   :  { %1746 = vmatpush1.bf16.msra.mxu0 %v2632_v57  ;;  %1958 = vmatpush1.bf16.msra.mxu1 %v2635_v58  ;;  %v2721_v57 = vld [vmem:[%s3779_s1 + $0x52c] ss:$16 sps:$4 sm:$0xff]   ;;  %v2716_v58 = vld [vmem:[%s3779_s1 + $0x520] ss:$16 sps:$4 sm:$0xff]  }
  0x70   :  { %1747 = vmatprep.subr.bf16.mxu0 %v2640_v59  ;;  %1959 = vmatprep.subr.bf16.mxu1 %v2643_v60  ;;  %v2719_v59 = vld [vmem:[%s3779_s1 + $0x528] ss:$16 sps:$4 sm:$0xff]   ;;  %v2724_v60 = vld [vmem:[%s3779_s1 + $0x544] ss:$16 sps:$4 sm:$0xff]  }
  0x73   :  { %1748 = vmatpush1.bf16.msra.mxu0 %v2638_v61  ;;  %1960 = vmatpush1.bf16.msra.mxu1 %v2641_v62  ;;  %v2727_v61 = vld [vmem:[%s3779_s1 + $0x54c] ss:$16 sps:$4 sm:$0xff]   ;;  %v2722_v62 = vld [vmem:[%s3779_s1 + $0x540] ss:$16 sps:$4 sm:$0xff]  }
  0x74   :  { %1749 = vmatprep.subr.bf16.mxu0 %v2646_v63  ;;  %1961 = vmatprep.subr.bf16.mxu1 %v2649_v0  ;;  %v2725_v63 = vld [vmem:[%s3779_s1 + $0x548] ss:$16 sps:$4 sm:$0xff]   ;;  %v2730_v0 = vld [vmem:[%s3779_s1 + $0x564] ss:$16 sps:$4 sm:$0xff]  }
  0x77   :  { %1750 = vmatpush1.bf16.msra.mxu0 %v2644_v1  ;;  %1962 = vmatpush1.bf16.msra.mxu1 %v2647_v2  ;;  %v2733_v1 = vld [vmem:[%s3779_s1 + $0x56c] ss:$16 sps:$4 sm:$0xff]   ;;  %v2728_v2 = vld [vmem:[%s3779_s1 + $0x560] ss:$16 sps:$4 sm:$0xff]  }
  0x78   :  { %1751 = vmatprep.subr.bf16.mxu0 %v2652_v3  ;;  %1963 = vmatprep.subr.bf16.mxu1 %v2655_v4  ;;  %v2731_v3 = vld [vmem:[%s3779_s1 + $0x568] ss:$16 sps:$4 sm:$0xff]   ;;  %v2736_v4 = vld [vmem:[%s3779_s1 + $0x584] ss:$16 sps:$4 sm:$0xff]  }
  0x7b   :  { %1752 = vmatpush1.bf16.msra.mxu0 %v2650_v5  ;;  %1964 = vmatpush1.bf16.msra.mxu1 %v2653_v6  ;;  %v2739_v5 = vld [vmem:[%s3779_s1 + $0x58c] ss:$16 sps:$4 sm:$0xff]   ;;  %v2734_v6 = vld [vmem:[%s3779_s1 + $0x580] ss:$16 sps:$4 sm:$0xff]  }
  0x7c   :  { %1753 = vmatprep.subr.bf16.mxu0 %v2658_v7  ;;  %1965 = vmatprep.subr.bf16.mxu1 %v2661_v8  ;;  %v2737_v7 = vld [vmem:[%s3779_s1 + $0x588] ss:$16 sps:$4 sm:$0xff]   ;;  %v286_v8 = vld [vmem:[%s3781_s2] sm:$0xff] }
  0x7d   :  { %292 = vperm.xlu0 %2468, %v286_v8   ;;  %v2820_v8 = vld [vmem:[%s3779_s1 + $0x744] ss:$16 sps:$4 sm:$0xff]  }
  0x7f   :  { %1754 = vmatpush1.bf16.msra.mxu0 %v2656_v9  ;;  %1966 = vmatpush1.bf16.msra.mxu1 %v2659_v10  ;;  %v288_v9 = vld [vmem:[%s3781_s2 + $0x10] sm:$0xff] }
  0x80   :  { %1776 = vmatprep.subr.bf16.mxu0 %v2664_v11  ;;  %1988 = vmatprep.subr.bf16.mxu1 %v2667_v12  ;;  %v2742_v10 = vld [vmem:[%s3779_s1 + $0x5a4] ss:$16 sps:$4 sm:$0xff]   ;;  %v2745_v11 = vld [vmem:[%s3779_s1 + $0x5ac] ss:$16 sps:$4 sm:$0xff]  }
  0x81   :  { %302 = vperm.xlu1 %2469, %v288_v9   ;;  %v287_v12 = vld [vmem:[%s3781_s2 + $0x8] sm:$0xff] }
  0x82   :  { %1756 = vmatmul.mubr.bf16.vlgmr.msra.gmra.mrb[0].mxu0 %v2133_v15  ;;  %1968 = vmatmul.mubr.bf16.vlgmr.msra.gmra.mrb[0].mxu1 %v2133_v15  ;;  %v2743_v15 = vld [vmem:[%s3779_s1 + $0x5a8] ss:$16 sps:$4 sm:$0xff]   ;;  %v2823_v9 = vld [vmem:[%s3779_s1 + $0x74c] ss:$16 sps:$4 sm:$0xff]  }
  0x83   :  { %1777 = vmatpush1.bf16.msra.mxu0 %v2662_v13  ;;  %1989 = vmatpush1.bf16.msra.mxu1 %v2665_v14  ;;  %v289_v13 = vld [vmem:[%s3781_s2 + $0x18] sm:$0xff]  ;;  %v2740_v14 = vld [vmem:[%s3779_s1 + $0x5a0] ss:$16 sps:$4 sm:$0xff]  }
  0x84   :  { %1778 = vmatprep.subr.bf16.mxu0 %v2670_v18  ;;  %1990 = vmatprep.subr.bf16.mxu1 %v2673_v19  ;;  %v2746_v18 = vld [vmem:[%s3779_s1 + $0x5c0] ss:$16 sps:$4 sm:$0xff]   ;;  %v2749_v19 = vld [vmem:[%s3779_s1 + $0x5c8] ss:$16 sps:$4 sm:$0xff]  }
  0x85   :  { %1765 = vmatprep.mubr.bf16.mxu0 %v2142_v20  ;;  %1977 = vmatprep.mubr.bf16.mxu1 %v2142_v20  ;;  %v2754_v20 = vld [vmem:[%s3779_s1 + $0x5e4] ss:$16 sps:$4 sm:$0xff]  }
  0x86   :  { %297 = vperm.xlu0 %2468, %v287_v12   ;;  %307 = vperm.xlu1 %2469, %v289_v13   ;;  %v2826_v12 = vld [vmem:[%s3779_s1 + $0x764] ss:$16 sps:$4 sm:$0xff]   ;;  %v2829_v13 = vld [vmem:[%s3779_s1 + $0x76c] ss:$16 sps:$4 sm:$0xff]  }
  0x87   :  { %1779 = vmatpush1.bf16.msra.mxu0 %v2668_v21  ;;  %1991 = vmatpush1.bf16.msra.mxu1 %v2671_v22  ;;  %v2757_v21 = vld [vmem:[%s3779_s1 + $0x5ec] ss:$16 sps:$4 sm:$0xff]   ;;  %v2752_v22 = vld [vmem:[%s3779_s1 + $0x5e0] ss:$16 sps:$4 sm:$0xff]  }
  0x88   :  { %1780 = vmatprep.subr.bf16.mxu0 %v2676_v23  ;;  %1992 = vmatprep.subr.bf16.mxu1 %v2679_v24  ;;  %v2755_v23 = vld [vmem:[%s3779_s1 + $0x5e8] ss:$16 sps:$4 sm:$0xff]   ;;  %v2760_v24 = vld [vmem:[%s3779_s1 + $0x604] ss:$16 sps:$4 sm:$0xff]  }
  0x8a   :  { %1766 = vmatmul.mubr.bf16.gmra.mrb[4].mxu0 %v2141_v26  ;;  %1978 = vmatmul.mubr.bf16.gmra.mrb[4].mxu1 %v2141_v26  ;;  %v2763_v26 = vld [vmem:[%s3779_s1 + $0x60c] ss:$16 sps:$4 sm:$0xff]  }
  0x8b   :  { %1781 = vmatpush1.bf16.msra.mxu0 %v2674_v28  ;;  %1993 = vmatpush1.bf16.msra.mxu1 %v2677_v29  ;;  %v2135_v28 = vcombine.low %v3324_v25, %v3329_v27  ;;  %v24_v29 = vld [vmem:[%s3780_s0 + $0x50] sm:$0xff]  ;;  %v2769_v27 = vld [vmem:[%s3779_s1 + $0x62c] ss:$16 sps:$4 sm:$0xff]  }
  0x8c   :  { %1782 = vmatprep.subr.bf16.mxu0 %v2682_v30  ;;  %1994 = vmatprep.subr.bf16.mxu1 %v2685_v31  ;;  %v28_v30 = vld [vmem:[%s3780_s0 + $0x70] sm:$0xff] }
  0x8d   :  { %1808 = vmatprep.mubr.bf16.mxu0 %v2136_v32  ;;  %2020 = vmatprep.mubr.bf16.mxu1 %v2136_v32  ;;  %v2758_v31 = vld [vmem:[%s3779_s1 + $0x600] ss:$16 sps:$4 sm:$0xff]   ;;  %v2761_v32 = vld [vmem:[%s3779_s1 + $0x608] ss:$16 sps:$4 sm:$0xff]   ;;  %v2766_v25 = vld [vmem:[%s3779_s1 + $0x624] ss:$16 sps:$4 sm:$0xff]  }
  0x8f   :  { %1783 = vmatpush1.bf16.msra.mxu0 %v2680_v33  ;;  %1995 = vmatpush1.bf16.msra.mxu1 %v2683_v34  ;;  %v2144_v33 = vcombine.high %v24_v29, %v28_v30  ;;  %v2764_v34 = vld [vmem:[%s3779_s1 + $0x620] ss:$16 sps:$4 sm:$0xff]  }
  0x90   :  { %1784 = vmatprep.subr.bf16.mxu0 %v2688_v35  ;;  %1996 = vmatprep.subr.bf16.mxu1 %v2691_v36  ;;  %v2767_v35 = vld [vmem:[%s3779_s1 + $0x628] ss:$16 sps:$4 sm:$0xff]   ;;  %v2772_v36 = vld [vmem:[%s3779_s1 + $0x644] ss:$16 sps:$4 sm:$0xff]  }
  0x93   :  { %1785 = vmatpush1.bf16.msra.mxu0 %v2686_v38  ;;  %1997 = vmatpush1.bf16.msra.mxu1 %v2689_v39  ;;  %v2143_v38 = vcombine.low %v24_v29, %v28_v30  ;;  %v3548_v39 = vld [vmem:[%s3780_s0 + $0x18] sm:$0xff]  ;;  %v2850_v30 = vld [vmem:[%s3779_s1 + $0x7e4] ss:$16 sps:$4 sm:$0xff]  }
  0x94   :  { %1786 = vmatprep.subr.bf16.mxu0 %v2694_v40  ;;  %1998 = vmatprep.subr.bf16.mxu1 %v2697_v41  ;;  %v3553_v40 = vld [vmem:[%s3780_s0 + $0x38] sm:$0xff]  ;;  %v2770_v41 = vld [vmem:[%s3779_s1 + $0x640] ss:$16 sps:$4 sm:$0xff]  }
  0x95   :  { %v2845_v29 = vld [vmem:[%s3779_s1 + $0x7c8] ss:$16 sps:$4 sm:$0xff]  }
  0x97   :  { %1787 = vmatpush1.bf16.msra.mxu0 %v2692_v42  ;;  %1999 = vmatpush1.bf16.msra.mxu1 %v2695_v43  ;;  %v2773_v42 = vld [vmem:[%s3779_s1 + $0x648] ss:$16 sps:$4 sm:$0xff]   ;;  %v2778_v43 = vld [vmem:[%s3779_s1 + $0x664] ss:$16 sps:$4 sm:$0xff]  }
  0x98   :  { %1788 = vmatprep.subr.bf16.mxu0 %v2700_v44  ;;  %2000 = vmatprep.subr.bf16.mxu1 %v2703_v45  ;;  %v2781_v44 = vld [vmem:[%s3779_s1 + $0x66c] ss:$16 sps:$4 sm:$0xff]   ;;  %v2138_v45 = vcombine.high %v3548_v39, %v3553_v40 }
  0x9b   :  { %1789 = vmatpush1.bf16.msra.mxu0 %v2698_v46  ;;  %2001 = vmatpush1.bf16.msra.mxu1 %v2701_v47  ;;  %v2776_v46 = vld [vmem:[%s3779_s1 + $0x660] ss:$16 sps:$4 sm:$0xff]   ;;  %v2779_v47 = vld [vmem:[%s3779_s1 + $0x668] ss:$16 sps:$4 sm:$0xff]  }
  0x9c   :  { %1790 = vmatprep.subr.bf16.mxu0 %v2706_v48  ;;  %2002 = vmatprep.subr.bf16.mxu1 %v2709_v49  ;;  %v2784_v48 = vld [vmem:[%s3779_s1 + $0x684] ss:$16 sps:$4 sm:$0xff]   ;;  %v2787_v49 = vld [vmem:[%s3779_s1 + $0x68c] ss:$16 sps:$4 sm:$0xff]  }
  0x9f   :  { %1791 = vmatpush1.bf16.msra.mxu0 %v2704_v50  ;;  %2003 = vmatpush1.bf16.msra.mxu1 %v2707_v51  ;;  %v2782_v50 = vld [vmem:[%s3779_s1 + $0x680] ss:$16 sps:$4 sm:$0xff]   ;;  %v2785_v51 = vld [vmem:[%s3779_s1 + $0x688] ss:$16 sps:$4 sm:$0xff]  }
  0xa0   :  { %1792 = vmatprep.subr.bf16.mxu0 %v2712_v52  ;;  %2004 = vmatprep.subr.bf16.mxu1 %v2715_v53  ;;  %v2790_v52 = vld [vmem:[%s3779_s1 + $0x6a4] ss:$16 sps:$4 sm:$0xff]   ;;  %v2793_v53 = vld [vmem:[%s3779_s1 + $0x6ac] ss:$16 sps:$4 sm:$0xff]  }
  0xa3   :  { %1793 = vmatpush1.bf16.msra.mxu0 %v2710_v54  ;;  %2005 = vmatpush1.bf16.msra.mxu1 %v2713_v55  ;;  %v2788_v54 = vld [vmem:[%s3779_s1 + $0x6a0] ss:$16 sps:$4 sm:$0xff]   ;;  %v2791_v55 = vld [vmem:[%s3779_s1 + $0x6a8] ss:$16 sps:$4 sm:$0xff]  }
  0xa4   :  { %1794 = vmatprep.subr.bf16.mxu0 %v2718_v56  ;;  %2006 = vmatprep.subr.bf16.mxu1 %v2721_v57  ;;  %v2796_v56 = vld [vmem:[%s3779_s1 + $0x6c4] ss:$16 sps:$4 sm:$0xff]   ;;  %v2799_v57 = vld [vmem:[%s3779_s1 + $0x6cc] ss:$16 sps:$4 sm:$0xff]  }
  0xa7   :  { %1795 = vmatpush1.bf16.msra.mxu0 %v2716_v58  ;;  %2007 = vmatpush1.bf16.msra.mxu1 %v2719_v59  ;;  %v2794_v58 = vld [vmem:[%s3779_s1 + $0x6c0] ss:$16 sps:$4 sm:$0xff]   ;;  %v2797_v59 = vld [vmem:[%s3779_s1 + $0x6c8] ss:$16 sps:$4 sm:$0xff]  }
  0xa8   :  { %1796 = vmatprep.subr.bf16.mxu0 %v2724_v60  ;;  %2008 = vmatprep.subr.bf16.mxu1 %v2727_v61  ;;  %v2802_v60 = vld [vmem:[%s3779_s1 + $0x6e4] ss:$16 sps:$4 sm:$0xff]   ;;  %v2805_v61 = vld [vmem:[%s3779_s1 + $0x6ec] ss:$16 sps:$4 sm:$0xff]  }
  0xab   :  { %1797 = vmatpush1.bf16.msra.mxu0 %v2722_v62  ;;  %2009 = vmatpush1.bf16.msra.mxu1 %v2725_v63  ;;  %v2800_v62 = vld [vmem:[%s3779_s1 + $0x6e0] ss:$16 sps:$4 sm:$0xff]   ;;  %v2803_v63 = vld [vmem:[%s3779_s1 + $0x6e8] ss:$16 sps:$4 sm:$0xff]  }
  0xac   :  { %1798 = vmatprep.subr.bf16.mxu0 %v2730_v0  ;;  %2010 = vmatprep.subr.bf16.mxu1 %v2733_v1  ;;  %v2808_v0 = vld [vmem:[%s3779_s1 + $0x704] ss:$16 sps:$4 sm:$0xff]   ;;  %v2811_v1 = vld [vmem:[%s3779_s1 + $0x70c] ss:$16 sps:$4 sm:$0xff]  }
  0xaf   :  { %1799 = vmatpush1.bf16.msra.mxu0 %v2728_v2  ;;  %2011 = vmatpush1.bf16.msra.mxu1 %v2731_v3  ;;  %v2806_v2 = vld [vmem:[%s3779_s1 + $0x700] ss:$16 sps:$4 sm:$0xff]   ;;  %v2809_v3 = vld [vmem:[%s3779_s1 + $0x708] ss:$16 sps:$4 sm:$0xff]  }
  0xb0   :  { %1800 = vmatprep.subr.bf16.mxu0 %v2736_v4  ;;  %2012 = vmatprep.subr.bf16.mxu1 %v2739_v5  ;;  %v2814_v4 = vld [vmem:[%s3779_s1 + $0x724] ss:$16 sps:$4 sm:$0xff]   ;;  %v2817_v5 = vld [vmem:[%s3779_s1 + $0x72c] ss:$16 sps:$4 sm:$0xff]  }
  0xb3   :  { %1801 = vmatpush1.bf16.msra.mxu0 %v2734_v6  ;;  %2013 = vmatpush1.bf16.msra.mxu1 %v2737_v7  ;;  %v2812_v6 = vld [vmem:[%s3779_s1 + $0x720] ss:$16 sps:$4 sm:$0xff]   ;;  %v2815_v7 = vld [vmem:[%s3779_s1 + $0x728] ss:$16 sps:$4 sm:$0xff]  }
  0xb4   :  { %1802 = vmatprep.subr.bf16.mxu0 %v2742_v10  ;;  %2014 = vmatprep.subr.bf16.mxu1 %v2745_v11  ;;  %v2818_v10 = vld [vmem:[%s3779_s1 + $0x740] ss:$16 sps:$4 sm:$0xff]   ;;  %v2821_v11 = vld [vmem:[%s3779_s1 + $0x748] ss:$16 sps:$4 sm:$0xff]  }
  0xb7   :  { %1803 = vmatpush1.bf16.msra.mxu0 %v2740_v14  ;;  %2015 = vmatpush1.bf16.msra.mxu1 %v2743_v15  ;;  %v2824_v14 = vld [vmem:[%s3779_s1 + $0x760] ss:$16 sps:$4 sm:$0xff]   ;;  %v2827_v15 = vld [vmem:[%s3779_s1 + $0x768] ss:$16 sps:$4 sm:$0xff]  }
  0xb8   :  { %1804 = vmatprep.subr.bf16.mxu0 %v2748_v16  ;;  %2016 = vmatprep.subr.bf16.mxu1 %v2751_v17  ;;  %v2832_v16 = vld [vmem:[%s3779_s1 + $0x784] ss:$16 sps:$4 sm:$0xff]   ;;  %v2835_v17 = vld [vmem:[%s3779_s1 + $0x78c] ss:$16 sps:$4 sm:$0xff]  }
  0xbb   :  { %1805 = vmatpush1.bf16.msra.mxu0 %v2746_v18  ;;  %2017 = vmatpush1.bf16.msra.mxu1 %v2749_v19  ;;  %v2830_v18 = vld [vmem:[%s3779_s1 + $0x780] ss:$16 sps:$4 sm:$0xff]   ;;  %v2833_v19 = vld [vmem:[%s3779_s1 + $0x788] ss:$16 sps:$4 sm:$0xff]  }
  0xbc   :  { %1806 = vmatprep.subr.bf16.mxu0 %v2754_v20  ;;  %2018 = vmatprep.subr.bf16.mxu1 %v2757_v21  ;;  %v2838_v20 = vld [vmem:[%s3779_s1 + $0x7a4] ss:$16 sps:$4 sm:$0xff]   ;;  %v2841_v21 = vld [vmem:[%s3779_s1 + $0x7ac] ss:$16 sps:$4 sm:$0xff]  }
  0xbf   :  { %1807 = vmatpush1.bf16.msra.mxu0 %v2752_v22  ;;  %2019 = vmatpush1.bf16.msra.mxu1 %v2755_v23  ;;  %v2836_v22 = vld [vmem:[%s3779_s1 + $0x7a0] ss:$16 sps:$4 sm:$0xff]   ;;  %v2839_v23 = vld [vmem:[%s3779_s1 + $0x7a8] ss:$16 sps:$4 sm:$0xff]  }
  0xc0   :  { %1829 = vmatprep.subr.bf16.mxu0 %v2760_v24  ;;  %2041 = vmatprep.subr.bf16.mxu1 %v2763_v26  ;;  %v2844_v24 = vld [vmem:[%s3779_s1 + $0x7c4] ss:$16 sps:$4 sm:$0xff]   ;;  %v2847_v26 = vld [vmem:[%s3779_s1 + $0x7cc] ss:$16 sps:$4 sm:$0xff]  }
  0xc2   :  { %1809 = vmatmul.mubr.bf16.vlgmr.msra.gmra.mrb[0].mxu0 %v2135_v28  ;;  %2021 = vmatmul.mubr.bf16.vlgmr.msra.gmra.mrb[0].mxu1 %v2135_v28  ;;  %v2842_v28 = vld [vmem:[%s3779_s1 + $0x7c0] ss:$16 sps:$4 sm:$0xff]  }
  0xc3   :  { %1830 = vmatpush1.bf16.msra.mxu0 %v2758_v31  ;;  %2042 = vmatpush1.bf16.msra.mxu1 %v2761_v32  ;;  %v2853_v31 = vld [vmem:[%s3779_s1 + $0x7ec] ss:$16 sps:$4 sm:$0xff]   ;;  %v2848_v32 = vld [vmem:[%s3779_s1 + $0x7e0] ss:$16 sps:$4 sm:$0xff]  }
  0xc4   :  { %1831 = vmatprep.subr.bf16.mxu0 %v2766_v25  ;;  %2043 = vmatprep.subr.bf16.mxu1 %v2769_v27  ;;  %v2851_v25 = vld [vmem:[%s3779_s1 + $0x7e8] ss:$16 sps:$4 sm:$0xff]  }
  0xc5   :  { %1818 = vmatprep.mubr.bf16.mxu0 %v2144_v33  ;;  %2030 = vmatprep.mubr.bf16.mxu1 %v2144_v33  ;;  %v25_v27 = vld [vmem:[%s3780_s0 + $0x58] sm:$0xff] }
  0xc6   :  { %v29_v33 = vld [vmem:[%s3780_s0 + $0x78] sm:$0xff] }
  0xc7   :  { %1832 = vmatpush1.bf16.msra.mxu0 %v2764_v34  ;;  %2044 = vmatpush1.bf16.msra.mxu1 %v2767_v35  ;;  %v2137_v34 = vcombine.low %v3548_v39, %v3553_v40  ;;  %v2146_v35 = vcombine.high %v25_v27, %v29_v33 }
  0xc8   :  { %1833 = vmatprep.subr.bf16.mxu0 %v2772_v36  ;;  %2045 = vmatprep.subr.bf16.mxu1 %v2775_v37  ;;  %v2145_v36 = vcombine.low %v25_v27, %v29_v33 }
  0xca   :  { %1819 = vmatmul.mubr.bf16.gmra.mrb[4].mxu0 %v2143_v38  ;;  %2031 = vmatmul.mubr.bf16.gmra.mrb[4].mxu1 %v2143_v38 }
  0xcb   :  { %1834 = vmatpush1.bf16.msra.mxu0 %v2770_v41  ;;  %2046 = vmatpush1.bf16.msra.mxu1 %v2773_v42 }
  0xcc   :  { %1835 = vmatprep.subr.bf16.mxu0 %v2778_v43  ;;  %2047 = vmatprep.subr.bf16.mxu1 %v2781_v44 }
  0xcd   :  { %1861 = vmatprep.mubr.bf16.mxu0 %v2138_v45  ;;  %2073 = vmatprep.mubr.bf16.mxu1 %v2138_v45 }
  0xcf   :  { %1836 = vmatpush1.bf16.msra.mxu0 %v2776_v46  ;;  %2048 = vmatpush1.bf16.msra.mxu1 %v2779_v47 }
  0xd0   :  { %1837 = vmatprep.subr.bf16.mxu0 %v2784_v48  ;;  %2049 = vmatprep.subr.bf16.mxu1 %v2787_v49 }
  0xd3   :  { %1838 = vmatpush1.bf16.msra.mxu0 %v2782_v50  ;;  %2050 = vmatpush1.bf16.msra.mxu1 %v2785_v51 }
  0xd4   :  { %1839 = vmatprep.subr.bf16.mxu0 %v2790_v52  ;;  %2051 = vmatprep.subr.bf16.mxu1 %v2793_v53 }
  0xd7   :  { %1840 = vmatpush1.bf16.msra.mxu0 %v2788_v54  ;;  %2052 = vmatpush1.bf16.msra.mxu1 %v2791_v55 }
  0xd8   :  { %1841 = vmatprep.subr.bf16.mxu0 %v2796_v56  ;;  %2053 = vmatprep.subr.bf16.mxu1 %v2799_v57 }
  0xdb   :  { %1842 = vmatpush1.bf16.msra.mxu0 %v2794_v58  ;;  %2054 = vmatpush1.bf16.msra.mxu1 %v2797_v59 }
  0xdc   :  { %1843 = vmatprep.subr.bf16.mxu0 %v2802_v60  ;;  %2055 = vmatprep.subr.bf16.mxu1 %v2805_v61 }
  0xdf   :  { %1844 = vmatpush1.bf16.msra.mxu0 %v2800_v62  ;;  %2056 = vmatpush1.bf16.msra.mxu1 %v2803_v63 }
  0xe0   :  { %1845 = vmatprep.subr.bf16.mxu0 %v2808_v0  ;;  %2057 = vmatprep.subr.bf16.mxu1 %v2811_v1 }
  0xe3   :  { %1846 = vmatpush1.bf16.msra.mxu0 %v2806_v2  ;;  %2058 = vmatpush1.bf16.msra.mxu1 %v2809_v3 }
  0xe4   :  { %1847 = vmatprep.subr.bf16.mxu0 %v2814_v4  ;;  %2059 = vmatprep.subr.bf16.mxu1 %v2817_v5 }
  0xe7   :  { %1848 = vmatpush1.bf16.msra.mxu0 %v2812_v6  ;;  %2060 = vmatpush1.bf16.msra.mxu1 %v2815_v7 }
  0xe8   :  { %1849 = vmatprep.subr.bf16.mxu0 %v2820_v8  ;;  %2061 = vmatprep.subr.bf16.mxu1 %v2823_v9 }
  0xeb   :  { %1850 = vmatpush1.bf16.msra.mxu0 %v2818_v10  ;;  %2062 = vmatpush1.bf16.msra.mxu1 %v2821_v11 }
  0xec   :  { %1851 = vmatprep.subr.bf16.mxu0 %v2826_v12  ;;  %2063 = vmatprep.subr.bf16.mxu1 %v2829_v13 }
  0xef   :  { %1852 = vmatpush1.bf16.msra.mxu0 %v2824_v14  ;;  %2064 = vmatpush1.bf16.msra.mxu1 %v2827_v15 }
  0xf0   :  { %1853 = vmatprep.subr.bf16.mxu0 %v2832_v16  ;;  %2065 = vmatprep.subr.bf16.mxu1 %v2835_v17 }
  0xf3   :  { %1854 = vmatpush1.bf16.msra.mxu0 %v2830_v18  ;;  %2066 = vmatpush1.bf16.msra.mxu1 %v2833_v19 }
  0xf4   :  { %1855 = vmatprep.subr.bf16.mxu0 %v2838_v20  ;;  %2067 = vmatprep.subr.bf16.mxu1 %v2841_v21 }
  0xf7   :  { %1856 = vmatpush1.bf16.msra.mxu0 %v2836_v22  ;;  %2068 = vmatpush1.bf16.msra.mxu1 %v2839_v23 }
  0xf8   :  { %1857 = vmatprep.subr.bf16.mxu0 %v2844_v24  ;;  %2069 = vmatprep.subr.bf16.mxu1 %v2847_v26 }
  0xfb   :  { %1858 = vmatpush1.bf16.msra.mxu0 %v2842_v28  ;;  %2070 = vmatpush1.bf16.msra.mxu1 %v2845_v29 }
  0xfc   :  { %1859 = vmatprep.subr.bf16.mxu0 %v2850_v30  ;;  %2071 = vmatprep.subr.bf16.mxu1 %v2853_v31  ;;  %v293_v37 = vpop.permute.xlu0 %292 }
  0xff   :  { %1860 = vmatpush1.bf16.msra.mxu0 %v2848_v32  ;;  %2072 = vmatpush1.bf16.msra.mxu1 %v2851_v25 }
 0x100   :  { %v303_v41 = vpop.permute.xlu1 %302 }
 0x102   :  { %1862 = vmatmul.mubr.bf16.vlgmr.msra.gmra.mrb[0].mxu0 %v2137_v34  ;;  %2074 = vmatmul.mubr.bf16.vlgmr.msra.gmra.mrb[0].mxu1 %v2137_v34 }
 0x103   :  { %1871 = vmatprep.mubr.bf16.mxu0 %v2146_v35  ;;  %2083 = vmatprep.mubr.bf16.mxu1 %v2146_v35 }
 0x105   :  { %v298_v38 = vpop.permute.xlu0 %297  ;;  %v308_v0 = vpop.permute.xlu1 %307 }
 0x10a   :  { %1872 = vmatmul.mubr.bf16.gmra.mrb[4].mxu0 %v2145_v36  ;;  %2084 = vmatmul.mubr.bf16.gmra.mrb[4].mxu1 %v2145_v36 }
 0x1d5   :  { %v1863_v42 = vpop.f32.mrb[0].mxu0  ;;  %v2075_v43 = vpop.f32.mrb[0].mxu1 }
 0x1d6   :  { %v2403_v44 = vadd.f32 %v1863_v42, %v293_v37  ;;  %v2411_v45 = vadd.f32 %v2075_v43, %v293_v37  ;;  %v1865_v46 = vpop.f32.mrb[1].mxu0  ;;  %v2077_v47 = vpop.f32.mrb[1].mxu1 }
 0x1d7   :  { %v2404_v39 = vadd.f32 %v1865_v46, %v293_v37  ;;  %v2412_v40 = vadd.f32 %v2077_v47, %v293_v37  ;;  %v1867_v48 = vpop.f32.mrb[2].mxu0  ;;  %v2079_v49 = vpop.f32.mrb[2].mxu1 }
 0x1d8   :  { %v2094_v50 = vmax.f32 %v2403_v44, 0.0  ;;  %v2096_v51 = vmax.f32 %v2411_v45, 0.0  ;;  %v2405_v52 = vadd.f32 %v1867_v48, %v298_v38  ;;  %v2413_v53 = vadd.f32 %v2079_v49, %v298_v38  ;;  %v1869_v54 = vpop.f32.mrb[3].mxu0  ;;  %v2081_v55 = vpop.f32.mrb[3].mxu1 }
 0x1d9   :  { %v2095_v56 = vmax.f32 %v2404_v39, 0.0  ;;  %v2097_v57 = vmax.f32 %v2412_v40, 0.0  ;;  %v2406_v58 = vadd.f32 %v1869_v54, %v298_v38  ;;  %v2414_v59 = vadd.f32 %v2081_v55, %v298_v38 }
 0x1da   :  { %2110 = vst [vmem:[%s3782_s3] sm:$0xff] %v2094_v50  ;;  %2112 = vst [vmem:[%s3782_s3 + $0x10] sm:$0xff] %v2096_v51  ;;  %v2098_v60 = vmax.f32 %v2405_v52, 0.0  ;;  %v2100_v61 = vmax.f32 %v2413_v53, 0.0 }
 0x1db   :  { %2111 = vst [vmem:[%s3782_s3 + $0x8] sm:$0xff] %v2095_v56  ;;  %2114 = vst.msk [vmem:[%s3782_s3 + $0x18] sm:$0xff] %vm2113_vm0, %v2097_v57  ;;  %v2099_v62 = vmax.f32 %v2406_v58, 0.0  ;;  %v2101_v63 = vmax.f32 %v2414_v59, 0.0 }
 0x1dc   :  { %2115 = vst [vmem:[%s3782_s3 + $0x20] sm:$0xff] %v2098_v60  ;;  %2117 = vst [vmem:[%s3782_s3 + $0x30] sm:$0xff] %v2100_v61 }
 0x1dd   :  { %2116 = vst [vmem:[%s3782_s3 + $0x28] sm:$0xff] %v2099_v62  ;;  %2118 = vst.msk [vmem:[%s3782_s3 + $0x38] sm:$0xff] %vm2113_vm0, %v2101_v63  ;;  %v1873_v1 = vpop.f32.mrb[4].mxu0  ;;  %v2085_v2 = vpop.f32.mrb[4].mxu1 }
 0x1de   :  { %v2407_v3 = vadd.f32 %v1873_v1, %v303_v41  ;;  %v2415_v4 = vadd.f32 %v2085_v2, %v303_v41  ;;  %v1875_v5 = vpop.f32.mrb[5].mxu0  ;;  %v2087_v6 = vpop.f32.mrb[5].mxu1 }
 0x1df   :  { %v2408_v7 = vadd.f32 %v1875_v5, %v303_v41  ;;  %v2416_v8 = vadd.f32 %v2087_v6, %v303_v41  ;;  %v1877_v9 = vpop.f32.mrb[6].mxu0  ;;  %v2089_v10 = vpop.f32.mrb[6].mxu1 }
 0x1e0   :  { %v2102_v11 = vmax.f32 %v2407_v3, 0.0  ;;  %v2104_v12 = vmax.f32 %v2415_v4, 0.0  ;;  %v2409_v13 = vadd.f32 %v1877_v9, %v308_v0  ;;  %v2417_v14 = vadd.f32 %v2089_v10, %v308_v0  ;;  %v1879_v15 = vpop.f32.mrb[7].mxu0  ;;  %v2091_v16 = vpop.f32.mrb[7].mxu1 }
 0x1e1   :  { %v2103_v17 = vmax.f32 %v2408_v7, 0.0  ;;  %v2105_v18 = vmax.f32 %v2416_v8, 0.0  ;;  %v2410_v19 = vadd.f32 %v1879_v15, %v308_v0  ;;  %v2418_v20 = vadd.f32 %v2091_v16, %v308_v0 }
 0x1e2   :  { %2119 = vst [vmem:[%s3782_s3 + $0x40] sm:$0xff] %v2102_v11  ;;  %2121 = vst [vmem:[%s3782_s3 + $0x50] sm:$0xff] %v2104_v12  ;;  %v2106_v21 = vmax.f32 %v2409_v13, 0.0  ;;  %v2108_v22 = vmax.f32 %v2417_v14, 0.0 }
 0x1e3   :  { %2120 = vst [vmem:[%s3782_s3 + $0x48] sm:$0xff] %v2103_v17  ;;  %2122 = vst.msk [vmem:[%s3782_s3 + $0x58] sm:$0xff] %vm2113_vm0, %v2105_v18  ;;  %v2107_v23 = vmax.f32 %v2410_v19, 0.0  ;;  %v2109_v24 = vmax.f32 %v2418_v20, 0.0 }
 0x1e4   :  { %2123 = vst [vmem:[%s3782_s3 + $0x60] sm:$0xff] %v2106_v21  ;;  %2125 = vst [vmem:[%s3782_s3 + $0x70] sm:$0xff] %v2108_v22 }
 0x1e5   :  { %2124 = vst [vmem:[%s3782_s3 + $0x68] sm:$0xff] %v2107_v23  ;;  %2126 = vst.msk [vmem:[%s3782_s3 + $0x78] sm:$0xff] %vm2113_vm0, %v2109_v24 }

// kernel: affine_invariant_autoencoder_forward.13
= control target key start
LH: loop header
LB: loop body
LE: loop exit
PB: predicated region body
PF: predicated region fallthrough
CT: control target
= control target key end

     0   :  { %v472_v38 = vlaneseq  ;;  %v4553_v39 = vmov 1966171168   ;;  %s5920_s1 = inlined_call_operand.vmem [shape: bf16[512,1568], index: 1, kind: input, shape index: {}]   ;;  %s5921_s0 = inlined_call_operand.vmem [shape: bf16[1,512], index: 0, kind: input, shape index: {}]   ;;  %s5922_s2 = inlined_call_operand.<no memory space> [shape: f32[1,1], index: 2, kind: input, shape index: {}]   ;;  %s5923_s3 = inlined_call_operand.vmem [shape: f32[1,1568], index: 3, kind: output, shape index: {}]  }
   0x1   :  { %v3893_v0 = vld [vmem:[%s5920_s1 + $0x4] ss:$52 sps:$4 sm:$0xff]   ;;  %v3895_v1 = vld [vmem:[%s5920_s1 + $0xc] ss:$52 sps:$4 sm:$0xff]   ;;  %v3898_v3 = vld [vmem:[%s5920_s1 + $0x8] ss:$52 sps:$4 sm:$0xff]   ;;  %v486_v40 = vunpack.c.l.s4 %v4553_v39 }
   0x2   :  { %2617 = vmatprep.subr.bf16.mxu0 %v3893_v0  ;;  %v3897_v2 = vld [vmem:[%s5920_s1] ss:$52 sps:$4 sm:$0xff]   ;;  %2699 = vmatprep.subr.bf16.mxu1 %v3895_v1  ;;  %v3903_v6 = vld [vmem:[%s5920_s1 + $0x68] ss:$52 sps:$4 sm:$0xff]   ;;  %v3904_v7 = vld [vmem:[%s5920_s1 + $0x70] ss:$52 sps:$4 sm:$0xff]  }
   0x3   :  { %v3899_v4 = vld [vmem:[%s5920_s1 + $0x6c] ss:$52 sps:$4 sm:$0xff]   ;;  %2618 = vmatpush1.bf16.msra.mxu0 %v3897_v2  ;;  %2700 = vmatpush1.bf16.msra.mxu1 %v3898_v3  ;;  %v3901_v5 = vld [vmem:[%s5920_s1 + $0x74] ss:$52 sps:$4 sm:$0xff]   ;;  %v3907_v9 = vld [vmem:[%s5920_s1 + $0xdc] ss:$52 sps:$4 sm:$0xff]   ;;  %v487_v46 = vunpack.c.0.s8 %v486_v40 }
   0x4   :  { %2619 = vmatprep.subr.bf16.mxu0 %v3899_v4  ;;  %2701 = vmatprep.subr.bf16.mxu1 %v3901_v5  ;;  %v3905_v8 = vld [vmem:[%s5920_s1 + $0xd4] ss:$52 sps:$4 sm:$0xff]   ;;  %v3909_v10 = vld [vmem:[%s5920_s1 + $0xd0] ss:$52 sps:$4 sm:$0xff]   ;;  %v3910_v11 = vld [vmem:[%s5920_s1 + $0xd8] ss:$52 sps:$4 sm:$0xff]  }
   0x5   :  { %v3911_v12 = vld [vmem:[%s5920_s1 + $0x13c] ss:$52 sps:$4 sm:$0xff]   ;;  %v3913_v13 = vld [vmem:[%s5920_s1 + $0x144] ss:$52 sps:$4 sm:$0xff]   ;;  %v3916_v15 = vld [vmem:[%s5920_s1 + $0x140] ss:$52 sps:$4 sm:$0xff]  }
   0x6   :  { %v3915_v14 = vld [vmem:[%s5920_s1 + $0x138] ss:$52 sps:$4 sm:$0xff]   ;;  %v3921_v18 = vld [vmem:[%s5920_s1 + $0x1a0] ss:$52 sps:$4 sm:$0xff]   ;;  %v3922_v19 = vld [vmem:[%s5920_s1 + $0x1a8] ss:$52 sps:$4 sm:$0xff]  }
   0x7   :  { %2620 = vmatpush1.bf16.msra.mxu0 %v3903_v6  ;;  %2702 = vmatpush1.bf16.msra.mxu1 %v3904_v7  ;;  %v3917_v16 = vld [vmem:[%s5920_s1 + $0x1a4] ss:$52 sps:$4 sm:$0xff]   ;;  %v3919_v17 = vld [vmem:[%s5920_s1 + $0x1ac] ss:$52 sps:$4 sm:$0xff]   ;;  %v3925_v21 = vld [vmem:[%s5920_s1 + $0x214] ss:$52 sps:$4 sm:$0xff]  }
   0x8   :  { %2621 = vmatprep.subr.bf16.mxu0 %v3905_v8  ;;  %2703 = vmatprep.subr.bf16.mxu1 %v3907_v9  ;;  %v3923_v20 = vld [vmem:[%s5920_s1 + $0x20c] ss:$52 sps:$4 sm:$0xff]   ;;  %v3927_v22 = vld [vmem:[%s5920_s1 + $0x208] ss:$52 sps:$4 sm:$0xff]   ;;  %v3928_v23 = vld [vmem:[%s5920_s1 + $0x210] ss:$52 sps:$4 sm:$0xff]  }
   0x9   :  { %v3929_v24 = vld [vmem:[%s5920_s1 + $0x274] ss:$52 sps:$4 sm:$0xff]   ;;  %v3931_v25 = vld [vmem:[%s5920_s1 + $0x27c] ss:$52 sps:$4 sm:$0xff]   ;;  %v3934_v27 = vld [vmem:[%s5920_s1 + $0x278] ss:$52 sps:$4 sm:$0xff]  }
   0xa   :  { %v3933_v26 = vld [vmem:[%s5920_s1 + $0x270] ss:$52 sps:$4 sm:$0xff]   ;;  %v3939_v30 = vld [vmem:[%s5920_s1 + $0x2d8] ss:$52 sps:$4 sm:$0xff]   ;;  %v3940_v31 = vld [vmem:[%s5920_s1 + $0x2e0] ss:$52 sps:$4 sm:$0xff]  }
   0xb   :  { %2622 = vmatpush1.bf16.msra.mxu0 %v3909_v10  ;;  %2704 = vmatpush1.bf16.msra.mxu1 %v3910_v11  ;;  %v3935_v28 = vld [vmem:[%s5920_s1 + $0x2dc] ss:$52 sps:$4 sm:$0xff]   ;;  %v3937_v29 = vld [vmem:[%s5920_s1 + $0x2e4] ss:$52 sps:$4 sm:$0xff]   ;;  %v3943_v33 = vld [vmem:[%s5920_s1 + $0x34c] ss:$52 sps:$4 sm:$0xff]  }
   0xc   :  { %2623 = vmatprep.subr.bf16.mxu0 %v3911_v12  ;;  %2705 = vmatprep.subr.bf16.mxu1 %v3913_v13  ;;  %v3941_v32 = vld [vmem:[%s5920_s1 + $0x344] ss:$52 sps:$4 sm:$0xff]   ;;  %v3945_v34 = vld [vmem:[%s5920_s1 + $0x340] ss:$52 sps:$4 sm:$0xff]   ;;  %v3946_v35 = vld [vmem:[%s5920_s1 + $0x348] ss:$52 sps:$4 sm:$0xff]  }
   0xd   :  { %v3947_v36 = vld [vmem:[%s5920_s1 + $0x3ac] ss:$52 sps:$4 sm:$0xff]   ;;  %v3949_v37 = vld [vmem:[%s5920_s1 + $0x3b4] ss:$52 sps:$4 sm:$0xff]   ;;  %v3952_v42 = vld [vmem:[%s5920_s1 + $0x3b0] ss:$52 sps:$4 sm:$0xff]  }
   0xe   :  { %v3951_v41 = vld [vmem:[%s5920_s1 + $0x3a8] ss:$52 sps:$4 sm:$0xff]   ;;  %v4702_v45 = vshrl.u32 %v472_v38, 7  ;;  %v3957_v47 = vld [vmem:[%s5920_s1 + $0x410] ss:$52 sps:$4 sm:$0xff]   ;;  %vm3373_vm0 = vcmp.lt.s32.totalorder %v472_v38, 544 }
   0xf   :  { %2624 = vmatpush1.bf16.msra.mxu0 %v3915_v14  ;;  %2706 = vmatpush1.bf16.msra.mxu1 %v3916_v15  ;;  %v3953_v43 = vld [vmem:[%s5920_s1 + $0x414] ss:$52 sps:$4 sm:$0xff]   ;;  %v3955_v44 = vld [vmem:[%s5920_s1 + $0x41c] ss:$52 sps:$4 sm:$0xff]   ;;  %v3958_v48 = vld [vmem:[%s5920_s1 + $0x418] ss:$52 sps:$4 sm:$0xff]  }
  0x10   :  { %2625 = vmatprep.subr.bf16.mxu0 %v3917_v16  ;;  %2707 = vmatprep.subr.bf16.mxu1 %v3919_v17  ;;  %v3959_v49 = vld [vmem:[%s5920_s1 + $0x47c] ss:$52 sps:$4 sm:$0xff]   ;;  %v3961_v50 = vld [vmem:[%s5920_s1 + $0x484] ss:$52 sps:$4 sm:$0xff]   ;;  %v4717_v51 = vsub.s32 %v487_v46, %v4702_v45  ;;  %v3964_v54 = vld [vmem:[%s5920_s1 + $0x480] ss:$52 sps:$4 sm:$0xff]  }
  0x11   :  { %v3380_v52 = vld.sshfl [vmem:[%s5921_s0] sm:$0x33 pattern:$0x75316420]  ;;  %v3963_v53 = vld [vmem:[%s5920_s1 + $0x478] ss:$52 sps:$4 sm:$0xff]  }
  0x12   :  { %v484_v55 = vcombine.high %v3380_v52, %v3380_v52  ;;  %v3965_v56 = vld [vmem:[%s5920_s1 + $0x4e4] ss:$52 sps:$4 sm:$0xff]   ;;  %v3967_v57 = vld [vmem:[%s5920_s1 + $0x4ec] ss:$52 sps:$4 sm:$0xff]   ;;  %v3970_v60 = vld [vmem:[%s5920_s1 + $0x4e8] ss:$52 sps:$4 sm:$0xff]   ;;  %v4791_v12 = vrot.slane %v3380_v52, %v4717_v51 }
  0x13   :  { %2626 = vmatpush1.bf16.msra.mxu0 %v3921_v18  ;;  %2708 = vmatpush1.bf16.msra.mxu1 %v3922_v19  ;;  %v3969_v59 = vld [vmem:[%s5920_s1 + $0x4e0] ss:$52 sps:$4 sm:$0xff]   ;;  %v3975_v63 = vld [vmem:[%s5920_s1 + $0x548] ss:$52 sps:$4 sm:$0xff]   ;;  %v3976_v0 = vld [vmem:[%s5920_s1 + $0x550] ss:$52 sps:$4 sm:$0xff]  }
  0x14   :  { %2627 = vmatprep.subr.bf16.mxu0 %v3923_v20  ;;  %2709 = vmatprep.subr.bf16.mxu1 %v3925_v21  ;;  %v4735_v58 = vrot.slane %v484_v55, %v4717_v51  ;;  %v3971_v61 = vld [vmem:[%s5920_s1 + $0x54c] ss:$52 sps:$4 sm:$0xff]   ;;  %v3973_v62 = vld [vmem:[%s5920_s1 + $0x554] ss:$52 sps:$4 sm:$0xff]   ;;  %v3979_v2 = vld [vmem:[%s5920_s1 + $0x5bc] ss:$52 sps:$4 sm:$0xff]  }
  0x15   :  { %v3977_v1 = vld [vmem:[%s5920_s1 + $0x5b4] ss:$52 sps:$4 sm:$0xff]   ;;  %v3981_v3 = vld [vmem:[%s5920_s1 + $0x5b0] ss:$52 sps:$4 sm:$0xff]   ;;  %v3982_v4 = vld [vmem:[%s5920_s1 + $0x5b8] ss:$52 sps:$4 sm:$0xff]  }
  0x16   :  { %2649 = vmatprep.mubr.bf16.mxu0 %v4735_v58  ;;  %2731 = vmatprep.mubr.bf16.mxu1 %v4735_v58  ;;  %v3983_v5 = vld [vmem:[%s5920_s1 + $0x61c] ss:$52 sps:$4 sm:$0xff]   ;;  %v3985_v6 = vld [vmem:[%s5920_s1 + $0x624] ss:$52 sps:$4 sm:$0xff]   ;;  %v3988_v8 = vld [vmem:[%s5920_s1 + $0x620] ss:$52 sps:$4 sm:$0xff]   ;;  %v4804_v16 = vcombine.high %v4735_v58, %v4735_v58 }
  0x17   :  { %2628 = vmatpush1.bf16.msra.mxu0 %v3927_v22  ;;  %2710 = vmatpush1.bf16.msra.mxu1 %v3928_v23  ;;  %v3987_v7 = vld [vmem:[%s5920_s1 + $0x618] ss:$52 sps:$4 sm:$0xff]   ;;  %v3989_v11 = vld [vmem:[%s5920_s1 + $0x680] ss:$52 sps:$4 sm:$0xff]   ;;  %v3992_v13 = vld [vmem:[%s5920_s1 + $0x688] ss:$52 sps:$4 sm:$0xff]  }
  0x18   :  { %2629 = vmatprep.subr.bf16.mxu0 %v3929_v24  ;;  %2711 = vmatprep.subr.bf16.mxu1 %v3931_v25  ;;  %v3991_v9 = vld [vmem:[%s5920_s1 + $0x684] ss:$52 sps:$4 sm:$0xff]   ;;  %v3994_v10 = vld [vmem:[%s5920_s1 + $0x68c] ss:$52 sps:$4 sm:$0xff]   ;;  %v4000_v15 = vld [vmem:[%s5920_s1 + $0x6f4] ss:$52 sps:$4 sm:$0xff]  }
  0x19   :  { %v3997_v14 = vld [vmem:[%s5920_s1 + $0x6ec] ss:$52 sps:$4 sm:$0xff]   ;;  %v3995_v17 = vld [vmem:[%s5920_s1 + $0x6e8] ss:$52 sps:$4 sm:$0xff]   ;;  %v3998_v18 = vld [vmem:[%s5920_s1 + $0x6f0] ss:$52 sps:$4 sm:$0xff]  }
  0x1a   :  { %v4003_v19 = vld [vmem:[%s5920_s1 + $0x754] ss:$52 sps:$4 sm:$0xff]   ;;  %v4006_v20 = vld [vmem:[%s5920_s1 + $0x75c] ss:$52 sps:$4 sm:$0xff]   ;;  %v4004_v22 = vld [vmem:[%s5920_s1 + $0x758] ss:$52 sps:$4 sm:$0xff]  }
  0x1b   :  { %2630 = vmatpush1.bf16.msra.mxu0 %v3933_v26  ;;  %2712 = vmatpush1.bf16.msra.mxu1 %v3934_v27  ;;  %v4001_v21 = vld [vmem:[%s5920_s1 + $0x750] ss:$52 sps:$4 sm:$0xff]   ;;  %v4007_v25 = vld [vmem:[%s5920_s1 + $0x7b8] ss:$52 sps:$4 sm:$0xff]   ;;  %v4010_v26 = vld [vmem:[%s5920_s1 + $0x7c0] ss:$52 sps:$4 sm:$0xff]   ;;  %v8_v27 = vstv %s5922_s2 }
  0x1c   :  { %2631 = vmatprep.subr.bf16.mxu0 %v3935_v28  ;;  %2713 = vmatprep.subr.bf16.mxu1 %v3937_v29  ;;  %v4009_v23 = vld [vmem:[%s5920_s1 + $0x7bc] ss:$52 sps:$4 sm:$0xff]   ;;  %v4012_v24 = vld [vmem:[%s5920_s1 + $0x7c4] ss:$52 sps:$4 sm:$0xff]   ;;  %v4018_v29 = vld [vmem:[%s5920_s1 + $0x82c] ss:$52 sps:$4 sm:$0xff]  }
  0x1d   :  { %v4015_v28 = vld [vmem:[%s5920_s1 + $0x824] ss:$52 sps:$4 sm:$0xff]   ;;  %9 = vst [vmem:[#allocation2] sm:$0x1] %v8_v27  ;;  %v4030_v39 = vld [vmem:[%s5920_s1 + $0x8fc] ss:$52 sps:$4 sm:$0xff]  }
  0x1e   :  { %v4025_v40 = vld [vmem:[%s5920_s1 + $0x8f0] ss:$52 sps:$4 sm:$0xff]   ;;  %v4034_v46 = vld [vmem:[%s5920_s1 + $0x960] ss:$52 sps:$4 sm:$0xff]  }
  0x1f   :  { %2632 = vmatpush1.bf16.msra.mxu0 %v3939_v30  ;;  %2714 = vmatpush1.bf16.msra.mxu1 %v3940_v31  ;;  %v4013_v30 = vld [vmem:[%s5920_s1 + $0x820] ss:$52 sps:$4 sm:$0xff]   ;;  %v4016_v31 = vld [vmem:[%s5920_s1 + $0x828] ss:$52 sps:$4 sm:$0xff]   ;;  %v4046_v55 = vld [vmem:[%s5920_s1 + $0xa30] ss:$52 sps:$4 sm:$0xff]  }
  0x20   :  { %2633 = vmatprep.subr.bf16.mxu0 %v3941_v32  ;;  %2715 = vmatprep.subr.bf16.mxu1 %v3943_v33  ;;  %v4021_v32 = vld [vmem:[%s5920_s1 + $0x88c] ss:$52 sps:$4 sm:$0xff]   ;;  %v4024_v33 = vld [vmem:[%s5920_s1 + $0x894] ss:$52 sps:$4 sm:$0xff]  }
  0x21   :  { %v4045_v52 = vld [vmem:[%s5920_s1 + $0xa2c] ss:$52 sps:$4 sm:$0xff]  }
  0x22   :  { %v4094_v27 = vld [vmem:[%s5920_s1 + $0x80] ss:$52 sps:$4 sm:$0xff]  }
  0x23   :  { %2634 = vmatpush1.bf16.msra.mxu0 %v3945_v34  ;;  %2716 = vmatpush1.bf16.msra.mxu1 %v3946_v35  ;;  %v4554_v34 = vmov 0   ;;  %v4019_v35 = vld [vmem:[%s5920_s1 + $0x888] ss:$52 sps:$4 sm:$0xff]  }
  0x24   :  { %2635 = vmatprep.subr.bf16.mxu0 %v3947_v36  ;;  %2717 = vmatprep.subr.bf16.mxu1 %v3949_v37  ;;  %v4022_v36 = vld [vmem:[%s5920_s1 + $0x890] ss:$52 sps:$4 sm:$0xff]   ;;  %v4027_v37 = vld [vmem:[%s5920_s1 + $0x8f4] ss:$52 sps:$4 sm:$0xff]  }
  0x25   :  { %3892 = vset.pattern.permute.xlu0 %v4554_v34  ;;  %v4103_v34 = vld [vmem:[%s5920_s1 + $0x148] ss:$52 sps:$4 sm:$0xff]  }
  0x27   :  { %2636 = vmatpush1.bf16.msra.mxu0 %v3951_v41  ;;  %2718 = vmatpush1.bf16.msra.mxu1 %v3952_v42  ;;  %v4028_v41 = vld [vmem:[%s5920_s1 + $0x8f8] ss:$52 sps:$4 sm:$0xff]   ;;  %v4033_v42 = vld [vmem:[%s5920_s1 + $0x95c] ss:$52 sps:$4 sm:$0xff]  }
  0x28   :  { %2637 = vmatprep.subr.bf16.mxu0 %v3953_v43  ;;  %2719 = vmatprep.subr.bf16.mxu1 %v3955_v44  ;;  %v4036_v43 = vld [vmem:[%s5920_s1 + $0x964] ss:$52 sps:$4 sm:$0xff]  }
  0x29   :  { %v4031_v44 = vld [vmem:[%s5920_s1 + $0x958] ss:$52 sps:$4 sm:$0xff]  }
  0x2b   :  { %2638 = vmatpush1.bf16.msra.mxu0 %v3957_v47  ;;  %2720 = vmatpush1.bf16.msra.mxu1 %v3958_v48  ;;  %v4039_v47 = vld [vmem:[%s5920_s1 + $0x9c4] ss:$52 sps:$4 sm:$0xff]   ;;  %v4042_v48 = vld [vmem:[%s5920_s1 + $0x9cc] ss:$52 sps:$4 sm:$0xff]  }
  0x2c   :  { %2639 = vmatprep.subr.bf16.mxu0 %v3959_v49  ;;  %2721 = vmatprep.subr.bf16.mxu1 %v3961_v50  ;;  %v4037_v49 = vld [vmem:[%s5920_s1 + $0x9c0] ss:$52 sps:$4 sm:$0xff]   ;;  %v4040_v50 = vld [vmem:[%s5920_s1 + $0x9c8] ss:$52 sps:$4 sm:$0xff]  }
  0x2f   :  { %2640 = vmatpush1.bf16.msra.mxu0 %v3963_v53  ;;  %2722 = vmatpush1.bf16.msra.mxu1 %v3964_v54  ;;  %v4048_v53 = vld [vmem:[%s5920_s1 + $0xa34] ss:$52 sps:$4 sm:$0xff]  }
  0x30   :  { %2641 = vmatprep.subr.bf16.mxu0 %v3965_v56  ;;  %2723 = vmatprep.subr.bf16.mxu1 %v3967_v57  ;;  %v4043_v54 = vld [vmem:[%s5920_s1 + $0xa28] ss:$52 sps:$4 sm:$0xff]  }
  0x31   :  { %v4051_v56 = vld [vmem:[%s5920_s1 + $0xa94] ss:$52 sps:$4 sm:$0xff]   ;;  %v4054_v57 = vld [vmem:[%s5920_s1 + $0xa9c] ss:$52 sps:$4 sm:$0xff]  }
  0x33   :  { %2642 = vmatpush1.bf16.msra.mxu0 %v3969_v59  ;;  %2724 = vmatpush1.bf16.msra.mxu1 %v3970_v60  ;;  %v4049_v59 = vld [vmem:[%s5920_s1 + $0xa90] ss:$52 sps:$4 sm:$0xff]   ;;  %v4052_v60 = vld [vmem:[%s5920_s1 + $0xa98] ss:$52 sps:$4 sm:$0xff]  }
  0x34   :  { %2643 = vmatprep.subr.bf16.mxu0 %v3971_v61  ;;  %2725 = vmatprep.subr.bf16.mxu1 %v3973_v62  ;;  %v4057_v61 = vld [vmem:[%s5920_s1 + $0xafc] ss:$52 sps:$4 sm:$0xff]   ;;  %v4060_v62 = vld [vmem:[%s5920_s1 + $0xb04] ss:$52 sps:$4 sm:$0xff]  }
  0x37   :  { %2644 = vmatpush1.bf16.msra.mxu0 %v3975_v63  ;;  %2726 = vmatpush1.bf16.msra.mxu1 %v3976_v0  ;;  %v4055_v63 = vld [vmem:[%s5920_s1 + $0xaf8] ss:$52 sps:$4 sm:$0xff]   ;;  %v4058_v0 = vld [vmem:[%s5920_s1 + $0xb00] ss:$52 sps:$4 sm:$0xff]  }
  0x38   :  { %2645 = vmatprep.subr.bf16.mxu0 %v3977_v1  ;;  %2727 = vmatprep.subr.bf16.mxu1 %v3979_v2  ;;  %v4063_v1 = vld [vmem:[%s5920_s1 + $0xb64] ss:$52 sps:$4 sm:$0xff]   ;;  %v4066_v2 = vld [vmem:[%s5920_s1 + $0xb6c] ss:$52 sps:$4 sm:$0xff]  }
  0x3b   :  { %2646 = vmatpush1.bf16.msra.mxu0 %v3981_v3  ;;  %2728 = vmatpush1.bf16.msra.mxu1 %v3982_v4  ;;  %v4061_v3 = vld [vmem:[%s5920_s1 + $0xb60] ss:$52 sps:$4 sm:$0xff]   ;;  %v4064_v4 = vld [vmem:[%s5920_s1 + $0xb68] ss:$52 sps:$4 sm:$0xff]  }
  0x3c   :  { %2647 = vmatprep.subr.bf16.mxu0 %v3983_v5  ;;  %2729 = vmatprep.subr.bf16.mxu1 %v3985_v6  ;;  %v4069_v5 = vld [vmem:[%s5920_s1 + $0xbcc] ss:$52 sps:$4 sm:$0xff]   ;;  %v4072_v6 = vld [vmem:[%s5920_s1 + $0xbd4] ss:$52 sps:$4 sm:$0xff]  }
  0x3f   :  { %2648 = vmatpush1.bf16.msra.mxu0 %v3987_v7  ;;  %2730 = vmatpush1.bf16.msra.mxu1 %v3988_v8  ;;  %v4067_v7 = vld [vmem:[%s5920_s1 + $0xbc8] ss:$52 sps:$4 sm:$0xff]   ;;  %v4070_v8 = vld [vmem:[%s5920_s1 + $0xbd0] ss:$52 sps:$4 sm:$0xff]  }
  0x40   :  { %2658 = vmatprep.subr.bf16.mxu0 %v3991_v9  ;;  %2740 = vmatprep.subr.bf16.mxu1 %v3994_v10  ;;  %v4075_v9 = vld [vmem:[%s5920_s1 + $0xc34] ss:$52 sps:$4 sm:$0xff]   ;;  %v4078_v10 = vld [vmem:[%s5920_s1 + $0xc3c] ss:$52 sps:$4 sm:$0xff]  }
  0x42   :  { %2650 = vmatmul.mubr.bf16.vlgmr.msra.gmra.mrb[0].mxu0 %v4791_v12  ;;  %2732 = vmatmul.mubr.bf16.vlgmr.msra.gmra.mrb[0].mxu1 %v4791_v12 }
  0x43   :  { %2659 = vmatpush1.bf16.msra.mxu0 %v3989_v11  ;;  %2741 = vmatpush1.bf16.msra.mxu1 %v3992_v13  ;;  %v4073_v11 = vld [vmem:[%s5920_s1 + $0xc30] ss:$52 sps:$4 sm:$0xff]   ;;  %v4076_v13 = vld [vmem:[%s5920_s1 + $0xc38] ss:$52 sps:$4 sm:$0xff]  }
  0x44   :  { %2660 = vmatprep.subr.bf16.mxu0 %v3997_v14  ;;  %2742 = vmatprep.subr.bf16.mxu1 %v4000_v15  ;;  %v4081_v14 = vld [vmem:[%s5920_s1 + $0xc9c] ss:$52 sps:$4 sm:$0xff]   ;;  %v4084_v15 = vld [vmem:[%s5920_s1 + $0xca4] ss:$52 sps:$4 sm:$0xff]  }
  0x45   :  { %2690 = vmatprep.mubr.bf16.mxu0 %v4804_v16  ;;  %2772 = vmatprep.mubr.bf16.mxu1 %v4804_v16 }
  0x47   :  { %2661 = vmatpush1.bf16.msra.mxu0 %v3995_v17  ;;  %2743 = vmatpush1.bf16.msra.mxu1 %v3998_v18  ;;  %v4079_v17 = vld [vmem:[%s5920_s1 + $0xc98] ss:$52 sps:$4 sm:$0xff]   ;;  %v4082_v18 = vld [vmem:[%s5920_s1 + $0xca0] ss:$52 sps:$4 sm:$0xff]  }
  0x48   :  { %2662 = vmatprep.subr.bf16.mxu0 %v4003_v19  ;;  %2744 = vmatprep.subr.bf16.mxu1 %v4006_v20  ;;  %v4087_v19 = vld [vmem:[%s5920_s1 + $0x14] ss:$52 sps:$4 sm:$0xff]   ;;  %v4090_v20 = vld [vmem:[%s5920_s1 + $0x1c] ss:$52 sps:$4 sm:$0xff]  }
  0x4b   :  { %2663 = vmatpush1.bf16.msra.mxu0 %v4001_v21  ;;  %2745 = vmatpush1.bf16.msra.mxu1 %v4004_v22  ;;  %v4995_v21 = vcombine.high %v4791_v12, %v4791_v12  ;;  %v4085_v22 = vld [vmem:[%s5920_s1 + $0x10] ss:$52 sps:$4 sm:$0xff]  }
  0x4c   :  { %2664 = vmatprep.subr.bf16.mxu0 %v4009_v23  ;;  %2746 = vmatprep.subr.bf16.mxu1 %v4012_v24  ;;  %v4088_v23 = vld [vmem:[%s5920_s1 + $0x18] ss:$52 sps:$4 sm:$0xff]   ;;  %v4093_v24 = vld [vmem:[%s5920_s1 + $0x7c] ss:$52 sps:$4 sm:$0xff]  }
  0x4f   :  { %2665 = vmatpush1.bf16.msra.mxu0 %v4007_v25  ;;  %2747 = vmatpush1.bf16.msra.mxu1 %v4010_v26  ;;  %v4096_v25 = vld [vmem:[%s5920_s1 + $0x84] ss:$52 sps:$4 sm:$0xff]  }
  0x50   :  { %2666 = vmatprep.subr.bf16.mxu0 %v4015_v28  ;;  %2748 = vmatprep.subr.bf16.mxu1 %v4018_v29  ;;  %v4091_v26 = vld [vmem:[%s5920_s1 + $0x78] ss:$52 sps:$4 sm:$0xff]  }
  0x51   :  { %v4099_v28 = vld [vmem:[%s5920_s1 + $0xe4] ss:$52 sps:$4 sm:$0xff]   ;;  %v4102_v29 = vld [vmem:[%s5920_s1 + $0xec] ss:$52 sps:$4 sm:$0xff]  }
  0x53   :  { %2667 = vmatpush1.bf16.msra.mxu0 %v4013_v30  ;;  %2749 = vmatpush1.bf16.msra.mxu1 %v4016_v31  ;;  %v4097_v30 = vld [vmem:[%s5920_s1 + $0xe0] ss:$52 sps:$4 sm:$0xff]   ;;  %v4100_v31 = vld [vmem:[%s5920_s1 + $0xe8] ss:$52 sps:$4 sm:$0xff]  }
  0x54   :  { %2668 = vmatprep.subr.bf16.mxu0 %v4021_v32  ;;  %2750 = vmatprep.subr.bf16.mxu1 %v4024_v33  ;;  %v4105_v32 = vld [vmem:[%s5920_s1 + $0x14c] ss:$52 sps:$4 sm:$0xff]   ;;  %v4108_v33 = vld [vmem:[%s5920_s1 + $0x154] ss:$52 sps:$4 sm:$0xff]  }
  0x57   :  { %2669 = vmatpush1.bf16.msra.mxu0 %v4019_v35  ;;  %2751 = vmatpush1.bf16.msra.mxu1 %v4022_v36  ;;  %v4106_v35 = vld [vmem:[%s5920_s1 + $0x150] ss:$52 sps:$4 sm:$0xff]   ;;  %v4111_v36 = vld [vmem:[%s5920_s1 + $0x1b4] ss:$52 sps:$4 sm:$0xff]  }
  0x58   :  { %2670 = vmatprep.subr.bf16.mxu0 %v4027_v37  ;;  %2752 = vmatprep.subr.bf16.mxu1 %v4030_v39  ;;  %v4114_v37 = vld [vmem:[%s5920_s1 + $0x1bc] ss:$52 sps:$4 sm:$0xff]   ;;  %v466_v39 = vld [vmem:[#allocation2] sm:$0x1] }
  0x59   :  { %469 = vperm.xlu0 %3892, %v466_v39   ;;  %v4193_v39 = vld [vmem:[%s5920_s1 + $0x760] ss:$52 sps:$4 sm:$0xff]  }
  0x5b   :  { %2671 = vmatpush1.bf16.msra.mxu0 %v4025_v40  ;;  %2753 = vmatpush1.bf16.msra.mxu1 %v4028_v41  ;;  %v4109_v40 = vld [vmem:[%s5920_s1 + $0x1b0] ss:$52 sps:$4 sm:$0xff]   ;;  %v4112_v41 = vld [vmem:[%s5920_s1 + $0x1b8] ss:$52 sps:$4 sm:$0xff]  }
  0x5c   :  { %2672 = vmatprep.subr.bf16.mxu0 %v4033_v42  ;;  %2754 = vmatprep.subr.bf16.mxu1 %v4036_v43  ;;  %v4117_v42 = vld [vmem:[%s5920_s1 + $0x21c] ss:$52 sps:$4 sm:$0xff]   ;;  %v4120_v43 = vld [vmem:[%s5920_s1 + $0x224] ss:$52 sps:$4 sm:$0xff]  }
  0x5f   :  { %2673 = vmatpush1.bf16.msra.mxu0 %v4031_v44  ;;  %2755 = vmatpush1.bf16.msra.mxu1 %v4034_v46  ;;  %v4115_v44 = vld [vmem:[%s5920_s1 + $0x218] ss:$52 sps:$4 sm:$0xff]   ;;  %v4118_v46 = vld [vmem:[%s5920_s1 + $0x220] ss:$52 sps:$4 sm:$0xff]  }
  0x60   :  { %2674 = vmatprep.subr.bf16.mxu0 %v4039_v47  ;;  %2756 = vmatprep.subr.bf16.mxu1 %v4042_v48  ;;  %v4123_v47 = vld [vmem:[%s5920_s1 + $0x284] ss:$52 sps:$4 sm:$0xff]   ;;  %v4126_v48 = vld [vmem:[%s5920_s1 + $0x28c] ss:$52 sps:$4 sm:$0xff]  }
  0x63   :  { %2675 = vmatpush1.bf16.msra.mxu0 %v4037_v49  ;;  %2757 = vmatpush1.bf16.msra.mxu1 %v4040_v50  ;;  %v4121_v49 = vld [vmem:[%s5920_s1 + $0x280] ss:$52 sps:$4 sm:$0xff]   ;;  %v4124_v50 = vld [vmem:[%s5920_s1 + $0x288] ss:$52 sps:$4 sm:$0xff]  }
  0x64   :  { %2676 = vmatprep.subr.bf16.mxu0 %v4045_v52  ;;  %2758 = vmatprep.subr.bf16.mxu1 %v4048_v53  ;;  %v4129_v52 = vld [vmem:[%s5920_s1 + $0x2ec] ss:$52 sps:$4 sm:$0xff]   ;;  %v4132_v53 = vld [vmem:[%s5920_s1 + $0x2f4] ss:$52 sps:$4 sm:$0xff]  }
  0x67   :  { %2677 = vmatpush1.bf16.msra.mxu0 %v4043_v54  ;;  %2759 = vmatpush1.bf16.msra.mxu1 %v4046_v55  ;;  %v4127_v54 = vld [vmem:[%s5920_s1 + $0x2e8] ss:$52 sps:$4 sm:$0xff]   ;;  %v4130_v55 = vld [vmem:[%s5920_s1 + $0x2f0] ss:$52 sps:$4 sm:$0xff]  }
  0x68   :  { %2678 = vmatprep.subr.bf16.mxu0 %v4051_v56  ;;  %2760 = vmatprep.subr.bf16.mxu1 %v4054_v57  ;;  %v4135_v56 = vld [vmem:[%s5920_s1 + $0x354] ss:$52 sps:$4 sm:$0xff]   ;;  %v4138_v57 = vld [vmem:[%s5920_s1 + $0x35c] ss:$52 sps:$4 sm:$0xff]  }
  0x6b   :  { %2679 = vmatpush1.bf16.msra.mxu0 %v4049_v59  ;;  %2761 = vmatpush1.bf16.msra.mxu1 %v4052_v60  ;;  %v4133_v59 = vld [vmem:[%s5920_s1 + $0x350] ss:$52 sps:$4 sm:$0xff]   ;;  %v4136_v60 = vld [vmem:[%s5920_s1 + $0x358] ss:$52 sps:$4 sm:$0xff]  }
  0x6c   :  { %2680 = vmatprep.subr.bf16.mxu0 %v4057_v61  ;;  %2762 = vmatprep.subr.bf16.mxu1 %v4060_v62  ;;  %v4141_v61 = vld [vmem:[%s5920_s1 + $0x3bc] ss:$52 sps:$4 sm:$0xff]   ;;  %v4144_v62 = vld [vmem:[%s5920_s1 + $0x3c4] ss:$52 sps:$4 sm:$0xff]  }
  0x6f   :  { %2681 = vmatpush1.bf16.msra.mxu0 %v4055_v63  ;;  %2763 = vmatpush1.bf16.msra.mxu1 %v4058_v0  ;;  %v4139_v63 = vld [vmem:[%s5920_s1 + $0x3b8] ss:$52 sps:$4 sm:$0xff]   ;;  %v4142_v0 = vld [vmem:[%s5920_s1 + $0x3c0] ss:$52 sps:$4 sm:$0xff]  }
  0x70   :  { %2682 = vmatprep.subr.bf16.mxu0 %v4063_v1  ;;  %2764 = vmatprep.subr.bf16.mxu1 %v4066_v2  ;;  %v4147_v1 = vld [vmem:[%s5920_s1 + $0x424] ss:$52 sps:$4 sm:$0xff]   ;;  %v4150_v2 = vld [vmem:[%s5920_s1 + $0x42c] ss:$52 sps:$4 sm:$0xff]  }
  0x73   :  { %2683 = vmatpush1.bf16.msra.mxu0 %v4061_v3  ;;  %2765 = vmatpush1.bf16.msra.mxu1 %v4064_v4  ;;  %v4145_v3 = vld [vmem:[%s5920_s1 + $0x420] ss:$52 sps:$4 sm:$0xff]   ;;  %v4148_v4 = vld [vmem:[%s5920_s1 + $0x428] ss:$52 sps:$4 sm:$0xff]  }
  0x74   :  { %2684 = vmatprep.subr.bf16.mxu0 %v4069_v5  ;;  %2766 = vmatprep.subr.bf16.mxu1 %v4072_v6  ;;  %v4153_v5 = vld [vmem:[%s5920_s1 + $0x48c] ss:$52 sps:$4 sm:$0xff]   ;;  %v4156_v6 = vld [vmem:[%s5920_s1 + $0x494] ss:$52 sps:$4 sm:$0xff]  }
  0x77   :  { %2685 = vmatpush1.bf16.msra.mxu0 %v4067_v7  ;;  %2767 = vmatpush1.bf16.msra.mxu1 %v4070_v8  ;;  %v4151_v7 = vld [vmem:[%s5920_s1 + $0x488] ss:$52 sps:$4 sm:$0xff]   ;;  %v4154_v8 = vld [vmem:[%s5920_s1 + $0x490] ss:$52 sps:$4 sm:$0xff]  }
  0x78   :  { %2686 = vmatprep.subr.bf16.mxu0 %v4075_v9  ;;  %2768 = vmatprep.subr.bf16.mxu1 %v4078_v10  ;;  %v4159_v9 = vld [vmem:[%s5920_s1 + $0x4f4] ss:$52 sps:$4 sm:$0xff]   ;;  %v4162_v10 = vld [vmem:[%s5920_s1 + $0x4fc] ss:$52 sps:$4 sm:$0xff]  }
  0x7b   :  { %2687 = vmatpush1.bf16.msra.mxu0 %v4073_v11  ;;  %2769 = vmatpush1.bf16.msra.mxu1 %v4076_v13  ;;  %v4157_v11 = vld [vmem:[%s5920_s1 + $0x4f0] ss:$52 sps:$4 sm:$0xff]   ;;  %v4160_v13 = vld [vmem:[%s5920_s1 + $0x4f8] ss:$52 sps:$4 sm:$0xff]  }
  0x7c   :  { %2688 = vmatprep.subr.bf16.mxu0 %v4081_v14  ;;  %2770 = vmatprep.subr.bf16.mxu1 %v4084_v15  ;;  %v4165_v14 = vld [vmem:[%s5920_s1 + $0x55c] ss:$52 sps:$4 sm:$0xff]   ;;  %v4168_v15 = vld [vmem:[%s5920_s1 + $0x564] ss:$52 sps:$4 sm:$0xff]  }
  0x7f   :  { %2689 = vmatpush1.bf16.msra.mxu0 %v4079_v17  ;;  %2771 = vmatpush1.bf16.msra.mxu1 %v4082_v18  ;;  %v4163_v17 = vld [vmem:[%s5920_s1 + $0x558] ss:$52 sps:$4 sm:$0xff]   ;;  %v4166_v18 = vld [vmem:[%s5920_s1 + $0x560] ss:$52 sps:$4 sm:$0xff]  }
  0x80   :  { %2781 = vmatprep.subr.bf16.mxu0 %v4087_v19  ;;  %2863 = vmatprep.subr.bf16.mxu1 %v4090_v20  ;;  %v4171_v19 = vld [vmem:[%s5920_s1 + $0x5c4] ss:$52 sps:$4 sm:$0xff]   ;;  %v4174_v20 = vld [vmem:[%s5920_s1 + $0x5cc] ss:$52 sps:$4 sm:$0xff]  }
  0x82   :  { %2691 = vmatmul.mubr.bf16.vlgmr.msra.gmra.mrb[0].mxu0 %v4995_v21  ;;  %2773 = vmatmul.mubr.bf16.vlgmr.msra.gmra.mrb[0].mxu1 %v4995_v21 }
  0x83   :  { %2782 = vmatpush1.bf16.msra.mxu0 %v4085_v22  ;;  %2864 = vmatpush1.bf16.msra.mxu1 %v4088_v23  ;;  %v4169_v22 = vld [vmem:[%s5920_s1 + $0x5c0] ss:$52 sps:$4 sm:$0xff]   ;;  %v4172_v23 = vld [vmem:[%s5920_s1 + $0x5c8] ss:$52 sps:$4 sm:$0xff]  }
  0x84   :  { %2783 = vmatprep.subr.bf16.mxu0 %v4093_v24  ;;  %2865 = vmatprep.subr.bf16.mxu1 %v4096_v25  ;;  %v4177_v24 = vld [vmem:[%s5920_s1 + $0x62c] ss:$52 sps:$4 sm:$0xff]   ;;  %v4180_v25 = vld [vmem:[%s5920_s1 + $0x634] ss:$52 sps:$4 sm:$0xff]  }
  0x85   :  { %2813 = vmatprep.mubr.bf16.mxu0 %v4735_v58  ;;  %2895 = vmatprep.mubr.bf16.mxu1 %v4735_v58 }
  0x87   :  { %2784 = vmatpush1.bf16.msra.mxu0 %v4091_v26  ;;  %2866 = vmatpush1.bf16.msra.mxu1 %v4094_v27  ;;  %v4175_v26 = vld [vmem:[%s5920_s1 + $0x628] ss:$52 sps:$4 sm:$0xff]   ;;  %v4178_v27 = vld [vmem:[%s5920_s1 + $0x630] ss:$52 sps:$4 sm:$0xff]  }
  0x88   :  { %2785 = vmatprep.subr.bf16.mxu0 %v4099_v28  ;;  %2867 = vmatprep.subr.bf16.mxu1 %v4102_v29  ;;  %v4183_v28 = vld [vmem:[%s5920_s1 + $0x694] ss:$52 sps:$4 sm:$0xff]   ;;  %v4186_v29 = vld [vmem:[%s5920_s1 + $0x69c] ss:$52 sps:$4 sm:$0xff]  }
  0x8b   :  { %2786 = vmatpush1.bf16.msra.mxu0 %v4097_v30  ;;  %2868 = vmatpush1.bf16.msra.mxu1 %v4100_v31  ;;  %v4181_v30 = vld [vmem:[%s5920_s1 + $0x690] ss:$52 sps:$4 sm:$0xff]   ;;  %v4184_v31 = vld [vmem:[%s5920_s1 + $0x698] ss:$52 sps:$4 sm:$0xff]  }
  0x8c   :  { %2787 = vmatprep.subr.bf16.mxu0 %v4105_v32  ;;  %2869 = vmatprep.subr.bf16.mxu1 %v4108_v33  ;;  %v4189_v32 = vld [vmem:[%s5920_s1 + $0x6fc] ss:$52 sps:$4 sm:$0xff]   ;;  %v4192_v33 = vld [vmem:[%s5920_s1 + $0x704] ss:$52 sps:$4 sm:$0xff]  }
  0x8f   :  { %2788 = vmatpush1.bf16.msra.mxu0 %v4103_v34  ;;  %2870 = vmatpush1.bf16.msra.mxu1 %v4106_v35  ;;  %v4187_v34 = vld [vmem:[%s5920_s1 + $0x6f8] ss:$52 sps:$4 sm:$0xff]   ;;  %v4190_v35 = vld [vmem:[%s5920_s1 + $0x700] ss:$52 sps:$4 sm:$0xff]  }
  0x90   :  { %2789 = vmatprep.subr.bf16.mxu0 %v4111_v36  ;;  %2871 = vmatprep.subr.bf16.mxu1 %v4114_v37  ;;  %v4195_v36 = vld [vmem:[%s5920_s1 + $0x764] ss:$52 sps:$4 sm:$0xff]   ;;  %v4198_v37 = vld [vmem:[%s5920_s1 + $0x76c] ss:$52 sps:$4 sm:$0xff]  }
  0x93   :  { %2790 = vmatpush1.bf16.msra.mxu0 %v4109_v40  ;;  %2872 = vmatpush1.bf16.msra.mxu1 %v4112_v41  ;;  %v4196_v40 = vld [vmem:[%s5920_s1 + $0x768] ss:$52 sps:$4 sm:$0xff]   ;;  %v4201_v41 = vld [vmem:[%s5920_s1 + $0x7cc] ss:$52 sps:$4 sm:$0xff]  }
  0x94   :  { %2791 = vmatprep.subr.bf16.mxu0 %v4117_v42  ;;  %2873 = vmatprep.subr.bf16.mxu1 %v4120_v43  ;;  %v4204_v42 = vld [vmem:[%s5920_s1 + $0x7d4] ss:$52 sps:$4 sm:$0xff]  }
  0x95   :  { %v4199_v43 = vld [vmem:[%s5920_s1 + $0x7c8] ss:$52 sps:$4 sm:$0xff]  }
  0x97   :  { %2792 = vmatpush1.bf16.msra.mxu0 %v4115_v44  ;;  %2874 = vmatpush1.bf16.msra.mxu1 %v4118_v46  ;;  %v4202_v44 = vld [vmem:[%s5920_s1 + $0x7d0] ss:$52 sps:$4 sm:$0xff]   ;;  %v4207_v46 = vld [vmem:[%s5920_s1 + $0x834] ss:$52 sps:$4 sm:$0xff]  }
  0x98   :  { %2793 = vmatprep.subr.bf16.mxu0 %v4123_v47  ;;  %2875 = vmatprep.subr.bf16.mxu1 %v4126_v48  ;;  %v4210_v47 = vld [vmem:[%s5920_s1 + $0x83c] ss:$52 sps:$4 sm:$0xff]  }
  0x99   :  { %v4205_v48 = vld [vmem:[%s5920_s1 + $0x830] ss:$52 sps:$4 sm:$0xff]  }
  0x9b   :  { %2794 = vmatpush1.bf16.msra.mxu0 %v4121_v49  ;;  %2876 = vmatpush1.bf16.msra.mxu1 %v4124_v50  ;;  %v4208_v49 = vld [vmem:[%s5920_s1 + $0x838] ss:$52 sps:$4 sm:$0xff]   ;;  %v4213_v50 = vld [vmem:[%s5920_s1 + $0x89c] ss:$52 sps:$4 sm:$0xff]  }
  0x9c   :  { %2795 = vmatprep.subr.bf16.mxu0 %v4129_v52  ;;  %2877 = vmatprep.subr.bf16.mxu1 %v4132_v53  ;;  %v4216_v52 = vld [vmem:[%s5920_s1 + $0x8a4] ss:$52 sps:$4 sm:$0xff]  }
  0x9d   :  { %v4211_v53 = vld [vmem:[%s5920_s1 + $0x898] ss:$52 sps:$4 sm:$0xff]  }
  0x9f   :  { %2796 = vmatpush1.bf16.msra.mxu0 %v4127_v54  ;;  %2878 = vmatpush1.bf16.msra.mxu1 %v4130_v55  ;;  %v4214_v54 = vld [vmem:[%s5920_s1 + $0x8a0] ss:$52 sps:$4 sm:$0xff]   ;;  %v4219_v55 = vld [vmem:[%s5920_s1 + $0x904] ss:$52 sps:$4 sm:$0xff]  }
  0xa0   :  { %2797 = vmatprep.subr.bf16.mxu0 %v4135_v56  ;;  %2879 = vmatprep.subr.bf16.mxu1 %v4138_v57  ;;  %v4222_v56 = vld [vmem:[%s5920_s1 + $0x90c] ss:$52 sps:$4 sm:$0xff]  }
  0xa1   :  { %v4217_v57 = vld [vmem:[%s5920_s1 + $0x900] ss:$52 sps:$4 sm:$0xff]  }
  0xa3   :  { %2798 = vmatpush1.bf16.msra.mxu0 %v4133_v59  ;;  %2880 = vmatpush1.bf16.msra.mxu1 %v4136_v60  ;;  %v4220_v59 = vld [vmem:[%s5920_s1 + $0x908] ss:$52 sps:$4 sm:$0xff]   ;;  %v4225_v60 = vld [vmem:[%s5920_s1 + $0x96c] ss:$52 sps:$4 sm:$0xff]  }
  0xa4   :  { %2799 = vmatprep.subr.bf16.mxu0 %v4141_v61  ;;  %2881 = vmatprep.subr.bf16.mxu1 %v4144_v62  ;;  %v4228_v61 = vld [vmem:[%s5920_s1 + $0x974] ss:$52 sps:$4 sm:$0xff]  }
  0xa5   :  { %v4223_v62 = vld [vmem:[%s5920_s1 + $0x968] ss:$52 sps:$4 sm:$0xff]  }
  0xa7   :  { %2800 = vmatpush1.bf16.msra.mxu0 %v4139_v63  ;;  %2882 = vmatpush1.bf16.msra.mxu1 %v4142_v0  ;;  %v4226_v63 = vld [vmem:[%s5920_s1 + $0x970] ss:$52 sps:$4 sm:$0xff]   ;;  %v4231_v0 = vld [vmem:[%s5920_s1 + $0x9d4] ss:$52 sps:$4 sm:$0xff]  }
  0xa8   :  { %2801 = vmatprep.subr.bf16.mxu0 %v4147_v1  ;;  %2883 = vmatprep.subr.bf16.mxu1 %v4150_v2  ;;  %v4234_v1 = vld [vmem:[%s5920_s1 + $0x9dc] ss:$52 sps:$4 sm:$0xff]  }
  0xa9   :  { %v4229_v2 = vld [vmem:[%s5920_s1 + $0x9d0] ss:$52 sps:$4 sm:$0xff]  }
  0xab   :  { %2802 = vmatpush1.bf16.msra.mxu0 %v4145_v3  ;;  %2884 = vmatpush1.bf16.msra.mxu1 %v4148_v4  ;;  %v4232_v3 = vld [vmem:[%s5920_s1 + $0x9d8] ss:$52 sps:$4 sm:$0xff]   ;;  %v4237_v4 = vld [vmem:[%s5920_s1 + $0xa3c] ss:$52 sps:$4 sm:$0xff]  }
  0xac   :  { %2803 = vmatprep.subr.bf16.mxu0 %v4153_v5  ;;  %2885 = vmatprep.subr.bf16.mxu1 %v4156_v6  ;;  %v4240_v5 = vld [vmem:[%s5920_s1 + $0xa44] ss:$52 sps:$4 sm:$0xff]  }
  0xad   :  { %v4235_v6 = vld [vmem:[%s5920_s1 + $0xa38] ss:$52 sps:$4 sm:$0xff]  }
  0xaf   :  { %2804 = vmatpush1.bf16.msra.mxu0 %v4151_v7  ;;  %2886 = vmatpush1.bf16.msra.mxu1 %v4154_v8  ;;  %v4238_v7 = vld [vmem:[%s5920_s1 + $0xa40] ss:$52 sps:$4 sm:$0xff]   ;;  %v4243_v8 = vld [vmem:[%s5920_s1 + $0xaa4] ss:$52 sps:$4 sm:$0xff]  }
  0xb0   :  { %2805 = vmatprep.subr.bf16.mxu0 %v4159_v9  ;;  %2887 = vmatprep.subr.bf16.mxu1 %v4162_v10  ;;  %v4246_v9 = vld [vmem:[%s5920_s1 + $0xaac] ss:$52 sps:$4 sm:$0xff]  }
  0xb1   :  { %v4241_v10 = vld [vmem:[%s5920_s1 + $0xaa0] ss:$52 sps:$4 sm:$0xff]  }
  0xb3   :  { %2806 = vmatpush1.bf16.msra.mxu0 %v4157_v11  ;;  %2888 = vmatpush1.bf16.msra.mxu1 %v4160_v13  ;;  %v4244_v11 = vld [vmem:[%s5920_s1 + $0xaa8] ss:$52 sps:$4 sm:$0xff]   ;;  %v4249_v13 = vld [vmem:[%s5920_s1 + $0xb0c] ss:$52 sps:$4 sm:$0xff]  }
  0xb4   :  { %2807 = vmatprep.subr.bf16.mxu0 %v4165_v14  ;;  %2889 = vmatprep.subr.bf16.mxu1 %v4168_v15  ;;  %v4252_v14 = vld [vmem:[%s5920_s1 + $0xb14] ss:$52 sps:$4 sm:$0xff]  }
  0xb5   :  { %v4247_v15 = vld [vmem:[%s5920_s1 + $0xb08] ss:$52 sps:$4 sm:$0xff]  }
  0xb7   :  { %2808 = vmatpush1.bf16.msra.mxu0 %v4163_v17  ;;  %2890 = vmatpush1.bf16.msra.mxu1 %v4166_v18  ;;  %v4250_v17 = vld [vmem:[%s5920_s1 + $0xb10] ss:$52 sps:$4 sm:$0xff]   ;;  %v4255_v18 = vld [vmem:[%s5920_s1 + $0xb74] ss:$52 sps:$4 sm:$0xff]  }
  0xb8   :  { %2809 = vmatprep.subr.bf16.mxu0 %v4171_v19  ;;  %2891 = vmatprep.subr.bf16.mxu1 %v4174_v20  ;;  %v4258_v19 = vld [vmem:[%s5920_s1 + $0xb7c] ss:$52 sps:$4 sm:$0xff]  }
  0xb9   :  { %v4253_v20 = vld [vmem:[%s5920_s1 + $0xb70] ss:$52 sps:$4 sm:$0xff]  }
  0xbb   :  { %2810 = vmatpush1.bf16.msra.mxu0 %v4169_v22  ;;  %2892 = vmatpush1.bf16.msra.mxu1 %v4172_v23  ;;  %v4256_v22 = vld [vmem:[%s5920_s1 + $0xb78] ss:$52 sps:$4 sm:$0xff]   ;;  %v4261_v23 = vld [vmem:[%s5920_s1 + $0xbdc] ss:$52 sps:$4 sm:$0xff]  }
  0xbc   :  { %2811 = vmatprep.subr.bf16.mxu0 %v4177_v24  ;;  %2893 = vmatprep.subr.bf16.mxu1 %v4180_v25  ;;  %v4264_v24 = vld [vmem:[%s5920_s1 + $0xbe4] ss:$52 sps:$4 sm:$0xff]  }
  0xbd   :  { %v4259_v25 = vld [vmem:[%s5920_s1 + $0xbd8] ss:$52 sps:$4 sm:$0xff]  }
  0xbf   :  { %2812 = vmatpush1.bf16.msra.mxu0 %v4175_v26  ;;  %2894 = vmatpush1.bf16.msra.mxu1 %v4178_v27  ;;  %v4262_v26 = vld [vmem:[%s5920_s1 + $0xbe0] ss:$52 sps:$4 sm:$0xff]   ;;  %v4267_v27 = vld [vmem:[%s5920_s1 + $0xc44] ss:$52 sps:$4 sm:$0xff]  }
  0xc0   :  { %2822 = vmatprep.subr.bf16.mxu0 %v4183_v28  ;;  %2904 = vmatprep.subr.bf16.mxu1 %v4186_v29  ;;  %v4270_v28 = vld [vmem:[%s5920_s1 + $0xc4c] ss:$52 sps:$4 sm:$0xff]  }
  0xc1   :  { %v4265_v29 = vld [vmem:[%s5920_s1 + $0xc40] ss:$52 sps:$4 sm:$0xff]  }
  0xc2   :  { %2814 = vmatmul.mubr.bf16.vlgmr.msra.gmra.mrb[4].mxu0 %v4791_v12  ;;  %2896 = vmatmul.mubr.bf16.vlgmr.msra.gmra.mrb[4].mxu1 %v4791_v12 }
  0xc3   :  { %2823 = vmatpush1.bf16.msra.mxu0 %v4181_v30  ;;  %2905 = vmatpush1.bf16.msra.mxu1 %v4184_v31  ;;  %v4268_v30 = vld [vmem:[%s5920_s1 + $0xc48] ss:$52 sps:$4 sm:$0xff]   ;;  %v4273_v31 = vld [vmem:[%s5920_s1 + $0xcac] ss:$52 sps:$4 sm:$0xff]  }
  0xc4   :  { %2824 = vmatprep.subr.bf16.mxu0 %v4189_v32  ;;  %2906 = vmatprep.subr.bf16.mxu1 %v4192_v33  ;;  %v4276_v32 = vld [vmem:[%s5920_s1 + $0xcb4] ss:$52 sps:$4 sm:$0xff]  }
  0xc5   :  { %2854 = vmatprep.mubr.bf16.mxu0 %v4804_v16  ;;  %2936 = vmatprep.mubr.bf16.mxu1 %v4804_v16  ;;  %v4271_v33 = vld [vmem:[%s5920_s1 + $0xca8] ss:$52 sps:$4 sm:$0xff]  }
  0xc7   :  { %2825 = vmatpush1.bf16.msra.mxu0 %v4187_v34  ;;  %2907 = vmatpush1.bf16.msra.mxu1 %v4190_v35  ;;  %v4274_v34 = vld [vmem:[%s5920_s1 + $0xcb0] ss:$52 sps:$4 sm:$0xff]  }
  0xc8   :  { %2826 = vmatprep.subr.bf16.mxu0 %v4195_v36  ;;  %2908 = vmatprep.subr.bf16.mxu1 %v4198_v37  ;;  %v4279_v35 = vld [vmem:[%s5920_s1 + $0x24] ss:$52 sps:$4 sm:$0xff]   ;;  %v4282_v36 = vld [vmem:[%s5920_s1 + $0x2c] ss:$52 sps:$4 sm:$0xff]  }
  0xc9   :  { %v4277_v37 = vld [vmem:[%s5920_s1 + $0x20] ss:$52 sps:$4 sm:$0xff]  }
  0xcb   :  { %2827 = vmatpush1.bf16.msra.mxu0 %v4193_v39  ;;  %2909 = vmatpush1.bf16.msra.mxu1 %v4196_v40  ;;  %v4280_v39 = vld [vmem:[%s5920_s1 + $0x28] ss:$52 sps:$4 sm:$0xff]   ;;  %v4285_v40 = vld [vmem:[%s5920_s1 + $0x8c] ss:$52 sps:$4 sm:$0xff]  }
  0xcc   :  { %2828 = vmatprep.subr.bf16.mxu0 %v4201_v41  ;;  %2910 = vmatprep.subr.bf16.mxu1 %v4204_v42  ;;  %v4288_v41 = vld [vmem:[%s5920_s1 + $0x94] ss:$52 sps:$4 sm:$0xff]  }
  0xcd   :  { %v4283_v42 = vld [vmem:[%s5920_s1 + $0x88] ss:$52 sps:$4 sm:$0xff]  }
  0xcf   :  { %2829 = vmatpush1.bf16.msra.mxu0 %v4199_v43  ;;  %2911 = vmatpush1.bf16.msra.mxu1 %v4202_v44  ;;  %v4286_v43 = vld [vmem:[%s5920_s1 + $0x90] ss:$52 sps:$4 sm:$0xff]   ;;  %v4291_v44 = vld [vmem:[%s5920_s1 + $0xf4] ss:$52 sps:$4 sm:$0xff]  }
  0xd0   :  { %2830 = vmatprep.subr.bf16.mxu0 %v4207_v46  ;;  %2912 = vmatprep.subr.bf16.mxu1 %v4210_v47  ;;  %v4294_v46 = vld [vmem:[%s5920_s1 + $0xfc] ss:$52 sps:$4 sm:$0xff]  }
  0xd1   :  { %v4289_v47 = vld [vmem:[%s5920_s1 + $0xf0] ss:$52 sps:$4 sm:$0xff]  }
  0xd3   :  { %2831 = vmatpush1.bf16.msra.mxu0 %v4205_v48  ;;  %2913 = vmatpush1.bf16.msra.mxu1 %v4208_v49  ;;  %v4292_v48 = vld [vmem:[%s5920_s1 + $0xf8] ss:$52 sps:$4 sm:$0xff]   ;;  %v4297_v49 = vld [vmem:[%s5920_s1 + $0x15c] ss:$52 sps:$4 sm:$0xff]  }
  0xd4   :  { %2832 = vmatprep.subr.bf16.mxu0 %v4213_v50  ;;  %2914 = vmatprep.subr.bf16.mxu1 %v4216_v52  ;;  %v4300_v50 = vld [vmem:[%s5920_s1 + $0x164] ss:$52 sps:$4 sm:$0xff]  }
  0xd5   :  { %v4295_v52 = vld [vmem:[%s5920_s1 + $0x158] ss:$52 sps:$4 sm:$0xff]  }
  0xd7   :  { %2833 = vmatpush1.bf16.msra.mxu0 %v4211_v53  ;;  %2915 = vmatpush1.bf16.msra.mxu1 %v4214_v54  ;;  %v4298_v53 = vld [vmem:[%s5920_s1 + $0x160] ss:$52 sps:$4 sm:$0xff]   ;;  %v4303_v54 = vld [vmem:[%s5920_s1 + $0x1c4] ss:$52 sps:$4 sm:$0xff]  }
  0xd8   :  { %2834 = vmatprep.subr.bf16.mxu0 %v4219_v55  ;;  %2916 = vmatprep.subr.bf16.mxu1 %v4222_v56  ;;  %v4306_v55 = vld [vmem:[%s5920_s1 + $0x1cc] ss:$52 sps:$4 sm:$0xff]  }
  0xd9   :  { %v4301_v56 = vld [vmem:[%s5920_s1 + $0x1c0] ss:$52 sps:$4 sm:$0xff]  }
  0xdb   :  { %2835 = vmatpush1.bf16.msra.mxu0 %v4217_v57  ;;  %2917 = vmatpush1.bf16.msra.mxu1 %v4220_v59  ;;  %v4304_v57 = vld [vmem:[%s5920_s1 + $0x1c8] ss:$52 sps:$4 sm:$0xff]   ;;  %v4309_v59 = vld [vmem:[%s5920_s1 + $0x22c] ss:$52 sps:$4 sm:$0xff]  }
  0xdc   :  { %2836 = vmatprep.subr.bf16.mxu0 %v4225_v60  ;;  %2918 = vmatprep.subr.bf16.mxu1 %v4228_v61  ;;  %v4312_v60 = vld [vmem:[%s5920_s1 + $0x234] ss:$52 sps:$4 sm:$0xff]  }
  0xdd   :  { %v4307_v61 = vld [vmem:[%s5920_s1 + $0x228] ss:$52 sps:$4 sm:$0xff]  }
  0xdf   :  { %2837 = vmatpush1.bf16.msra.mxu0 %v4223_v62  ;;  %2919 = vmatpush1.bf16.msra.mxu1 %v4226_v63  ;;  %v4310_v62 = vld [vmem:[%s5920_s1 + $0x230] ss:$52 sps:$4 sm:$0xff]   ;;  %v4315_v63 = vld [vmem:[%s5920_s1 + $0x294] ss:$52 sps:$4 sm:$0xff]  }
  0xe0   :  { %2838 = vmatprep.subr.bf16.mxu0 %v4231_v0  ;;  %2920 = vmatprep.subr.bf16.mxu1 %v4234_v1  ;;  %v4318_v0 = vld [vmem:[%s5920_s1 + $0x29c] ss:$52 sps:$4 sm:$0xff]  }
  0xe1   :  { %v4313_v1 = vld [vmem:[%s5920_s1 + $0x290] ss:$52 sps:$4 sm:$0xff]  }
  0xe3   :  { %2839 = vmatpush1.bf16.msra.mxu0 %v4229_v2  ;;  %2921 = vmatpush1.bf16.msra.mxu1 %v4232_v3  ;;  %v4316_v2 = vld [vmem:[%s5920_s1 + $0x298] ss:$52 sps:$4 sm:$0xff]   ;;  %v4321_v3 = vld [vmem:[%s5920_s1 + $0x2fc] ss:$52 sps:$4 sm:$0xff]  }
  0xe4   :  { %2840 = vmatprep.subr.bf16.mxu0 %v4237_v4  ;;  %2922 = vmatprep.subr.bf16.mxu1 %v4240_v5  ;;  %v4324_v4 = vld [vmem:[%s5920_s1 + $0x304] ss:$52 sps:$4 sm:$0xff]  }
  0xe5   :  { %v4319_v5 = vld [vmem:[%s5920_s1 + $0x2f8] ss:$52 sps:$4 sm:$0xff]  }
  0xe7   :  { %2841 = vmatpush1.bf16.msra.mxu0 %v4235_v6  ;;  %2923 = vmatpush1.bf16.msra.mxu1 %v4238_v7  ;;  %v4322_v6 = vld [vmem:[%s5920_s1 + $0x300] ss:$52 sps:$4 sm:$0xff]   ;;  %v4327_v7 = vld [vmem:[%s5920_s1 + $0x364] ss:$52 sps:$4 sm:$0xff]  }
  0xe8   :  { %2842 = vmatprep.subr.bf16.mxu0 %v4243_v8  ;;  %2924 = vmatprep.subr.bf16.mxu1 %v4246_v9  ;;  %v4330_v8 = vld [vmem:[%s5920_s1 + $0x36c] ss:$52 sps:$4 sm:$0xff]  }
  0xe9   :  { %v4325_v9 = vld [vmem:[%s5920_s1 + $0x360] ss:$52 sps:$4 sm:$0xff]  }
  0xeb   :  { %2843 = vmatpush1.bf16.msra.mxu0 %v4241_v10  ;;  %2925 = vmatpush1.bf16.msra.mxu1 %v4244_v11  ;;  %v4328_v10 = vld [vmem:[%s5920_s1 + $0x368] ss:$52 sps:$4 sm:$0xff]   ;;  %v4333_v11 = vld [vmem:[%s5920_s1 + $0x3cc] ss:$52 sps:$4 sm:$0xff]  }
  0xec   :  { %2844 = vmatprep.subr.bf16.mxu0 %v4249_v13  ;;  %2926 = vmatprep.subr.bf16.mxu1 %v4252_v14  ;;  %v4336_v13 = vld [vmem:[%s5920_s1 + $0x3d4] ss:$52 sps:$4 sm:$0xff]  }
  0xed   :  { %v4331_v14 = vld [vmem:[%s5920_s1 + $0x3c8] ss:$52 sps:$4 sm:$0xff]  }
  0xef   :  { %2845 = vmatpush1.bf16.msra.mxu0 %v4247_v15  ;;  %2927 = vmatpush1.bf16.msra.mxu1 %v4250_v17  ;;  %v4334_v15 = vld [vmem:[%s5920_s1 + $0x3d0] ss:$52 sps:$4 sm:$0xff]   ;;  %v4339_v17 = vld [vmem:[%s5920_s1 + $0x434] ss:$52 sps:$4 sm:$0xff]  }
  0xf0   :  { %2846 = vmatprep.subr.bf16.mxu0 %v4255_v18  ;;  %2928 = vmatprep.subr.bf16.mxu1 %v4258_v19  ;;  %v4342_v18 = vld [vmem:[%s5920_s1 + $0x43c] ss:$52 sps:$4 sm:$0xff]  }
  0xf1   :  { %v4337_v19 = vld [vmem:[%s5920_s1 + $0x430] ss:$52 sps:$4 sm:$0xff]  }
  0xf3   :  { %2847 = vmatpush1.bf16.msra.mxu0 %v4253_v20  ;;  %2929 = vmatpush1.bf16.msra.mxu1 %v4256_v22  ;;  %v4340_v20 = vld [vmem:[%s5920_s1 + $0x438] ss:$52 sps:$4 sm:$0xff]   ;;  %v4345_v22 = vld [vmem:[%s5920_s1 + $0x49c] ss:$52 sps:$4 sm:$0xff]  }
  0xf4   :  { %2848 = vmatprep.subr.bf16.mxu0 %v4261_v23  ;;  %2930 = vmatprep.subr.bf16.mxu1 %v4264_v24  ;;  %v4348_v23 = vld [vmem:[%s5920_s1 + $0x4a4] ss:$52 sps:$4 sm:$0xff]  }
  0xf5   :  { %v4343_v24 = vld [vmem:[%s5920_s1 + $0x498] ss:$52 sps:$4 sm:$0xff]  }
  0xf7   :  { %2849 = vmatpush1.bf16.msra.mxu0 %v4259_v25  ;;  %2931 = vmatpush1.bf16.msra.mxu1 %v4262_v26  ;;  %v4346_v25 = vld [vmem:[%s5920_s1 + $0x4a0] ss:$52 sps:$4 sm:$0xff]   ;;  %v4351_v26 = vld [vmem:[%s5920_s1 + $0x504] ss:$52 sps:$4 sm:$0xff]  }
  0xf8   :  { %2850 = vmatprep.subr.bf16.mxu0 %v4267_v27  ;;  %2932 = vmatprep.subr.bf16.mxu1 %v4270_v28  ;;  %v4354_v27 = vld [vmem:[%s5920_s1 + $0x50c] ss:$52 sps:$4 sm:$0xff]  }
  0xf9   :  { %v4349_v28 = vld [vmem:[%s5920_s1 + $0x500] ss:$52 sps:$4 sm:$0xff]  }
  0xfb   :  { %2851 = vmatpush1.bf16.msra.mxu0 %v4265_v29  ;;  %2933 = vmatpush1.bf16.msra.mxu1 %v4268_v30  ;;  %v4352_v29 = vld [vmem:[%s5920_s1 + $0x508] ss:$52 sps:$4 sm:$0xff]   ;;  %v4357_v30 = vld [vmem:[%s5920_s1 + $0x56c] ss:$52 sps:$4 sm:$0xff]  }
  0xfc   :  { %2852 = vmatprep.subr.bf16.mxu0 %v4273_v31  ;;  %2934 = vmatprep.subr.bf16.mxu1 %v4276_v32  ;;  %v4360_v31 = vld [vmem:[%s5920_s1 + $0x574] ss:$52 sps:$4 sm:$0xff]  }
  0xfd   :  { %v4355_v32 = vld [vmem:[%s5920_s1 + $0x568] ss:$52 sps:$4 sm:$0xff]  }
  0xff   :  { %2853 = vmatpush1.bf16.msra.mxu0 %v4271_v33  ;;  %2935 = vmatpush1.bf16.msra.mxu1 %v4274_v34  ;;  %v4358_v33 = vld [vmem:[%s5920_s1 + $0x570] ss:$52 sps:$4 sm:$0xff]   ;;  %v4363_v34 = vld [vmem:[%s5920_s1 + $0x5d4] ss:$52 sps:$4 sm:$0xff]  }
 0x100   :  { %2945 = vmatprep.subr.bf16.mxu0 %v4279_v35  ;;  %3027 = vmatprep.subr.bf16.mxu1 %v4282_v36  ;;  %v4366_v35 = vld [vmem:[%s5920_s1 + $0x5dc] ss:$52 sps:$4 sm:$0xff]  }
 0x101   :  { %v4361_v36 = vld [vmem:[%s5920_s1 + $0x5d0] ss:$52 sps:$4 sm:$0xff]  }
 0x102   :  { %2855 = vmatmul.mubr.bf16.vlgmr.msra.gmra.mrb[4].mxu0 %v4995_v21  ;;  %2937 = vmatmul.mubr.bf16.vlgmr.msra.gmra.mrb[4].mxu1 %v4995_v21 }
 0x103   :  { %2946 = vmatpush1.bf16.msra.mxu0 %v4277_v37  ;;  %3028 = vmatpush1.bf16.msra.mxu1 %v4280_v39  ;;  %v4364_v37 = vld [vmem:[%s5920_s1 + $0x5d8] ss:$52 sps:$4 sm:$0xff]   ;;  %v4369_v39 = vld [vmem:[%s5920_s1 + $0x63c] ss:$52 sps:$4 sm:$0xff]  }
 0x104   :  { %2947 = vmatprep.subr.bf16.mxu0 %v4285_v40  ;;  %3029 = vmatprep.subr.bf16.mxu1 %v4288_v41  ;;  %v4372_v40 = vld [vmem:[%s5920_s1 + $0x644] ss:$52 sps:$4 sm:$0xff]  }
 0x105   :  { %2977 = vmatprep.mubr.bf16.mxu0 %v4735_v58  ;;  %3059 = vmatprep.mubr.bf16.mxu1 %v4735_v58  ;;  %v4367_v41 = vld [vmem:[%s5920_s1 + $0x638] ss:$52 sps:$4 sm:$0xff]  }
 0x107   :  { %2948 = vmatpush1.bf16.msra.mxu0 %v4283_v42  ;;  %3030 = vmatpush1.bf16.msra.mxu1 %v4286_v43  ;;  %v4370_v42 = vld [vmem:[%s5920_s1 + $0x640] ss:$52 sps:$4 sm:$0xff]   ;;  %v4375_v43 = vld [vmem:[%s5920_s1 + $0x6a4] ss:$52 sps:$4 sm:$0xff]  }
 0x108   :  { %2949 = vmatprep.subr.bf16.mxu0 %v4291_v44  ;;  %3031 = vmatprep.subr.bf16.mxu1 %v4294_v46  ;;  %v4378_v44 = vld [vmem:[%s5920_s1 + $0x6ac] ss:$52 sps:$4 sm:$0xff]  }
 0x109   :  { %v4373_v46 = vld [vmem:[%s5920_s1 + $0x6a0] ss:$52 sps:$4 sm:$0xff]  }
 0x10b   :  { %2950 = vmatpush1.bf16.msra.mxu0 %v4289_v47  ;;  %3032 = vmatpush1.bf16.msra.mxu1 %v4292_v48  ;;  %v4376_v47 = vld [vmem:[%s5920_s1 + $0x6a8] ss:$52 sps:$4 sm:$0xff]   ;;  %v4381_v48 = vld [vmem:[%s5920_s1 + $0x70c] ss:$52 sps:$4 sm:$0xff]  }
 0x10c   :  { %2951 = vmatprep.subr.bf16.mxu0 %v4297_v49  ;;  %3033 = vmatprep.subr.bf16.mxu1 %v4300_v50  ;;  %v4384_v49 = vld [vmem:[%s5920_s1 + $0x714] ss:$52 sps:$4 sm:$0xff]  }
 0x10d   :  { %v4379_v50 = vld [vmem:[%s5920_s1 + $0x708] ss:$52 sps:$4 sm:$0xff]  }
 0x10f   :  { %2952 = vmatpush1.bf16.msra.mxu0 %v4295_v52  ;;  %3034 = vmatpush1.bf16.msra.mxu1 %v4298_v53  ;;  %v4382_v52 = vld [vmem:[%s5920_s1 + $0x710] ss:$52 sps:$4 sm:$0xff]   ;;  %v4387_v53 = vld [vmem:[%s5920_s1 + $0x774] ss:$52 sps:$4 sm:$0xff]  }
 0x110   :  { %2953 = vmatprep.subr.bf16.mxu0 %v4303_v54  ;;  %3035 = vmatprep.subr.bf16.mxu1 %v4306_v55  ;;  %v4390_v54 = vld [vmem:[%s5920_s1 + $0x77c] ss:$52 sps:$4 sm:$0xff]  }
 0x111   :  { %v4385_v55 = vld [vmem:[%s5920_s1 + $0x770] ss:$52 sps:$4 sm:$0xff]  }
 0x113   :  { %2954 = vmatpush1.bf16.msra.mxu0 %v4301_v56  ;;  %3036 = vmatpush1.bf16.msra.mxu1 %v4304_v57  ;;  %v4388_v56 = vld [vmem:[%s5920_s1 + $0x778] ss:$52 sps:$4 sm:$0xff]   ;;  %v4393_v57 = vld [vmem:[%s5920_s1 + $0x7dc] ss:$52 sps:$4 sm:$0xff]  }
 0x114   :  { %2955 = vmatprep.subr.bf16.mxu0 %v4309_v59  ;;  %3037 = vmatprep.subr.bf16.mxu1 %v4312_v60  ;;  %v4396_v59 = vld [vmem:[%s5920_s1 + $0x7e4] ss:$52 sps:$4 sm:$0xff]  }
 0x115   :  { %v4391_v60 = vld [vmem:[%s5920_s1 + $0x7d8] ss:$52 sps:$4 sm:$0xff]  }
 0x117   :  { %2956 = vmatpush1.bf16.msra.mxu0 %v4307_v61  ;;  %3038 = vmatpush1.bf16.msra.mxu1 %v4310_v62  ;;  %v4394_v61 = vld [vmem:[%s5920_s1 + $0x7e0] ss:$52 sps:$4 sm:$0xff]   ;;  %v4399_v62 = vld [vmem:[%s5920_s1 + $0x844] ss:$52 sps:$4 sm:$0xff]  }
 0x118   :  { %2957 = vmatprep.subr.bf16.mxu0 %v4315_v63  ;;  %3039 = vmatprep.subr.bf16.mxu1 %v4318_v0  ;;  %v4402_v63 = vld [vmem:[%s5920_s1 + $0x84c] ss:$52 sps:$4 sm:$0xff]   ;;  %v474_v0 = vsub.s32 0, %v4702_v45  ;;  %v4408_v45 = vld [vmem:[%s5920_s1 + $0x8b4] ss:$52 sps:$4 sm:$0xff]  }
 0x11b   :  { %2958 = vmatpush1.bf16.msra.mxu0 %v4313_v1  ;;  %3040 = vmatpush1.bf16.msra.mxu1 %v4316_v2  ;;  %v4397_v1 = vld [vmem:[%s5920_s1 + $0x840] ss:$52 sps:$4 sm:$0xff]   ;;  %v4400_v2 = vld [vmem:[%s5920_s1 + $0x848] ss:$52 sps:$4 sm:$0xff]  }
 0x11c   :  { %2959 = vmatprep.subr.bf16.mxu0 %v4321_v3  ;;  %3041 = vmatprep.subr.bf16.mxu1 %v4324_v4  ;;  %v470_v3 = vpop.permute.xlu0 %469  ;;  %v4405_v4 = vld [vmem:[%s5920_s1 + $0x8ac] ss:$52 sps:$4 sm:$0xff]  }
 0x11f   :  { %2960 = vmatpush1.bf16.msra.mxu0 %v4319_v5  ;;  %3042 = vmatpush1.bf16.msra.mxu1 %v4322_v6  ;;  %v5650_v5 = vrot.slane %v470_v3, %v474_v0  ;;  %v4403_v6 = vld [vmem:[%s5920_s1 + $0x8a8] ss:$52 sps:$4 sm:$0xff]   ;;  %v4450_v0 = vld [vmem:[%s5920_s1 + $0xb8c] ss:$52 sps:$4 sm:$0xff]  }
 0x120   :  { %2961 = vmatprep.subr.bf16.mxu0 %v4327_v7  ;;  %3043 = vmatprep.subr.bf16.mxu1 %v4330_v8  ;;  %v4406_v7 = vld [vmem:[%s5920_s1 + $0x8b0] ss:$52 sps:$4 sm:$0xff]   ;;  %v4411_v8 = vld [vmem:[%s5920_s1 + $0x914] ss:$52 sps:$4 sm:$0xff]   ;;  %v4453_v3 = vld [vmem:[%s5920_s1 + $0xbec] ss:$52 sps:$4 sm:$0xff]  }
 0x123   :  { %2962 = vmatpush1.bf16.msra.mxu0 %v4325_v9  ;;  %3044 = vmatpush1.bf16.msra.mxu1 %v4328_v10  ;;  %v4414_v9 = vld [vmem:[%s5920_s1 + $0x91c] ss:$52 sps:$4 sm:$0xff]  }
 0x124   :  { %2963 = vmatprep.subr.bf16.mxu0 %v4333_v11  ;;  %3045 = vmatprep.subr.bf16.mxu1 %v4336_v13 }
 0x127   :  { %2964 = vmatpush1.bf16.msra.mxu0 %v4331_v14  ;;  %3046 = vmatpush1.bf16.msra.mxu1 %v4334_v15 }
 0x128   :  { %2965 = vmatprep.subr.bf16.mxu0 %v4339_v17  ;;  %3047 = vmatprep.subr.bf16.mxu1 %v4342_v18  ;;  %v4409_v18 = vld [vmem:[%s5920_s1 + $0x910] ss:$52 sps:$4 sm:$0xff]  }
 0x12b   :  { %2966 = vmatpush1.bf16.msra.mxu0 %v4337_v19  ;;  %3048 = vmatpush1.bf16.msra.mxu1 %v4340_v20  ;;  %v4412_v19 = vld [vmem:[%s5920_s1 + $0x918] ss:$52 sps:$4 sm:$0xff]  }
 0x12c   :  { %2967 = vmatprep.subr.bf16.mxu0 %v4345_v22  ;;  %3049 = vmatprep.subr.bf16.mxu1 %v4348_v23 }
 0x12f   :  { %2968 = vmatpush1.bf16.msra.mxu0 %v4343_v24  ;;  %3050 = vmatpush1.bf16.msra.mxu1 %v4346_v25  ;;  %v4417_v25 = vld [vmem:[%s5920_s1 + $0x97c] ss:$52 sps:$4 sm:$0xff]  }
 0x130   :  { %2969 = vmatprep.subr.bf16.mxu0 %v4351_v26  ;;  %3051 = vmatprep.subr.bf16.mxu1 %v4354_v27  ;;  %v4420_v26 = vld [vmem:[%s5920_s1 + $0x984] ss:$52 sps:$4 sm:$0xff]  }
 0x133   :  { %2970 = vmatpush1.bf16.msra.mxu0 %v4349_v28  ;;  %3052 = vmatpush1.bf16.msra.mxu1 %v4352_v29 }
 0x134   :  { %2971 = vmatprep.subr.bf16.mxu0 %v4357_v30  ;;  %3053 = vmatprep.subr.bf16.mxu1 %v4360_v31 }
 0x137   :  { %2972 = vmatpush1.bf16.msra.mxu0 %v4355_v32  ;;  %3054 = vmatpush1.bf16.msra.mxu1 %v4358_v33  ;;  %v4415_v33 = vld [vmem:[%s5920_s1 + $0x978] ss:$52 sps:$4 sm:$0xff]  }
 0x138   :  { %2973 = vmatprep.subr.bf16.mxu0 %v4363_v34  ;;  %3055 = vmatprep.subr.bf16.mxu1 %v4366_v35  ;;  %v4418_v34 = vld [vmem:[%s5920_s1 + $0x980] ss:$52 sps:$4 sm:$0xff]   ;;  %v4423_v35 = vld [vmem:[%s5920_s1 + $0x9e4] ss:$52 sps:$4 sm:$0xff]  }
 0x13b   :  { %2974 = vmatpush1.bf16.msra.mxu0 %v4361_v36  ;;  %3056 = vmatpush1.bf16.msra.mxu1 %v4364_v37  ;;  %v4426_v36 = vld [vmem:[%s5920_s1 + $0x9ec] ss:$52 sps:$4 sm:$0xff]  }
 0x13c   :  { %2975 = vmatprep.subr.bf16.mxu0 %v4369_v39  ;;  %3057 = vmatprep.subr.bf16.mxu1 %v4372_v40  ;;  %v4421_v37 = vld [vmem:[%s5920_s1 + $0x9e0] ss:$52 sps:$4 sm:$0xff]   ;;  %v4424_v39 = vld [vmem:[%s5920_s1 + $0x9e8] ss:$52 sps:$4 sm:$0xff]  }
 0x13d   :  { %v4429_v40 = vld [vmem:[%s5920_s1 + $0xa4c] ss:$52 sps:$4 sm:$0xff]  }
 0x13f   :  { %2976 = vmatpush1.bf16.msra.mxu0 %v4367_v41  ;;  %3058 = vmatpush1.bf16.msra.mxu1 %v4370_v42  ;;  %v4432_v41 = vld [vmem:[%s5920_s1 + $0xa54] ss:$52 sps:$4 sm:$0xff]  }
 0x140   :  { %2986 = vmatprep.subr.bf16.mxu0 %v4375_v43  ;;  %3068 = vmatprep.subr.bf16.mxu1 %v4378_v44  ;;  %v4427_v42 = vld [vmem:[%s5920_s1 + $0xa48] ss:$52 sps:$4 sm:$0xff]   ;;  %v4430_v43 = vld [vmem:[%s5920_s1 + $0xa50] ss:$52 sps:$4 sm:$0xff]  }
 0x142   :  { %2978 = vmatmul.mubr.bf16.vlgmr.msra.gmra.mrb[8].mxu0 %v4791_v12  ;;  %3060 = vmatmul.mubr.bf16.vlgmr.msra.gmra.mrb[8].mxu1 %v4791_v12 }
 0x143   :  { %2987 = vmatpush1.bf16.msra.mxu0 %v4373_v46  ;;  %3069 = vmatpush1.bf16.msra.mxu1 %v4376_v47  ;;  %v4435_v46 = vld [vmem:[%s5920_s1 + $0xab4] ss:$52 sps:$4 sm:$0xff]   ;;  %v4438_v47 = vld [vmem:[%s5920_s1 + $0xabc] ss:$52 sps:$4 sm:$0xff]  }
 0x144   :  { %2988 = vmatprep.subr.bf16.mxu0 %v4381_v48  ;;  %3070 = vmatprep.subr.bf16.mxu1 %v4384_v49 }
 0x145   :  { %3018 = vmatprep.mubr.bf16.mxu0 %v4804_v16  ;;  %3100 = vmatprep.mubr.bf16.mxu1 %v4804_v16 }
 0x147   :  { %2989 = vmatpush1.bf16.msra.mxu0 %v4379_v50  ;;  %3071 = vmatpush1.bf16.msra.mxu1 %v4382_v52 }
 0x148   :  { %2990 = vmatprep.subr.bf16.mxu0 %v4387_v53  ;;  %3072 = vmatprep.subr.bf16.mxu1 %v4390_v54 }
 0x14b   :  { %2991 = vmatpush1.bf16.msra.mxu0 %v4385_v55  ;;  %3073 = vmatpush1.bf16.msra.mxu1 %v4388_v56  ;;  %v4433_v55 = vld [vmem:[%s5920_s1 + $0xab0] ss:$52 sps:$4 sm:$0xff]   ;;  %v4436_v56 = vld [vmem:[%s5920_s1 + $0xab8] ss:$52 sps:$4 sm:$0xff]  }
 0x14c   :  { %2992 = vmatprep.subr.bf16.mxu0 %v4393_v57  ;;  %3074 = vmatprep.subr.bf16.mxu1 %v4396_v59  ;;  %v4441_v59 = vld [vmem:[%s5920_s1 + $0xb1c] ss:$52 sps:$4 sm:$0xff]  }
 0x14f   :  { %2993 = vmatpush1.bf16.msra.mxu0 %v4391_v60  ;;  %3075 = vmatpush1.bf16.msra.mxu1 %v4394_v61  ;;  %v4444_v60 = vld [vmem:[%s5920_s1 + $0xb24] ss:$52 sps:$4 sm:$0xff]  }
 0x150   :  { %2994 = vmatprep.subr.bf16.mxu0 %v4399_v62  ;;  %3076 = vmatprep.subr.bf16.mxu1 %v4402_v63  ;;  %v4439_v61 = vld [vmem:[%s5920_s1 + $0xb18] ss:$52 sps:$4 sm:$0xff]   ;;  %v4442_v62 = vld [vmem:[%s5920_s1 + $0xb20] ss:$52 sps:$4 sm:$0xff]  }
 0x151   :  { %v4447_v63 = vld [vmem:[%s5920_s1 + $0xb84] ss:$52 sps:$4 sm:$0xff]  }
 0x153   :  { %2995 = vmatpush1.bf16.msra.mxu0 %v4397_v1  ;;  %3077 = vmatpush1.bf16.msra.mxu1 %v4400_v2  ;;  %v4445_v1 = vld [vmem:[%s5920_s1 + $0xb80] ss:$52 sps:$4 sm:$0xff]   ;;  %v4448_v2 = vld [vmem:[%s5920_s1 + $0xb88] ss:$52 sps:$4 sm:$0xff]  }
 0x154   :  { %2996 = vmatprep.subr.bf16.mxu0 %v4405_v4  ;;  %3078 = vmatprep.subr.bf16.mxu1 %v4408_v45  ;;  %v4456_v4 = vld [vmem:[%s5920_s1 + $0xbf4] ss:$52 sps:$4 sm:$0xff]  }
 0x155   :  { %v2692_v10 = vpop.f32.mrb[0].mxu0  ;;  %v2774_v11 = vpop.f32.mrb[0].mxu1 }
 0x156   :  { %v3854_v13 = vadd.f32 %v2692_v10, %v5650_v5  ;;  %v3856_v14 = vadd.f32 %v2774_v11, %v5650_v5  ;;  %v2694_v15 = vpop.f32.mrb[1].mxu0  ;;  %v2776_v17 = vpop.f32.mrb[1].mxu1 }
 0x157   :  { %v3855_v20 = vadd.f32 %v2694_v15, %v5650_v5  ;;  %v3857_v22 = vadd.f32 %v2776_v17, %v5650_v5  ;;  %v2696_v23 = vpop.f32.mrb[2].mxu0  ;;  %v2778_v24 = vpop.f32.mrb[2].mxu1  ;;  %2997 = vmatpush1.bf16.msra.mxu0 %v4403_v6  ;;  %3079 = vmatpush1.bf16.msra.mxu1 %v4406_v7 }
 0x158   :  { %v3797_v27 = vmul.f32 -1.442695, %v3854_v13  ;;  %v3799_v28 = vmul.f32 -1.442695, %v3856_v14  ;;  %v2697_v29 = vpop.f32.mrb[3].mxu0  ;;  %v2779_v30 = vpop.f32.mrb[3].mxu1  ;;  %2998 = vmatprep.subr.bf16.mxu0 %v4411_v8  ;;  %3080 = vmatprep.subr.bf16.mxu1 %v4414_v9 }
 0x159   :  { %v3798_v31 = vmul.f32 -1.442695, %v3855_v20  ;;  %v3800_v32 = vmul.f32 -1.442695, %v3857_v22  ;;  %v4451_v8 = vld [vmem:[%s5920_s1 + $0xbe8] ss:$52 sps:$4 sm:$0xff]  }
 0x15a   :  { %4501 = vpow2.f32 %v3797_v27  ;;  %v4454_v9 = vld [vmem:[%s5920_s1 + $0xbf0] ss:$52 sps:$4 sm:$0xff]   ;;  %v4459_v13 = vld [vmem:[%s5920_s1 + $0xc54] ss:$52 sps:$4 sm:$0xff]   ;;  %v4460_v20 = vld [vmem:[%s5920_s1 + $0xc58] ss:$52 sps:$4 sm:$0xff]  }
 0x15b   :  { %4503 = vpow2.f32 %v3799_v28  ;;  %2999 = vmatpush1.bf16.msra.mxu0 %v4409_v18  ;;  %3081 = vmatpush1.bf16.msra.mxu1 %v4412_v19  ;;  %v4462_v14 = vld [vmem:[%s5920_s1 + $0xc5c] ss:$52 sps:$4 sm:$0xff]   ;;  %v4468_v23 = vld [vmem:[%s5920_s1 + $0xcc4] ss:$52 sps:$4 sm:$0xff]  }
 0x15c   :  { %4505 = vpow2.f32 %v3798_v31  ;;  %3000 = vmatprep.subr.bf16.mxu0 %v4417_v25  ;;  %3082 = vmatprep.subr.bf16.mxu1 %v4420_v26  ;;  %v4457_v19 = vld [vmem:[%s5920_s1 + $0xc50] ss:$52 sps:$4 sm:$0xff]   ;;  %v4463_v25 = vld [vmem:[%s5920_s1 + $0xcb8] ss:$52 sps:$4 sm:$0xff]   ;;  %v4466_v26 = vld [vmem:[%s5920_s1 + $0xcc0] ss:$52 sps:$4 sm:$0xff]  }
 0x15d   :  { %4507 = vpow2.f32 %v3800_v32  ;;  %v4465_v22 = vld [vmem:[%s5920_s1 + $0xcbc] ss:$52 sps:$4 sm:$0xff]   ;;  %v4473_v31 = vld [vmem:[%s5920_s1 + $0x3d8] ss:$52 sps:$4 sm:$0xff]  }
 0x15e   :  { %v4469_v27 = vld [vmem:[%s5920_s1 + $0x370] ss:$52 sps:$4 sm:$0xff]   ;;  %v4474_v32 = vld [vmem:[%s5920_s1 + $0xa58] ss:$52 sps:$4 sm:$0xff]  }
 0x15f   :  { %3001 = vmatpush1.bf16.msra.mxu0 %v4415_v33  ;;  %3083 = vmatpush1.bf16.msra.mxu1 %v4418_v34  ;;  %v4470_v28 = vld [vmem:[%s5920_s1 + $0x9f0] ss:$52 sps:$4 sm:$0xff]   ;;  %v4475_v33 = vld [vmem:[%s5920_s1 + $0x98] ss:$52 sps:$4 sm:$0xff]  }
 0x160   :  { %3002 = vmatprep.subr.bf16.mxu0 %v4423_v35  ;;  %3084 = vmatprep.subr.bf16.mxu1 %v4426_v36  ;;  %v4471_v29 = vld [vmem:[%s5920_s1 + $0x30] ss:$52 sps:$4 sm:$0xff]   ;;  %v4476_v34 = vld [vmem:[%s5920_s1 + $0x718] ss:$52 sps:$4 sm:$0xff]   ;;  %v4477_v35 = vld [vmem:[%s5920_s1 + $0x440] ss:$52 sps:$4 sm:$0xff]  }
 0x161   :  { %v4472_v30 = vld [vmem:[%s5920_s1 + $0x6b0] ss:$52 sps:$4 sm:$0xff]   ;;  %v4478_v36 = vld [vmem:[%s5920_s1 + $0xac0] ss:$52 sps:$4 sm:$0xff]  }
 0x163   :  { %3003 = vmatpush1.bf16.msra.mxu0 %v4421_v37  ;;  %3085 = vmatpush1.bf16.msra.mxu1 %v4424_v39  ;;  %v4479_v37 = vld [vmem:[%s5920_s1 + $0x100] ss:$52 sps:$4 sm:$0xff]  }
 0x164   :  { %v4502_v44 = vpop.eup %4501  ;;  %3004 = vmatprep.subr.bf16.mxu0 %v4429_v40  ;;  %3086 = vmatprep.subr.bf16.mxu1 %v4432_v41  ;;  %v4480_v39 = vld [vmem:[%s5920_s1 + $0x780] ss:$52 sps:$4 sm:$0xff]   ;;  %v4481_v40 = vld [vmem:[%s5920_s1 + $0x4a8] ss:$52 sps:$4 sm:$0xff]  }
 0x165   :  { %v4504_v48 = vpop.eup %4503  ;;  %v3228_v49 = vadd.f32 1.0, %v4502_v44  ;;  %v4484_v41 = vld [vmem:[%s5920_s1 + $0x7e8] ss:$52 sps:$4 sm:$0xff]   ;;  %v4487_v44 = vld [vmem:[%s5920_s1 + $0x1d0] ss:$52 sps:$4 sm:$0xff]  }
 0x166   :  { %v4506_v50 = vpop.eup %4505  ;;  %v3230_v52 = vadd.f32 1.0, %v4504_v48  ;;  %v4490_v48 = vld [vmem:[%s5920_s1 + $0xbf8] ss:$52 sps:$4 sm:$0xff]  }
 0x167   :  { %v4508_v53 = vpop.eup %4507  ;;  %4509 = vrcp.f32 %v3228_v49  ;;  %v3229_v54 = vadd.f32 1.0, %v4506_v50  ;;  %3005 = vmatpush1.bf16.msra.mxu0 %v4427_v42  ;;  %3087 = vmatpush1.bf16.msra.mxu1 %v4430_v43  ;;  %v4485_v42 = vld [vmem:[%s5920_s1 + $0x510] ss:$52 sps:$4 sm:$0xff]   ;;  %v4491_v49 = vld [vmem:[%s5920_s1 + $0x238] ss:$52 sps:$4 sm:$0xff]  }
 0x168   :  { %4511 = vrcp.f32 %v3230_v52  ;;  %v3231_v57 = vadd.f32 1.0, %v4508_v53  ;;  %3006 = vmatprep.subr.bf16.mxu0 %v4435_v46  ;;  %3088 = vmatprep.subr.bf16.mxu1 %v4438_v47  ;;  %v4486_v43 = vld [vmem:[%s5920_s1 + $0xb90] ss:$52 sps:$4 sm:$0xff]   ;;  %v4489_v47 = vld [vmem:[%s5920_s1 + $0x578] ss:$52 sps:$4 sm:$0xff]  }
 0x169   :  { %4513 = vrcp.f32 %v3229_v54  ;;  %v4488_v46 = vld [vmem:[%s5920_s1 + $0x850] ss:$52 sps:$4 sm:$0xff]   ;;  %v4492_v50 = vld [vmem:[%s5920_s1 + $0x8b8] ss:$52 sps:$4 sm:$0xff]   ;;  %v4493_v52 = vld [vmem:[%s5920_s1 + $0x5e0] ss:$52 sps:$4 sm:$0xff]  }
 0x16a   :  { %4515 = vrcp.f32 %v3231_v57  ;;  %v4494_v53 = vld [vmem:[%s5920_s1 + $0xc60] ss:$52 sps:$4 sm:$0xff]   ;;  %v4498_v57 = vld [vmem:[%s5920_s1 + $0xcc8] ss:$52 sps:$4 sm:$0xff]  }
 0x16b   :  { %3007 = vmatpush1.bf16.msra.mxu0 %v4433_v55  ;;  %3089 = vmatpush1.bf16.msra.mxu1 %v4436_v56  ;;  %v4495_v54 = vld [vmem:[%s5920_s1 + $0x2a0] ss:$52 sps:$4 sm:$0xff]   ;;  %v4497_v56 = vld [vmem:[%s5920_s1 + $0x648] ss:$52 sps:$4 sm:$0xff]  }
 0x16c   :  { %3008 = vmatprep.subr.bf16.mxu0 %v4441_v59  ;;  %3090 = vmatprep.subr.bf16.mxu1 %v4444_v60  ;;  %v4496_v55 = vld [vmem:[%s5920_s1 + $0x920] ss:$52 sps:$4 sm:$0xff]   ;;  %v4499_v59 = vld [vmem:[%s5920_s1 + $0x308] ss:$52 sps:$4 sm:$0xff]  }
 0x16d   :  { %v4500_v60 = vld [vmem:[%s5920_s1 + $0x988] ss:$52 sps:$4 sm:$0xff]  }
 0x16f   :  { %3009 = vmatpush1.bf16.msra.mxu0 %v4439_v61  ;;  %3091 = vmatpush1.bf16.msra.mxu1 %v4442_v62 }
 0x170   :  { %3010 = vmatprep.subr.bf16.mxu0 %v4447_v63  ;;  %3092 = vmatprep.subr.bf16.mxu1 %v4450_v0 }
 0x171   :  { %v4510_v45 = vpop.eup %4509 }
 0x172   :  { %v4512_v6 = vpop.eup %4511 }
 0x173   :  { %v4514_v7 = vpop.eup %4513  ;;  %3011 = vmatpush1.bf16.msra.mxu0 %v4445_v1  ;;  %3093 = vmatpush1.bf16.msra.mxu1 %v4448_v2 }
 0x174   :  { %v4516_v10 = vpop.eup %4515  ;;  %v3280_v11 = vcombine.low %v4510_v45, %v4514_v7  ;;  %3012 = vmatprep.subr.bf16.mxu0 %v4453_v3  ;;  %3094 = vmatprep.subr.bf16.mxu1 %v4456_v4 }
 0x175   :  { %v3281_v15 = vcombine.low %v4512_v6, %v4516_v10 }
 0x176   :  { %v5765_v17 = vrot.slane %v3280_v11, %v4717_v51 }
 0x177   :  { %v5768_v18 = vrot.slane %v3281_v15, %v4717_v51  ;;  %3013 = vmatpush1.bf16.msra.mxu0 %v4451_v8  ;;  %3095 = vmatpush1.bf16.msra.mxu1 %v4454_v9 }
 0x178   :  { %3014 = vmatprep.subr.bf16.mxu0 %v4459_v13  ;;  %3096 = vmatprep.subr.bf16.mxu1 %v4462_v14 }
 0x179   :  { %v3312_v24 = vcombine.low %v5765_v17, %v5768_v18 }
 0x17b   :  { %3015 = vmatpush1.bf16.msra.mxu0 %v4457_v19  ;;  %3097 = vmatpush1.bf16.msra.mxu1 %v4460_v20 }
 0x17c   :  { %3016 = vmatprep.subr.bf16.mxu0 %v4465_v22  ;;  %3098 = vmatprep.subr.bf16.mxu1 %v4468_v23 }
 0x17f   :  { %3017 = vmatpush1.bf16.msra.mxu0 %v4463_v25  ;;  %3099 = vmatpush1.bf16.msra.mxu1 %v4466_v26 }
 0x180   :  { %3810 = vmatprep.subr.bf16.mxu0 %v4469_v27  ;;  %3832 = vmatprep.subr.bf16.mxu1 %v4470_v28 }
 0x182   :  { %3019 = vmatmul.mubr.bf16.vlgmr.msra.gmra.mrb[8].mxu0 %v4995_v21  ;;  %3101 = vmatmul.mubr.bf16.vlgmr.msra.gmra.mrb[8].mxu1 %v4995_v21 }
 0x183   :  { %3811 = vmatpush3.bf16.msra.mxu0 %v4471_v29  ;;  %3833 = vmatpush3.bf16.msra.mxu1 %v4472_v30 }
 0x184   :  { %3812 = vmatprep.subr.bf16.mxu0 %v4473_v31  ;;  %3834 = vmatprep.subr.bf16.mxu1 %v4474_v32 }
 0x185   :  { %3141 = vmatprep.mubr.bf16.mxu0 %v4735_v58  ;;  %3181 = vmatprep.mubr.bf16.mxu1 %v4804_v16  ;;  %v4482_v58 = vld [vmem:[%s5920_s1 + $0xb28] ss:$52 sps:$4 sm:$0xff]  }
 0x186   :  { %v4483_v16 = vld [vmem:[%s5920_s1 + $0x168] ss:$52 sps:$4 sm:$0xff]  }
 0x187   :  { %3813 = vmatpush3.bf16.msra.mxu0 %v4475_v33  ;;  %3835 = vmatpush3.bf16.msra.mxu1 %v4476_v34  ;;  %v3320_v34 = vrot.slane %v3312_v24, %v4717_v51 }
 0x188   :  { %3814 = vmatprep.subr.bf16.mxu0 %v4477_v35  ;;  %3836 = vmatprep.subr.bf16.mxu1 %v4478_v36 }
 0x18b   :  { %3815 = vmatpush3.bf16.msra.mxu0 %v4479_v37  ;;  %3837 = vmatpush3.bf16.msra.mxu1 %v4480_v39 }
 0x18c   :  { %3816 = vmatprep.subr.bf16.mxu0 %v4481_v40  ;;  %3838 = vmatprep.subr.bf16.mxu1 %v4482_v58 }
 0x18f   :  { %3817 = vmatpush3.bf16.msra.mxu0 %v4483_v16  ;;  %3839 = vmatpush3.bf16.msra.mxu1 %v4484_v41 }
 0x190   :  { %3818 = vmatprep.subr.bf16.mxu0 %v4485_v42  ;;  %3840 = vmatprep.subr.bf16.mxu1 %v4486_v43 }
 0x193   :  { %3819 = vmatpush3.bf16.msra.mxu0 %v4487_v44  ;;  %3841 = vmatpush3.bf16.msra.mxu1 %v4488_v46 }
 0x194   :  { %3820 = vmatprep.subr.bf16.mxu0 %v4489_v47  ;;  %3842 = vmatprep.subr.bf16.mxu1 %v4490_v48 }
 0x197   :  { %3821 = vmatpush3.bf16.msra.mxu0 %v4491_v49  ;;  %3843 = vmatpush3.bf16.msra.mxu1 %v4492_v50 }
 0x198   :  { %3822 = vmatprep.subr.bf16.mxu0 %v4493_v52  ;;  %3844 = vmatprep.subr.bf16.mxu1 %v4494_v53 }
 0x19b   :  { %3823 = vmatpush3.bf16.msra.mxu0 %v4495_v54  ;;  %3845 = vmatpush3.bf16.msra.mxu1 %v4496_v55 }
 0x19c   :  { %3824 = vmatprep.subr.bf16.mxu0 %v4497_v56  ;;  %3846 = vmatprep.subr.bf16.mxu1 %v4498_v57 }
 0x19f   :  { %3825 = vmatpush3.bf16.msra.mxu0 %v4499_v59  ;;  %3847 = vmatpush3.bf16.msra.mxu1 %v4500_v60 }
 0x1a2   :  { %3142 = vmatmul.mubr.bf16.vlgmr.msra.gmra.mrb[12].mxu0 %v4791_v12  ;;  %3182 = vmatmul.mubr.bf16.vlgmr.msra.gmra.mrb[12].mxu1 %v4995_v21 }
 0x1d5   :  { %v2856_v61 = vpop.f32.mrb[4].mxu0  ;;  %v2938_v62 = vpop.f32.mrb[4].mxu1 }
 0x1d6   :  { %v3858_v63 = vadd.f32 %v2856_v61, %v5650_v5  ;;  %v3860_v0 = vadd.f32 %v2938_v62, %v5650_v5  ;;  %v2858_v1 = vpop.f32.mrb[5].mxu0  ;;  %v2940_v2 = vpop.f32.mrb[5].mxu1 }
 0x1d7   :  { %v3859_v3 = vadd.f32 %v2858_v1, %v5650_v5  ;;  %v3861_v4 = vadd.f32 %v2940_v2, %v5650_v5  ;;  %v2860_v45 = vpop.f32.mrb[6].mxu0  ;;  %v2942_v6 = vpop.f32.mrb[6].mxu1 }
 0x1d8   :  { %v3801_v7 = vmul.f32 -1.442695, %v3858_v63  ;;  %v3803_v8 = vmul.f32 -1.442695, %v3860_v0  ;;  %v2861_v9 = vpop.f32.mrb[7].mxu0  ;;  %v2943_v12 = vpop.f32.mrb[7].mxu1 }
 0x1d9   :  { %v3802_v10 = vmul.f32 -1.442695, %v3859_v3  ;;  %v3804_v21 = vmul.f32 -1.442695, %v3861_v4 }
 0x1da   :  { %4517 = vpow2.f32 %v3801_v7 }
 0x1db   :  { %4519 = vpow2.f32 %v3803_v8 }
 0x1dc   :  { %4521 = vpow2.f32 %v3802_v10 }
 0x1dd   :  { %4523 = vpow2.f32 %v3804_v21 }
 0x1e4   :  { %v4518_v11 = vpop.eup %4517 }
 0x1e5   :  { %v4520_v13 = vpop.eup %4519  ;;  %v3232_v14 = vadd.f32 1.0, %v4518_v11 }
 0x1e6   :  { %v4522_v15 = vpop.eup %4521  ;;  %v3234_v19 = vadd.f32 1.0, %v4520_v13 }
 0x1e7   :  { %v4524_v20 = vpop.eup %4523  ;;  %4525 = vrcp.f32 %v3232_v14  ;;  %v3233_v22 = vadd.f32 1.0, %v4522_v15 }
 0x1e8   :  { %4527 = vrcp.f32 %v3234_v19  ;;  %v3235_v23 = vadd.f32 1.0, %v4524_v20 }
 0x1e9   :  { %4529 = vrcp.f32 %v3233_v22 }
 0x1ea   :  { %4531 = vrcp.f32 %v3235_v23 }
 0x1f1   :  { %v4526_v25 = vpop.eup %4525 }
 0x1f2   :  { %v4528_v26 = vpop.eup %4527 }
 0x1f3   :  { %v4530_v27 = vpop.eup %4529 }
 0x1f4   :  { %v4532_v28 = vpop.eup %4531  ;;  %v3282_v29 = vcombine.low %v4526_v25, %v4530_v27 }
 0x1f5   :  { %v3283_v30 = vcombine.low %v4528_v26, %v4532_v28 }
 0x1f6   :  { %v3304_v31 = vrot.slane %v3282_v29, %v4717_v51 }
 0x1f7   :  { %v3311_v32 = vrot.slane %v3283_v30, %v4717_v51 }
 0x1f9   :  { %v3313_v33 = vcombine.low %v3304_v31, %v3311_v32 }
 0x1fb   :  { %v3327_v35 = vrot.slane %v3313_v33, %v4717_v51 }
 0x1fd   :  { %v3328_v36 = vcombine.low %v3320_v34, %v3327_v35 }
 0x1ff   :  { %3370 = vst [vmem:[%s5923_s3] sm:$0xff] %v3328_v36 }
 0x255   :  { %v3020_v37 = vpop.f32.mrb[8].mxu0  ;;  %v3102_v39 = vpop.f32.mrb[8].mxu1 }
 0x256   :  { %v3862_v40 = vadd.f32 %v3020_v37, %v5650_v5  ;;  %v3864_v58 = vadd.f32 %v3102_v39, %v5650_v5  ;;  %v3022_v16 = vpop.f32.mrb[9].mxu0  ;;  %v3104_v41 = vpop.f32.mrb[9].mxu1 }
 0x257   :  { %v3863_v42 = vadd.f32 %v3022_v16, %v5650_v5  ;;  %v3865_v17 = vadd.f32 %v3104_v41, %v5650_v5  ;;  %v3024_v18 = vpop.f32.mrb[10].mxu0  ;;  %v3106_v24 = vpop.f32.mrb[10].mxu1 }
 0x258   :  { %v3805_v43 = vmul.f32 -1.442695, %v3862_v40  ;;  %v3807_v44 = vmul.f32 -1.442695, %v3864_v58  ;;  %v3025_v46 = vpop.f32.mrb[11].mxu0  ;;  %v3107_v47 = vpop.f32.mrb[11].mxu1 }
 0x259   :  { %v3806_v48 = vmul.f32 -1.442695, %v3863_v42  ;;  %v3808_v49 = vmul.f32 -1.442695, %v3865_v17 }
 0x25a   :  { %4533 = vpow2.f32 %v3805_v43 }
 0x25b   :  { %4535 = vpow2.f32 %v3807_v44 }
 0x25c   :  { %4537 = vpow2.f32 %v3806_v48 }
 0x25d   :  { %4539 = vpow2.f32 %v3808_v49 }
 0x264   :  { %v4534_v50 = vpop.eup %4533 }
 0x265   :  { %v4536_v52 = vpop.eup %4535  ;;  %v3236_v53 = vadd.f32 1.0, %v4534_v50 }
 0x266   :  { %v4538_v54 = vpop.eup %4537  ;;  %v3238_v55 = vadd.f32 1.0, %v4536_v52 }
 0x267   :  { %v4540_v56 = vpop.eup %4539  ;;  %4541 = vrcp.f32 %v3236_v53  ;;  %v3237_v57 = vadd.f32 1.0, %v4538_v54 }
 0x268   :  { %4543 = vrcp.f32 %v3238_v55  ;;  %v3239_v59 = vadd.f32 1.0, %v4540_v56 }
 0x269   :  { %4545 = vrcp.f32 %v3237_v57 }
 0x26a   :  { %4547 = vrcp.f32 %v3239_v59 }
 0x271   :  { %v4542_v60 = vpop.eup %4541 }
 0x272   :  { %v4544_v61 = vpop.eup %4543 }
 0x273   :  { %v4546_v62 = vpop.eup %4545 }
 0x274   :  { %v4548_v63 = vpop.eup %4547  ;;  %v3329_v0 = vcombine.low %v4542_v60, %v4546_v62 }
 0x275   :  { %v3330_v1 = vcombine.low %v4544_v61, %v4548_v63  ;;  %v3826_v2 = vpop.f32.mrb[12].mxu0  ;;  %v3848_v3 = vpop.f32.mrb[12].mxu1 }
 0x276   :  { %v3337_v4 = vrot.slane %v3329_v0, %v4717_v51  ;;  %v3827_v45 = vpop.f32.mrb[13].mxu0  ;;  %v3849_v6 = vpop.f32.mrb[13].mxu1 }
 0x277   :  { %v3344_v7 = vrot.slane %v3330_v1, %v4717_v51  ;;  %v3828_v8 = vadd.f32 %v3827_v45, %v3826_v2  ;;  %v3850_v9 = vadd.f32 %v3849_v6, %v3848_v3  ;;  %v3829_v12 = vpop.f32.mrb[14].mxu0  ;;  %v3851_v10 = vpop.f32.mrb[14].mxu1 }
 0x278   :  { %v3830_v21 = vpop.f32.mrb[15].mxu0  ;;  %v3852_v11 = vpop.f32.mrb[15].mxu1 }
 0x279   :  { %v3352_v13 = vcombine.low %v3337_v4, %v3344_v7  ;;  %v3144_v14 = vadd.f32 %v3828_v8, %v5650_v5 }
 0x27b   :  { %v3184_v15 = vadd.f32 %v3850_v9, %v3144_v14  ;;  %v3359_v26 = vrot.slane %v3352_v13, %v4717_v51 }
 0x27d   :  { %v3809_v19 = vmul.f32 -1.442695, %v3184_v15 }
 0x27f   :  { %4549 = vpow2.f32 %v3809_v19 }
 0x289   :  { %v4550_v20 = vpop.eup %4549 }
 0x28a   :  { %v3240_v22 = vadd.f32 1.0, %v4550_v20 }
 0x28c   :  { %4551 = vrcp.f32 %v3240_v22 }
 0x296   :  { %v4552_v23 = vpop.eup %4551 }
 0x297   :  { %v3351_v25 = vrot.slane %v4552_v23, %v4717_v51 }
 0x299   :  { %v3366_v27 = vrot.slane %v3351_v25, %v4717_v51 }
 0x29b   :  { %v3367_v28 = vcombine.low %v3359_v26, %v3366_v27 }
 0x29d   :  { %3375 = vst.msk [vmem:[%s5923_s3 + $0x8] sm:$0x1f] %vm3373_vm0, %v3367_v28 }

</bundles_post_ra>
